<compile_context>
chip_gen: v7x
topology: tpu7x:2x2x1
jax: 0.10.0
libtpu: 0.0.40
codegen_flags: <defaults>
</compile_context>

<pallas_src>
import functools

import jax
import jax.numpy as jnp
import numpy as np
from jax.experimental import pallas as pl
from jax.experimental.pallas import tpu as pltpu

# ----------------------------- config ---------------------------------------
STAGES_REPEATS = [2, 2, 2]
STAGES_OUT = [16, 32, 64, 128, 128]
NUM_CLASSES = 10
_BN_EPS = 1e-5

# 3x3 stride-2 window: tap index kh (or kw) -> (parity of source row, row delta)
_PAR = (0, 1, 0)
_DEL = (0, 0, 1)


# ----------------------------- Pallas kernels --------------------------------
def _stem_kernel(xp_ref, mask_ref, w_ref, b_ref, o_ref, *, wq, lout, n_img):
    """conv1 (im2col matmul, BN+ReLU folded) fused with 3x3/s2 maxpool.

    xp_ref  : (N, 4, Lq, 27) parity planes of the conv1 im2col patches (zeros at pads)
    mask_ref: (4, Lq, 1)     1.0 where the plane position is a real conv1 output
    o_ref   : (N, Lout, C)   maxpool output in q-space (row q = h*wq + w)
    """
    w = w_ref[...]
    b = b_ref[...]
    for n in range(n_img):
        ys = []
        for p in range(4):
            c = jnp.dot(xp_ref[n, p], w, preferred_element_type=jnp.float32) + b
            ys.append(jnp.maximum(c, 0.0) * mask_ref[p])
        m = None
        for kh in range(3):
            for kw in range(3):
                p = _PAR[kh] * 2 + _PAR[kw]
                off = _DEL[kh] * wq + _DEL[kw]
                tap = ys[p][off:off + lout, :]
                m = tap if m is None else jnp.maximum(m, tap)
        o_ref[n] = m


def _block_s2_kernel(xp_ref, mask_ref,
                     w21_ref, b21_ref, dw2w_ref, dw2b_ref, w22_ref, b22_ref,
                     dw1w_ref, dw1b_ref, w1b_ref, b1b_ref,
                     o_ref, *, wq, lout, n_img):
    """Fused stride-2 InvertedResidual (branch1 + branch2 + concat + shuffle)."""
    w21 = w21_ref[...]; b21 = b21_ref[...]
    w22 = w22_ref[...]; b22 = b22_ref[...]   # odd-lane scattered (branch2 -> odd)
    w1b = w1b_ref[...]; b1b = b1b_ref[...]   # even-lane scattered (branch1 -> even)
    dw1w = dw1w_ref[...]; dw1b = dw1b_ref[...]
    dw2w = dw2w_ref[...]; dw2b = dw2b_ref[...]
    for n in range(n_img):
        xs = [xp_ref[n, p] for p in range(4)]
        # branch2 pw1 (+BN+ReLU) on every plane position; re-zero the pad positions
        # so the following depthwise sees true zero padding.
        ys = [jnp.maximum(jnp.dot(xs[p], w21, preferred_element_type=jnp.float32)
                          + b21, 0.0) * mask_ref[p]
              for p in range(4)]
        acc1 = None
        acc2 = None
        for kh in range(3):
            for kw in range(3):
                k = kh * 3 + kw
                p = _PAR[kh] * 2 + _PAR[kw]
                off = _DEL[kh] * wq + _DEL[kw]
                t1 = xs[p][off:off + lout, :] * dw1w[k]
                t2 = ys[p][off:off + lout, :] * dw2w[k]
                acc1 = t1 if acc1 is None else acc1 + t1
                acc2 = t2 if acc2 is None else acc2 + t2
        acc1 = acc1 + dw1b
        acc2 = acc2 + dw2b
        z1 = jnp.maximum(jnp.dot(acc1, w1b, preferred_element_type=jnp.float32) + b1b, 0.0)
        z2 = jnp.maximum(jnp.dot(acc2, w22, preferred_element_type=jnp.float32) + b22, 0.0)
        o_ref[n] = z1 + z2        # even lanes = branch1, odd = branch2 -> shuffled


def _block_s1_kernel(x1_ref, x2_ref, mask_ref,
                     w1_ref, b1_ref, dww_ref, dwb_ref, w2_ref, b2_ref, pe_ref,
                     o_ref, *, wp, lout, n_img):
    """Fused stride-1 InvertedResidual (split + branch2 + concat + shuffle)."""
    mask = mask_ref[...]
    w1 = w1_ref[...]; b1 = b1_ref[...]
    w2 = w2_ref[...]; b2 = b2_ref[...]       # odd-lane scattered (branch2 -> odd)
    pe = pe_ref[...]                         # even-lane scatter identity for x1
    dww = dww_ref[...]; dwb = dwb_ref[...]
    for n in range(n_img):
        x2 = x2_ref[n]
        y = jnp.maximum(jnp.dot(x2, w1, preferred_element_type=jnp.float32) + b1, 0.0)
        y = y * mask                          # re-zero pad positions for the dw conv
        acc = None
        for kh in range(3):
            for kw in range(3):
                off = kh * wp + kw
                t = y[off:off + lout, :] * dww[kh * 3 + kw]
                acc = t if acc is None else acc + t
        acc = acc + dwb
        z = jnp.maximum(jnp.dot(acc, w2, preferred_element_type=jnp.float32) + b2, 0.0)
        x1 = x1_ref[n]
        x1v = x1[wp + 1:wp + 1 + lout, :]     # center-tap alignment of the passthrough
        o_ref[n] = jnp.dot(x1v, pe, preferred_element_type=jnp.float32) + z


def _head_kernel(x_ref, w5_ref, b5_ref, wfc_ref, bfc_ref, o_ref, *, n_img):
    """conv5 1x1 (+BN+ReLU) + global spatial mean + final Linear."""
    w5 = w5_ref[...]; b5 = b5_ref[...]
    wfc = wfc_ref[...]; bfc = bfc_ref[...]
    for n in range(n_img):
        h = jnp.maximum(jnp.dot(x_ref[n], w5, preferred_element_type=jnp.float32) + b5, 0.0)
        m = jnp.mean(h, axis=0, keepdims=True)
        o_ref[pl.ds(n, 1), :] = jnp.dot(m, wfc, preferred_element_type=jnp.float32) + bfc


# ----------------------------- pallas_call glue -------------------------------
def _full_spec(shape):
    nd = len(shape)
    return pl.BlockSpec(tuple(shape), lambda i, _nd=nd: (0,) * _nd)


def _call_whole(kernel, out_shape, *inputs):
    return pl.pallas_call(
        kernel,
        out_shape=jax.ShapeDtypeStruct(tuple(out_shape), jnp.float32),
        grid=(1,),
        in_specs=[_full_spec(a.shape) for a in inputs],
        out_specs=_full_spec(out_shape),
        compiler_params=pltpu.CompilerParams(dimension_semantics=("arbitrary",)),
    )(*inputs)


# ----------------------------- layout helpers (wrapper-side, tiny) ------------
def _padded_flat(x):
    """(N,H,W,C) -> zero-padded row-major slab for 3x3/s1 windows.

    Pixel (h,w) lives at row (h+1)*(W+2)+(w+1); tap (kh,kw) of output (h,w) is at
    row offset kh*(W+2)+kw from q = h*(W+2)+w.  Extra tail rows keep slices in range.
    """
    n, h, w, c = x.shape
    wp = w + 2
    xp = jnp.pad(x, ((0, 0), (1, 2), (1, 1), (0, 0)))
    xf = xp.reshape(n, (h + 3) * wp, c)
    rows = np.arange(h + 3)
    cols = np.arange(wp)
    m = ((rows >= 1) & (rows <= h))[:, None] & ((cols >= 1) & (cols <= w))[None, :]
    mask = jnp.asarray(m.reshape((h + 3) * wp, 1), dtype=jnp.float32)
    return xf, mask, wp


def _parity_planes(x):
    """(N,Hi,Wi,C) -> the 4 (row,col)-parity planes of the zero-padded grid, flattened.

    planes[n, 2a+b, i*(Wo+1)+j] = x_padded[2i+a-1, 2j+b-1]; tap (kh,kw) of output
    (h,w) is planes[plane(kh,kw)][(h+dh)*(Wo+1) + (w+dw)] with (a,dh)=_PAR/_DEL[kh].
    """
    n, hi, wi, c = x.shape
    ho, wo = hi // 2, wi // 2
    wq = wo + 1
    lq = (ho + 2) * wq
    xp = jnp.pad(x, ((0, 0), (1, 1), (1, 1), (0, 0)))
    planes, masks = [], []
    ii = np.arange(ho + 2)
    jj = np.arange(wq)
    for a in (0, 1):
        for b in (0, 1):
            p = xp[:, a:a + 2 * ho + 1:2, b:b + 2 * wo + 1:2, :]      # (N, Ho+1, Wq, C)
            p = jnp.pad(p, ((0, 0), (0, 1), (0, 0), (0, 0)))          # zero tail row
            planes.append(p.reshape(n, lq, c))
            r = 2 * ii + a - 1
            s = 2 * jj + b - 1
            m = ((r >= 0) & (r < hi))[:, None] & ((s >= 0) & (s < wi))[None, :]
            masks.append(m.reshape(lq, 1))
    planes = jnp.stack(planes, axis=1)
    mask = jnp.asarray(np.stack(masks, 0), dtype=jnp.float32)
    return planes, mask, wq, ho * wq


def _from_q(y, ho, wrow, wo):
    """(N, ho*wrow, C) q-space slab -> (N, ho, wo, C) NHWC tensor."""
    n, _, c = y.shape
    return y.reshape(n, ho, wrow, c)[:, :, :wo, :]


# ----------------------------- layer wrappers ---------------------------------
def stem(x, p):
    n, h, w, _ = x.shape
    hc, wc = h // 2, w // 2                          # conv1 output grid
    xp = jnp.pad(x, ((0, 0), (1, 1), (1, 1), (0, 0)))
    cols = []
    for kh in range(3):
        for kw in range(3):
            cols.append(xp[:, kh:kh + 2 * hc - 1:2, kw:kw + 2 * wc - 1:2, :])
    patches = jnp.concatenate(cols, axis=-1)         # (N, hc, wc, 27) im2col
    planes, mask, wq, lout = _parity_planes(patches)
    cout = p["w"].shape[1]
    out = _call_whole(functools.partial(_stem_kernel, wq=wq, lout=lout, n_img=n),
                      (n, lout, cout), planes, mask, p["w"], p["b"])
    return _from_q(out, hc // 2, wq, wc // 2)


def inverted_residual_s2(x, p):
    n, hi, wi, _ = x.shape
    planes, mask, wq, lout = _parity_planes(x)
    cout = p["w1b"].shape[1]
    out = _call_whole(
        functools.partial(_block_s2_kernel, wq=wq, lout=lout, n_img=n),
        (n, lout, cout),
        planes, mask,
        p["w21"], p["b21"], p["dw2w"], p["dw2b"], p["w22"], p["b22"],
        p["dw1w"], p["dw1b"], p["w1b"], p["b1b"])
    return _from_q(out, hi // 2, wq, wi // 2)


def inverted_residual_s1(x, p):
    n, h, w, c = x.shape
    bf = c // 2
    xf, mask, wp = _padded_flat(x)
    x1f = xf[..., :bf]          # passthrough half (torch.chunk(2, dim=1)[0])
    x2f = xf[..., bf:]
    lout = h * wp
    out = _call_whole(
        functools.partial(_block_s1_kernel, wp=wp, lout=lout, n_img=n),
        (n, lout, c),
        x1f, x2f, mask,
        p["w1"], p["b1"], p["dww"], p["dwb"], p["w2"], p["b2"], p["pe"])
    return _from_q(out, h, wp, w)


def head(x, p):
    n, h, w, c = x.shape
    xr = x.reshape(n, h * w, c)
    ncls = p["wfc"].shape[1]
    return _call_whole(functools.partial(_head_kernel, n_img=n),
                       (n, ncls), xr, p["w5"], p["b5"], p["wfc"], p["bfc"])


@jax.jit
def shufflenet_forward(prep, x_nchw):
    x = jnp.transpose(x_nchw, (0, 2, 3, 1))          # NCHW -> NHWC
    x = stem(x, prep["stem"])
    for st in prep["stages"]:
        x = inverted_residual_s2(x, st["down"])
        for bp in st["rest"]:
            x = inverted_residual_s1(x, bp)
    return head(x, prep["head"])


# ----------------------------- parameters -------------------------------------
def init_params(key):
    """Raw parameters mirroring the PyTorch module (convs + BatchNorm params)."""
    keys = iter(jax.random.split(key, 128))

    def conv_w(shape, fan_out):
        return jax.random.normal(next(keys), shape, jnp.float32) * jnp.sqrt(2.0 / fan_out)

    def bn(c):
        return dict(gamma=jnp.ones((c,), jnp.float32), beta=jnp.zeros((c,), jnp.float32),
                    mean=jnp.zeros((c,), jnp.float32), var=jnp.ones((c,), jnp.float32))

    params = {}
    c0 = STAGES_OUT[0]
    params["conv1"] = dict(w=conv_w((3, 3, 3, c0), c0 * 9), bn=bn(c0))
    inp = c0
    stages = []
    for rep, oup in zip(STAGES_REPEATS, STAGES_OUT[1:4]):
        bf = oup // 2
        blocks = [dict(
            branch1=dict(dw_w=conv_w((3, 3, inp), inp * 9), bn1=bn(inp),
                         pw_w=conv_w((inp, bf), bf), bn2=bn(bf)),
            branch2=dict(pw1_w=conv_w((inp, bf), bf), bn1=bn(bf),
                         dw_w=conv_w((3, 3, bf), bf * 9), bn2=bn(bf),
                         pw2_w=conv_w((bf, bf), bf), bn3=bn(bf)))]
        for _ in range(rep - 1):
            blocks.append(dict(
                branch2=dict(pw1_w=conv_w((bf, bf), bf), bn1=bn(bf),
                             dw_w=conv_w((3, 3, bf), bf * 9), bn2=bn(bf),
                             pw2_w=conv_w((bf, bf), bf), bn3=bn(bf))))
        stages.append(blocks)
        inp = oup
    params["stages"] = stages
    c5 = STAGES_OUT[-1]
    params["conv5"] = dict(w=conv_w((inp, c5), c5), bn=bn(c5))
    params["fc"] = dict(
        w=jax.random.normal(next(keys), (c5, NUM_CLASSES), jnp.float32) * 0.01,
        b=jnp.zeros((NUM_CLASSES,), jnp.float32))
    return params


def _fold_bn(bnp):
    scale = bnp["gamma"] / jnp.sqrt(bnp["var"] + _BN_EPS)
    return scale, bnp["beta"] - bnp["mean"] * scale


def _scatter_cols(w, parity):
    """(K, bf) -> (K, 2*bf), column j placed at column 2*j+parity (rest zero)."""
    k, bf = w.shape
    return jnp.zeros((k, 2 * bf), w.dtype).at[:, parity::2].set(w)


def _scatter_bias(b, parity):
    bf = b.shape[0]
    return jnp.zeros((2 * bf,), b.dtype).at[parity::2].set(b).reshape(1, -1)


def prepare_params(params):
    """Fold BN into weights; fold concat + channel_shuffle(2) into the final 1x1 of
    each branch via even/odd lane scattering of its weight columns."""
    prep = {}
    s, b = _fold_bn(params["conv1"]["bn"])
    prep["stem"] = dict(w=(params["conv1"]["w"] * s).reshape(27, -1), b=b.reshape(1, -1))

    stages = []
    for blocks in params["stages"]:
        st = {}
        b1p, b2p = blocks[0]["branch1"], blocks[0]["branch2"]
        s, bb = _fold_bn(b1p["bn1"])
        dw1w, dw1b = (b1p["dw_w"] * s).reshape(9, 1, -1), bb.reshape(1, -1)
        s, bb = _fold_bn(b1p["bn2"])
        w1b, b1b = _scatter_cols(b1p["pw_w"] * s[None, :], 0), _scatter_bias(bb, 0)
        s, bb = _fold_bn(b2p["bn1"])
        w21, b21 = b2p["pw1_w"] * s[None, :], bb.reshape(1, -1)
        s, bb = _fold_bn(b2p["bn2"])
        dw2w, dw2b = (b2p["dw_w"] * s).reshape(9, 1, -1), bb.reshape(1, -1)
        s, bb = _fold_bn(b2p["bn3"])
        w22, b22 = _scatter_cols(b2p["pw2_w"] * s[None, :], 1), _scatter_bias(bb, 1)
        st["down"] = dict(w21=w21, b21=b21, dw2w=dw2w, dw2b=dw2b, w22=w22, b22=b22,
                          dw1w=dw1w, dw1b=dw1b, w1b=w1b, b1b=b1b)
        rest = []
        for blk in blocks[1:]:
            b2p = blk["branch2"]
            s, bb = _fold_bn(b2p["bn1"])
            w1, b1 = b2p["pw1_w"] * s[None, :], bb.reshape(1, -1)
            s, bb = _fold_bn(b2p["bn2"])
            dww, dwb = (b2p["dw_w"] * s).reshape(9, 1, -1), bb.reshape(1, -1)
            s, bb = _fold_bn(b2p["bn3"])
            w2, b2 = _scatter_cols(b2p["pw2_w"] * s[None, :], 1), _scatter_bias(bb, 1)
            bf = b2p["pw1_w"].shape[1]
            pe = _scatter_cols(jnp.eye(bf, dtype=jnp.float32), 0)
            rest.append(dict(w1=w1, b1=b1, dww=dww, dwb=dwb, w2=w2, b2=b2, pe=pe))
        st["rest"] = rest
        stages.append(st)
    prep["stages"] = stages

    s, b = _fold_bn(params["conv5"]["bn"])
    prep["head"] = dict(w5=params["conv5"]["w"] * s[None, :], b5=b.reshape(1, -1),
                        wfc=params["fc"]["w"], bfc=params["fc"]["b"].reshape(1, -1))
    return prep


# ----------------------------- pure-XLA reference (correctness check) ---------
def _ref_pw(x, w, s, b):
    y = jnp.einsum("nhwc,cd->nhwd", x, w, precision=jax.lax.Precision.HIGHEST) * s + b
    return jnp.maximum(y, 0.0)


def _ref_dw(x, w, s, b, stride):
    c = x.shape[-1]
    y = jax.lax.conv_general_dilated(
        x, w.reshape(3, 3, 1, c), (stride, stride), ((1, 1), (1, 1)),
        dimension_numbers=("NHWC", "HWIO", "NHWC"), feature_group_count=c,
        precision=jax.lax.Precision.HIGHEST)
    return y * s + b


def _ref_shuffle(x):
    n, h, w, c = x.shape
    return x.reshape(n, h, w, 2, c // 2).transpose(0, 1, 2, 4, 3).reshape(n, h, w, c)


@jax.jit
def reference_forward(params, x_nchw):
    x = jnp.transpose(x_nchw, (0, 2, 3, 1))
    p = params["conv1"]
    s, b = _fold_bn(p["bn"])
    x = jax.lax.conv_general_dilated(
        x, p["w"], (2, 2), ((1, 1), (1, 1)),
        dimension_numbers=("NHWC", "HWIO", "NHWC"),
        precision=jax.lax.Precision.HIGHEST)
    x = jnp.maximum(x * s + b, 0.0)
    x = jax.lax.reduce_window(x, -jnp.inf, jax.lax.max,
                              (1, 3, 3, 1), (1, 2, 2, 1),
                              ((0, 0), (1, 1), (1, 1), (0, 0)))
    for blocks in params["stages"]:
        for i, blk in enumerate(blocks):
            stride = 2 if i == 0 else 1
            if stride == 1:
                c = x.shape[-1]
                x1, x2 = x[..., :c // 2], x[..., c // 2:]
            else:
                x1 = x2 = x
            bp = blk["branch2"]
            s, b = _fold_bn(bp["bn1"]); y = _ref_pw(x2, bp["pw1_w"], s, b)
            s, b = _fold_bn(bp["bn2"]); y = _ref_dw(y, bp["dw_w"], s, b, stride)
            s, b = _fold_bn(bp["bn3"]); y = _ref_pw(y, bp["pw2_w"], s, b)
            if stride == 2:
                bp = blk["branch1"]
                s, b = _fold_bn(bp["bn1"]); z = _ref_dw(x1, bp["dw_w"], s, b, 2)
                s, b = _fold_bn(bp["bn2"]); x1 = _ref_pw(z, bp["pw_w"], s, b)
            x = _ref_shuffle(jnp.concatenate([x1, y], axis=-1))
    p = params["conv5"]
    s, b = _fold_bn(p["bn"])
    x = _ref_pw(x, p["w"], s, b)
    x = x.mean(axis=(1, 2))
    return jnp.dot(x, params["fc"]["w"],
                   precision=jax.lax.Precision.HIGHEST) + params["fc"]["b"][None, :]


# ----------------------------- main --------------------------------------------
if __name__ == "__main__":
    key = jax.random.PRNGKey(0)
    pkey, xkey = jax.random.split(key)
    params = init_params(pkey)
    prep = prepare_params(params)
    # NCHW input, same convention as the PyTorch module.
    x = jax.random.normal(xkey, (2, 3, 32, 32), jnp.float32)

    out = jax.block_until_ready(shufflenet_forward(prep, x))
    assert out.shape == (2, NUM_CLASSES), out.shape
    assert bool(jnp.all(jnp.isfinite(out)))

    ref = jax.block_until_ready(reference_forward(params, x))
    err = float(jnp.max(jnp.abs(out - ref)))
    assert err < 2e-3, f"Pallas forward mismatches XLA reference (max abs err {err})"
    print("KERNEL_OK")
</pallas_src>

<mosaic_0001>
module attributes {stable_mosaic.version = 11 : i64} {
  func.func @_stem_kernel(%arg0: i32, %arg1: memref<2x4x90x27xf32, #tpu.memory_space<vmem>>, %arg2: memref<4x90x1xf32, #tpu.memory_space<vmem>>, %arg3: memref<27x16xf32, #tpu.memory_space<vmem>>, %arg4: memref<1x16xf32, #tpu.memory_space<vmem>>, %arg5: memref<2x72x16xf32, #tpu.memory_space<vmem>>) attributes {dimension_semantics = [#tpu.dimension_semantics<arbitrary>], iteration_bounds = array<i64: 1>, scalar_prefetch = 0 : i64, scratch_operands = 0 : i64, tpu.core_type = #tpu.core_type<tc>, window_params = [{pipeline_mode = #tpu.pipeline_mode<synchronous>, transform_indices = @transform_0, window_bounds = array<i64: 2, 4, 90, 27>}, {pipeline_mode = #tpu.pipeline_mode<synchronous>, transform_indices = @transform_1, window_bounds = array<i64: 4, 90, 1>}, {pipeline_mode = #tpu.pipeline_mode<synchronous>, transform_indices = @transform_2, window_bounds = array<i64: 27, 16>}, {pipeline_mode = #tpu.pipeline_mode<synchronous>, transform_indices = @transform_3, window_bounds = array<i64: 1, 16>}, {pipeline_mode = #tpu.pipeline_mode<synchronous>, transform_indices = @transform_4, window_bounds = array<i64: 2, 72, 16>}]} {
    %c0 = arith.constant 0 : index
    %c0_0 = arith.constant 0 : index
    %0 = vector.load %arg3[%c0, %c0_0] : memref<27x16xf32, #tpu.memory_space<vmem>>, vector<27x16xf32>
    %c0_1 = arith.constant 0 : index
    %c0_2 = arith.constant 0 : index
    %1 = vector.load %arg4[%c0_1, %c0_2] : memref<1x16xf32, #tpu.memory_space<vmem>>, vector<1x16xf32>
    %c0_3 = arith.constant 0 : index
    %c0_4 = arith.constant 0 : index
    %c0_5 = arith.constant 0 : index
    %c0_6 = arith.constant 0 : index
    %2 = vector.load %arg1[%c0_3, %c0_4, %c0_5, %c0_6] : memref<2x4x90x27xf32, #tpu.memory_space<vmem>>, vector<1x1x90x27xf32>
    %3 = vector.shape_cast %2 : vector<1x1x90x27xf32> to vector<90x27xf32>
    %cst = arith.constant dense<0.000000e+00> : vector<90x16xf32>
    %4 = tpu.matmul %3, %0, %cst {dimension_numbers = #tpu.dot_dimension_numbers<[1], [0], [0], [1], [0, 0, 1, 1], [], []>} : vector<90x27xf32>, vector<27x16xf32>, vector<90x16xf32> -> vector<90x16xf32>
    %5 = vector.broadcast %1 : vector<1x16xf32> to vector<90x16xf32>
    %6 = arith.addf %4, %5 : vector<90x16xf32>
    %cst_7 = arith.constant 0.000000e+00 : f32
    %7 = vector.broadcast %cst_7 : f32 to vector<90x16xf32>
    %8 = arith.maximumf %6, %7 : vector<90x16xf32>
    %c0_8 = arith.constant 0 : index
    %c0_9 = arith.constant 0 : index
    %c0_10 = arith.constant 0 : index
    %9 = vector.load %arg2[%c0_8, %c0_9, %c0_10] : memref<4x90x1xf32, #tpu.memory_space<vmem>>, vector<1x90x1xf32>
    %10 = vector.shape_cast %9 : vector<1x90x1xf32> to vector<90x1xf32>
    %11 = vector.broadcast %10 : vector<90x1xf32> to vector<90x16xf32>
    %12 = arith.mulf %8, %11 : vector<90x16xf32>
    %c0_11 = arith.constant 0 : index
    %c1 = arith.constant 1 : index
    %c0_12 = arith.constant 0 : index
    %c0_13 = arith.constant 0 : index
    %13 = vector.load %arg1[%c0_11, %c1, %c0_12, %c0_13] : memref<2x4x90x27xf32, #tpu.memory_space<vmem>>, vector<1x1x90x27xf32>
    %14 = vector.shape_cast %13 : vector<1x1x90x27xf32> to vector<90x27xf32>
    %cst_14 = arith.constant dense<0.000000e+00> : vector<90x16xf32>
    %15 = tpu.matmul %14, %0, %cst_14 {dimension_numbers = #tpu.dot_dimension_numbers<[1], [0], [0], [1], [0, 0, 1, 1], [], []>} : vector<90x27xf32>, vector<27x16xf32>, vector<90x16xf32> -> vector<90x16xf32>
    %16 = vector.broadcast %1 : vector<1x16xf32> to vector<90x16xf32>
    %17 = arith.addf %15, %16 : vector<90x16xf32>
    %cst_15 = arith.constant 0.000000e+00 : f32
    %18 = vector.broadcast %cst_15 : f32 to vector<90x16xf32>
    %19 = arith.maximumf %17, %18 : vector<90x16xf32>
    %c1_16 = arith.constant 1 : index
    %c0_17 = arith.constant 0 : index
    %c0_18 = arith.constant 0 : index
    %20 = vector.load %arg2[%c1_16, %c0_17, %c0_18] : memref<4x90x1xf32, #tpu.memory_space<vmem>>, vector<1x90x1xf32>
    %21 = vector.shape_cast %20 : vector<1x90x1xf32> to vector<90x1xf32>
    %22 = vector.broadcast %21 : vector<90x1xf32> to vector<90x16xf32>
    %23 = arith.mulf %19, %22 : vector<90x16xf32>
    %c0_19 = arith.constant 0 : index
    %c2 = arith.constant 2 : index
    %c0_20 = arith.constant 0 : index
    %c0_21 = arith.constant 0 : index
    %24 = vector.load %arg1[%c0_19, %c2, %c0_20, %c0_21] : memref<2x4x90x27xf32, #tpu.memory_space<vmem>>, vector<1x1x90x27xf32>
    %25 = vector.shape_cast %24 : vector<1x1x90x27xf32> to vector<90x27xf32>
    %cst_22 = arith.constant dense<0.000000e+00> : vector<90x16xf32>
    %26 = tpu.matmul %25, %0, %cst_22 {dimension_numbers = #tpu.dot_dimension_numbers<[1], [0], [0], [1], [0, 0, 1, 1], [], []>} : vector<90x27xf32>, vector<27x16xf32>, vector<90x16xf32> -> vector<90x16xf32>
    %27 = vector.broadcast %1 : vector<1x16xf32> to vector<90x16xf32>
    %28 = arith.addf %26, %27 : vector<90x16xf32>
    %cst_23 = arith.constant 0.000000e+00 : f32
    %29 = vector.broadcast %cst_23 : f32 to vector<90x16xf32>
    %30 = arith.maximumf %28, %29 : vector<90x16xf32>
    %c2_24 = arith.constant 2 : index
    %c0_25 = arith.constant 0 : index
    %c0_26 = arith.constant 0 : index
    %31 = vector.load %arg2[%c2_24, %c0_25, %c0_26] : memref<4x90x1xf32, #tpu.memory_space<vmem>>, vector<1x90x1xf32>
    %32 = vector.shape_cast %31 : vector<1x90x1xf32> to vector<90x1xf32>
    %33 = vector.broadcast %32 : vector<90x1xf32> to vector<90x16xf32>
    %34 = arith.mulf %30, %33 : vector<90x16xf32>
    %c0_27 = arith.constant 0 : index
    %c3 = arith.constant 3 : index
    %c0_28 = arith.constant 0 : index
    %c0_29 = arith.constant 0 : index
    %35 = vector.load %arg1[%c0_27, %c3, %c0_28, %c0_29] : memref<2x4x90x27xf32, #tpu.memory_space<vmem>>, vector<1x1x90x27xf32>
    %36 = vector.shape_cast %35 : vector<1x1x90x27xf32> to vector<90x27xf32>
    %cst_30 = arith.constant dense<0.000000e+00> : vector<90x16xf32>
    %37 = tpu.matmul %36, %0, %cst_30 {dimension_numbers = #tpu.dot_dimension_numbers<[1], [0], [0], [1], [0, 0, 1, 1], [], []>} : vector<90x27xf32>, vector<27x16xf32>, vector<90x16xf32> -> vector<90x16xf32>
    %38 = vector.broadcast %1 : vector<1x16xf32> to vector<90x16xf32>
    %39 = arith.addf %37, %38 : vector<90x16xf32>
    %cst_31 = arith.constant 0.000000e+00 : f32
    %40 = vector.broadcast %cst_31 : f32 to vector<90x16xf32>
    %41 = arith.maximumf %39, %40 : vector<90x16xf32>
    %c3_32 = arith.constant 3 : index
    %c0_33 = arith.constant 0 : index
    %c0_34 = arith.constant 0 : index
    %42 = vector.load %arg2[%c3_32, %c0_33, %c0_34] : memref<4x90x1xf32, #tpu.memory_space<vmem>>, vector<1x90x1xf32>
    %43 = vector.shape_cast %42 : vector<1x90x1xf32> to vector<90x1xf32>
    %44 = vector.broadcast %43 : vector<90x1xf32> to vector<90x16xf32>
    %45 = arith.mulf %41, %44 : vector<90x16xf32>
    %46 = vector.extract_strided_slice %12 {offsets = [0, 0], sizes = [72, 16], strides = [1, 1]} : vector<90x16xf32> to vector<72x16xf32>
    %47 = vector.extract_strided_slice %23 {offsets = [0, 0], sizes = [72, 16], strides = [1, 1]} : vector<90x16xf32> to vector<72x16xf32>
    %48 = arith.maximumf %46, %47 : vector<72x16xf32>
    %49 = vector.extract_strided_slice %12 {offsets = [1, 0], sizes = [72, 16], strides = [1, 1]} : vector<90x16xf32> to vector<72x16xf32>
    %50 = arith.maximumf %48, %49 : vector<72x16xf32>
    %51 = vector.extract_strided_slice %34 {offsets = [0, 0], sizes = [72, 16], strides = [1, 1]} : vector<90x16xf32> to vector<72x16xf32>
    %52 = arith.maximumf %50, %51 : vector<72x16xf32>
    %53 = vector.extract_strided_slice %45 {offsets = [0, 0], sizes = [72, 16], strides = [1, 1]} : vector<90x16xf32> to vector<72x16xf32>
    %54 = arith.maximumf %52, %53 : vector<72x16xf32>
    %55 = vector.extract_strided_slice %34 {offsets = [1, 0], sizes = [72, 16], strides = [1, 1]} : vector<90x16xf32> to vector<72x16xf32>
    %56 = arith.maximumf %54, %55 : vector<72x16xf32>
    %57 = vector.extract_strided_slice %12 {offsets = [9, 0], sizes = [72, 16], strides = [1, 1]} : vector<90x16xf32> to vector<72x16xf32>
    %58 = arith.maximumf %56, %57 : vector<72x16xf32>
    %59 = vector.extract_strided_slice %23 {offsets = [9, 0], sizes = [72, 16], strides = [1, 1]} : vector<90x16xf32> to vector<72x16xf32>
    %60 = arith.maximumf %58, %59 : vector<72x16xf32>
    %61 = vector.extract_strided_slice %12 {offsets = [10, 0], sizes = [72, 16], strides = [1, 1]} : vector<90x16xf32> to vector<72x16xf32>
    %62 = arith.maximumf %60, %61 : vector<72x16xf32>
    %c0_35 = arith.constant 0 : index
    %c0_36 = arith.constant 0 : index
    %c0_37 = arith.constant 0 : index
    %63 = vector.load %arg5[%c0_35, %c0_36, %c0_37] : memref<2x72x16xf32, #tpu.memory_space<vmem>>, vector<1x72x16xf32>
    %64 = vector.shape_cast %63 : vector<1x72x16xf32> to vector<72x16xf32>
    %65 = vector.shape_cast %62 : vector<72x16xf32> to vector<1x72x16xf32>
    tpu.vector_store %arg5[%c0_35, %c0_36, %c0_37], %65 {strides = array<i32>} : memref<2x72x16xf32, #tpu.memory_space<vmem>>, vector<1x72x16xf32>,
    %c1_38 = arith.constant 1 : index
    %c0_39 = arith.constant 0 : index
    %c0_40 = arith.constant 0 : index
    %c0_41 = arith.constant 0 : index
    %66 = vector.load %arg1[%c1_38, %c0_39, %c0_40, %c0_41] : memref<2x4x90x27xf32, #tpu.memory_space<vmem>>, vector<1x1x90x27xf32>
    %67 = vector.shape_cast %66 : vector<1x1x90x27xf32> to vector<90x27xf32>
    %cst_42 = arith.constant dense<0.000000e+00> : vector<90x16xf32>
    %68 = tpu.matmul %67, %0, %cst_42 {dimension_numbers = #tpu.dot_dimension_numbers<[1], [0], [0], [1], [0, 0, 1, 1], [], []>} : vector<90x27xf32>, vector<27x16xf32>, vector<90x16xf32> -> vector<90x16xf32>
    %69 = vector.broadcast %1 : vector<1x16xf32> to vector<90x16xf32>
    %70 = arith.addf %68, %69 : vector<90x16xf32>
    %cst_43 = arith.constant 0.000000e+00 : f32
    %71 = vector.broadcast %cst_43 : f32 to vector<90x16xf32>
    %72 = arith.maximumf %70, %71 : vector<90x16xf32>
    %c0_44 = arith.constant 0 : index
    %c0_45 = arith.constant 0 : index
    %c0_46 = arith.constant 0 : index
    %73 = vector.load %arg2[%c0_44, %c0_45, %c0_46] : memref<4x90x1xf32, #tpu.memory_space<vmem>>, vector<1x90x1xf32>
    %74 = vector.shape_cast %73 : vector<1x90x1xf32> to vector<90x1xf32>
    %75 = vector.broadcast %74 : vector<90x1xf32> to vector<90x16xf32>
    %76 = arith.mulf %72, %75 : vector<90x16xf32>
    %c1_47 = arith.constant 1 : index
    %c1_48 = arith.constant 1 : index
    %c0_49 = arith.constant 0 : index
    %c0_50 = arith.constant 0 : index
    %77 = vector.load %arg1[%c1_47, %c1_48, %c0_49, %c0_50] : memref<2x4x90x27xf32, #tpu.memory_space<vmem>>, vector<1x1x90x27xf32>
    %78 = vector.shape_cast %77 : vector<1x1x90x27xf32> to vector<90x27xf32>
    %cst_51 = arith.constant dense<0.000000e+00> : vector<90x16xf32>
    %79 = tpu.matmul %78, %0, %cst_51 {dimension_numbers = #tpu.dot_dimension_numbers<[1], [0], [0], [1], [0, 0, 1, 1], [], []>} : vector<90x27xf32>, vector<27x16xf32>, vector<90x16xf32> -> vector<90x16xf32>
    %80 = vector.broadcast %1 : vector<1x16xf32> to vector<90x16xf32>
    %81 = arith.addf %79, %80 : vector<90x16xf32>
    %cst_52 = arith.constant 0.000000e+00 : f32
    %82 = vector.broadcast %cst_52 : f32 to vector<90x16xf32>
    %83 = arith.maximumf %81, %82 : vector<90x16xf32>
    %c1_53 = arith.constant 1 : index
    %c0_54 = arith.constant 0 : index
    %c0_55 = arith.constant 0 : index
    %84 = vector.load %arg2[%c1_53, %c0_54, %c0_55] : memref<4x90x1xf32, #tpu.memory_space<vmem>>, vector<1x90x1xf32>
    %85 = vector.shape_cast %84 : vector<1x90x1xf32> to vector<90x1xf32>
    %86 = vector.broadcast %85 : vector<90x1xf32> to vector<90x16xf32>
    %87 = arith.mulf %83, %86 : vector<90x16xf32>
    %c1_56 = arith.constant 1 : index
    %c2_57 = arith.constant 2 : index
    %c0_58 = arith.constant 0 : index
    %c0_59 = arith.constant 0 : index
    %88 = vector.load %arg1[%c1_56, %c2_57, %c0_58, %c0_59] : memref<2x4x90x27xf32, #tpu.memory_space<vmem>>, vector<1x1x90x27xf32>
    %89 = vector.shape_cast %88 : vector<1x1x90x27xf32> to vector<90x27xf32>
    %cst_60 = arith.constant dense<0.000000e+00> : vector<90x16xf32>
    %90 = tpu.matmul %89, %0, %cst_60 {dimension_numbers = #tpu.dot_dimension_numbers<[1], [0], [0], [1], [0, 0, 1, 1], [], []>} : vector<90x27xf32>, vector<27x16xf32>, vector<90x16xf32> -> vector<90x16xf32>
    %91 = vector.broadcast %1 : vector<1x16xf32> to vector<90x16xf32>
    %92 = arith.addf %90, %91 : vector<90x16xf32>
    %cst_61 = arith.constant 0.000000e+00 : f32
    %93 = vector.broadcast %cst_61 : f32 to vector<90x16xf32>
    %94 = arith.maximumf %92, %93 : vector<90x16xf32>
    %c2_62 = arith.constant 2 : index
    %c0_63 = arith.constant 0 : index
    %c0_64 = arith.constant 0 : index
    %95 = vector.load %arg2[%c2_62, %c0_63, %c0_64] : memref<4x90x1xf32, #tpu.memory_space<vmem>>, vector<1x90x1xf32>
    %96 = vector.shape_cast %95 : vector<1x90x1xf32> to vector<90x1xf32>
    %97 = vector.broadcast %96 : vector<90x1xf32> to vector<90x16xf32>
    %98 = arith.mulf %94, %97 : vector<90x16xf32>
    %c1_65 = arith.constant 1 : index
    %c3_66 = arith.constant 3 : index
    %c0_67 = arith.constant 0 : index
    %c0_68 = arith.constant 0 : index
    %99 = vector.load %arg1[%c1_65, %c3_66, %c0_67, %c0_68] : memref<2x4x90x27xf32, #tpu.memory_space<vmem>>, vector<1x1x90x27xf32>
    %100 = vector.shape_cast %99 : vector<1x1x90x27xf32> to vector<90x27xf32>
    %cst_69 = arith.constant dense<0.000000e+00> : vector<90x16xf32>
    %101 = tpu.matmul %100, %0, %cst_69 {dimension_numbers = #tpu.dot_dimension_numbers<[1], [0], [0], [1], [0, 0, 1, 1], [], []>} : vector<90x27xf32>, vector<27x16xf32>, vector<90x16xf32> -> vector<90x16xf32>
    %102 = vector.broadcast %1 : vector<1x16xf32> to vector<90x16xf32>
    %103 = arith.addf %101, %102 : vector<90x16xf32>
    %cst_70 = arith.constant 0.000000e+00 : f32
    %104 = vector.broadcast %cst_70 : f32 to vector<90x16xf32>
    %105 = arith.maximumf %103, %104 : vector<90x16xf32>
    %c3_71 = arith.constant 3 : index
    %c0_72 = arith.constant 0 : index
    %c0_73 = arith.constant 0 : index
    %106 = vector.load %arg2[%c3_71, %c0_72, %c0_73] : memref<4x90x1xf32, #tpu.memory_space<vmem>>, vector<1x90x1xf32>
    %107 = vector.shape_cast %106 : vector<1x90x1xf32> to vector<90x1xf32>
    %108 = vector.broadcast %107 : vector<90x1xf32> to vector<90x16xf32>
    %109 = arith.mulf %105, %108 : vector<90x16xf32>
    %110 = vector.extract_strided_slice %76 {offsets = [0, 0], sizes = [72, 16], strides = [1, 1]} : vector<90x16xf32> to vector<72x16xf32>
    %111 = vector.extract_strided_slice %87 {offsets = [0, 0], sizes = [72, 16], strides = [1, 1]} : vector<90x16xf32> to vector<72x16xf32>
    %112 = arith.maximumf %110, %111 : vector<72x16xf32>
    %113 = vector.extract_strided_slice %76 {offsets = [1, 0], sizes = [72, 16], strides = [1, 1]} : vector<90x16xf32> to vector<72x16xf32>
    %114 = arith.maximumf %112, %113 : vector<72x16xf32>
    %115 = vector.extract_strided_slice %98 {offsets = [0, 0], sizes = [72, 16], strides = [1, 1]} : vector<90x16xf32> to vector<72x16xf32>
    %116 = arith.maximumf %114, %115 : vector<72x16xf32>
    %117 = vector.extract_strided_slice %109 {offsets = [0, 0], sizes = [72, 16], strides = [1, 1]} : vector<90x16xf32> to vector<72x16xf32>
    %118 = arith.maximumf %116, %117 : vector<72x16xf32>
    %119 = vector.extract_strided_slice %98 {offsets = [1, 0], sizes = [72, 16], strides = [1, 1]} : vector<90x16xf32> to vector<72x16xf32>
    %120 = arith.maximumf %118, %119 : vector<72x16xf32>
    %121 = vector.extract_strided_slice %76 {offsets = [9, 0], sizes = [72, 16], strides = [1, 1]} : vector<90x16xf32> to vector<72x16xf32>
    %122 = arith.maximumf %120, %121 : vector<72x16xf32>
    %123 = vector.extract_strided_slice %87 {offsets = [9, 0], sizes = [72, 16], strides = [1, 1]} : vector<90x16xf32> to vector<72x16xf32>
    %124 = arith.maximumf %122, %123 : vector<72x16xf32>
    %125 = vector.extract_strided_slice %76 {offsets = [10, 0], sizes = [72, 16], strides = [1, 1]} : vector<90x16xf32> to vector<72x16xf32>
    %126 = arith.maximumf %124, %125 : vector<72x16xf32>
    %c1_74 = arith.constant 1 : index
    %c0_75 = arith.constant 0 : index
    %c0_76 = arith.constant 0 : index
    %127 = vector.load %arg5[%c1_74, %c0_75, %c0_76] : memref<2x72x16xf32, #tpu.memory_space<vmem>>, vector<1x72x16xf32>
    %128 = vector.shape_cast %127 : vector<1x72x16xf32> to vector<72x16xf32>
    %129 = vector.shape_cast %126 : vector<72x16xf32> to vector<1x72x16xf32>
    tpu.vector_store %arg5[%c1_74, %c0_75, %c0_76], %129 {strides = array<i32>} : memref<2x72x16xf32, #tpu.memory_space<vmem>>, vector<1x72x16xf32>,
    return
  }
  func.func @transform_0(%arg0: i32) -> (i32, i32, i32, i32) {
    %c0_i32 = arith.constant 0 : i32
    %c0_i32_0 = arith.constant 0 : i32
    %c0_i32_1 = arith.constant 0 : i32
    %c0_i32_2 = arith.constant 0 : i32
    %c0_i32_3 = arith.constant 0 : i32
    return %c0_i32, %c0_i32_0, %c0_i32_1, %c0_i32_2 : i32, i32, i32, i32
  }
  func.func @transform_1(%arg0: i32) -> (i32, i32, i32) {
    %c0_i32 = arith.constant 0 : i32
    %c0_i32_0 = arith.constant 0 : i32
    %c0_i32_1 = arith.constant 0 : i32
    %c0_i32_2 = arith.constant 0 : i32
    return %c0_i32, %c0_i32_0, %c0_i32_1 : i32, i32, i32
  }
  func.func @transform_2(%arg0: i32) -> (i32, i32) {
    %c0_i32 = arith.constant 0 : i32
    %c0_i32_0 = arith.constant 0 : i32
    %c0_i32_1 = arith.constant 0 : i32
    return %c0_i32, %c0_i32_0 : i32, i32
  }
  func.func @transform_3(%arg0: i32) -> (i32, i32) {
    %c0_i32 = arith.constant 0 : i32
    %c0_i32_0 = arith.constant 0 : i32
    %c0_i32_1 = arith.constant 0 : i32
    return %c0_i32, %c0_i32_0 : i32, i32
  }
  func.func @transform_4(%arg0: i32) -> (i32, i32, i32) {
    %c0_i32 = arith.constant 0 : i32
    %c0_i32_0 = arith.constant 0 : i32
    %c0_i32_1 = arith.constant 0 : i32
    %c0_i32_2 = arith.constant 0 : i32
    return %c0_i32, %c0_i32_0, %c0_i32_1 : i32, i32, i32
  }
}

module attributes {stable_mosaic.version = 11 : i64} {
  func.func @_block_s2_kernel(%arg0: i32, %arg1: memref<2x4x30x16xf32, #tpu.memory_space<vmem>>, %arg2: memref<4x30x1xf32, #tpu.memory_space<vmem>>, %arg3: memref<16x16xf32, #tpu.memory_space<vmem>>, %arg4: memref<1x16xf32, #tpu.memory_space<vmem>>, %arg5: memref<9x1x16xf32, #tpu.memory_space<vmem>>, %arg6: memref<1x16xf32, #tpu.memory_space<vmem>>, %arg7: memref<16x32xf32, #tpu.memory_space<vmem>>, %arg8: memref<1x32xf32, #tpu.memory_space<vmem>>, %arg9: memref<9x1x16xf32, #tpu.memory_space<vmem>>, %arg10: memref<1x16xf32, #tpu.memory_space<vmem>>, %arg11: memref<16x32xf32, #tpu.memory_space<vmem>>, %arg12: memref<1x32xf32, #tpu.memory_space<vmem>>, %arg13: memref<2x20x32xf32, #tpu.memory_space<vmem>>) attributes {dimension_semantics = [#tpu.dimension_semantics<arbitrary>], iteration_bounds = array<i64: 1>, scalar_prefetch = 0 : i64, scratch_operands = 0 : i64, tpu.core_type = #tpu.core_type<tc>, window_params = [{pipeline_mode = #tpu.pipeline_mode<synchronous>, transform_indices = @transform_0, window_bounds = array<i64: 2, 4, 30, 16>}, {pipeline_mode = #tpu.pipeline_mode<synchronous>, transform_indices = @transform_1, window_bounds = array<i64: 4, 30, 1>}, {pipeline_mode = #tpu.pipeline_mode<synchronous>, transform_indices = @transform_2, window_bounds = array<i64: 16, 16>}, {pipeline_mode = #tpu.pipeline_mode<synchronous>, transform_indices = @transform_3, window_bounds = array<i64: 1, 16>}, {pipeline_mode = #tpu.pipeline_mode<synchronous>, transform_indices = @transform_4, window_bounds = array<i64: 9, 1, 16>}, {pipeline_mode = #tpu.pipeline_mode<synchronous>, transform_indices = @transform_5, window_bounds = array<i64: 1, 16>}, {pipeline_mode = #tpu.pipeline_mode<synchronous>, transform_indices = @transform_6, window_bounds = array<i64: 16, 32>}, {pipeline_mode = #tpu.pipeline_mode<synchronous>, transform_indices = @transform_7, window_bounds = array<i64: 1, 32>}, {pipeline_mode = #tpu.pipeline_mode<synchronous>, transform_indices = @transform_8, window_bounds = array<i64: 9, 1, 16>}, {pipeline_mode = #tpu.pipeline_mode<synchronous>, transform_indices = @transform_9, window_bounds = array<i64: 1, 16>}, {pipeline_mode = #tpu.pipeline_mode<synchronous>, transform_indices = @transform_10, window_bounds = array<i64: 16, 32>}, {pipeline_mode = #tpu.pipeline_mode<synchronous>, transform_indices = @transform_11, window_bounds = array<i64: 1, 32>}, {pipeline_mode = #tpu.pipeline_mode<synchronous>, transform_indices = @transform_12, window_bounds = array<i64: 2, 20, 32>}]} {
    %c0 = arith.constant 0 : index
    %c0_0 = arith.constant 0 : index
    %0 = vector.load %arg3[%c0, %c0_0] : memref<16x16xf32, #tpu.memory_space<vmem>>, vector<16x16xf32>
    %c0_1 = arith.constant 0 : index
    %c0_2 = arith.constant 0 : index
    %1 = vector.load %arg4[%c0_1, %c0_2] : memref<1x16xf32, #tpu.memory_space<vmem>>, vector<1x16xf32>
    %c0_3 = arith.constant 0 : index
    %c0_4 = arith.constant 0 : index
    %2 = vector.load %arg7[%c0_3, %c0_4] : memref<16x32xf32, #tpu.memory_space<vmem>>, vector<16x32xf32>
    %c0_5 = arith.constant 0 : index
    %c0_6 = arith.constant 0 : index
    %3 = vector.load %arg8[%c0_5, %c0_6] : memref<1x32xf32, #tpu.memory_space<vmem>>, vector<1x32xf32>
    %c0_7 = arith.constant 0 : index
    %c0_8 = arith.constant 0 : index
    %4 = vector.load %arg11[%c0_7, %c0_8] : memref<16x32xf32, #tpu.memory_space<vmem>>, vector<16x32xf32>
    %c0_9 = arith.constant 0 : index
    %c0_10 = arith.constant 0 : index
    %5 = vector.load %arg12[%c0_9, %c0_10] : memref<1x32xf32, #tpu.memory_space<vmem>>, vector<1x32xf32>
    %c0_11 = arith.constant 0 : index
    %c0_12 = arith.constant 0 : index
    %c0_13 = arith.constant 0 : index
    %6 = vector.load %arg9[%c0_11, %c0_12, %c0_13] : memref<9x1x16xf32, #tpu.memory_space<vmem>>, vector<9x1x16xf32>
    %c0_14 = arith.constant 0 : index
    %c0_15 = arith.constant 0 : index
    %7 = vector.load %arg10[%c0_14, %c0_15] : memref<1x16xf32, #tpu.memory_space<vmem>>, vector<1x16xf32>
    %c0_16 = arith.constant 0 : index
    %c0_17 = arith.constant 0 : index
    %c0_18 = arith.constant 0 : index
    %8 = vector.load %arg5[%c0_16, %c0_17, %c0_18] : memref<9x1x16xf32, #tpu.memory_space<vmem>>, vector<9x1x16xf32>
    %c0_19 = arith.constant 0 : index
    %c0_20 = arith.constant 0 : index
    %9 = vector.load %arg6[%c0_19, %c0_20] : memref<1x16xf32, #tpu.memory_space<vmem>>, vector<1x16xf32>
    %c0_21 = arith.constant 0 : index
    %c0_22 = arith.constant 0 : index
    %c0_23 = arith.constant 0 : index
    %c0_24 = arith.constant 0 : index
    %10 = vector.load %arg1[%c0_21, %c0_22, %c0_23, %c0_24] : memref<2x4x30x16xf32, #tpu.memory_space<vmem>>, vector<1x1x30x16xf32>
    %11 = vector.shape_cast %10 : vector<1x1x30x16xf32> to vector<30x16xf32>
    %c0_25 = arith.constant 0 : index
    %c1 = arith.constant 1 : index
    %c0_26 = arith.constant 0 : index
    %c0_27 = arith.constant 0 : index
    %12 = vector.load %arg1[%c0_25, %c1, %c0_26, %c0_27] : memref<2x4x30x16xf32, #tpu.memory_space<vmem>>, vector<1x1x30x16xf32>
    %13 = vector.shape_cast %12 : vector<1x1x30x16xf32> to vector<30x16xf32>
    %c0_28 = arith.constant 0 : index
    %c2 = arith.constant 2 : index
    %c0_29 = arith.constant 0 : index
    %c0_30 = arith.constant 0 : index
    %14 = vector.load %arg1[%c0_28, %c2, %c0_29, %c0_30] : memref<2x4x30x16xf32, #tpu.memory_space<vmem>>, vector<1x1x30x16xf32>
    %15 = vector.shape_cast %14 : vector<1x1x30x16xf32> to vector<30x16xf32>
    %c0_31 = arith.constant 0 : index
    %c3 = arith.constant 3 : index
    %c0_32 = arith.constant 0 : index
    %c0_33 = arith.constant 0 : index
    %16 = vector.load %arg1[%c0_31, %c3, %c0_32, %c0_33] : memref<2x4x30x16xf32, #tpu.memory_space<vmem>>, vector<1x1x30x16xf32>
    %17 = vector.shape_cast %16 : vector<1x1x30x16xf32> to vector<30x16xf32>
    %cst = arith.constant dense<0.000000e+00> : vector<30x16xf32>
    %18 = tpu.matmul %11, %0, %cst {dimension_numbers = #tpu.dot_dimension_numbers<[1], [0], [0], [1], [0, 0, 1, 1], [], []>} : vector<30x16xf32>, vector<16x16xf32>, vector<30x16xf32> -> vector<30x16xf32>
    %19 = vector.broadcast %1 : vector<1x16xf32> to vector<30x16xf32>
    %20 = arith.addf %18, %19 : vector<30x16xf32>
    %cst_34 = arith.constant 0.000000e+00 : f32
    %21 = vector.broadcast %cst_34 : f32 to vector<30x16xf32>
    %22 = arith.maximumf %20, %21 : vector<30x16xf32>
    %c0_35 = arith.constant 0 : index
    %c0_36 = arith.constant 0 : index
    %c0_37 = arith.constant 0 : index
    %23 = vector.load %arg2[%c0_35, %c0_36, %c0_37] : memref<4x30x1xf32, #tpu.memory_space<vmem>>, vector<1x30x1xf32>
    %24 = vector.shape_cast %23 : vector<1x30x1xf32> to vector<30x1xf32>
    %25 = vector.broadcast %24 : vector<30x1xf32> to vector<30x16xf32>
    %26 = arith.mulf %22, %25 : vector<30x16xf32>
    %cst_38 = arith.constant dense<0.000000e+00> : vector<30x16xf32>
    %27 = tpu.matmul %13, %0, %cst_38 {dimension_numbers = #tpu.dot_dimension_numbers<[1], [0], [0], [1], [0, 0, 1, 1], [], []>} : vector<30x16xf32>, vector<16x16xf32>, vector<30x16xf32> -> vector<30x16xf32>
    %28 = vector.broadcast %1 : vector<1x16xf32> to vector<30x16xf32>
    %29 = arith.addf %27, %28 : vector<30x16xf32>
    %cst_39 = arith.constant 0.000000e+00 : f32
    %30 = vector.broadcast %cst_39 : f32 to vector<30x16xf32>
    %31 = arith.maximumf %29, %30 : vector<30x16xf32>
    %c1_40 = arith.constant 1 : index
    %c0_41 = arith.constant 0 : index
    %c0_42 = arith.constant 0 : index
    %32 = vector.load %arg2[%c1_40, %c0_41, %c0_42] : memref<4x30x1xf32, #tpu.memory_space<vmem>>, vector<1x30x1xf32>
    %33 = vector.shape_cast %32 : vector<1x30x1xf32> to vector<30x1xf32>
    %34 = vector.broadcast %33 : vector<30x1xf32> to vector<30x16xf32>
    %35 = arith.mulf %31, %34 : vector<30x16xf32>
    %cst_43 = arith.constant dense<0.000000e+00> : vector<30x16xf32>
    %36 = tpu.matmul %15, %0, %cst_43 {dimension_numbers = #tpu.dot_dimension_numbers<[1], [0], [0], [1], [0, 0, 1, 1], [], []>} : vector<30x16xf32>, vector<16x16xf32>, vector<30x16xf32> -> vector<30x16xf32>
    %37 = vector.broadcast %1 : vector<1x16xf32> to vector<30x16xf32>
    %38 = arith.addf %36, %37 : vector<30x16xf32>
    %cst_44 = arith.constant 0.000000e+00 : f32
    %39 = vector.broadcast %cst_44 : f32 to vector<30x16xf32>
    %40 = arith.maximumf %38, %39 : vector<30x16xf32>
    %c2_45 = arith.constant 2 : index
    %c0_46 = arith.constant 0 : index
    %c0_47 = arith.constant 0 : index
    %41 = vector.load %arg2[%c2_45, %c0_46, %c0_47] : memref<4x30x1xf32, #tpu.memory_space<vmem>>, vector<1x30x1xf32>
    %42 = vector.shape_cast %41 : vector<1x30x1xf32> to vector<30x1xf32>
    %43 = vector.broadcast %42 : vector<30x1xf32> to vector<30x16xf32>
    %44 = arith.mulf %40, %43 : vector<30x16xf32>
    %cst_48 = arith.constant dense<0.000000e+00> : vector<30x16xf32>
    %45 = tpu.matmul %17, %0, %cst_48 {dimension_numbers = #tpu.dot_dimension_numbers<[1], [0], [0], [1], [0, 0, 1, 1], [], []>} : vector<30x16xf32>, vector<16x16xf32>, vector<30x16xf32> -> vector<30x16xf32>
    %46 = vector.broadcast %1 : vector<1x16xf32> to vector<30x16xf32>
    %47 = arith.addf %45, %46 : vector<30x16xf32>
    %cst_49 = arith.constant 0.000000e+00 : f32
    %48 = vector.broadcast %cst_49 : f32 to vector<30x16xf32>
    %49 = arith.maximumf %47, %48 : vector<30x16xf32>
    %c3_50 = arith.constant 3 : index
    %c0_51 = arith.constant 0 : index
    %c0_52 = arith.constant 0 : index
    %50 = vector.load %arg2[%c3_50, %c0_51, %c0_52] : memref<4x30x1xf32, #tpu.memory_space<vmem>>, vector<1x30x1xf32>
    %51 = vector.shape_cast %50 : vector<1x30x1xf32> to vector<30x1xf32>
    %52 = vector.broadcast %51 : vector<30x1xf32> to vector<30x16xf32>
    %53 = arith.mulf %49, %52 : vector<30x16xf32>
    %54 = vector.extract_strided_slice %11 {offsets = [0, 0], sizes = [20, 16], strides = [1, 1]} : vector<30x16xf32> to vector<20x16xf32>
    %55 = vector.extract_strided_slice %6 {offsets = [0, 0, 0], sizes = [1, 1, 16], strides = [1, 1, 1]} : vector<9x1x16xf32> to vector<1x1x16xf32>
    %56 = vector.shape_cast %55 : vector<1x1x16xf32> to vector<1x16xf32>
    %57 = vector.broadcast %56 : vector<1x16xf32> to vector<20x16xf32>
    %58 = arith.mulf %54, %57 : vector<20x16xf32>
    %59 = vector.extract_strided_slice %26 {offsets = [0, 0], sizes = [20, 16], strides = [1, 1]} : vector<30x16xf32> to vector<20x16xf32>
    %60 = vector.extract_strided_slice %8 {offsets = [0, 0, 0], sizes = [1, 1, 16], strides = [1, 1, 1]} : vector<9x1x16xf32> to vector<1x1x16xf32>
    %61 = vector.shape_cast %60 : vector<1x1x16xf32> to vector<1x16xf32>
    %62 = vector.broadcast %61 : vector<1x16xf32> to vector<20x16xf32>
    %63 = arith.mulf %59, %62 : vector<20x16xf32>
    %64 = vector.extract_strided_slice %13 {offsets = [0, 0], sizes = [20, 16], strides = [1, 1]} : vector<30x16xf32> to vector<20x16xf32>
    %65 = vector.extract_strided_slice %6 {offsets = [1, 0, 0], sizes = [1, 1, 16], strides = [1, 1, 1]} : vector<9x1x16xf32> to vector<1x1x16xf32>
    %66 = vector.shape_cast %65 : vector<1x1x16xf32> to vector<1x16xf32>
    %67 = vector.broadcast %66 : vector<1x16xf32> to vector<20x16xf32>
    %68 = arith.mulf %64, %67 : vector<20x16xf32>
    %69 = vector.extract_strided_slice %35 {offsets = [0, 0], sizes = [20, 16], strides = [1, 1]} : vector<30x16xf32> to vector<20x16xf32>
    %70 = vector.extract_strided_slice %8 {offsets = [1, 0, 0], sizes = [1, 1, 16], strides = [1, 1, 1]} : vector<9x1x16xf32> to vector<1x1x16xf32>
    %71 = vector.shape_cast %70 : vector<1x1x16xf32> to vector<1x16xf32>
    %72 = vector.broadcast %71 : vector<1x16xf32> to vector<20x16xf32>
    %73 = arith.mulf %69, %72 : vector<20x16xf32>
    %74 = arith.addf %58, %68 : vector<20x16xf32>
    %75 = arith.addf %63, %73 : vector<20x16xf32>
    %76 = vector.extract_strided_slice %11 {offsets = [1, 0], sizes = [20, 16], strides = [1, 1]} : vector<30x16xf32> to vector<20x16xf32>
    %77 = vector.extract_strided_slice %6 {offsets = [2, 0, 0], sizes = [1, 1, 16], strides = [1, 1, 1]} : vector<9x1x16xf32> to vector<1x1x16xf32>
    %78 = vector.shape_cast %77 : vector<1x1x16xf32> to vector<1x16xf32>
    %79 = vector.broadcast %78 : vector<1x16xf32> to vector<20x16xf32>
    %80 = arith.mulf %76, %79 : vector<20x16xf32>
    %81 = vector.extract_strided_slice %26 {offsets = [1, 0], sizes = [20, 16], strides = [1, 1]} : vector<30x16xf32> to vector<20x16xf32>
    %82 = vector.extract_strided_slice %8 {offsets = [2, 0, 0], sizes = [1, 1, 16], strides = [1, 1, 1]} : vector<9x1x16xf32> to vector<1x1x16xf32>
    %83 = vector.shape_cast %82 : vector<1x1x16xf32> to vector<1x16xf32>
    %84 = vector.broadcast %83 : vector<1x16xf32> to vector<20x16xf32>
    %85 = arith.mulf %81, %84 : vector<20x16xf32>
    %86 = arith.addf %74, %80 : vector<20x16xf32>
    %87 = arith.addf %75, %85 : vector<20x16xf32>
    %88 = vector.extract_strided_slice %15 {offsets = [0, 0], sizes = [20, 16], strides = [1, 1]} : vector<30x16xf32> to vector<20x16xf32>
    %89 = vector.extract_strided_slice %6 {offsets = [3, 0, 0], sizes = [1, 1, 16], strides = [1, 1, 1]} : vector<9x1x16xf32> to vector<1x1x16xf32>
    %90 = vector.shape_cast %89 : vector<1x1x16xf32> to vector<1x16xf32>
    %91 = vector.broadcast %90 : vector<1x16xf32> to vector<20x16xf32>
    %92 = arith.mulf %88, %91 : vector<20x16xf32>
    %93 = vector.extract_strided_slice %44 {offsets = [0, 0], sizes = [20, 16], strides = [1, 1]} : vector<30x16xf32> to vector<20x16xf32>
    %94 = vector.extract_strided_slice %8 {offsets = [3, 0, 0], sizes = [1, 1, 16], strides = [1, 1, 1]} : vector<9x1x16xf32> to vector<1x1x16xf32>
    %95 = vector.shape_cast %94 : vector<1x1x16xf32> to vector<1x16xf32>
    %96 = vector.broadcast %95 : vector<1x16xf32> to vector<20x16xf32>
    %97 = arith.mulf %93, %96 : vector<20x16xf32>
    %98 = arith.addf %86, %92 : vector<20x16xf32>
    %99 = arith.addf %87, %97 : vector<20x16xf32>
    %100 = vector.extract_strided_slice %17 {offsets = [0, 0], sizes = [20, 16], strides = [1, 1]} : vector<30x16xf32> to vector<20x16xf32>
    %101 = vector.extract_strided_slice %6 {offsets = [4, 0, 0], sizes = [1, 1, 16], strides = [1, 1, 1]} : vector<9x1x16xf32> to vector<1x1x16xf32>
    %102 = vector.shape_cast %101 : vector<1x1x16xf32> to vector<1x16xf32>
    %103 = vector.broadcast %102 : vector<1x16xf32> to vector<20x16xf32>
    %104 = arith.mulf %100, %103 : vector<20x16xf32>
    %105 = vector.extract_strided_slice %53 {offsets = [0, 0], sizes = [20, 16], strides = [1, 1]} : vector<30x16xf32> to vector<20x16xf32>
    %106 = vector.extract_strided_slice %8 {offsets = [4, 0, 0], sizes = [1, 1, 16], strides = [1, 1, 1]} : vector<9x1x16xf32> to vector<1x1x16xf32>
    %107 = vector.shape_cast %106 : vector<1x1x16xf32> to vector<1x16xf32>
    %108 = vector.broadcast %107 : vector<1x16xf32> to vector<20x16xf32>
    %109 = arith.mulf %105, %108 : vector<20x16xf32>
    %110 = arith.addf %98, %104 : vector<20x16xf32>
    %111 = arith.addf %99, %109 : vector<20x16xf32>
    %112 = vector.extract_strided_slice %15 {offsets = [1, 0], sizes = [20, 16], strides = [1, 1]} : vector<30x16xf32> to vector<20x16xf32>
    %113 = vector.extract_strided_slice %6 {offsets = [5, 0, 0], sizes = [1, 1, 16], strides = [1, 1, 1]} : vector<9x1x16xf32> to vector<1x1x16xf32>
    %114 = vector.shape_cast %113 : vector<1x1x16xf32> to vector<1x16xf32>
    %115 = vector.broadcast %114 : vector<1x16xf32> to vector<20x16xf32>
    %116 = arith.mulf %112, %115 : vector<20x16xf32>
    %117 = vector.extract_strided_slice %44 {offsets = [1, 0], sizes = [20, 16], strides = [1, 1]} : vector<30x16xf32> to vector<20x16xf32>
    %118 = vector.extract_strided_slice %8 {offsets = [5, 0, 0], sizes = [1, 1, 16], strides = [1, 1, 1]} : vector<9x1x16xf32> to vector<1x1x16xf32>
    %119 = vector.shape_cast %118 : vector<1x1x16xf32> to vector<1x16xf32>
    %120 = vector.broadcast %119 : vector<1x16xf32> to vector<20x16xf32>
    %121 = arith.mulf %117, %120 : vector<20x16xf32>
    %122 = arith.addf %110, %116 : vector<20x16xf32>
    %123 = arith.addf %111, %121 : vector<20x16xf32>
    %124 = vector.extract_strided_slice %11 {offsets = [5, 0], sizes = [20, 16], strides = [1, 1]} : vector<30x16xf32> to vector<20x16xf32>
    %125 = vector.extract_strided_slice %6 {offsets = [6, 0, 0], sizes = [1, 1, 16], strides = [1, 1, 1]} : vector<9x1x16xf32> to vector<1x1x16xf32>
    %126 = vector.shape_cast %125 : vector<1x1x16xf32> to vector<1x16xf32>
    %127 = vector.broadcast %126 : vector<1x16xf32> to vector<20x16xf32>
    %128 = arith.mulf %124, %127 : vector<20x16xf32>
    %129 = vector.extract_strided_slice %26 {offsets = [5, 0], sizes = [20, 16], strides = [1, 1]} : vector<30x16xf32> to vector<20x16xf32>
    %130 = vector.extract_strided_slice %8 {offsets = [6, 0, 0], sizes = [1, 1, 16], strides = [1, 1, 1]} : vector<9x1x16xf32> to vector<1x1x16xf32>
    %131 = vector.shape_cast %130 : vector<1x1x16xf32> to vector<1x16xf32>
    %132 = vector.broadcast %131 : vector<1x16xf32> to vector<20x16xf32>
    %133 = arith.mulf %129, %132 : vector<20x16xf32>
    %134 = arith.addf %122, %128 : vector<20x16xf32>
    %135 = arith.addf %123, %133 : vector<20x16xf32>
    %136 = vector.extract_strided_slice %13 {offsets = [5, 0], sizes = [20, 16], strides = [1, 1]} : vector<30x16xf32> to vector<20x16xf32>
    %137 = vector.extract_strided_slice %6 {offsets = [7, 0, 0], sizes = [1, 1, 16], strides = [1, 1, 1]} : vector<9x1x16xf32> to vector<1x1x16xf32>
    %138 = vector.shape_cast %137 : vector<1x1x16xf32> to vector<1x16xf32>
    %139 = vector.broadcast %138 : vector<1x16xf32> to vector<20x16xf32>
    %140 = arith.mulf %136, %139 : vector<20x16xf32>
    %141 = vector.extract_strided_slice %35 {offsets = [5, 0], sizes = [20, 16], strides = [1, 1]} : vector<30x16xf32> to vector<20x16xf32>
    %142 = vector.extract_strided_slice %8 {offsets = [7, 0, 0], sizes = [1, 1, 16], strides = [1, 1, 1]} : vector<9x1x16xf32> to vector<1x1x16xf32>
    %143 = vector.shape_cast %142 : vector<1x1x16xf32> to vector<1x16xf32>
    %144 = vector.broadcast %143 : vector<1x16xf32> to vector<20x16xf32>
    %145 = arith.mulf %141, %144 : vector<20x16xf32>
    %146 = arith.addf %134, %140 : vector<20x16xf32>
    %147 = arith.addf %135, %145 : vector<20x16xf32>
    %148 = vector.extract_strided_slice %11 {offsets = [6, 0], sizes = [20, 16], strides = [1, 1]} : vector<30x16xf32> to vector<20x16xf32>
    %149 = vector.extract_strided_slice %6 {offsets = [8, 0, 0], sizes = [1, 1, 16], strides = [1, 1, 1]} : vector<9x1x16xf32> to vector<1x1x16xf32>
    %150 = vector.shape_cast %149 : vector<1x1x16xf32> to vector<1x16xf32>
    %151 = vector.broadcast %150 : vector<1x16xf32> to vector<20x16xf32>
    %152 = arith.mulf %148, %151 : vector<20x16xf32>
    %153 = vector.extract_strided_slice %26 {offsets = [6, 0], sizes = [20, 16], strides = [1, 1]} : vector<30x16xf32> to vector<20x16xf32>
    %154 = vector.extract_strided_slice %8 {offsets = [8, 0, 0], sizes = [1, 1, 16], strides = [1, 1, 1]} : vector<9x1x16xf32> to vector<1x1x16xf32>
    %155 = vector.shape_cast %154 : vector<1x1x16xf32> to vector<1x16xf32>
    %156 = vector.broadcast %155 : vector<1x16xf32> to vector<20x16xf32>
    %157 = arith.mulf %153, %156 : vector<20x16xf32>
    %158 = arith.addf %146, %152 : vector<20x16xf32>
    %159 = arith.addf %147, %157 : vector<20x16xf32>
    %160 = vector.broadcast %7 : vector<1x16xf32> to vector<20x16xf32>
    %161 = arith.addf %158, %160 : vector<20x16xf32>
    %162 = vector.broadcast %9 : vector<1x16xf32> to vector<20x16xf32>
    %163 = arith.addf %159, %162 : vector<20x16xf32>
    %cst_53 = arith.constant dense<0.000000e+00> : vector<20x32xf32>
    %164 = tpu.matmul %161, %4, %cst_53 {dimension_numbers = #tpu.dot_dimension_numbers<[1], [0], [0], [1], [0, 0, 1, 1], [], []>} : vector<20x16xf32>, vector<16x32xf32>, vector<20x32xf32> -> vector<20x32xf32>
    %165 = vector.broadcast %5 : vector<1x32xf32> to vector<20x32xf32>
    %166 = arith.addf %164, %165 : vector<20x32xf32>
    %cst_54 = arith.constant 0.000000e+00 : f32
    %167 = vector.broadcast %cst_54 : f32 to vector<20x32xf32>
    %168 = arith.maximumf %166, %167 : vector<20x32xf32>
    %cst_55 = arith.constant dense<0.000000e+00> : vector<20x32xf32>
    %169 = tpu.matmul %163, %2, %cst_55 {dimension_numbers = #tpu.dot_dimension_numbers<[1], [0], [0], [1], [0, 0, 1, 1], [], []>} : vector<20x16xf32>, vector<16x32xf32>, vector<20x32xf32> -> vector<20x32xf32>
    %170 = vector.broadcast %3 : vector<1x32xf32> to vector<20x32xf32>
    %171 = arith.addf %169, %170 : vector<20x32xf32>
    %cst_56 = arith.constant 0.000000e+00 : f32
    %172 = vector.broadcast %cst_56 : f32 to vector<20x32xf32>
    %173 = arith.maximumf %171, %172 : vector<20x32xf32>
    %174 = arith.addf %168, %173 : vector<20x32xf32>
    %c0_57 = arith.constant 0 : index
    %c0_58 = arith.constant 0 : index
    %c0_59 = arith.constant 0 : index
    %175 = vector.load %arg13[%c0_57, %c0_58, %c0_59] : memref<2x20x32xf32, #tpu.memory_space<vmem>>, vector<1x20x32xf32>
    %176 = vector.shape_cast %175 : vector<1x20x32xf32> to vector<20x32xf32>
    %177 = vector.shape_cast %174 : vector<20x32xf32> to vector<1x20x32xf32>
    tpu.vector_store %arg13[%c0_57, %c0_58, %c0_59], %177 {strides = array<i32>} : memref<2x20x32xf32, #tpu.memory_space<vmem>>, vector<1x20x32xf32>,
    %c1_60 = arith.constant 1 : index
    %c0_61 = arith.constant 0 : index
    %c0_62 = arith.constant 0 : index
    %c0_63 = arith.constant 0 : index
    %178 = vector.load %arg1[%c1_60, %c0_61, %c0_62, %c0_63] : memref<2x4x30x16xf32, #tpu.memory_space<vmem>>, vector<1x1x30x16xf32>
    %179 = vector.shape_cast %178 : vector<1x1x30x16xf32> to vector<30x16xf32>
    %c1_64 = arith.constant 1 : index
    %c1_65 = arith.constant 1 : index
    %c0_66 = arith.constant 0 : index
    %c0_67 = arith.constant 0 : index
    %180 = vector.load %arg1[%c1_64, %c1_65, %c0_66, %c0_67] : memref<2x4x30x16xf32, #tpu.memory_space<vmem>>, vector<1x1x30x16xf32>
    %181 = vector.shape_cast %180 : vector<1x1x30x16xf32> to vector<30x16xf32>
    %c1_68 = arith.constant 1 : index
    %c2_69 = arith.constant 2 : index
    %c0_70 = arith.constant 0 : index
    %c0_71 = arith.constant 0 : index
    %182 = vector.load %arg1[%c1_68, %c2_69, %c0_70, %c0_71] : memref<2x4x30x16xf32, #tpu.memory_space<vmem>>, vector<1x1x30x16xf32>
    %183 = vector.shape_cast %182 : vector<1x1x30x16xf32> to vector<30x16xf32>
    %c1_72 = arith.constant 1 : index
    %c3_73 = arith.constant 3 : index
    %c0_74 = arith.constant 0 : index
    %c0_75 = arith.constant 0 : index
    %184 = vector.load %arg1[%c1_72, %c3_73, %c0_74, %c0_75] : memref<2x4x30x16xf32, #tpu.memory_space<vmem>>, vector<1x1x30x16xf32>
    %185 = vector.shape_cast %184 : vector<1x1x30x16xf32> to vector<30x16xf32>
    %cst_76 = arith.constant dense<0.000000e+00> : vector<30x16xf32>
    %186 = tpu.matmul %179, %0, %cst_76 {dimension_numbers = #tpu.dot_dimension_numbers<[1], [0], [0], [1], [0, 0, 1, 1], [], []>} : vector<30x16xf32>, vector<16x16xf32>, vector<30x16xf32> -> vector<30x16xf32>
    %187 = vector.broadcast %1 : vector<1x16xf32> to vector<30x16xf32>
    %188 = arith.addf %186, %187 : vector<30x16xf32>
    %cst_77 = arith.constant 0.000000e+00 : f32
    %189 = vector.broadcast %cst_77 : f32 to vector<30x16xf32>
    %190 = arith.maximumf %188, %189 : vector<30x16xf32>
    %c0_78 = arith.constant 0 : index
    %c0_79 = arith.constant 0 : index
    %c0_80 = arith.constant 0 : index
    %191 = vector.load %arg2[%c0_78, %c0_79, %c0_80] : memref<4x30x1xf32, #tpu.memory_space<vmem>>, vector<1x30x1xf32>
    %192 = vector.shape_cast %191 : vector<1x30x1xf32> to vector<30x1xf32>
    %193 = vector.broadcast %192 : vector<30x1xf32> to vector<30x16xf32>
    %194 = arith.mulf %190, %193 : vector<30x16xf32>
    %cst_81 = arith.constant dense<0.000000e+00> : vector<30x16xf32>
    %195 = tpu.matmul %181, %0, %cst_81 {dimension_numbers = #tpu.dot_dimension_numbers<[1], [0], [0], [1], [0, 0, 1, 1], [], []>} : vector<30x16xf32>, vector<16x16xf32>, vector<30x16xf32> -> vector<30x16xf32>
    %196 = vector.broadcast %1 : vector<1x16xf32> to vector<30x16xf32>
    %197 = arith.addf %195, %196 : vector<30x16xf32>
    %cst_82 = arith.constant 0.000000e+00 : f32
    %198 = vector.broadcast %cst_82 : f32 to vector<30x16xf32>
    %199 = arith.maximumf %197, %198 : vector<30x16xf32>
    %c1_83 = arith.constant 1 : index
    %c0_84 = arith.constant 0 : index
    %c0_85 = arith.constant 0 : index
    %200 = vector.load %arg2[%c1_83, %c0_84, %c0_85] : memref<4x30x1xf32, #tpu.memory_space<vmem>>, vector<1x30x1xf32>
    %201 = vector.shape_cast %200 : vector<1x30x1xf32> to vector<30x1xf32>
    %202 = vector.broadcast %201 : vector<30x1xf32> to vector<30x16xf32>
    %203 = arith.mulf %199, %202 : vector<30x16xf32>
    %cst_86 = arith.constant dense<0.000000e+00> : vector<30x16xf32>
    %204 = tpu.matmul %183, %0, %cst_86 {dimension_numbers = #tpu.dot_dimension_numbers<[1], [0], [0], [1], [0, 0, 1, 1], [], []>} : vector<30x16xf32>, vector<16x16xf32>, vector<30x16xf32> -> vector<30x16xf32>
    %205 = vector.broadcast %1 : vector<1x16xf32> to vector<30x16xf32>
    %206 = arith.addf %204, %205 : vector<30x16xf32>
    %cst_87 = arith.constant 0.000000e+00 : f32
    %207 = vector.broadcast %cst_87 : f32 to vector<30x16xf32>
    %208 = arith.maximumf %206, %207 : vector<30x16xf32>
    %c2_88 = arith.constant 2 : index
    %c0_89 = arith.constant 0 : index
    %c0_90 = arith.constant 0 : index
    %209 = vector.load %arg2[%c2_88, %c0_89, %c0_90] : memref<4x30x1xf32, #tpu.memory_space<vmem>>, vector<1x30x1xf32>
    %210 = vector.shape_cast %209 : vector<1x30x1xf32> to vector<30x1xf32>
    %211 = vector.broadcast %210 : vector<30x1xf32> to vector<30x16xf32>
    %212 = arith.mulf %208, %211 : vector<30x16xf32>
    %cst_91 = arith.constant dense<0.000000e+00> : vector<30x16xf32>
    %213 = tpu.matmul %185, %0, %cst_91 {dimension_numbers = #tpu.dot_dimension_numbers<[1], [0], [0], [1], [0, 0, 1, 1], [], []>} : vector<30x16xf32>, vector<16x16xf32>, vector<30x16xf32> -> vector<30x16xf32>
    %214 = vector.broadcast %1 : vector<1x16xf32> to vector<30x16xf32>
    %215 = arith.addf %213, %214 : vector<30x16xf32>
    %cst_92 = arith.constant 0.000000e+00 : f32
    %216 = vector.broadcast %cst_92 : f32 to vector<30x16xf32>
    %217 = arith.maximumf %215, %216 : vector<30x16xf32>
    %c3_93 = arith.constant 3 : index
    %c0_94 = arith.constant 0 : index
    %c0_95 = arith.constant 0 : index
    %218 = vector.load %arg2[%c3_93, %c0_94, %c0_95] : memref<4x30x1xf32, #tpu.memory_space<vmem>>, vector<1x30x1xf32>
    %219 = vector.shape_cast %218 : vector<1x30x1xf32> to vector<30x1xf32>
    %220 = vector.broadcast %219 : vector<30x1xf32> to vector<30x16xf32>
    %221 = arith.mulf %217, %220 : vector<30x16xf32>
    %222 = vector.extract_strided_slice %179 {offsets = [0, 0], sizes = [20, 16], strides = [1, 1]} : vector<30x16xf32> to vector<20x16xf32>
    %223 = vector.extract_strided_slice %6 {offsets = [0, 0, 0], sizes = [1, 1, 16], strides = [1, 1, 1]} : vector<9x1x16xf32> to vector<1x1x16xf32>
    %224 = vector.shape_cast %223 : vector<1x1x16xf32> to vector<1x16xf32>
    %225 = vector.broadcast %224 : vector<1x16xf32> to vector<20x16xf32>
    %226 = arith.mulf %222, %225 : vector<20x16xf32>
    %227 = vector.extract_strided_slice %194 {offsets = [0, 0], sizes = [20, 16], strides = [1, 1]} : vector<30x16xf32> to vector<20x16xf32>
    %228 = vector.extract_strided_slice %8 {offsets = [0, 0, 0], sizes = [1, 1, 16], strides = [1, 1, 1]} : vector<9x1x16xf32> to vector<1x1x16xf32>
    %229 = vector.shape_cast %228 : vector<1x1x16xf32> to vector<1x16xf32>
    %230 = vector.broadcast %229 : vector<1x16xf32> to vector<20x16xf32>
    %231 = arith.mulf %227, %230 : vector<20x16xf32>
    %232 = vector.extract_strided_slice %181 {offsets = [0, 0], sizes = [20, 16], strides = [1, 1]} : vector<30x16xf32> to vector<20x16xf32>
    %233 = vector.extract_strided_slice %6 {offsets = [1, 0, 0], sizes = [1, 1, 16], strides = [1, 1, 1]} : vector<9x1x16xf32> to vector<1x1x16xf32>
    %234 = vector.shape_cast %233 : vector<1x1x16xf32> to vector<1x16xf32>
    %235 = vector.broadcast %234 : vector<1x16xf32> to vector<20x16xf32>
    %236 = arith.mulf %232, %235 : vector<20x16xf32>
    %237 = vector.extract_strided_slice %203 {offsets = [0, 0], sizes = [20, 16], strides = [1, 1]} : vector<30x16xf32> to vector<20x16xf32>
    %238 = vector.extract_strided_slice %8 {offsets = [1, 0, 0], sizes = [1, 1, 16], strides = [1, 1, 1]} : vector<9x1x16xf32> to vector<1x1x16xf32>
    %239 = vector.shape_cast %238 : vector<1x1x16xf32> to vector<1x16xf32>
    %240 = vector.broadcast %239 : vector<1x16xf32> to vector<20x16xf32>
    %241 = arith.mulf %237, %240 : vector<20x16xf32>
    %242 = arith.addf %226, %236 : vector<20x16xf32>
    %243 = arith.addf %231, %241 : vector<20x16xf32>
    %244 = vector.extract_strided_slice %179 {offsets = [1, 0], sizes = [20, 16], strides = [1, 1]} : vector<30x16xf32> to vector<20x16xf32>
    %245 = vector.extract_strided_slice %6 {offsets = [2, 0, 0], sizes = [1, 1, 16], strides = [1, 1, 1]} : vector<9x1x16xf32> to vector<1x1x16xf32>
    %246 = vector.shape_cast %245 : vector<1x1x16xf32> to vector<1x16xf32>
    %247 = vector.broadcast %246 : vector<1x16xf32> to vector<20x16xf32>
    %248 = arith.mulf %244, %247 : vector<20x16xf32>
    %249 = vector.extract_strided_slice %194 {offsets = [1, 0], sizes = [20, 16], strides = [1, 1]} : vector<30x16xf32> to vector<20x16xf32>
    %250 = vector.extract_strided_slice %8 {offsets = [2, 0, 0], sizes = [1, 1, 16], strides = [1, 1, 1]} : vector<9x1x16xf32> to vector<1x1x16xf32>
    %251 = vector.shape_cast %250 : vector<1x1x16xf32> to vector<1x16xf32>
    %252 = vector.broadcast %251 : vector<1x16xf32> to vector<20x16xf32>
    %253 = arith.mulf %249, %252 : vector<20x16xf32>
    %254 = arith.addf %242, %248 : vector<20x16xf32>
    %255 = arith.addf %243, %253 : vector<20x16xf32>
    %256 = vector.extract_strided_slice %183 {offsets = [0, 0], sizes = [20, 16], strides = [1, 1]} : vector<30x16xf32> to vector<20x16xf32>
    %257 = vector.extract_strided_slice %6 {offsets = [3, 0, 0], sizes = [1, 1, 16], strides = [1, 1, 1]} : vector<9x1x16xf32> to vector<1x1x16xf32>
    %258 = vector.shape_cast %257 : vector<1x1x16xf32> to vector<1x16xf32>
    %259 = vector.broadcast %258 : vector<1x16xf32> to vector<20x16xf32>
    %260 = arith.mulf %256, %259 : vector<20x16xf32>
    %261 = vector.extract_strided_slice %212 {offsets = [0, 0], sizes = [20, 16], strides = [1, 1]} : vector<30x16xf32> to vector<20x16xf32>
    %262 = vector.extract_strided_slice %8 {offsets = [3, 0, 0], sizes = [1, 1, 16], strides = [1, 1, 1]} : vector<9x1x16xf32> to vector<1x1x16xf32>
    %263 = vector.shape_cast %262 : vector<1x1x16xf32> to vector<1x16xf32>
    %264 = vector.broadcast %263 : vector<1x16xf32> to vector<20x16xf32>
    %265 = arith.mulf %261, %264 : vector<20x16xf32>
    %266 = arith.addf %254, %260 : vector<20x16xf32>
    %267 = arith.addf %255, %265 : vector<20x16xf32>
    %268 = vector.extract_strided_slice %185 {offsets = [0, 0], sizes = [20, 16], strides = [1, 1]} : vector<30x16xf32> to vector<20x16xf32>
    %269 = vector.extract_strided_slice %6 {offsets = [4, 0, 0], sizes = [1, 1, 16], strides = [1, 1, 1]} : vector<9x1x16xf32> to vector<1x1x16xf32>
    %270 = vector.shape_cast %269 : vector<1x1x16xf32> to vector<1x16xf32>
    %271 = vector.broadcast %270 : vector<1x16xf32> to vector<20x16xf32>
    %272 = arith.mulf %268, %271 : vector<20x16xf32>
    %273 = vector.extract_strided_slice %221 {offsets = [0, 0], sizes = [20, 16], strides = [1, 1]} : vector<30x16xf32> to vector<20x16xf32>
    %274 = vector.extract_strided_slice %8 {offsets = [4, 0, 0], sizes = [1, 1, 16], strides = [1, 1, 1]} : vector<9x1x16xf32> to vector<1x1x16xf32>
    %275 = vector.shape_cast %274 : vector<1x1x16xf32> to vector<1x16xf32>
    %276 = vector.broadcast %275 : vector<1x16xf32> to vector<20x16xf32>
    %277 = arith.mulf %273, %276 : vector<20x16xf32>
    %278 = arith.addf %266, %272 : vector<20x16xf32>
    %279 = arith.addf %267, %277 : vector<20x16xf32>
    %280 = vector.extract_strided_slice %183 {offsets = [1, 0], sizes = [20, 16], strides = [1, 1]} : vector<30x16xf32> to vector<20x16xf32>
    %281 = vector.extract_strided_slice %6 {offsets = [5, 0, 0], sizes = [1, 1, 16], strides = [1, 1, 1]} : vector<9x1x16xf32> to vector<1x1x16xf32>
    %282 = vector.shape_cast %281 : vector<1x1x16xf32> to vector<1x16xf32>
    %283 = vector.broadcast %282 : vector<1x16xf32> to vector<20x16xf32>
    %284 = arith.mulf %280, %283 : vector<20x16xf32>
    %285 = vector.extract_strided_slice %212 {offsets = [1, 0], sizes = [20, 16], strides = [1, 1]} : vector<30x16xf32> to vector<20x16xf32>
    %286 = vector.extract_strided_slice %8 {offsets = [5, 0, 0], sizes = [1, 1, 16], strides = [1, 1, 1]} : vector<9x1x16xf32> to vector<1x1x16xf32>
    %287 = vector.shape_cast %286 : vector<1x1x16xf32> to vector<1x16xf32>
    %288 = vector.broadcast %287 : vector<1x16xf32> to vector<20x16xf32>
    %289 = arith.mulf %285, %288 : vector<20x16xf32>
    %290 = arith.addf %278, %284 : vector<20x16xf32>
    %291 = arith.addf %279, %289 : vector<20x16xf32>
    %292 = vector.extract_strided_slice %179 {offsets = [5, 0], sizes = [20, 16], strides = [1, 1]} : vector<30x16xf32> to vector<20x16xf32>
    %293 = vector.extract_strided_slice %6 {offsets = [6, 0, 0], sizes = [1, 1, 16], strides = [1, 1, 1]} : vector<9x1x16xf32> to vector<1x1x16xf32>
    %294 = vector.shape_cast %293 : vector<1x1x16xf32> to vector<1x16xf32>
    %295 = vector.broadcast %294 : vector<1x16xf32> to vector<20x16xf32>
    %296 = arith.mulf %292, %295 : vector<20x16xf32>
    %297 = vector.extract_strided_slice %194 {offsets = [5, 0], sizes = [20, 16], strides = [1, 1]} : vector<30x16xf32> to vector<20x16xf32>
    %298 = vector.extract_strided_slice %8 {offsets = [6, 0, 0], sizes = [1, 1, 16], strides = [1, 1, 1]} : vector<9x1x16xf32> to vector<1x1x16xf32>
    %299 = vector.shape_cast %298 : vector<1x1x16xf32> to vector<1x16xf32>
    %300 = vector.broadcast %299 : vector<1x16xf32> to vector<20x16xf32>
    %301 = arith.mulf %297, %300 : vector<20x16xf32>
    %302 = arith.addf %290, %296 : vector<20x16xf32>
    %303 = arith.addf %291, %301 : vector<20x16xf32>
    %304 = vector.extract_strided_slice %181 {offsets = [5, 0], sizes = [20, 16], strides = [1, 1]} : vector<30x16xf32> to vector<20x16xf32>
    %305 = vector.extract_strided_slice %6 {offsets = [7, 0, 0], sizes = [1, 1, 16], strides = [1, 1, 1]} : vector<9x1x16xf32> to vector<1x1x16xf32>
    %306 = vector.shape_cast %305 : vector<1x1x16xf32> to vector<1x16xf32>
    %307 = vector.broadcast %306 : vector<1x16xf32> to vector<20x16xf32>
    %308 = arith.mulf %304, %307 : vector<20x16xf32>
    %309 = vector.extract_strided_slice %203 {offsets = [5, 0], sizes = [20, 16], strides = [1, 1]} : vector<30x16xf32> to vector<20x16xf32>
    %310 = vector.extract_strided_slice %8 {offsets = [7, 0, 0], sizes = [1, 1, 16], strides = [1, 1, 1]} : vector<9x1x16xf32> to vector<1x1x16xf32>
    %311 = vector.shape_cast %310 : vector<1x1x16xf32> to vector<1x16xf32>
    %312 = vector.broadcast %311 : vector<1x16xf32> to vector<20x16xf32>
    %313 = arith.mulf %309, %312 : vector<20x16xf32>
    %314 = arith.addf %302, %308 : vector<20x16xf32>
    %315 = arith.addf %303, %313 : vector<20x16xf32>
    %316 = vector.extract_strided_slice %179 {offsets = [6, 0], sizes = [20, 16], strides = [1, 1]} : vector<30x16xf32> to vector<20x16xf32>
    %317 = vector.extract_strided_slice %6 {offsets = [8, 0, 0], sizes = [1, 1, 16], strides = [1, 1, 1]} : vector<9x1x16xf32> to vector<1x1x16xf32>
    %318 = vector.shape_cast %317 : vector<1x1x16xf32> to vector<1x16xf32>
    %319 = vector.broadcast %318 : vector<1x16xf32> to vector<20x16xf32>
    %320 = arith.mulf %316, %319 : vector<20x16xf32>
    %321 = vector.extract_strided_slice %194 {offsets = [6, 0], sizes = [20, 16], strides = [1, 1]} : vector<30x16xf32> to vector<20x16xf32>
    %322 = vector.extract_strided_slice %8 {offsets = [8, 0, 0], sizes = [1, 1, 16], strides = [1, 1, 1]} : vector<9x1x16xf32> to vector<1x1x16xf32>
    %323 = vector.shape_cast %322 : vector<1x1x16xf32> to vector<1x16xf32>
    %324 = vector.broadcast %323 : vector<1x16xf32> to vector<20x16xf32>
    %325 = arith.mulf %321, %324 : vector<20x16xf32>
    %326 = arith.addf %314, %320 : vector<20x16xf32>
    %327 = arith.addf %315, %325 : vector<20x16xf32>
    %328 = vector.broadcast %7 : vector<1x16xf32> to vector<20x16xf32>
    %329 = arith.addf %326, %328 : vector<20x16xf32>
    %330 = vector.broadcast %9 : vector<1x16xf32> to vector<20x16xf32>
    %331 = arith.addf %327, %330 : vector<20x16xf32>
    %cst_96 = arith.constant dense<0.000000e+00> : vector<20x32xf32>
    %332 = tpu.matmul %329, %4, %cst_96 {dimension_numbers = #tpu.dot_dimension_numbers<[1], [0], [0], [1], [0, 0, 1, 1], [], []>} : vector<20x16xf32>, vector<16x32xf32>, vector<20x32xf32> -> vector<20x32xf32>
    %333 = vector.broadcast %5 : vector<1x32xf32> to vector<20x32xf32>
    %334 = arith.addf %332, %333 : vector<20x32xf32>
    %cst_97 = arith.constant 0.000000e+00 : f32
    %335 = vector.broadcast %cst_97 : f32 to vector<20x32xf32>
    %336 = arith.maximumf %334, %335 : vector<20x32xf32>
    %cst_98 = arith.constant dense<0.000000e+00> : vector<20x32xf32>
    %337 = tpu.matmul %331, %2, %cst_98 {dimension_numbers = #tpu.dot_dimension_numbers<[1], [0], [0], [1], [0, 0, 1, 1], [], []>} : vector<20x16xf32>, vector<16x32xf32>, vector<20x32xf32> -> vector<20x32xf32>
    %338 = vector.broadcast %3 : vector<1x32xf32> to vector<20x32xf32>
    %339 = arith.addf %337, %338 : vector<20x32xf32>
    %cst_99 = arith.constant 0.000000e+00 : f32
    %340 = vector.broadcast %cst_99 : f32 to vector<20x32xf32>
    %341 = arith.maximumf %339, %340 : vector<20x32xf32>
    %342 = arith.addf %336, %341 : vector<20x32xf32>
    %c1_100 = arith.constant 1 : index
    %c0_101 = arith.constant 0 : index
    %c0_102 = arith.constant 0 : index
    %343 = vector.load %arg13[%c1_100, %c0_101, %c0_102] : memref<2x20x32xf32, #tpu.memory_space<vmem>>, vector<1x20x32xf32>
    %344 = vector.shape_cast %343 : vector<1x20x32xf32> to vector<20x32xf32>
    %345 = vector.shape_cast %342 : vector<20x32xf32> to vector<1x20x32xf32>
    tpu.vector_store %arg13[%c1_100, %c0_101, %c0_102], %345 {strides = array<i32>} : memref<2x20x32xf32, #tpu.memory_space<vmem>>, vector<1x20x32xf32>,
    return
  }
  func.func @transform_0(%arg0: i32) -> (i32, i32, i32, i32) {
    %c0_i32 = arith.constant 0 : i32
    %c0_i32_0 = arith.constant 0 : i32
    %c0_i32_1 = arith.constant 0 : i32
    %c0_i32_2 = arith.constant 0 : i32
    %c0_i32_3 = arith.constant 0 : i32
    return %c0_i32, %c0_i32_0, %c0_i32_1, %c0_i32_2 : i32, i32, i32, i32
  }
  func.func @transform_1(%arg0: i32) -> (i32, i32, i32) {
    %c0_i32 = arith.constant 0 : i32
    %c0_i32_0 = arith.constant 0 : i32
    %c0_i32_1 = arith.constant 0 : i32
    %c0_i32_2 = arith.constant 0 : i32
    return %c0_i32, %c0_i32_0, %c0_i32_1 : i32, i32, i32
  }
  func.func @transform_2(%arg0: i32) -> (i32, i32) {
    %c0_i32 = arith.constant 0 : i32
    %c0_i32_0 = arith.constant 0 : i32
    %c0_i32_1 = arith.constant 0 : i32
    return %c0_i32, %c0_i32_0 : i32, i32
  }
  func.func @transform_3(%arg0: i32) -> (i32, i32) {
    %c0_i32 = arith.constant 0 : i32
    %c0_i32_0 = arith.constant 0 : i32
    %c0_i32_1 = arith.constant 0 : i32
    return %c0_i32, %c0_i32_0 : i32, i32
  }
  func.func @transform_4(%arg0: i32) -> (i32, i32, i32) {
    %c0_i32 = arith.constant 0 : i32
    %c0_i32_0 = arith.constant 0 : i32
    %c0_i32_1 = arith.constant 0 : i32
    %c0_i32_2 = arith.constant 0 : i32
    return %c0_i32, %c0_i32_0, %c0_i32_1 : i32, i32, i32
  }
  func.func @transform_5(%arg0: i32) -> (i32, i32) {
    %c0_i32 = arith.constant 0 : i32
    %c0_i32_0 = arith.constant 0 : i32
    %c0_i32_1 = arith.constant 0 : i32
    return %c0_i32, %c0_i32_0 : i32, i32
  }
  func.func @transform_6(%arg0: i32) -> (i32, i32) {
    %c0_i32 = arith.constant 0 : i32
    %c0_i32_0 = arith.constant 0 : i32
    %c0_i32_1 = arith.constant 0 : i32
    return %c0_i32, %c0_i32_0 : i32, i32
  }
  func.func @transform_7(%arg0: i32) -> (i32, i32) {
    %c0_i32 = arith.constant 0 : i32
    %c0_i32_0 = arith.constant 0 : i32
    %c0_i32_1 = arith.constant 0 : i32
    return %c0_i32, %c0_i32_0 : i32, i32
  }
  func.func @transform_8(%arg0: i32) -> (i32, i32, i32) {
    %c0_i32 = arith.constant 0 : i32
    %c0_i32_0 = arith.constant 0 : i32
    %c0_i32_1 = arith.constant 0 : i32
    %c0_i32_2 = arith.constant 0 : i32
    return %c0_i32, %c0_i32_0, %c0_i32_1 : i32, i32, i32
  }
  func.func @transform_9(%arg0: i32) -> (i32, i32) {
    %c0_i32 = arith.constant 0 : i32
    %c0_i32_0 = arith.constant 0 : i32
    %c0_i32_1 = arith.constant 0 : i32
    return %c0_i32, %c0_i32_0 : i32, i32
  }
  func.func @transform_10(%arg0: i32) -> (i32, i32) {
    %c0_i32 = arith.constant 0 : i32
    %c0_i32_0 = arith.constant 0 : i32
    %c0_i32_1 = arith.constant 0 : i32
    return %c0_i32, %c0_i32_0 : i32, i32
  }
  func.func @transform_11(%arg0: i32) -> (i32, i32) {
    %c0_i32 = arith.constant 0 : i32
    %c0_i32_0 = arith.constant 0 : i32
    %c0_i32_1 = arith.constant 0 : i32
    return %c0_i32, %c0_i32_0 : i32, i32
  }
  func.func @transform_12(%arg0: i32) -> (i32, i32, i32) {
    %c0_i32 = arith.constant 0 : i32
    %c0_i32_0 = arith.constant 0 : i32
    %c0_i32_1 = arith.constant 0 : i32
    %c0_i32_2 = arith.constant 0 : i32
    return %c0_i32, %c0_i32_0, %c0_i32_1 : i32, i32, i32
  }
}

module attributes {stable_mosaic.version = 11 : i64} {
  func.func @_block_s1_kernel(%arg0: i32, %arg1: memref<2x42x16xf32, #tpu.memory_space<vmem>>, %arg2: memref<2x42x16xf32, #tpu.memory_space<vmem>>, %arg3: memref<42x1xf32, #tpu.memory_space<vmem>>, %arg4: memref<16x16xf32, #tpu.memory_space<vmem>>, %arg5: memref<1x16xf32, #tpu.memory_space<vmem>>, %arg6: memref<9x1x16xf32, #tpu.memory_space<vmem>>, %arg7: memref<1x16xf32, #tpu.memory_space<vmem>>, %arg8: memref<16x32xf32, #tpu.memory_space<vmem>>, %arg9: memref<1x32xf32, #tpu.memory_space<vmem>>, %arg10: memref<16x32xf32, #tpu.memory_space<vmem>>, %arg11: memref<2x24x32xf32, #tpu.memory_space<vmem>>) attributes {dimension_semantics = [#tpu.dimension_semantics<arbitrary>], iteration_bounds = array<i64: 1>, scalar_prefetch = 0 : i64, scratch_operands = 0 : i64, tpu.core_type = #tpu.core_type<tc>, window_params = [{pipeline_mode = #tpu.pipeline_mode<synchronous>, transform_indices = @transform_0, window_bounds = array<i64: 2, 42, 16>}, {pipeline_mode = #tpu.pipeline_mode<synchronous>, transform_indices = @transform_1, window_bounds = array<i64: 2, 42, 16>}, {pipeline_mode = #tpu.pipeline_mode<synchronous>, transform_indices = @transform_2, window_bounds = array<i64: 42, 1>}, {pipeline_mode = #tpu.pipeline_mode<synchronous>, transform_indices = @transform_3, window_bounds = array<i64: 16, 16>}, {pipeline_mode = #tpu.pipeline_mode<synchronous>, transform_indices = @transform_4, window_bounds = array<i64: 1, 16>}, {pipeline_mode = #tpu.pipeline_mode<synchronous>, transform_indices = @transform_5, window_bounds = array<i64: 9, 1, 16>}, {pipeline_mode = #tpu.pipeline_mode<synchronous>, transform_indices = @transform_6, window_bounds = array<i64: 1, 16>}, {pipeline_mode = #tpu.pipeline_mode<synchronous>, transform_indices = @transform_7, window_bounds = array<i64: 16, 32>}, {pipeline_mode = #tpu.pipeline_mode<synchronous>, transform_indices = @transform_8, window_bounds = array<i64: 1, 32>}, {pipeline_mode = #tpu.pipeline_mode<synchronous>, transform_indices = @transform_9, window_bounds = array<i64: 16, 32>}, {pipeline_mode = #tpu.pipeline_mode<synchronous>, transform_indices = @transform_10, window_bounds = array<i64: 2, 24, 32>}]} {
    %c0 = arith.constant 0 : index
    %c0_0 = arith.constant 0 : index
    %0 = vector.load %arg3[%c0, %c0_0] : memref<42x1xf32, #tpu.memory_space<vmem>>, vector<42x1xf32>
    %c0_1 = arith.constant 0 : index
    %c0_2 = arith.constant 0 : index
    %1 = vector.load %arg4[%c0_1, %c0_2] : memref<16x16xf32, #tpu.memory_space<vmem>>, vector<16x16xf32>
    %c0_3 = arith.constant 0 : index
    %c0_4 = arith.constant 0 : index
    %2 = vector.load %arg5[%c0_3, %c0_4] : memref<1x16xf32, #tpu.memory_space<vmem>>, vector<1x16xf32>
    %c0_5 = arith.constant 0 : index
    %c0_6 = arith.constant 0 : index
    %3 = vector.load %arg8[%c0_5, %c0_6] : memref<16x32xf32, #tpu.memory_space<vmem>>, vector<16x32xf32>
    %c0_7 = arith.constant 0 : index
    %c0_8 = arith.constant 0 : index
    %4 = vector.load %arg9[%c0_7, %c0_8] : memref<1x32xf32, #tpu.memory_space<vmem>>, vector<1x32xf32>
    %c0_9 = arith.constant 0 : index
    %c0_10 = arith.constant 0 : index
    %5 = vector.load %arg10[%c0_9, %c0_10] : memref<16x32xf32, #tpu.memory_space<vmem>>, vector<16x32xf32>
    %c0_11 = arith.constant 0 : index
    %c0_12 = arith.constant 0 : index
    %c0_13 = arith.constant 0 : index
    %6 = vector.load %arg6[%c0_11, %c0_12, %c0_13] : memref<9x1x16xf32, #tpu.memory_space<vmem>>, vector<9x1x16xf32>
    %c0_14 = arith.constant 0 : index
    %c0_15 = arith.constant 0 : index
    %7 = vector.load %arg7[%c0_14, %c0_15] : memref<1x16xf32, #tpu.memory_space<vmem>>, vector<1x16xf32>
    %c0_16 = arith.constant 0 : index
    %c0_17 = arith.constant 0 : index
    %c0_18 = arith.constant 0 : index
    %8 = vector.load %arg2[%c0_16, %c0_17, %c0_18] : memref<2x42x16xf32, #tpu.memory_space<vmem>>, vector<1x42x16xf32>
    %9 = vector.shape_cast %8 : vector<1x42x16xf32> to vector<42x16xf32>
    %cst = arith.constant dense<0.000000e+00> : vector<42x16xf32>
    %10 = tpu.matmul %9, %1, %cst {dimension_numbers = #tpu.dot_dimension_numbers<[1], [0], [0], [1], [0, 0, 1, 1], [], []>} : vector<42x16xf32>, vector<16x16xf32>, vector<42x16xf32> -> vector<42x16xf32>
    %11 = vector.broadcast %2 : vector<1x16xf32> to vector<42x16xf32>
    %12 = arith.addf %10, %11 : vector<42x16xf32>
    %cst_19 = arith.constant 0.000000e+00 : f32
    %13 = vector.broadcast %cst_19 : f32 to vector<42x16xf32>
    %14 = arith.maximumf %12, %13 : vector<42x16xf32>
    %15 = vector.broadcast %0 : vector<42x1xf32> to vector<42x16xf32>
    %16 = arith.mulf %14, %15 : vector<42x16xf32>
    %17 = vector.extract_strided_slice %16 {offsets = [0, 0], sizes = [24, 16], strides = [1, 1]} : vector<42x16xf32> to vector<24x16xf32>
    %18 = vector.extract_strided_slice %6 {offsets = [0, 0, 0], sizes = [1, 1, 16], strides = [1, 1, 1]} : vector<9x1x16xf32> to vector<1x1x16xf32>
    %19 = vector.shape_cast %18 : vector<1x1x16xf32> to vector<1x16xf32>
    %20 = vector.broadcast %19 : vector<1x16xf32> to vector<24x16xf32>
    %21 = arith.mulf %17, %20 : vector<24x16xf32>
    %22 = vector.extract_strided_slice %16 {offsets = [1, 0], sizes = [24, 16], strides = [1, 1]} : vector<42x16xf32> to vector<24x16xf32>
    %23 = vector.extract_strided_slice %6 {offsets = [1, 0, 0], sizes = [1, 1, 16], strides = [1, 1, 1]} : vector<9x1x16xf32> to vector<1x1x16xf32>
    %24 = vector.shape_cast %23 : vector<1x1x16xf32> to vector<1x16xf32>
    %25 = vector.broadcast %24 : vector<1x16xf32> to vector<24x16xf32>
    %26 = arith.mulf %22, %25 : vector<24x16xf32>
    %27 = arith.addf %21, %26 : vector<24x16xf32>
    %28 = vector.extract_strided_slice %16 {offsets = [2, 0], sizes = [24, 16], strides = [1, 1]} : vector<42x16xf32> to vector<24x16xf32>
    %29 = vector.extract_strided_slice %6 {offsets = [2, 0, 0], sizes = [1, 1, 16], strides = [1, 1, 1]} : vector<9x1x16xf32> to vector<1x1x16xf32>
    %30 = vector.shape_cast %29 : vector<1x1x16xf32> to vector<1x16xf32>
    %31 = vector.broadcast %30 : vector<1x16xf32> to vector<24x16xf32>
    %32 = arith.mulf %28, %31 : vector<24x16xf32>
    %33 = arith.addf %27, %32 : vector<24x16xf32>
    %34 = vector.extract_strided_slice %16 {offsets = [6, 0], sizes = [24, 16], strides = [1, 1]} : vector<42x16xf32> to vector<24x16xf32>
    %35 = vector.extract_strided_slice %6 {offsets = [3, 0, 0], sizes = [1, 1, 16], strides = [1, 1, 1]} : vector<9x1x16xf32> to vector<1x1x16xf32>
    %36 = vector.shape_cast %35 : vector<1x1x16xf32> to vector<1x16xf32>
    %37 = vector.broadcast %36 : vector<1x16xf32> to vector<24x16xf32>
    %38 = arith.mulf %34, %37 : vector<24x16xf32>
    %39 = arith.addf %33, %38 : vector<24x16xf32>
    %40 = vector.extract_strided_slice %16 {offsets = [7, 0], sizes = [24, 16], strides = [1, 1]} : vector<42x16xf32> to vector<24x16xf32>
    %41 = vector.extract_strided_slice %6 {offsets = [4, 0, 0], sizes = [1, 1, 16], strides = [1, 1, 1]} : vector<9x1x16xf32> to vector<1x1x16xf32>
    %42 = vector.shape_cast %41 : vector<1x1x16xf32> to vector<1x16xf32>
    %43 = vector.broadcast %42 : vector<1x16xf32> to vector<24x16xf32>
    %44 = arith.mulf %40, %43 : vector<24x16xf32>
    %45 = arith.addf %39, %44 : vector<24x16xf32>
    %46 = vector.extract_strided_slice %16 {offsets = [8, 0], sizes = [24, 16], strides = [1, 1]} : vector<42x16xf32> to vector<24x16xf32>
    %47 = vector.extract_strided_slice %6 {offsets = [5, 0, 0], sizes = [1, 1, 16], strides = [1, 1, 1]} : vector<9x1x16xf32> to vector<1x1x16xf32>
    %48 = vector.shape_cast %47 : vector<1x1x16xf32> to vector<1x16xf32>
    %49 = vector.broadcast %48 : vector<1x16xf32> to vector<24x16xf32>
    %50 = arith.mulf %46, %49 : vector<24x16xf32>
    %51 = arith.addf %45, %50 : vector<24x16xf32>
    %52 = vector.extract_strided_slice %16 {offsets = [12, 0], sizes = [24, 16], strides = [1, 1]} : vector<42x16xf32> to vector<24x16xf32>
    %53 = vector.extract_strided_slice %6 {offsets = [6, 0, 0], sizes = [1, 1, 16], strides = [1, 1, 1]} : vector<9x1x16xf32> to vector<1x1x16xf32>
    %54 = vector.shape_cast %53 : vector<1x1x16xf32> to vector<1x16xf32>
    %55 = vector.broadcast %54 : vector<1x16xf32> to vector<24x16xf32>
    %56 = arith.mulf %52, %55 : vector<24x16xf32>
    %57 = arith.addf %51, %56 : vector<24x16xf32>
    %58 = vector.extract_strided_slice %16 {offsets = [13, 0], sizes = [24, 16], strides = [1, 1]} : vector<42x16xf32> to vector<24x16xf32>
    %59 = vector.extract_strided_slice %6 {offsets = [7, 0, 0], sizes = [1, 1, 16], strides = [1, 1, 1]} : vector<9x1x16xf32> to vector<1x1x16xf32>
    %60 = vector.shape_cast %59 : vector<1x1x16xf32> to vector<1x16xf32>
    %61 = vector.broadcast %60 : vector<1x16xf32> to vector<24x16xf32>
    %62 = arith.mulf %58, %61 : vector<24x16xf32>
    %63 = arith.addf %57, %62 : vector<24x16xf32>
    %64 = vector.extract_strided_slice %16 {offsets = [14, 0], sizes = [24, 16], strides = [1, 1]} : vector<42x16xf32> to vector<24x16xf32>
    %65 = vector.extract_strided_slice %6 {offsets = [8, 0, 0], sizes = [1, 1, 16], strides = [1, 1, 1]} : vector<9x1x16xf32> to vector<1x1x16xf32>
    %66 = vector.shape_cast %65 : vector<1x1x16xf32> to vector<1x16xf32>
    %67 = vector.broadcast %66 : vector<1x16xf32> to vector<24x16xf32>
    %68 = arith.mulf %64, %67 : vector<24x16xf32>
    %69 = arith.addf %63, %68 : vector<24x16xf32>
    %70 = vector.broadcast %7 : vector<1x16xf32> to vector<24x16xf32>
    %71 = arith.addf %69, %70 : vector<24x16xf32>
    %cst_20 = arith.constant dense<0.000000e+00> : vector<24x32xf32>
    %72 = tpu.matmul %71, %3, %cst_20 {dimension_numbers = #tpu.dot_dimension_numbers<[1], [0], [0], [1], [0, 0, 1, 1], [], []>} : vector<24x16xf32>, vector<16x32xf32>, vector<24x32xf32> -> vector<24x32xf32>
    %73 = vector.broadcast %4 : vector<1x32xf32> to vector<24x32xf32>
    %74 = arith.addf %72, %73 : vector<24x32xf32>
    %cst_21 = arith.constant 0.000000e+00 : f32
    %75 = vector.broadcast %cst_21 : f32 to vector<24x32xf32>
    %76 = arith.maximumf %74, %75 : vector<24x32xf32>
    %c0_22 = arith.constant 0 : index
    %c0_23 = arith.constant 0 : index
    %c0_24 = arith.constant 0 : index
    %77 = vector.load %arg1[%c0_22, %c0_23, %c0_24] : memref<2x42x16xf32, #tpu.memory_space<vmem>>, vector<1x42x16xf32>
    %78 = vector.shape_cast %77 : vector<1x42x16xf32> to vector<42x16xf32>
    %79 = vector.extract_strided_slice %78 {offsets = [7, 0], sizes = [24, 16], strides = [1, 1]} : vector<42x16xf32> to vector<24x16xf32>
    %cst_25 = arith.constant dense<0.000000e+00> : vector<24x32xf32>
    %80 = tpu.matmul %79, %5, %cst_25 {dimension_numbers = #tpu.dot_dimension_numbers<[1], [0], [0], [1], [0, 0, 1, 1], [], []>} : vector<24x16xf32>, vector<16x32xf32>, vector<24x32xf32> -> vector<24x32xf32>
    %81 = arith.addf %80, %76 : vector<24x32xf32>
    %c0_26 = arith.constant 0 : index
    %c0_27 = arith.constant 0 : index
    %c0_28 = arith.constant 0 : index
    %82 = vector.load %arg11[%c0_26, %c0_27, %c0_28] : memref<2x24x32xf32, #tpu.memory_space<vmem>>, vector<1x24x32xf32>
    %83 = vector.shape_cast %82 : vector<1x24x32xf32> to vector<24x32xf32>
    %84 = vector.shape_cast %81 : vector<24x32xf32> to vector<1x24x32xf32>
    tpu.vector_store %arg11[%c0_26, %c0_27, %c0_28], %84 {strides = array<i32>} : memref<2x24x32xf32, #tpu.memory_space<vmem>>, vector<1x24x32xf32>,
    %c1 = arith.constant 1 : index
    %c0_29 = arith.constant 0 : index
    %c0_30 = arith.constant 0 : index
    %85 = vector.load %arg2[%c1, %c0_29, %c0_30] : memref<2x42x16xf32, #tpu.memory_space<vmem>>, vector<1x42x16xf32>
    %86 = vector.shape_cast %85 : vector<1x42x16xf32> to vector<42x16xf32>
    %cst_31 = arith.constant dense<0.000000e+00> : vector<42x16xf32>
    %87 = tpu.matmul %86, %1, %cst_31 {dimension_numbers = #tpu.dot_dimension_numbers<[1], [0], [0], [1], [0, 0, 1, 1], [], []>} : vector<42x16xf32>, vector<16x16xf32>, vector<42x16xf32> -> vector<42x16xf32>
    %88 = vector.broadcast %2 : vector<1x16xf32> to vector<42x16xf32>
    %89 = arith.addf %87, %88 : vector<42x16xf32>
    %cst_32 = arith.constant 0.000000e+00 : f32
    %90 = vector.broadcast %cst_32 : f32 to vector<42x16xf32>
    %91 = arith.maximumf %89, %90 : vector<42x16xf32>
    %92 = vector.broadcast %0 : vector<42x1xf32> to vector<42x16xf32>
    %93 = arith.mulf %91, %92 : vector<42x16xf32>
    %94 = vector.extract_strided_slice %93 {offsets = [0, 0], sizes = [24, 16], strides = [1, 1]} : vector<42x16xf32> to vector<24x16xf32>
    %95 = vector.extract_strided_slice %6 {offsets = [0, 0, 0], sizes = [1, 1, 16], strides = [1, 1, 1]} : vector<9x1x16xf32> to vector<1x1x16xf32>
    %96 = vector.shape_cast %95 : vector<1x1x16xf32> to vector<1x16xf32>
    %97 = vector.broadcast %96 : vector<1x16xf32> to vector<24x16xf32>
    %98 = arith.mulf %94, %97 : vector<24x16xf32>
    %99 = vector.extract_strided_slice %93 {offsets = [1, 0], sizes = [24, 16], strides = [1, 1]} : vector<42x16xf32> to vector<24x16xf32>
    %100 = vector.extract_strided_slice %6 {offsets = [1, 0, 0], sizes = [1, 1, 16], strides = [1, 1, 1]} : vector<9x1x16xf32> to vector<1x1x16xf32>
    %101 = vector.shape_cast %100 : vector<1x1x16xf32> to vector<1x16xf32>
    %102 = vector.broadcast %101 : vector<1x16xf32> to vector<24x16xf32>
    %103 = arith.mulf %99, %102 : vector<24x16xf32>
    %104 = arith.addf %98, %103 : vector<24x16xf32>
    %105 = vector.extract_strided_slice %93 {offsets = [2, 0], sizes = [24, 16], strides = [1, 1]} : vector<42x16xf32> to vector<24x16xf32>
    %106 = vector.extract_strided_slice %6 {offsets = [2, 0, 0], sizes = [1, 1, 16], strides = [1, 1, 1]} : vector<9x1x16xf32> to vector<1x1x16xf32>
    %107 = vector.shape_cast %106 : vector<1x1x16xf32> to vector<1x16xf32>
    %108 = vector.broadcast %107 : vector<1x16xf32> to vector<24x16xf32>
    %109 = arith.mulf %105, %108 : vector<24x16xf32>
    %110 = arith.addf %104, %109 : vector<24x16xf32>
    %111 = vector.extract_strided_slice %93 {offsets = [6, 0], sizes = [24, 16], strides = [1, 1]} : vector<42x16xf32> to vector<24x16xf32>
    %112 = vector.extract_strided_slice %6 {offsets = [3, 0, 0], sizes = [1, 1, 16], strides = [1, 1, 1]} : vector<9x1x16xf32> to vector<1x1x16xf32>
    %113 = vector.shape_cast %112 : vector<1x1x16xf32> to vector<1x16xf32>
    %114 = vector.broadcast %113 : vector<1x16xf32> to vector<24x16xf32>
    %115 = arith.mulf %111, %114 : vector<24x16xf32>
    %116 = arith.addf %110, %115 : vector<24x16xf32>
    %117 = vector.extract_strided_slice %93 {offsets = [7, 0], sizes = [24, 16], strides = [1, 1]} : vector<42x16xf32> to vector<24x16xf32>
    %118 = vector.extract_strided_slice %6 {offsets = [4, 0, 0], sizes = [1, 1, 16], strides = [1, 1, 1]} : vector<9x1x16xf32> to vector<1x1x16xf32>
    %119 = vector.shape_cast %118 : vector<1x1x16xf32> to vector<1x16xf32>
    %120 = vector.broadcast %119 : vector<1x16xf32> to vector<24x16xf32>
    %121 = arith.mulf %117, %120 : vector<24x16xf32>
    %122 = arith.addf %116, %121 : vector<24x16xf32>
    %123 = vector.extract_strided_slice %93 {offsets = [8, 0], sizes = [24, 16], strides = [1, 1]} : vector<42x16xf32> to vector<24x16xf32>
    %124 = vector.extract_strided_slice %6 {offsets = [5, 0, 0], sizes = [1, 1, 16], strides = [1, 1, 1]} : vector<9x1x16xf32> to vector<1x1x16xf32>
    %125 = vector.shape_cast %124 : vector<1x1x16xf32> to vector<1x16xf32>
    %126 = vector.broadcast %125 : vector<1x16xf32> to vector<24x16xf32>
    %127 = arith.mulf %123, %126 : vector<24x16xf32>
    %128 = arith.addf %122, %127 : vector<24x16xf32>
    %129 = vector.extract_strided_slice %93 {offsets = [12, 0], sizes = [24, 16], strides = [1, 1]} : vector<42x16xf32> to vector<24x16xf32>
    %130 = vector.extract_strided_slice %6 {offsets = [6, 0, 0], sizes = [1, 1, 16], strides = [1, 1, 1]} : vector<9x1x16xf32> to vector<1x1x16xf32>
    %131 = vector.shape_cast %130 : vector<1x1x16xf32> to vector<1x16xf32>
    %132 = vector.broadcast %131 : vector<1x16xf32> to vector<24x16xf32>
    %133 = arith.mulf %129, %132 : vector<24x16xf32>
    %134 = arith.addf %128, %133 : vector<24x16xf32>
    %135 = vector.extract_strided_slice %93 {offsets = [13, 0], sizes = [24, 16], strides = [1, 1]} : vector<42x16xf32> to vector<24x16xf32>
    %136 = vector.extract_strided_slice %6 {offsets = [7, 0, 0], sizes = [1, 1, 16], strides = [1, 1, 1]} : vector<9x1x16xf32> to vector<1x1x16xf32>
    %137 = vector.shape_cast %136 : vector<1x1x16xf32> to vector<1x16xf32>
    %138 = vector.broadcast %137 : vector<1x16xf32> to vector<24x16xf32>
    %139 = arith.mulf %135, %138 : vector<24x16xf32>
    %140 = arith.addf %134, %139 : vector<24x16xf32>
    %141 = vector.extract_strided_slice %93 {offsets = [14, 0], sizes = [24, 16], strides = [1, 1]} : vector<42x16xf32> to vector<24x16xf32>
    %142 = vector.extract_strided_slice %6 {offsets = [8, 0, 0], sizes = [1, 1, 16], strides = [1, 1, 1]} : vector<9x1x16xf32> to vector<1x1x16xf32>
    %143 = vector.shape_cast %142 : vector<1x1x16xf32> to vector<1x16xf32>
    %144 = vector.broadcast %143 : vector<1x16xf32> to vector<24x16xf32>
    %145 = arith.mulf %141, %144 : vector<24x16xf32>
    %146 = arith.addf %140, %145 : vector<24x16xf32>
    %147 = vector.broadcast %7 : vector<1x16xf32> to vector<24x16xf32>
    %148 = arith.addf %146, %147 : vector<24x16xf32>
    %cst_33 = arith.constant dense<0.000000e+00> : vector<24x32xf32>
    %149 = tpu.matmul %148, %3, %cst_33 {dimension_numbers = #tpu.dot_dimension_numbers<[1], [0], [0], [1], [0, 0, 1, 1], [], []>} : vector<24x16xf32>, vector<16x32xf32>, vector<24x32xf32> -> vector<24x32xf32>
    %150 = vector.broadcast %4 : vector<1x32xf32> to vector<24x32xf32>
    %151 = arith.addf %149, %150 : vector<24x32xf32>
    %cst_34 = arith.constant 0.000000e+00 : f32
    %152 = vector.broadcast %cst_34 : f32 to vector<24x32xf32>
    %153 = arith.maximumf %151, %152 : vector<24x32xf32>
    %c1_35 = arith.constant 1 : index
    %c0_36 = arith.constant 0 : index
    %c0_37 = arith.constant 0 : index
    %154 = vector.load %arg1[%c1_35, %c0_36, %c0_37] : memref<2x42x16xf32, #tpu.memory_space<vmem>>, vector<1x42x16xf32>
    %155 = vector.shape_cast %154 : vector<1x42x16xf32> to vector<42x16xf32>
    %156 = vector.extract_strided_slice %155 {offsets = [7, 0], sizes = [24, 16], strides = [1, 1]} : vector<42x16xf32> to vector<24x16xf32>
    %cst_38 = arith.constant dense<0.000000e+00> : vector<24x32xf32>
    %157 = tpu.matmul %156, %5, %cst_38 {dimension_numbers = #tpu.dot_dimension_numbers<[1], [0], [0], [1], [0, 0, 1, 1], [], []>} : vector<24x16xf32>, vector<16x32xf32>, vector<24x32xf32> -> vector<24x32xf32>
    %158 = arith.addf %157, %153 : vector<24x32xf32>
    %c1_39 = arith.constant 1 : index
    %c0_40 = arith.constant 0 : index
    %c0_41 = arith.constant 0 : index
    %159 = vector.load %arg11[%c1_39, %c0_40, %c0_41] : memref<2x24x32xf32, #tpu.memory_space<vmem>>, vector<1x24x32xf32>
    %160 = vector.shape_cast %159 : vector<1x24x32xf32> to vector<24x32xf32>
    %161 = vector.shape_cast %158 : vector<24x32xf32> to vector<1x24x32xf32>
    tpu.vector_store %arg11[%c1_39, %c0_40, %c0_41], %161 {strides = array<i32>} : memref<2x24x32xf32, #tpu.memory_space<vmem>>, vector<1x24x32xf32>,
    return
  }
  func.func @transform_0(%arg0: i32) -> (i32, i32, i32) {
    %c0_i32 = arith.constant 0 : i32
    %c0_i32_0 = arith.constant 0 : i32
    %c0_i32_1 = arith.constant 0 : i32
    %c0_i32_2 = arith.constant 0 : i32
    return %c0_i32, %c0_i32_0, %c0_i32_1 : i32, i32, i32
  }
  func.func @transform_1(%arg0: i32) -> (i32, i32, i32) {
    %c0_i32 = arith.constant 0 : i32
    %c0_i32_0 = arith.constant 0 : i32
    %c0_i32_1 = arith.constant 0 : i32
    %c0_i32_2 = arith.constant 0 : i32
    return %c0_i32, %c0_i32_0, %c0_i32_1 : i32, i32, i32
  }
  func.func @transform_2(%arg0: i32) -> (i32, i32) {
    %c0_i32 = arith.constant 0 : i32
    %c0_i32_0 = arith.constant 0 : i32
    %c0_i32_1 = arith.constant 0 : i32
    return %c0_i32, %c0_i32_0 : i32, i32
  }
  func.func @transform_3(%arg0: i32) -> (i32, i32) {
    %c0_i32 = arith.constant 0 : i32
    %c0_i32_0 = arith.constant 0 : i32
    %c0_i32_1 = arith.constant 0 : i32
    return %c0_i32, %c0_i32_0 : i32, i32
  }
  func.func @transform_4(%arg0: i32) -> (i32, i32) {
    %c0_i32 = arith.constant 0 : i32
    %c0_i32_0 = arith.constant 0 : i32
    %c0_i32_1 = arith.constant 0 : i32
    return %c0_i32, %c0_i32_0 : i32, i32
  }
  func.func @transform_5(%arg0: i32) -> (i32, i32, i32) {
    %c0_i32 = arith.constant 0 : i32
    %c0_i32_0 = arith.constant 0 : i32
    %c0_i32_1 = arith.constant 0 : i32
    %c0_i32_2 = arith.constant 0 : i32
    return %c0_i32, %c0_i32_0, %c0_i32_1 : i32, i32, i32
  }
  func.func @transform_6(%arg0: i32) -> (i32, i32) {
    %c0_i32 = arith.constant 0 : i32
    %c0_i32_0 = arith.constant 0 : i32
    %c0_i32_1 = arith.constant 0 : i32
    return %c0_i32, %c0_i32_0 : i32, i32
  }
  func.func @transform_7(%arg0: i32) -> (i32, i32) {
    %c0_i32 = arith.constant 0 : i32
    %c0_i32_0 = arith.constant 0 : i32
    %c0_i32_1 = arith.constant 0 : i32
    return %c0_i32, %c0_i32_0 : i32, i32
  }
  func.func @transform_8(%arg0: i32) -> (i32, i32) {
    %c0_i32 = arith.constant 0 : i32
    %c0_i32_0 = arith.constant 0 : i32
    %c0_i32_1 = arith.constant 0 : i32
    return %c0_i32, %c0_i32_0 : i32, i32
  }
  func.func @transform_9(%arg0: i32) -> (i32, i32) {
    %c0_i32 = arith.constant 0 : i32
    %c0_i32_0 = arith.constant 0 : i32
    %c0_i32_1 = arith.constant 0 : i32
    return %c0_i32, %c0_i32_0 : i32, i32
  }
  func.func @transform_10(%arg0: i32) -> (i32, i32, i32) {
    %c0_i32 = arith.constant 0 : i32
    %c0_i32_0 = arith.constant 0 : i32
    %c0_i32_1 = arith.constant 0 : i32
    %c0_i32_2 = arith.constant 0 : i32
    return %c0_i32, %c0_i32_0, %c0_i32_1 : i32, i32, i32
  }
}

module attributes {stable_mosaic.version = 11 : i64} {
  func.func @_block_s2_kernel(%arg0: i32, %arg1: memref<2x4x12x32xf32, #tpu.memory_space<vmem>>, %arg2: memref<4x12x1xf32, #tpu.memory_space<vmem>>, %arg3: memref<32x32xf32, #tpu.memory_space<vmem>>, %arg4: memref<1x32xf32, #tpu.memory_space<vmem>>, %arg5: memref<9x1x32xf32, #tpu.memory_space<vmem>>, %arg6: memref<1x32xf32, #tpu.memory_space<vmem>>, %arg7: memref<32x64xf32, #tpu.memory_space<vmem>>, %arg8: memref<1x64xf32, #tpu.memory_space<vmem>>, %arg9: memref<9x1x32xf32, #tpu.memory_space<vmem>>, %arg10: memref<1x32xf32, #tpu.memory_space<vmem>>, %arg11: memref<32x64xf32, #tpu.memory_space<vmem>>, %arg12: memref<1x64xf32, #tpu.memory_space<vmem>>, %arg13: memref<2x6x64xf32, #tpu.memory_space<vmem>>) attributes {dimension_semantics = [#tpu.dimension_semantics<arbitrary>], iteration_bounds = array<i64: 1>, scalar_prefetch = 0 : i64, scratch_operands = 0 : i64, tpu.core_type = #tpu.core_type<tc>, window_params = [{pipeline_mode = #tpu.pipeline_mode<synchronous>, transform_indices = @transform_0, window_bounds = array<i64: 2, 4, 12, 32>}, {pipeline_mode = #tpu.pipeline_mode<synchronous>, transform_indices = @transform_1, window_bounds = array<i64: 4, 12, 1>}, {pipeline_mode = #tpu.pipeline_mode<synchronous>, transform_indices = @transform_2, window_bounds = array<i64: 32, 32>}, {pipeline_mode = #tpu.pipeline_mode<synchronous>, transform_indices = @transform_3, window_bounds = array<i64: 1, 32>}, {pipeline_mode = #tpu.pipeline_mode<synchronous>, transform_indices = @transform_4, window_bounds = array<i64: 9, 1, 32>}, {pipeline_mode = #tpu.pipeline_mode<synchronous>, transform_indices = @transform_5, window_bounds = array<i64: 1, 32>}, {pipeline_mode = #tpu.pipeline_mode<synchronous>, transform_indices = @transform_6, window_bounds = array<i64: 32, 64>}, {pipeline_mode = #tpu.pipeline_mode<synchronous>, transform_indices = @transform_7, window_bounds = array<i64: 1, 64>}, {pipeline_mode = #tpu.pipeline_mode<synchronous>, transform_indices = @transform_8, window_bounds = array<i64: 9, 1, 32>}, {pipeline_mode = #tpu.pipeline_mode<synchronous>, transform_indices = @transform_9, window_bounds = array<i64: 1, 32>}, {pipeline_mode = #tpu.pipeline_mode<synchronous>, transform_indices = @transform_10, window_bounds = array<i64: 32, 64>}, {pipeline_mode = #tpu.pipeline_mode<synchronous>, transform_indices = @transform_11, window_bounds = array<i64: 1, 64>}, {pipeline_mode = #tpu.pipeline_mode<synchronous>, transform_indices = @transform_12, window_bounds = array<i64: 2, 6, 64>}]} {
    %c0 = arith.constant 0 : index
    %c0_0 = arith.constant 0 : index
    %0 = vector.load %arg3[%c0, %c0_0] : memref<32x32xf32, #tpu.memory_space<vmem>>, vector<32x32xf32>
    %c0_1 = arith.constant 0 : index
    %c0_2 = arith.constant 0 : index
    %1 = vector.load %arg4[%c0_1, %c0_2] : memref<1x32xf32, #tpu.memory_space<vmem>>, vector<1x32xf32>
    %c0_3 = arith.constant 0 : index
    %c0_4 = arith.constant 0 : index
    %2 = vector.load %arg7[%c0_3, %c0_4] : memref<32x64xf32, #tpu.memory_space<vmem>>, vector<32x64xf32>
    %c0_5 = arith.constant 0 : index
    %c0_6 = arith.constant 0 : index
    %3 = vector.load %arg8[%c0_5, %c0_6] : memref<1x64xf32, #tpu.memory_space<vmem>>, vector<1x64xf32>
    %c0_7 = arith.constant 0 : index
    %c0_8 = arith.constant 0 : index
    %4 = vector.load %arg11[%c0_7, %c0_8] : memref<32x64xf32, #tpu.memory_space<vmem>>, vector<32x64xf32>
    %c0_9 = arith.constant 0 : index
    %c0_10 = arith.constant 0 : index
    %5 = vector.load %arg12[%c0_9, %c0_10] : memref<1x64xf32, #tpu.memory_space<vmem>>, vector<1x64xf32>
    %c0_11 = arith.constant 0 : index
    %c0_12 = arith.constant 0 : index
    %c0_13 = arith.constant 0 : index
    %6 = vector.load %arg9[%c0_11, %c0_12, %c0_13] : memref<9x1x32xf32, #tpu.memory_space<vmem>>, vector<9x1x32xf32>
    %c0_14 = arith.constant 0 : index
    %c0_15 = arith.constant 0 : index
    %7 = vector.load %arg10[%c0_14, %c0_15] : memref<1x32xf32, #tpu.memory_space<vmem>>, vector<1x32xf32>
    %c0_16 = arith.constant 0 : index
    %c0_17 = arith.constant 0 : index
    %c0_18 = arith.constant 0 : index
    %8 = vector.load %arg5[%c0_16, %c0_17, %c0_18] : memref<9x1x32xf32, #tpu.memory_space<vmem>>, vector<9x1x32xf32>
    %c0_19 = arith.constant 0 : index
    %c0_20 = arith.constant 0 : index
    %9 = vector.load %arg6[%c0_19, %c0_20] : memref<1x32xf32, #tpu.memory_space<vmem>>, vector<1x32xf32>
    %c0_21 = arith.constant 0 : index
    %c0_22 = arith.constant 0 : index
    %c0_23 = arith.constant 0 : index
    %c0_24 = arith.constant 0 : index
    %10 = vector.load %arg1[%c0_21, %c0_22, %c0_23, %c0_24] : memref<2x4x12x32xf32, #tpu.memory_space<vmem>>, vector<1x1x12x32xf32>
    %11 = vector.shape_cast %10 : vector<1x1x12x32xf32> to vector<12x32xf32>
    %c0_25 = arith.constant 0 : index
    %c1 = arith.constant 1 : index
    %c0_26 = arith.constant 0 : index
    %c0_27 = arith.constant 0 : index
    %12 = vector.load %arg1[%c0_25, %c1, %c0_26, %c0_27] : memref<2x4x12x32xf32, #tpu.memory_space<vmem>>, vector<1x1x12x32xf32>
    %13 = vector.shape_cast %12 : vector<1x1x12x32xf32> to vector<12x32xf32>
    %c0_28 = arith.constant 0 : index
    %c2 = arith.constant 2 : index
    %c0_29 = arith.constant 0 : index
    %c0_30 = arith.constant 0 : index
    %14 = vector.load %arg1[%c0_28, %c2, %c0_29, %c0_30] : memref<2x4x12x32xf32, #tpu.memory_space<vmem>>, vector<1x1x12x32xf32>
    %15 = vector.shape_cast %14 : vector<1x1x12x32xf32> to vector<12x32xf32>
    %c0_31 = arith.constant 0 : index
    %c3 = arith.constant 3 : index
    %c0_32 = arith.constant 0 : index
    %c0_33 = arith.constant 0 : index
    %16 = vector.load %arg1[%c0_31, %c3, %c0_32, %c0_33] : memref<2x4x12x32xf32, #tpu.memory_space<vmem>>, vector<1x1x12x32xf32>
    %17 = vector.shape_cast %16 : vector<1x1x12x32xf32> to vector<12x32xf32>
    %cst = arith.constant dense<0.000000e+00> : vector<12x32xf32>
    %18 = tpu.matmul %11, %0, %cst {dimension_numbers = #tpu.dot_dimension_numbers<[1], [0], [0], [1], [0, 0, 1, 1], [], []>} : vector<12x32xf32>, vector<32x32xf32>, vector<12x32xf32> -> vector<12x32xf32>
    %19 = vector.broadcast %1 : vector<1x32xf32> to vector<12x32xf32>
    %20 = arith.addf %18, %19 : vector<12x32xf32>
    %cst_34 = arith.constant 0.000000e+00 : f32
    %21 = vector.broadcast %cst_34 : f32 to vector<12x32xf32>
    %22 = arith.maximumf %20, %21 : vector<12x32xf32>
    %c0_35 = arith.constant 0 : index
    %c0_36 = arith.constant 0 : index
    %c0_37 = arith.constant 0 : index
    %23 = vector.load %arg2[%c0_35, %c0_36, %c0_37] : memref<4x12x1xf32, #tpu.memory_space<vmem>>, vector<1x12x1xf32>
    %24 = vector.shape_cast %23 : vector<1x12x1xf32> to vector<12x1xf32>
    %25 = vector.broadcast %24 : vector<12x1xf32> to vector<12x32xf32>
    %26 = arith.mulf %22, %25 : vector<12x32xf32>
    %cst_38 = arith.constant dense<0.000000e+00> : vector<12x32xf32>
    %27 = tpu.matmul %13, %0, %cst_38 {dimension_numbers = #tpu.dot_dimension_numbers<[1], [0], [0], [1], [0, 0, 1, 1], [], []>} : vector<12x32xf32>, vector<32x32xf32>, vector<12x32xf32> -> vector<12x32xf32>
    %28 = vector.broadcast %1 : vector<1x32xf32> to vector<12x32xf32>
    %29 = arith.addf %27, %28 : vector<12x32xf32>
    %cst_39 = arith.constant 0.000000e+00 : f32
    %30 = vector.broadcast %cst_39 : f32 to vector<12x32xf32>
    %31 = arith.maximumf %29, %30 : vector<12x32xf32>
    %c1_40 = arith.constant 1 : index
    %c0_41 = arith.constant 0 : index
    %c0_42 = arith.constant 0 : index
    %32 = vector.load %arg2[%c1_40, %c0_41, %c0_42] : memref<4x12x1xf32, #tpu.memory_space<vmem>>, vector<1x12x1xf32>
    %33 = vector.shape_cast %32 : vector<1x12x1xf32> to vector<12x1xf32>
    %34 = vector.broadcast %33 : vector<12x1xf32> to vector<12x32xf32>
    %35 = arith.mulf %31, %34 : vector<12x32xf32>
    %cst_43 = arith.constant dense<0.000000e+00> : vector<12x32xf32>
    %36 = tpu.matmul %15, %0, %cst_43 {dimension_numbers = #tpu.dot_dimension_numbers<[1], [0], [0], [1], [0, 0, 1, 1], [], []>} : vector<12x32xf32>, vector<32x32xf32>, vector<12x32xf32> -> vector<12x32xf32>
    %37 = vector.broadcast %1 : vector<1x32xf32> to vector<12x32xf32>
    %38 = arith.addf %36, %37 : vector<12x32xf32>
    %cst_44 = arith.constant 0.000000e+00 : f32
    %39 = vector.broadcast %cst_44 : f32 to vector<12x32xf32>
    %40 = arith.maximumf %38, %39 : vector<12x32xf32>
    %c2_45 = arith.constant 2 : index
    %c0_46 = arith.constant 0 : index
    %c0_47 = arith.constant 0 : index
    %41 = vector.load %arg2[%c2_45, %c0_46, %c0_47] : memref<4x12x1xf32, #tpu.memory_space<vmem>>, vector<1x12x1xf32>
    %42 = vector.shape_cast %41 : vector<1x12x1xf32> to vector<12x1xf32>
    %43 = vector.broadcast %42 : vector<12x1xf32> to vector<12x32xf32>
    %44 = arith.mulf %40, %43 : vector<12x32xf32>
    %cst_48 = arith.constant dense<0.000000e+00> : vector<12x32xf32>
    %45 = tpu.matmul %17, %0, %cst_48 {dimension_numbers = #tpu.dot_dimension_numbers<[1], [0], [0], [1], [0, 0, 1, 1], [], []>} : vector<12x32xf32>, vector<32x32xf32>, vector<12x32xf32> -> vector<12x32xf32>
    %46 = vector.broadcast %1 : vector<1x32xf32> to vector<12x32xf32>
    %47 = arith.addf %45, %46 : vector<12x32xf32>
    %cst_49 = arith.constant 0.000000e+00 : f32
    %48 = vector.broadcast %cst_49 : f32 to vector<12x32xf32>
    %49 = arith.maximumf %47, %48 : vector<12x32xf32>
    %c3_50 = arith.constant 3 : index
    %c0_51 = arith.constant 0 : index
    %c0_52 = arith.constant 0 : index
    %50 = vector.load %arg2[%c3_50, %c0_51, %c0_52] : memref<4x12x1xf32, #tpu.memory_space<vmem>>, vector<1x12x1xf32>
    %51 = vector.shape_cast %50 : vector<1x12x1xf32> to vector<12x1xf32>
    %52 = vector.broadcast %51 : vector<12x1xf32> to vector<12x32xf32>
    %53 = arith.mulf %49, %52 : vector<12x32xf32>
    %54 = vector.extract_strided_slice %11 {offsets = [0, 0], sizes = [6, 32], strides = [1, 1]} : vector<12x32xf32> to vector<6x32xf32>
    %55 = vector.extract_strided_slice %6 {offsets = [0, 0, 0], sizes = [1, 1, 32], strides = [1, 1, 1]} : vector<9x1x32xf32> to vector<1x1x32xf32>
    %56 = vector.shape_cast %55 : vector<1x1x32xf32> to vector<1x32xf32>
    %57 = vector.broadcast %56 : vector<1x32xf32> to vector<6x32xf32>
    %58 = arith.mulf %54, %57 : vector<6x32xf32>
    %59 = vector.extract_strided_slice %26 {offsets = [0, 0], sizes = [6, 32], strides = [1, 1]} : vector<12x32xf32> to vector<6x32xf32>
    %60 = vector.extract_strided_slice %8 {offsets = [0, 0, 0], sizes = [1, 1, 32], strides = [1, 1, 1]} : vector<9x1x32xf32> to vector<1x1x32xf32>
    %61 = vector.shape_cast %60 : vector<1x1x32xf32> to vector<1x32xf32>
    %62 = vector.broadcast %61 : vector<1x32xf32> to vector<6x32xf32>
    %63 = arith.mulf %59, %62 : vector<6x32xf32>
    %64 = vector.extract_strided_slice %13 {offsets = [0, 0], sizes = [6, 32], strides = [1, 1]} : vector<12x32xf32> to vector<6x32xf32>
    %65 = vector.extract_strided_slice %6 {offsets = [1, 0, 0], sizes = [1, 1, 32], strides = [1, 1, 1]} : vector<9x1x32xf32> to vector<1x1x32xf32>
    %66 = vector.shape_cast %65 : vector<1x1x32xf32> to vector<1x32xf32>
    %67 = vector.broadcast %66 : vector<1x32xf32> to vector<6x32xf32>
    %68 = arith.mulf %64, %67 : vector<6x32xf32>
    %69 = vector.extract_strided_slice %35 {offsets = [0, 0], sizes = [6, 32], strides = [1, 1]} : vector<12x32xf32> to vector<6x32xf32>
    %70 = vector.extract_strided_slice %8 {offsets = [1, 0, 0], sizes = [1, 1, 32], strides = [1, 1, 1]} : vector<9x1x32xf32> to vector<1x1x32xf32>
    %71 = vector.shape_cast %70 : vector<1x1x32xf32> to vector<1x32xf32>
    %72 = vector.broadcast %71 : vector<1x32xf32> to vector<6x32xf32>
    %73 = arith.mulf %69, %72 : vector<6x32xf32>
    %74 = arith.addf %58, %68 : vector<6x32xf32>
    %75 = arith.addf %63, %73 : vector<6x32xf32>
    %76 = vector.extract_strided_slice %11 {offsets = [1, 0], sizes = [6, 32], strides = [1, 1]} : vector<12x32xf32> to vector<6x32xf32>
    %77 = vector.extract_strided_slice %6 {offsets = [2, 0, 0], sizes = [1, 1, 32], strides = [1, 1, 1]} : vector<9x1x32xf32> to vector<1x1x32xf32>
    %78 = vector.shape_cast %77 : vector<1x1x32xf32> to vector<1x32xf32>
    %79 = vector.broadcast %78 : vector<1x32xf32> to vector<6x32xf32>
    %80 = arith.mulf %76, %79 : vector<6x32xf32>
    %81 = vector.extract_strided_slice %26 {offsets = [1, 0], sizes = [6, 32], strides = [1, 1]} : vector<12x32xf32> to vector<6x32xf32>
    %82 = vector.extract_strided_slice %8 {offsets = [2, 0, 0], sizes = [1, 1, 32], strides = [1, 1, 1]} : vector<9x1x32xf32> to vector<1x1x32xf32>
    %83 = vector.shape_cast %82 : vector<1x1x32xf32> to vector<1x32xf32>
    %84 = vector.broadcast %83 : vector<1x32xf32> to vector<6x32xf32>
    %85 = arith.mulf %81, %84 : vector<6x32xf32>
    %86 = arith.addf %74, %80 : vector<6x32xf32>
    %87 = arith.addf %75, %85 : vector<6x32xf32>
    %88 = vector.extract_strided_slice %15 {offsets = [0, 0], sizes = [6, 32], strides = [1, 1]} : vector<12x32xf32> to vector<6x32xf32>
    %89 = vector.extract_strided_slice %6 {offsets = [3, 0, 0], sizes = [1, 1, 32], strides = [1, 1, 1]} : vector<9x1x32xf32> to vector<1x1x32xf32>
    %90 = vector.shape_cast %89 : vector<1x1x32xf32> to vector<1x32xf32>
    %91 = vector.broadcast %90 : vector<1x32xf32> to vector<6x32xf32>
    %92 = arith.mulf %88, %91 : vector<6x32xf32>
    %93 = vector.extract_strided_slice %44 {offsets = [0, 0], sizes = [6, 32], strides = [1, 1]} : vector<12x32xf32> to vector<6x32xf32>
    %94 = vector.extract_strided_slice %8 {offsets = [3, 0, 0], sizes = [1, 1, 32], strides = [1, 1, 1]} : vector<9x1x32xf32> to vector<1x1x32xf32>
    %95 = vector.shape_cast %94 : vector<1x1x32xf32> to vector<1x32xf32>
    %96 = vector.broadcast %95 : vector<1x32xf32> to vector<6x32xf32>
    %97 = arith.mulf %93, %96 : vector<6x32xf32>
    %98 = arith.addf %86, %92 : vector<6x32xf32>
    %99 = arith.addf %87, %97 : vector<6x32xf32>
    %100 = vector.extract_strided_slice %17 {offsets = [0, 0], sizes = [6, 32], strides = [1, 1]} : vector<12x32xf32> to vector<6x32xf32>
    %101 = vector.extract_strided_slice %6 {offsets = [4, 0, 0], sizes = [1, 1, 32], strides = [1, 1, 1]} : vector<9x1x32xf32> to vector<1x1x32xf32>
    %102 = vector.shape_cast %101 : vector<1x1x32xf32> to vector<1x32xf32>
    %103 = vector.broadcast %102 : vector<1x32xf32> to vector<6x32xf32>
    %104 = arith.mulf %100, %103 : vector<6x32xf32>
    %105 = vector.extract_strided_slice %53 {offsets = [0, 0], sizes = [6, 32], strides = [1, 1]} : vector<12x32xf32> to vector<6x32xf32>
    %106 = vector.extract_strided_slice %8 {offsets = [4, 0, 0], sizes = [1, 1, 32], strides = [1, 1, 1]} : vector<9x1x32xf32> to vector<1x1x32xf32>
    %107 = vector.shape_cast %106 : vector<1x1x32xf32> to vector<1x32xf32>
    %108 = vector.broadcast %107 : vector<1x32xf32> to vector<6x32xf32>
    %109 = arith.mulf %105, %108 : vector<6x32xf32>
    %110 = arith.addf %98, %104 : vector<6x32xf32>
    %111 = arith.addf %99, %109 : vector<6x32xf32>
    %112 = vector.extract_strided_slice %15 {offsets = [1, 0], sizes = [6, 32], strides = [1, 1]} : vector<12x32xf32> to vector<6x32xf32>
    %113 = vector.extract_strided_slice %6 {offsets = [5, 0, 0], sizes = [1, 1, 32], strides = [1, 1, 1]} : vector<9x1x32xf32> to vector<1x1x32xf32>
    %114 = vector.shape_cast %113 : vector<1x1x32xf32> to vector<1x32xf32>
    %115 = vector.broadcast %114 : vector<1x32xf32> to vector<6x32xf32>
    %116 = arith.mulf %112, %115 : vector<6x32xf32>
    %117 = vector.extract_strided_slice %44 {offsets = [1, 0], sizes = [6, 32], strides = [1, 1]} : vector<12x32xf32> to vector<6x32xf32>
    %118 = vector.extract_strided_slice %8 {offsets = [5, 0, 0], sizes = [1, 1, 32], strides = [1, 1, 1]} : vector<9x1x32xf32> to vector<1x1x32xf32>
    %119 = vector.shape_cast %118 : vector<1x1x32xf32> to vector<1x32xf32>
    %120 = vector.broadcast %119 : vector<1x32xf32> to vector<6x32xf32>
    %121 = arith.mulf %117, %120 : vector<6x32xf32>
    %122 = arith.addf %110, %116 : vector<6x32xf32>
    %123 = arith.addf %111, %121 : vector<6x32xf32>
    %124 = vector.extract_strided_slice %11 {offsets = [3, 0], sizes = [6, 32], strides = [1, 1]} : vector<12x32xf32> to vector<6x32xf32>
    %125 = vector.extract_strided_slice %6 {offsets = [6, 0, 0], sizes = [1, 1, 32], strides = [1, 1, 1]} : vector<9x1x32xf32> to vector<1x1x32xf32>
    %126 = vector.shape_cast %125 : vector<1x1x32xf32> to vector<1x32xf32>
    %127 = vector.broadcast %126 : vector<1x32xf32> to vector<6x32xf32>
    %128 = arith.mulf %124, %127 : vector<6x32xf32>
    %129 = vector.extract_strided_slice %26 {offsets = [3, 0], sizes = [6, 32], strides = [1, 1]} : vector<12x32xf32> to vector<6x32xf32>
    %130 = vector.extract_strided_slice %8 {offsets = [6, 0, 0], sizes = [1, 1, 32], strides = [1, 1, 1]} : vector<9x1x32xf32> to vector<1x1x32xf32>
    %131 = vector.shape_cast %130 : vector<1x1x32xf32> to vector<1x32xf32>
    %132 = vector.broadcast %131 : vector<1x32xf32> to vector<6x32xf32>
    %133 = arith.mulf %129, %132 : vector<6x32xf32>
    %134 = arith.addf %122, %128 : vector<6x32xf32>
    %135 = arith.addf %123, %133 : vector<6x32xf32>
    %136 = vector.extract_strided_slice %13 {offsets = [3, 0], sizes = [6, 32], strides = [1, 1]} : vector<12x32xf32> to vector<6x32xf32>
    %137 = vector.extract_strided_slice %6 {offsets = [7, 0, 0], sizes = [1, 1, 32], strides = [1, 1, 1]} : vector<9x1x32xf32> to vector<1x1x32xf32>
    %138 = vector.shape_cast %137 : vector<1x1x32xf32> to vector<1x32xf32>
    %139 = vector.broadcast %138 : vector<1x32xf32> to vector<6x32xf32>
    %140 = arith.mulf %136, %139 : vector<6x32xf32>
    %141 = vector.extract_strided_slice %35 {offsets = [3, 0], sizes = [6, 32], strides = [1, 1]} : vector<12x32xf32> to vector<6x32xf32>
    %142 = vector.extract_strided_slice %8 {offsets = [7, 0, 0], sizes = [1, 1, 32], strides = [1, 1, 1]} : vector<9x1x32xf32> to vector<1x1x32xf32>
    %143 = vector.shape_cast %142 : vector<1x1x32xf32> to vector<1x32xf32>
    %144 = vector.broadcast %143 : vector<1x32xf32> to vector<6x32xf32>
    %145 = arith.mulf %141, %144 : vector<6x32xf32>
    %146 = arith.addf %134, %140 : vector<6x32xf32>
    %147 = arith.addf %135, %145 : vector<6x32xf32>
    %148 = vector.extract_strided_slice %11 {offsets = [4, 0], sizes = [6, 32], strides = [1, 1]} : vector<12x32xf32> to vector<6x32xf32>
    %149 = vector.extract_strided_slice %6 {offsets = [8, 0, 0], sizes = [1, 1, 32], strides = [1, 1, 1]} : vector<9x1x32xf32> to vector<1x1x32xf32>
    %150 = vector.shape_cast %149 : vector<1x1x32xf32> to vector<1x32xf32>
    %151 = vector.broadcast %150 : vector<1x32xf32> to vector<6x32xf32>
    %152 = arith.mulf %148, %151 : vector<6x32xf32>
    %153 = vector.extract_strided_slice %26 {offsets = [4, 0], sizes = [6, 32], strides = [1, 1]} : vector<12x32xf32> to vector<6x32xf32>
    %154 = vector.extract_strided_slice %8 {offsets = [8, 0, 0], sizes = [1, 1, 32], strides = [1, 1, 1]} : vector<9x1x32xf32> to vector<1x1x32xf32>
    %155 = vector.shape_cast %154 : vector<1x1x32xf32> to vector<1x32xf32>
    %156 = vector.broadcast %155 : vector<1x32xf32> to vector<6x32xf32>
    %157 = arith.mulf %153, %156 : vector<6x32xf32>
    %158 = arith.addf %146, %152 : vector<6x32xf32>
    %159 = arith.addf %147, %157 : vector<6x32xf32>
    %160 = vector.broadcast %7 : vector<1x32xf32> to vector<6x32xf32>
    %161 = arith.addf %158, %160 : vector<6x32xf32>
    %162 = vector.broadcast %9 : vector<1x32xf32> to vector<6x32xf32>
    %163 = arith.addf %159, %162 : vector<6x32xf32>
    %cst_53 = arith.constant dense<0.000000e+00> : vector<6x64xf32>
    %164 = tpu.matmul %161, %4, %cst_53 {dimension_numbers = #tpu.dot_dimension_numbers<[1], [0], [0], [1], [0, 0, 1, 1], [], []>} : vector<6x32xf32>, vector<32x64xf32>, vector<6x64xf32> -> vector<6x64xf32>
    %165 = vector.broadcast %5 : vector<1x64xf32> to vector<6x64xf32>
    %166 = arith.addf %164, %165 : vector<6x64xf32>
    %cst_54 = arith.constant 0.000000e+00 : f32
    %167 = vector.broadcast %cst_54 : f32 to vector<6x64xf32>
    %168 = arith.maximumf %166, %167 : vector<6x64xf32>
    %cst_55 = arith.constant dense<0.000000e+00> : vector<6x64xf32>
    %169 = tpu.matmul %163, %2, %cst_55 {dimension_numbers = #tpu.dot_dimension_numbers<[1], [0], [0], [1], [0, 0, 1, 1], [], []>} : vector<6x32xf32>, vector<32x64xf32>, vector<6x64xf32> -> vector<6x64xf32>
    %170 = vector.broadcast %3 : vector<1x64xf32> to vector<6x64xf32>
    %171 = arith.addf %169, %170 : vector<6x64xf32>
    %cst_56 = arith.constant 0.000000e+00 : f32
    %172 = vector.broadcast %cst_56 : f32 to vector<6x64xf32>
    %173 = arith.maximumf %171, %172 : vector<6x64xf32>
    %174 = arith.addf %168, %173 : vector<6x64xf32>
    %c0_57 = arith.constant 0 : index
    %c0_58 = arith.constant 0 : index
    %c0_59 = arith.constant 0 : index
    %175 = vector.load %arg13[%c0_57, %c0_58, %c0_59] : memref<2x6x64xf32, #tpu.memory_space<vmem>>, vector<1x6x64xf32>
    %176 = vector.shape_cast %175 : vector<1x6x64xf32> to vector<6x64xf32>
    %177 = vector.shape_cast %174 : vector<6x64xf32> to vector<1x6x64xf32>
    tpu.vector_store %arg13[%c0_57, %c0_58, %c0_59], %177 {strides = array<i32>} : memref<2x6x64xf32, #tpu.memory_space<vmem>>, vector<1x6x64xf32>,
    %c1_60 = arith.constant 1 : index
    %c0_61 = arith.constant 0 : index
    %c0_62 = arith.constant 0 : index
    %c0_63 = arith.constant 0 : index
    %178 = vector.load %arg1[%c1_60, %c0_61, %c0_62, %c0_63] : memref<2x4x12x32xf32, #tpu.memory_space<vmem>>, vector<1x1x12x32xf32>
    %179 = vector.shape_cast %178 : vector<1x1x12x32xf32> to vector<12x32xf32>
    %c1_64 = arith.constant 1 : index
    %c1_65 = arith.constant 1 : index
    %c0_66 = arith.constant 0 : index
    %c0_67 = arith.constant 0 : index
    %180 = vector.load %arg1[%c1_64, %c1_65, %c0_66, %c0_67] : memref<2x4x12x32xf32, #tpu.memory_space<vmem>>, vector<1x1x12x32xf32>
    %181 = vector.shape_cast %180 : vector<1x1x12x32xf32> to vector<12x32xf32>
    %c1_68 = arith.constant 1 : index
    %c2_69 = arith.constant 2 : index
    %c0_70 = arith.constant 0 : index
    %c0_71 = arith.constant 0 : index
    %182 = vector.load %arg1[%c1_68, %c2_69, %c0_70, %c0_71] : memref<2x4x12x32xf32, #tpu.memory_space<vmem>>, vector<1x1x12x32xf32>
    %183 = vector.shape_cast %182 : vector<1x1x12x32xf32> to vector<12x32xf32>
    %c1_72 = arith.constant 1 : index
    %c3_73 = arith.constant 3 : index
    %c0_74 = arith.constant 0 : index
    %c0_75 = arith.constant 0 : index
    %184 = vector.load %arg1[%c1_72, %c3_73, %c0_74, %c0_75] : memref<2x4x12x32xf32, #tpu.memory_space<vmem>>, vector<1x1x12x32xf32>
    %185 = vector.shape_cast %184 : vector<1x1x12x32xf32> to vector<12x32xf32>
    %cst_76 = arith.constant dense<0.000000e+00> : vector<12x32xf32>
    %186 = tpu.matmul %179, %0, %cst_76 {dimension_numbers = #tpu.dot_dimension_numbers<[1], [0], [0], [1], [0, 0, 1, 1], [], []>} : vector<12x32xf32>, vector<32x32xf32>, vector<12x32xf32> -> vector<12x32xf32>
    %187 = vector.broadcast %1 : vector<1x32xf32> to vector<12x32xf32>
    %188 = arith.addf %186, %187 : vector<12x32xf32>
    %cst_77 = arith.constant 0.000000e+00 : f32
    %189 = vector.broadcast %cst_77 : f32 to vector<12x32xf32>
    %190 = arith.maximumf %188, %189 : vector<12x32xf32>
    %c0_78 = arith.constant 0 : index
    %c0_79 = arith.constant 0 : index
    %c0_80 = arith.constant 0 : index
    %191 = vector.load %arg2[%c0_78, %c0_79, %c0_80] : memref<4x12x1xf32, #tpu.memory_space<vmem>>, vector<1x12x1xf32>
    %192 = vector.shape_cast %191 : vector<1x12x1xf32> to vector<12x1xf32>
    %193 = vector.broadcast %192 : vector<12x1xf32> to vector<12x32xf32>
    %194 = arith.mulf %190, %193 : vector<12x32xf32>
    %cst_81 = arith.constant dense<0.000000e+00> : vector<12x32xf32>
    %195 = tpu.matmul %181, %0, %cst_81 {dimension_numbers = #tpu.dot_dimension_numbers<[1], [0], [0], [1], [0, 0, 1, 1], [], []>} : vector<12x32xf32>, vector<32x32xf32>, vector<12x32xf32> -> vector<12x32xf32>
    %196 = vector.broadcast %1 : vector<1x32xf32> to vector<12x32xf32>
    %197 = arith.addf %195, %196 : vector<12x32xf32>
    %cst_82 = arith.constant 0.000000e+00 : f32
    %198 = vector.broadcast %cst_82 : f32 to vector<12x32xf32>
    %199 = arith.maximumf %197, %198 : vector<12x32xf32>
    %c1_83 = arith.constant 1 : index
    %c0_84 = arith.constant 0 : index
    %c0_85 = arith.constant 0 : index
    %200 = vector.load %arg2[%c1_83, %c0_84, %c0_85] : memref<4x12x1xf32, #tpu.memory_space<vmem>>, vector<1x12x1xf32>
    %201 = vector.shape_cast %200 : vector<1x12x1xf32> to vector<12x1xf32>
    %202 = vector.broadcast %201 : vector<12x1xf32> to vector<12x32xf32>
    %203 = arith.mulf %199, %202 : vector<12x32xf32>
    %cst_86 = arith.constant dense<0.000000e+00> : vector<12x32xf32>
    %204 = tpu.matmul %183, %0, %cst_86 {dimension_numbers = #tpu.dot_dimension_numbers<[1], [0], [0], [1], [0, 0, 1, 1], [], []>} : vector<12x32xf32>, vector<32x32xf32>, vector<12x32xf32> -> vector<12x32xf32>
    %205 = vector.broadcast %1 : vector<1x32xf32> to vector<12x32xf32>
    %206 = arith.addf %204, %205 : vector<12x32xf32>
    %cst_87 = arith.constant 0.000000e+00 : f32
    %207 = vector.broadcast %cst_87 : f32 to vector<12x32xf32>
    %208 = arith.maximumf %206, %207 : vector<12x32xf32>
    %c2_88 = arith.constant 2 : index
    %c0_89 = arith.constant 0 : index
    %c0_90 = arith.constant 0 : index
    %209 = vector.load %arg2[%c2_88, %c0_89, %c0_90] : memref<4x12x1xf32, #tpu.memory_space<vmem>>, vector<1x12x1xf32>
    %210 = vector.shape_cast %209 : vector<1x12x1xf32> to vector<12x1xf32>
    %211 = vector.broadcast %210 : vector<12x1xf32> to vector<12x32xf32>
    %212 = arith.mulf %208, %211 : vector<12x32xf32>
    %cst_91 = arith.constant dense<0.000000e+00> : vector<12x32xf32>
    %213 = tpu.matmul %185, %0, %cst_91 {dimension_numbers = #tpu.dot_dimension_numbers<[1], [0], [0], [1], [0, 0, 1, 1], [], []>} : vector<12x32xf32>, vector<32x32xf32>, vector<12x32xf32> -> vector<12x32xf32>
    %214 = vector.broadcast %1 : vector<1x32xf32> to vector<12x32xf32>
    %215 = arith.addf %213, %214 : vector<12x32xf32>
    %cst_92 = arith.constant 0.000000e+00 : f32
    %216 = vector.broadcast %cst_92 : f32 to vector<12x32xf32>
    %217 = arith.maximumf %215, %216 : vector<12x32xf32>
    %c3_93 = arith.constant 3 : index
    %c0_94 = arith.constant 0 : index
    %c0_95 = arith.constant 0 : index
    %218 = vector.load %arg2[%c3_93, %c0_94, %c0_95] : memref<4x12x1xf32, #tpu.memory_space<vmem>>, vector<1x12x1xf32>
    %219 = vector.shape_cast %218 : vector<1x12x1xf32> to vector<12x1xf32>
    %220 = vector.broadcast %219 : vector<12x1xf32> to vector<12x32xf32>
    %221 = arith.mulf %217, %220 : vector<12x32xf32>
    %222 = vector.extract_strided_slice %179 {offsets = [0, 0], sizes = [6, 32], strides = [1, 1]} : vector<12x32xf32> to vector<6x32xf32>
    %223 = vector.extract_strided_slice %6 {offsets = [0, 0, 0], sizes = [1, 1, 32], strides = [1, 1, 1]} : vector<9x1x32xf32> to vector<1x1x32xf32>
    %224 = vector.shape_cast %223 : vector<1x1x32xf32> to vector<1x32xf32>
    %225 = vector.broadcast %224 : vector<1x32xf32> to vector<6x32xf32>
    %226 = arith.mulf %222, %225 : vector<6x32xf32>
    %227 = vector.extract_strided_slice %194 {offsets = [0, 0], sizes = [6, 32], strides = [1, 1]} : vector<12x32xf32> to vector<6x32xf32>
    %228 = vector.extract_strided_slice %8 {offsets = [0, 0, 0], sizes = [1, 1, 32], strides = [1, 1, 1]} : vector<9x1x32xf32> to vector<1x1x32xf32>
    %229 = vector.shape_cast %228 : vector<1x1x32xf32> to vector<1x32xf32>
    %230 = vector.broadcast %229 : vector<1x32xf32> to vector<6x32xf32>
    %231 = arith.mulf %227, %230 : vector<6x32xf32>
    %232 = vector.extract_strided_slice %181 {offsets = [0, 0], sizes = [6, 32], strides = [1, 1]} : vector<12x32xf32> to vector<6x32xf32>
    %233 = vector.extract_strided_slice %6 {offsets = [1, 0, 0], sizes = [1, 1, 32], strides = [1, 1, 1]} : vector<9x1x32xf32> to vector<1x1x32xf32>
    %234 = vector.shape_cast %233 : vector<1x1x32xf32> to vector<1x32xf32>
    %235 = vector.broadcast %234 : vector<1x32xf32> to vector<6x32xf32>
    %236 = arith.mulf %232, %235 : vector<6x32xf32>
    %237 = vector.extract_strided_slice %203 {offsets = [0, 0], sizes = [6, 32], strides = [1, 1]} : vector<12x32xf32> to vector<6x32xf32>
    %238 = vector.extract_strided_slice %8 {offsets = [1, 0, 0], sizes = [1, 1, 32], strides = [1, 1, 1]} : vector<9x1x32xf32> to vector<1x1x32xf32>
    %239 = vector.shape_cast %238 : vector<1x1x32xf32> to vector<1x32xf32>
    %240 = vector.broadcast %239 : vector<1x32xf32> to vector<6x32xf32>
    %241 = arith.mulf %237, %240 : vector<6x32xf32>
    %242 = arith.addf %226, %236 : vector<6x32xf32>
    %243 = arith.addf %231, %241 : vector<6x32xf32>
    %244 = vector.extract_strided_slice %179 {offsets = [1, 0], sizes = [6, 32], strides = [1, 1]} : vector<12x32xf32> to vector<6x32xf32>
    %245 = vector.extract_strided_slice %6 {offsets = [2, 0, 0], sizes = [1, 1, 32], strides = [1, 1, 1]} : vector<9x1x32xf32> to vector<1x1x32xf32>
    %246 = vector.shape_cast %245 : vector<1x1x32xf32> to vector<1x32xf32>
    %247 = vector.broadcast %246 : vector<1x32xf32> to vector<6x32xf32>
    %248 = arith.mulf %244, %247 : vector<6x32xf32>
    %249 = vector.extract_strided_slice %194 {offsets = [1, 0], sizes = [6, 32], strides = [1, 1]} : vector<12x32xf32> to vector<6x32xf32>
    %250 = vector.extract_strided_slice %8 {offsets = [2, 0, 0], sizes = [1, 1, 32], strides = [1, 1, 1]} : vector<9x1x32xf32> to vector<1x1x32xf32>
    %251 = vector.shape_cast %250 : vector<1x1x32xf32> to vector<1x32xf32>
    %252 = vector.broadcast %251 : vector<1x32xf32> to vector<6x32xf32>
    %253 = arith.mulf %249, %252 : vector<6x32xf32>
    %254 = arith.addf %242, %248 : vector<6x32xf32>
    %255 = arith.addf %243, %253 : vector<6x32xf32>
    %256 = vector.extract_strided_slice %183 {offsets = [0, 0], sizes = [6, 32], strides = [1, 1]} : vector<12x32xf32> to vector<6x32xf32>
    %257 = vector.extract_strided_slice %6 {offsets = [3, 0, 0], sizes = [1, 1, 32], strides = [1, 1, 1]} : vector<9x1x32xf32> to vector<1x1x32xf32>
    %258 = vector.shape_cast %257 : vector<1x1x32xf32> to vector<1x32xf32>
    %259 = vector.broadcast %258 : vector<1x32xf32> to vector<6x32xf32>
    %260 = arith.mulf %256, %259 : vector<6x32xf32>
    %261 = vector.extract_strided_slice %212 {offsets = [0, 0], sizes = [6, 32], strides = [1, 1]} : vector<12x32xf32> to vector<6x32xf32>
    %262 = vector.extract_strided_slice %8 {offsets = [3, 0, 0], sizes = [1, 1, 32], strides = [1, 1, 1]} : vector<9x1x32xf32> to vector<1x1x32xf32>
    %263 = vector.shape_cast %262 : vector<1x1x32xf32> to vector<1x32xf32>
    %264 = vector.broadcast %263 : vector<1x32xf32> to vector<6x32xf32>
    %265 = arith.mulf %261, %264 : vector<6x32xf32>
    %266 = arith.addf %254, %260 : vector<6x32xf32>
    %267 = arith.addf %255, %265 : vector<6x32xf32>
    %268 = vector.extract_strided_slice %185 {offsets = [0, 0], sizes = [6, 32], strides = [1, 1]} : vector<12x32xf32> to vector<6x32xf32>
    %269 = vector.extract_strided_slice %6 {offsets = [4, 0, 0], sizes = [1, 1, 32], strides = [1, 1, 1]} : vector<9x1x32xf32> to vector<1x1x32xf32>
    %270 = vector.shape_cast %269 : vector<1x1x32xf32> to vector<1x32xf32>
    %271 = vector.broadcast %270 : vector<1x32xf32> to vector<6x32xf32>
    %272 = arith.mulf %268, %271 : vector<6x32xf32>
    %273 = vector.extract_strided_slice %221 {offsets = [0, 0], sizes = [6, 32], strides = [1, 1]} : vector<12x32xf32> to vector<6x32xf32>
    %274 = vector.extract_strided_slice %8 {offsets = [4, 0, 0], sizes = [1, 1, 32], strides = [1, 1, 1]} : vector<9x1x32xf32> to vector<1x1x32xf32>
    %275 = vector.shape_cast %274 : vector<1x1x32xf32> to vector<1x32xf32>
    %276 = vector.broadcast %275 : vector<1x32xf32> to vector<6x32xf32>
    %277 = arith.mulf %273, %276 : vector<6x32xf32>
    %278 = arith.addf %266, %272 : vector<6x32xf32>
    %279 = arith.addf %267, %277 : vector<6x32xf32>
    %280 = vector.extract_strided_slice %183 {offsets = [1, 0], sizes = [6, 32], strides = [1, 1]} : vector<12x32xf32> to vector<6x32xf32>
    %281 = vector.extract_strided_slice %6 {offsets = [5, 0, 0], sizes = [1, 1, 32], strides = [1, 1, 1]} : vector<9x1x32xf32> to vector<1x1x32xf32>
    %282 = vector.shape_cast %281 : vector<1x1x32xf32> to vector<1x32xf32>
    %283 = vector.broadcast %282 : vector<1x32xf32> to vector<6x32xf32>
    %284 = arith.mulf %280, %283 : vector<6x32xf32>
    %285 = vector.extract_strided_slice %212 {offsets = [1, 0], sizes = [6, 32], strides = [1, 1]} : vector<12x32xf32> to vector<6x32xf32>
    %286 = vector.extract_strided_slice %8 {offsets = [5, 0, 0], sizes = [1, 1, 32], strides = [1, 1, 1]} : vector<9x1x32xf32> to vector<1x1x32xf32>
    %287 = vector.shape_cast %286 : vector<1x1x32xf32> to vector<1x32xf32>
    %288 = vector.broadcast %287 : vector<1x32xf32> to vector<6x32xf32>
    %289 = arith.mulf %285, %288 : vector<6x32xf32>
    %290 = arith.addf %278, %284 : vector<6x32xf32>
    %291 = arith.addf %279, %289 : vector<6x32xf32>
    %292 = vector.extract_strided_slice %179 {offsets = [3, 0], sizes = [6, 32], strides = [1, 1]} : vector<12x32xf32> to vector<6x32xf32>
    %293 = vector.extract_strided_slice %6 {offsets = [6, 0, 0], sizes = [1, 1, 32], strides = [1, 1, 1]} : vector<9x1x32xf32> to vector<1x1x32xf32>
    %294 = vector.shape_cast %293 : vector<1x1x32xf32> to vector<1x32xf32>
    %295 = vector.broadcast %294 : vector<1x32xf32> to vector<6x32xf32>
    %296 = arith.mulf %292, %295 : vector<6x32xf32>
    %297 = vector.extract_strided_slice %194 {offsets = [3, 0], sizes = [6, 32], strides = [1, 1]} : vector<12x32xf32> to vector<6x32xf32>
    %298 = vector.extract_strided_slice %8 {offsets = [6, 0, 0], sizes = [1, 1, 32], strides = [1, 1, 1]} : vector<9x1x32xf32> to vector<1x1x32xf32>
    %299 = vector.shape_cast %298 : vector<1x1x32xf32> to vector<1x32xf32>
    %300 = vector.broadcast %299 : vector<1x32xf32> to vector<6x32xf32>
    %301 = arith.mulf %297, %300 : vector<6x32xf32>
    %302 = arith.addf %290, %296 : vector<6x32xf32>
    %303 = arith.addf %291, %301 : vector<6x32xf32>
    %304 = vector.extract_strided_slice %181 {offsets = [3, 0], sizes = [6, 32], strides = [1, 1]} : vector<12x32xf32> to vector<6x32xf32>
    %305 = vector.extract_strided_slice %6 {offsets = [7, 0, 0], sizes = [1, 1, 32], strides = [1, 1, 1]} : vector<9x1x32xf32> to vector<1x1x32xf32>
    %306 = vector.shape_cast %305 : vector<1x1x32xf32> to vector<1x32xf32>
    %307 = vector.broadcast %306 : vector<1x32xf32> to vector<6x32xf32>
    %308 = arith.mulf %304, %307 : vector<6x32xf32>
    %309 = vector.extract_strided_slice %203 {offsets = [3, 0], sizes = [6, 32], strides = [1, 1]} : vector<12x32xf32> to vector<6x32xf32>
    %310 = vector.extract_strided_slice %8 {offsets = [7, 0, 0], sizes = [1, 1, 32], strides = [1, 1, 1]} : vector<9x1x32xf32> to vector<1x1x32xf32>
    %311 = vector.shape_cast %310 : vector<1x1x32xf32> to vector<1x32xf32>
    %312 = vector.broadcast %311 : vector<1x32xf32> to vector<6x32xf32>
    %313 = arith.mulf %309, %312 : vector<6x32xf32>
    %314 = arith.addf %302, %308 : vector<6x32xf32>
    %315 = arith.addf %303, %313 : vector<6x32xf32>
    %316 = vector.extract_strided_slice %179 {offsets = [4, 0], sizes = [6, 32], strides = [1, 1]} : vector<12x32xf32> to vector<6x32xf32>
    %317 = vector.extract_strided_slice %6 {offsets = [8, 0, 0], sizes = [1, 1, 32], strides = [1, 1, 1]} : vector<9x1x32xf32> to vector<1x1x32xf32>
    %318 = vector.shape_cast %317 : vector<1x1x32xf32> to vector<1x32xf32>
    %319 = vector.broadcast %318 : vector<1x32xf32> to vector<6x32xf32>
    %320 = arith.mulf %316, %319 : vector<6x32xf32>
    %321 = vector.extract_strided_slice %194 {offsets = [4, 0], sizes = [6, 32], strides = [1, 1]} : vector<12x32xf32> to vector<6x32xf32>
    %322 = vector.extract_strided_slice %8 {offsets = [8, 0, 0], sizes = [1, 1, 32], strides = [1, 1, 1]} : vector<9x1x32xf32> to vector<1x1x32xf32>
    %323 = vector.shape_cast %322 : vector<1x1x32xf32> to vector<1x32xf32>
    %324 = vector.broadcast %323 : vector<1x32xf32> to vector<6x32xf32>
    %325 = arith.mulf %321, %324 : vector<6x32xf32>
    %326 = arith.addf %314, %320 : vector<6x32xf32>
    %327 = arith.addf %315, %325 : vector<6x32xf32>
    %328 = vector.broadcast %7 : vector<1x32xf32> to vector<6x32xf32>
    %329 = arith.addf %326, %328 : vector<6x32xf32>
    %330 = vector.broadcast %9 : vector<1x32xf32> to vector<6x32xf32>
    %331 = arith.addf %327, %330 : vector<6x32xf32>
    %cst_96 = arith.constant dense<0.000000e+00> : vector<6x64xf32>
    %332 = tpu.matmul %329, %4, %cst_96 {dimension_numbers = #tpu.dot_dimension_numbers<[1], [0], [0], [1], [0, 0, 1, 1], [], []>} : vector<6x32xf32>, vector<32x64xf32>, vector<6x64xf32> -> vector<6x64xf32>
    %333 = vector.broadcast %5 : vector<1x64xf32> to vector<6x64xf32>
    %334 = arith.addf %332, %333 : vector<6x64xf32>
    %cst_97 = arith.constant 0.000000e+00 : f32
    %335 = vector.broadcast %cst_97 : f32 to vector<6x64xf32>
    %336 = arith.maximumf %334, %335 : vector<6x64xf32>
    %cst_98 = arith.constant dense<0.000000e+00> : vector<6x64xf32>
    %337 = tpu.matmul %331, %2, %cst_98 {dimension_numbers = #tpu.dot_dimension_numbers<[1], [0], [0], [1], [0, 0, 1, 1], [], []>} : vector<6x32xf32>, vector<32x64xf32>, vector<6x64xf32> -> vector<6x64xf32>
    %338 = vector.broadcast %3 : vector<1x64xf32> to vector<6x64xf32>
    %339 = arith.addf %337, %338 : vector<6x64xf32>
    %cst_99 = arith.constant 0.000000e+00 : f32
    %340 = vector.broadcast %cst_99 : f32 to vector<6x64xf32>
    %341 = arith.maximumf %339, %340 : vector<6x64xf32>
    %342 = arith.addf %336, %341 : vector<6x64xf32>
    %c1_100 = arith.constant 1 : index
    %c0_101 = arith.constant 0 : index
    %c0_102 = arith.constant 0 : index
    %343 = vector.load %arg13[%c1_100, %c0_101, %c0_102] : memref<2x6x64xf32, #tpu.memory_space<vmem>>, vector<1x6x64xf32>
    %344 = vector.shape_cast %343 : vector<1x6x64xf32> to vector<6x64xf32>
    %345 = vector.shape_cast %342 : vector<6x64xf32> to vector<1x6x64xf32>
    tpu.vector_store %arg13[%c1_100, %c0_101, %c0_102], %345 {strides = array<i32>} : memref<2x6x64xf32, #tpu.memory_space<vmem>>, vector<1x6x64xf32>,
    return
  }
  func.func @transform_0(%arg0: i32) -> (i32, i32, i32, i32) {
    %c0_i32 = arith.constant 0 : i32
    %c0_i32_0 = arith.constant 0 : i32
    %c0_i32_1 = arith.constant 0 : i32
    %c0_i32_2 = arith.constant 0 : i32
    %c0_i32_3 = arith.constant 0 : i32
    return %c0_i32, %c0_i32_0, %c0_i32_1, %c0_i32_2 : i32, i32, i32, i32
  }
  func.func @transform_1(%arg0: i32) -> (i32, i32, i32) {
    %c0_i32 = arith.constant 0 : i32
    %c0_i32_0 = arith.constant 0 : i32
    %c0_i32_1 = arith.constant 0 : i32
    %c0_i32_2 = arith.constant 0 : i32
    return %c0_i32, %c0_i32_0, %c0_i32_1 : i32, i32, i32
  }
  func.func @transform_2(%arg0: i32) -> (i32, i32) {
    %c0_i32 = arith.constant 0 : i32
    %c0_i32_0 = arith.constant 0 : i32
    %c0_i32_1 = arith.constant 0 : i32
    return %c0_i32, %c0_i32_0 : i32, i32
  }
  func.func @transform_3(%arg0: i32) -> (i32, i32) {
    %c0_i32 = arith.constant 0 : i32
    %c0_i32_0 = arith.constant 0 : i32
    %c0_i32_1 = arith.constant 0 : i32
    return %c0_i32, %c0_i32_0 : i32, i32
  }
  func.func @transform_4(%arg0: i32) -> (i32, i32, i32) {
    %c0_i32 = arith.constant 0 : i32
    %c0_i32_0 = arith.constant 0 : i32
    %c0_i32_1 = arith.constant 0 : i32
    %c0_i32_2 = arith.constant 0 : i32
    return %c0_i32, %c0_i32_0, %c0_i32_1 : i32, i32, i32
  }
  func.func @transform_5(%arg0: i32) -> (i32, i32) {
    %c0_i32 = arith.constant 0 : i32
    %c0_i32_0 = arith.constant 0 : i32
    %c0_i32_1 = arith.constant 0 : i32
    return %c0_i32, %c0_i32_0 : i32, i32
  }
  func.func @transform_6(%arg0: i32) -> (i32, i32) {
    %c0_i32 = arith.constant 0 : i32
    %c0_i32_0 = arith.constant 0 : i32
    %c0_i32_1 = arith.constant 0 : i32
    return %c0_i32, %c0_i32_0 : i32, i32
  }
  func.func @transform_7(%arg0: i32) -> (i32, i32) {
    %c0_i32 = arith.constant 0 : i32
    %c0_i32_0 = arith.constant 0 : i32
    %c0_i32_1 = arith.constant 0 : i32
    return %c0_i32, %c0_i32_0 : i32, i32
  }
  func.func @transform_8(%arg0: i32) -> (i32, i32, i32) {
    %c0_i32 = arith.constant 0 : i32
    %c0_i32_0 = arith.constant 0 : i32
    %c0_i32_1 = arith.constant 0 : i32
    %c0_i32_2 = arith.constant 0 : i32
    return %c0_i32, %c0_i32_0, %c0_i32_1 : i32, i32, i32
  }
  func.func @transform_9(%arg0: i32) -> (i32, i32) {
    %c0_i32 = arith.constant 0 : i32
    %c0_i32_0 = arith.constant 0 : i32
    %c0_i32_1 = arith.constant 0 : i32
    return %c0_i32, %c0_i32_0 : i32, i32
  }
  func.func @transform_10(%arg0: i32) -> (i32, i32) {
    %c0_i32 = arith.constant 0 : i32
    %c0_i32_0 = arith.constant 0 : i32
    %c0_i32_1 = arith.constant 0 : i32
    return %c0_i32, %c0_i32_0 : i32, i32
  }
  func.func @transform_11(%arg0: i32) -> (i32, i32) {
    %c0_i32 = arith.constant 0 : i32
    %c0_i32_0 = arith.constant 0 : i32
    %c0_i32_1 = arith.constant 0 : i32
    return %c0_i32, %c0_i32_0 : i32, i32
  }
  func.func @transform_12(%arg0: i32) -> (i32, i32, i32) {
    %c0_i32 = arith.constant 0 : i32
    %c0_i32_0 = arith.constant 0 : i32
    %c0_i32_1 = arith.constant 0 : i32
    %c0_i32_2 = arith.constant 0 : i32
    return %c0_i32, %c0_i32_0, %c0_i32_1 : i32, i32, i32
  }
}

module attributes {stable_mosaic.version = 11 : i64} {
  func.func @_block_s1_kernel(%arg0: i32, %arg1: memref<2x20x32xf32, #tpu.memory_space<vmem>>, %arg2: memref<2x20x32xf32, #tpu.memory_space<vmem>>, %arg3: memref<20x1xf32, #tpu.memory_space<vmem>>, %arg4: memref<32x32xf32, #tpu.memory_space<vmem>>, %arg5: memref<1x32xf32, #tpu.memory_space<vmem>>, %arg6: memref<9x1x32xf32, #tpu.memory_space<vmem>>, %arg7: memref<1x32xf32, #tpu.memory_space<vmem>>, %arg8: memref<32x64xf32, #tpu.memory_space<vmem>>, %arg9: memref<1x64xf32, #tpu.memory_space<vmem>>, %arg10: memref<32x64xf32, #tpu.memory_space<vmem>>, %arg11: memref<2x8x64xf32, #tpu.memory_space<vmem>>) attributes {dimension_semantics = [#tpu.dimension_semantics<arbitrary>], iteration_bounds = array<i64: 1>, scalar_prefetch = 0 : i64, scratch_operands = 0 : i64, tpu.core_type = #tpu.core_type<tc>, window_params = [{pipeline_mode = #tpu.pipeline_mode<synchronous>, transform_indices = @transform_0, window_bounds = array<i64: 2, 20, 32>}, {pipeline_mode = #tpu.pipeline_mode<synchronous>, transform_indices = @transform_1, window_bounds = array<i64: 2, 20, 32>}, {pipeline_mode = #tpu.pipeline_mode<synchronous>, transform_indices = @transform_2, window_bounds = array<i64: 20, 1>}, {pipeline_mode = #tpu.pipeline_mode<synchronous>, transform_indices = @transform_3, window_bounds = array<i64: 32, 32>}, {pipeline_mode = #tpu.pipeline_mode<synchronous>, transform_indices = @transform_4, window_bounds = array<i64: 1, 32>}, {pipeline_mode = #tpu.pipeline_mode<synchronous>, transform_indices = @transform_5, window_bounds = array<i64: 9, 1, 32>}, {pipeline_mode = #tpu.pipeline_mode<synchronous>, transform_indices = @transform_6, window_bounds = array<i64: 1, 32>}, {pipeline_mode = #tpu.pipeline_mode<synchronous>, transform_indices = @transform_7, window_bounds = array<i64: 32, 64>}, {pipeline_mode = #tpu.pipeline_mode<synchronous>, transform_indices = @transform_8, window_bounds = array<i64: 1, 64>}, {pipeline_mode = #tpu.pipeline_mode<synchronous>, transform_indices = @transform_9, window_bounds = array<i64: 32, 64>}, {pipeline_mode = #tpu.pipeline_mode<synchronous>, transform_indices = @transform_10, window_bounds = array<i64: 2, 8, 64>}]} {
    %c0 = arith.constant 0 : index
    %c0_0 = arith.constant 0 : index
    %0 = vector.load %arg3[%c0, %c0_0] : memref<20x1xf32, #tpu.memory_space<vmem>>, vector<20x1xf32>
    %c0_1 = arith.constant 0 : index
    %c0_2 = arith.constant 0 : index
    %1 = vector.load %arg4[%c0_1, %c0_2] : memref<32x32xf32, #tpu.memory_space<vmem>>, vector<32x32xf32>
    %c0_3 = arith.constant 0 : index
    %c0_4 = arith.constant 0 : index
    %2 = vector.load %arg5[%c0_3, %c0_4] : memref<1x32xf32, #tpu.memory_space<vmem>>, vector<1x32xf32>
    %c0_5 = arith.constant 0 : index
    %c0_6 = arith.constant 0 : index
    %3 = vector.load %arg8[%c0_5, %c0_6] : memref<32x64xf32, #tpu.memory_space<vmem>>, vector<32x64xf32>
    %c0_7 = arith.constant 0 : index
    %c0_8 = arith.constant 0 : index
    %4 = vector.load %arg9[%c0_7, %c0_8] : memref<1x64xf32, #tpu.memory_space<vmem>>, vector<1x64xf32>
    %c0_9 = arith.constant 0 : index
    %c0_10 = arith.constant 0 : index
    %5 = vector.load %arg10[%c0_9, %c0_10] : memref<32x64xf32, #tpu.memory_space<vmem>>, vector<32x64xf32>
    %c0_11 = arith.constant 0 : index
    %c0_12 = arith.constant 0 : index
    %c0_13 = arith.constant 0 : index
    %6 = vector.load %arg6[%c0_11, %c0_12, %c0_13] : memref<9x1x32xf32, #tpu.memory_space<vmem>>, vector<9x1x32xf32>
    %c0_14 = arith.constant 0 : index
    %c0_15 = arith.constant 0 : index
    %7 = vector.load %arg7[%c0_14, %c0_15] : memref<1x32xf32, #tpu.memory_space<vmem>>, vector<1x32xf32>
    %c0_16 = arith.constant 0 : index
    %c0_17 = arith.constant 0 : index
    %c0_18 = arith.constant 0 : index
    %8 = vector.load %arg2[%c0_16, %c0_17, %c0_18] : memref<2x20x32xf32, #tpu.memory_space<vmem>>, vector<1x20x32xf32>
    %9 = vector.shape_cast %8 : vector<1x20x32xf32> to vector<20x32xf32>
    %cst = arith.constant dense<0.000000e+00> : vector<20x32xf32>
    %10 = tpu.matmul %9, %1, %cst {dimension_numbers = #tpu.dot_dimension_numbers<[1], [0], [0], [1], [0, 0, 1, 1], [], []>} : vector<20x32xf32>, vector<32x32xf32>, vector<20x32xf32> -> vector<20x32xf32>
    %11 = vector.broadcast %2 : vector<1x32xf32> to vector<20x32xf32>
    %12 = arith.addf %10, %11 : vector<20x32xf32>
    %cst_19 = arith.constant 0.000000e+00 : f32
    %13 = vector.broadcast %cst_19 : f32 to vector<20x32xf32>
    %14 = arith.maximumf %12, %13 : vector<20x32xf32>
    %15 = vector.broadcast %0 : vector<20x1xf32> to vector<20x32xf32>
    %16 = arith.mulf %14, %15 : vector<20x32xf32>
    %17 = vector.extract_strided_slice %16 {offsets = [0, 0], sizes = [8, 32], strides = [1, 1]} : vector<20x32xf32> to vector<8x32xf32>
    %18 = vector.extract_strided_slice %6 {offsets = [0, 0, 0], sizes = [1, 1, 32], strides = [1, 1, 1]} : vector<9x1x32xf32> to vector<1x1x32xf32>
    %19 = vector.shape_cast %18 : vector<1x1x32xf32> to vector<1x32xf32>
    %20 = vector.broadcast %19 : vector<1x32xf32> to vector<8x32xf32>
    %21 = arith.mulf %17, %20 : vector<8x32xf32>
    %22 = vector.extract_strided_slice %16 {offsets = [1, 0], sizes = [8, 32], strides = [1, 1]} : vector<20x32xf32> to vector<8x32xf32>
    %23 = vector.extract_strided_slice %6 {offsets = [1, 0, 0], sizes = [1, 1, 32], strides = [1, 1, 1]} : vector<9x1x32xf32> to vector<1x1x32xf32>
    %24 = vector.shape_cast %23 : vector<1x1x32xf32> to vector<1x32xf32>
    %25 = vector.broadcast %24 : vector<1x32xf32> to vector<8x32xf32>
    %26 = arith.mulf %22, %25 : vector<8x32xf32>
    %27 = arith.addf %21, %26 : vector<8x32xf32>
    %28 = vector.extract_strided_slice %16 {offsets = [2, 0], sizes = [8, 32], strides = [1, 1]} : vector<20x32xf32> to vector<8x32xf32>
    %29 = vector.extract_strided_slice %6 {offsets = [2, 0, 0], sizes = [1, 1, 32], strides = [1, 1, 1]} : vector<9x1x32xf32> to vector<1x1x32xf32>
    %30 = vector.shape_cast %29 : vector<1x1x32xf32> to vector<1x32xf32>
    %31 = vector.broadcast %30 : vector<1x32xf32> to vector<8x32xf32>
    %32 = arith.mulf %28, %31 : vector<8x32xf32>
    %33 = arith.addf %27, %32 : vector<8x32xf32>
    %34 = vector.extract_strided_slice %16 {offsets = [4, 0], sizes = [8, 32], strides = [1, 1]} : vector<20x32xf32> to vector<8x32xf32>
    %35 = vector.extract_strided_slice %6 {offsets = [3, 0, 0], sizes = [1, 1, 32], strides = [1, 1, 1]} : vector<9x1x32xf32> to vector<1x1x32xf32>
    %36 = vector.shape_cast %35 : vector<1x1x32xf32> to vector<1x32xf32>
    %37 = vector.broadcast %36 : vector<1x32xf32> to vector<8x32xf32>
    %38 = arith.mulf %34, %37 : vector<8x32xf32>
    %39 = arith.addf %33, %38 : vector<8x32xf32>
    %40 = vector.extract_strided_slice %16 {offsets = [5, 0], sizes = [8, 32], strides = [1, 1]} : vector<20x32xf32> to vector<8x32xf32>
    %41 = vector.extract_strided_slice %6 {offsets = [4, 0, 0], sizes = [1, 1, 32], strides = [1, 1, 1]} : vector<9x1x32xf32> to vector<1x1x32xf32>
    %42 = vector.shape_cast %41 : vector<1x1x32xf32> to vector<1x32xf32>
    %43 = vector.broadcast %42 : vector<1x32xf32> to vector<8x32xf32>
    %44 = arith.mulf %40, %43 : vector<8x32xf32>
    %45 = arith.addf %39, %44 : vector<8x32xf32>
    %46 = vector.extract_strided_slice %16 {offsets = [6, 0], sizes = [8, 32], strides = [1, 1]} : vector<20x32xf32> to vector<8x32xf32>
    %47 = vector.extract_strided_slice %6 {offsets = [5, 0, 0], sizes = [1, 1, 32], strides = [1, 1, 1]} : vector<9x1x32xf32> to vector<1x1x32xf32>
    %48 = vector.shape_cast %47 : vector<1x1x32xf32> to vector<1x32xf32>
    %49 = vector.broadcast %48 : vector<1x32xf32> to vector<8x32xf32>
    %50 = arith.mulf %46, %49 : vector<8x32xf32>
    %51 = arith.addf %45, %50 : vector<8x32xf32>
    %52 = vector.extract_strided_slice %16 {offsets = [8, 0], sizes = [8, 32], strides = [1, 1]} : vector<20x32xf32> to vector<8x32xf32>
    %53 = vector.extract_strided_slice %6 {offsets = [6, 0, 0], sizes = [1, 1, 32], strides = [1, 1, 1]} : vector<9x1x32xf32> to vector<1x1x32xf32>
    %54 = vector.shape_cast %53 : vector<1x1x32xf32> to vector<1x32xf32>
    %55 = vector.broadcast %54 : vector<1x32xf32> to vector<8x32xf32>
    %56 = arith.mulf %52, %55 : vector<8x32xf32>
    %57 = arith.addf %51, %56 : vector<8x32xf32>
    %58 = vector.extract_strided_slice %16 {offsets = [9, 0], sizes = [8, 32], strides = [1, 1]} : vector<20x32xf32> to vector<8x32xf32>
    %59 = vector.extract_strided_slice %6 {offsets = [7, 0, 0], sizes = [1, 1, 32], strides = [1, 1, 1]} : vector<9x1x32xf32> to vector<1x1x32xf32>
    %60 = vector.shape_cast %59 : vector<1x1x32xf32> to vector<1x32xf32>
    %61 = vector.broadcast %60 : vector<1x32xf32> to vector<8x32xf32>
    %62 = arith.mulf %58, %61 : vector<8x32xf32>
    %63 = arith.addf %57, %62 : vector<8x32xf32>
    %64 = vector.extract_strided_slice %16 {offsets = [10, 0], sizes = [8, 32], strides = [1, 1]} : vector<20x32xf32> to vector<8x32xf32>
    %65 = vector.extract_strided_slice %6 {offsets = [8, 0, 0], sizes = [1, 1, 32], strides = [1, 1, 1]} : vector<9x1x32xf32> to vector<1x1x32xf32>
    %66 = vector.shape_cast %65 : vector<1x1x32xf32> to vector<1x32xf32>
    %67 = vector.broadcast %66 : vector<1x32xf32> to vector<8x32xf32>
    %68 = arith.mulf %64, %67 : vector<8x32xf32>
    %69 = arith.addf %63, %68 : vector<8x32xf32>
    %70 = vector.broadcast %7 : vector<1x32xf32> to vector<8x32xf32>
    %71 = arith.addf %69, %70 : vector<8x32xf32>
    %cst_20 = arith.constant dense<0.000000e+00> : vector<8x64xf32>
    %72 = tpu.matmul %71, %3, %cst_20 {dimension_numbers = #tpu.dot_dimension_numbers<[1], [0], [0], [1], [0, 0, 1, 1], [], []>} : vector<8x32xf32>, vector<32x64xf32>, vector<8x64xf32> -> vector<8x64xf32>
    %73 = vector.broadcast %4 : vector<1x64xf32> to vector<8x64xf32>
    %74 = arith.addf %72, %73 : vector<8x64xf32>
    %cst_21 = arith.constant 0.000000e+00 : f32
    %75 = vector.broadcast %cst_21 : f32 to vector<8x64xf32>
    %76 = arith.maximumf %74, %75 : vector<8x64xf32>
    %c0_22 = arith.constant 0 : index
    %c0_23 = arith.constant 0 : index
    %c0_24 = arith.constant 0 : index
    %77 = vector.load %arg1[%c0_22, %c0_23, %c0_24] : memref<2x20x32xf32, #tpu.memory_space<vmem>>, vector<1x20x32xf32>
    %78 = vector.shape_cast %77 : vector<1x20x32xf32> to vector<20x32xf32>
    %79 = vector.extract_strided_slice %78 {offsets = [5, 0], sizes = [8, 32], strides = [1, 1]} : vector<20x32xf32> to vector<8x32xf32>
    %cst_25 = arith.constant dense<0.000000e+00> : vector<8x64xf32>
    %80 = tpu.matmul %79, %5, %cst_25 {dimension_numbers = #tpu.dot_dimension_numbers<[1], [0], [0], [1], [0, 0, 1, 1], [], []>} : vector<8x32xf32>, vector<32x64xf32>, vector<8x64xf32> -> vector<8x64xf32>
    %81 = arith.addf %80, %76 : vector<8x64xf32>
    %c0_26 = arith.constant 0 : index
    %c0_27 = arith.constant 0 : index
    %c0_28 = arith.constant 0 : index
    %82 = vector.load %arg11[%c0_26, %c0_27, %c0_28] : memref<2x8x64xf32, #tpu.memory_space<vmem>>, vector<1x8x64xf32>
    %83 = vector.shape_cast %82 : vector<1x8x64xf32> to vector<8x64xf32>
    %84 = vector.shape_cast %81 : vector<8x64xf32> to vector<1x8x64xf32>
    tpu.vector_store %arg11[%c0_26, %c0_27, %c0_28], %84 {strides = array<i32>} : memref<2x8x64xf32, #tpu.memory_space<vmem>>, vector<1x8x64xf32>,
    %c1 = arith.constant 1 : index
    %c0_29 = arith.constant 0 : index
    %c0_30 = arith.constant 0 : index
    %85 = vector.load %arg2[%c1, %c0_29, %c0_30] : memref<2x20x32xf32, #tpu.memory_space<vmem>>, vector<1x20x32xf32>
    %86 = vector.shape_cast %85 : vector<1x20x32xf32> to vector<20x32xf32>
    %cst_31 = arith.constant dense<0.000000e+00> : vector<20x32xf32>
    %87 = tpu.matmul %86, %1, %cst_31 {dimension_numbers = #tpu.dot_dimension_numbers<[1], [0], [0], [1], [0, 0, 1, 1], [], []>} : vector<20x32xf32>, vector<32x32xf32>, vector<20x32xf32> -> vector<20x32xf32>
    %88 = vector.broadcast %2 : vector<1x32xf32> to vector<20x32xf32>
    %89 = arith.addf %87, %88 : vector<20x32xf32>
    %cst_32 = arith.constant 0.000000e+00 : f32
    %90 = vector.broadcast %cst_32 : f32 to vector<20x32xf32>
    %91 = arith.maximumf %89, %90 : vector<20x32xf32>
    %92 = vector.broadcast %0 : vector<20x1xf32> to vector<20x32xf32>
    %93 = arith.mulf %91, %92 : vector<20x32xf32>
    %94 = vector.extract_strided_slice %93 {offsets = [0, 0], sizes = [8, 32], strides = [1, 1]} : vector<20x32xf32> to vector<8x32xf32>
    %95 = vector.extract_strided_slice %6 {offsets = [0, 0, 0], sizes = [1, 1, 32], strides = [1, 1, 1]} : vector<9x1x32xf32> to vector<1x1x32xf32>
    %96 = vector.shape_cast %95 : vector<1x1x32xf32> to vector<1x32xf32>
    %97 = vector.broadcast %96 : vector<1x32xf32> to vector<8x32xf32>
    %98 = arith.mulf %94, %97 : vector<8x32xf32>
    %99 = vector.extract_strided_slice %93 {offsets = [1, 0], sizes = [8, 32], strides = [1, 1]} : vector<20x32xf32> to vector<8x32xf32>
    %100 = vector.extract_strided_slice %6 {offsets = [1, 0, 0], sizes = [1, 1, 32], strides = [1, 1, 1]} : vector<9x1x32xf32> to vector<1x1x32xf32>
    %101 = vector.shape_cast %100 : vector<1x1x32xf32> to vector<1x32xf32>
    %102 = vector.broadcast %101 : vector<1x32xf32> to vector<8x32xf32>
    %103 = arith.mulf %99, %102 : vector<8x32xf32>
    %104 = arith.addf %98, %103 : vector<8x32xf32>
    %105 = vector.extract_strided_slice %93 {offsets = [2, 0], sizes = [8, 32], strides = [1, 1]} : vector<20x32xf32> to vector<8x32xf32>
    %106 = vector.extract_strided_slice %6 {offsets = [2, 0, 0], sizes = [1, 1, 32], strides = [1, 1, 1]} : vector<9x1x32xf32> to vector<1x1x32xf32>
    %107 = vector.shape_cast %106 : vector<1x1x32xf32> to vector<1x32xf32>
    %108 = vector.broadcast %107 : vector<1x32xf32> to vector<8x32xf32>
    %109 = arith.mulf %105, %108 : vector<8x32xf32>
    %110 = arith.addf %104, %109 : vector<8x32xf32>
    %111 = vector.extract_strided_slice %93 {offsets = [4, 0], sizes = [8, 32], strides = [1, 1]} : vector<20x32xf32> to vector<8x32xf32>
    %112 = vector.extract_strided_slice %6 {offsets = [3, 0, 0], sizes = [1, 1, 32], strides = [1, 1, 1]} : vector<9x1x32xf32> to vector<1x1x32xf32>
    %113 = vector.shape_cast %112 : vector<1x1x32xf32> to vector<1x32xf32>
    %114 = vector.broadcast %113 : vector<1x32xf32> to vector<8x32xf32>
    %115 = arith.mulf %111, %114 : vector<8x32xf32>
    %116 = arith.addf %110, %115 : vector<8x32xf32>
    %117 = vector.extract_strided_slice %93 {offsets = [5, 0], sizes = [8, 32], strides = [1, 1]} : vector<20x32xf32> to vector<8x32xf32>
    %118 = vector.extract_strided_slice %6 {offsets = [4, 0, 0], sizes = [1, 1, 32], strides = [1, 1, 1]} : vector<9x1x32xf32> to vector<1x1x32xf32>
    %119 = vector.shape_cast %118 : vector<1x1x32xf32> to vector<1x32xf32>
    %120 = vector.broadcast %119 : vector<1x32xf32> to vector<8x32xf32>
    %121 = arith.mulf %117, %120 : vector<8x32xf32>
    %122 = arith.addf %116, %121 : vector<8x32xf32>
    %123 = vector.extract_strided_slice %93 {offsets = [6, 0], sizes = [8, 32], strides = [1, 1]} : vector<20x32xf32> to vector<8x32xf32>
    %124 = vector.extract_strided_slice %6 {offsets = [5, 0, 0], sizes = [1, 1, 32], strides = [1, 1, 1]} : vector<9x1x32xf32> to vector<1x1x32xf32>
    %125 = vector.shape_cast %124 : vector<1x1x32xf32> to vector<1x32xf32>
    %126 = vector.broadcast %125 : vector<1x32xf32> to vector<8x32xf32>
    %127 = arith.mulf %123, %126 : vector<8x32xf32>
    %128 = arith.addf %122, %127 : vector<8x32xf32>
    %129 = vector.extract_strided_slice %93 {offsets = [8, 0], sizes = [8, 32], strides = [1, 1]} : vector<20x32xf32> to vector<8x32xf32>
    %130 = vector.extract_strided_slice %6 {offsets = [6, 0, 0], sizes = [1, 1, 32], strides = [1, 1, 1]} : vector<9x1x32xf32> to vector<1x1x32xf32>
    %131 = vector.shape_cast %130 : vector<1x1x32xf32> to vector<1x32xf32>
    %132 = vector.broadcast %131 : vector<1x32xf32> to vector<8x32xf32>
    %133 = arith.mulf %129, %132 : vector<8x32xf32>
    %134 = arith.addf %128, %133 : vector<8x32xf32>
    %135 = vector.extract_strided_slice %93 {offsets = [9, 0], sizes = [8, 32], strides = [1, 1]} : vector<20x32xf32> to vector<8x32xf32>
    %136 = vector.extract_strided_slice %6 {offsets = [7, 0, 0], sizes = [1, 1, 32], strides = [1, 1, 1]} : vector<9x1x32xf32> to vector<1x1x32xf32>
    %137 = vector.shape_cast %136 : vector<1x1x32xf32> to vector<1x32xf32>
    %138 = vector.broadcast %137 : vector<1x32xf32> to vector<8x32xf32>
    %139 = arith.mulf %135, %138 : vector<8x32xf32>
    %140 = arith.addf %134, %139 : vector<8x32xf32>
    %141 = vector.extract_strided_slice %93 {offsets = [10, 0], sizes = [8, 32], strides = [1, 1]} : vector<20x32xf32> to vector<8x32xf32>
    %142 = vector.extract_strided_slice %6 {offsets = [8, 0, 0], sizes = [1, 1, 32], strides = [1, 1, 1]} : vector<9x1x32xf32> to vector<1x1x32xf32>
    %143 = vector.shape_cast %142 : vector<1x1x32xf32> to vector<1x32xf32>
    %144 = vector.broadcast %143 : vector<1x32xf32> to vector<8x32xf32>
    %145 = arith.mulf %141, %144 : vector<8x32xf32>
    %146 = arith.addf %140, %145 : vector<8x32xf32>
    %147 = vector.broadcast %7 : vector<1x32xf32> to vector<8x32xf32>
    %148 = arith.addf %146, %147 : vector<8x32xf32>
    %cst_33 = arith.constant dense<0.000000e+00> : vector<8x64xf32>
    %149 = tpu.matmul %148, %3, %cst_33 {dimension_numbers = #tpu.dot_dimension_numbers<[1], [0], [0], [1], [0, 0, 1, 1], [], []>} : vector<8x32xf32>, vector<32x64xf32>, vector<8x64xf32> -> vector<8x64xf32>
    %150 = vector.broadcast %4 : vector<1x64xf32> to vector<8x64xf32>
    %151 = arith.addf %149, %150 : vector<8x64xf32>
    %cst_34 = arith.constant 0.000000e+00 : f32
    %152 = vector.broadcast %cst_34 : f32 to vector<8x64xf32>
    %153 = arith.maximumf %151, %152 : vector<8x64xf32>
    %c1_35 = arith.constant 1 : index
    %c0_36 = arith.constant 0 : index
    %c0_37 = arith.constant 0 : index
    %154 = vector.load %arg1[%c1_35, %c0_36, %c0_37] : memref<2x20x32xf32, #tpu.memory_space<vmem>>, vector<1x20x32xf32>
    %155 = vector.shape_cast %154 : vector<1x20x32xf32> to vector<20x32xf32>
    %156 = vector.extract_strided_slice %155 {offsets = [5, 0], sizes = [8, 32], strides = [1, 1]} : vector<20x32xf32> to vector<8x32xf32>
    %cst_38 = arith.constant dense<0.000000e+00> : vector<8x64xf32>
    %157 = tpu.matmul %156, %5, %cst_38 {dimension_numbers = #tpu.dot_dimension_numbers<[1], [0], [0], [1], [0, 0, 1, 1], [], []>} : vector<8x32xf32>, vector<32x64xf32>, vector<8x64xf32> -> vector<8x64xf32>
    %158 = arith.addf %157, %153 : vector<8x64xf32>
    %c1_39 = arith.constant 1 : index
    %c0_40 = arith.constant 0 : index
    %c0_41 = arith.constant 0 : index
    %159 = vector.load %arg11[%c1_39, %c0_40, %c0_41] : memref<2x8x64xf32, #tpu.memory_space<vmem>>, vector<1x8x64xf32>
    %160 = vector.shape_cast %159 : vector<1x8x64xf32> to vector<8x64xf32>
    %161 = vector.shape_cast %158 : vector<8x64xf32> to vector<1x8x64xf32>
    tpu.vector_store %arg11[%c1_39, %c0_40, %c0_41], %161 {strides = array<i32>} : memref<2x8x64xf32, #tpu.memory_space<vmem>>, vector<1x8x64xf32>,
    return
  }
  func.func @transform_0(%arg0: i32) -> (i32, i32, i32) {
    %c0_i32 = arith.constant 0 : i32
    %c0_i32_0 = arith.constant 0 : i32
    %c0_i32_1 = arith.constant 0 : i32
    %c0_i32_2 = arith.constant 0 : i32
    return %c0_i32, %c0_i32_0, %c0_i32_1 : i32, i32, i32
  }
  func.func @transform_1(%arg0: i32) -> (i32, i32, i32) {
    %c0_i32 = arith.constant 0 : i32
    %c0_i32_0 = arith.constant 0 : i32
    %c0_i32_1 = arith.constant 0 : i32
    %c0_i32_2 = arith.constant 0 : i32
    return %c0_i32, %c0_i32_0, %c0_i32_1 : i32, i32, i32
  }
  func.func @transform_2(%arg0: i32) -> (i32, i32) {
    %c0_i32 = arith.constant 0 : i32
    %c0_i32_0 = arith.constant 0 : i32
    %c0_i32_1 = arith.constant 0 : i32
    return %c0_i32, %c0_i32_0 : i32, i32
  }
  func.func @transform_3(%arg0: i32) -> (i32, i32) {
    %c0_i32 = arith.constant 0 : i32
    %c0_i32_0 = arith.constant 0 : i32
    %c0_i32_1 = arith.constant 0 : i32
    return %c0_i32, %c0_i32_0 : i32, i32
  }
  func.func @transform_4(%arg0: i32) -> (i32, i32) {
    %c0_i32 = arith.constant 0 : i32
    %c0_i32_0 = arith.constant 0 : i32
    %c0_i32_1 = arith.constant 0 : i32
    return %c0_i32, %c0_i32_0 : i32, i32
  }
  func.func @transform_5(%arg0: i32) -> (i32, i32, i32) {
    %c0_i32 = arith.constant 0 : i32
    %c0_i32_0 = arith.constant 0 : i32
    %c0_i32_1 = arith.constant 0 : i32
    %c0_i32_2 = arith.constant 0 : i32
    return %c0_i32, %c0_i32_0, %c0_i32_1 : i32, i32, i32
  }
  func.func @transform_6(%arg0: i32) -> (i32, i32) {
    %c0_i32 = arith.constant 0 : i32
    %c0_i32_0 = arith.constant 0 : i32
    %c0_i32_1 = arith.constant 0 : i32
    return %c0_i32, %c0_i32_0 : i32, i32
  }
  func.func @transform_7(%arg0: i32) -> (i32, i32) {
    %c0_i32 = arith.constant 0 : i32
    %c0_i32_0 = arith.constant 0 : i32
    %c0_i32_1 = arith.constant 0 : i32
    return %c0_i32, %c0_i32_0 : i32, i32
  }
  func.func @transform_8(%arg0: i32) -> (i32, i32) {
    %c0_i32 = arith.constant 0 : i32
    %c0_i32_0 = arith.constant 0 : i32
    %c0_i32_1 = arith.constant 0 : i32
    return %c0_i32, %c0_i32_0 : i32, i32
  }
  func.func @transform_9(%arg0: i32) -> (i32, i32) {
    %c0_i32 = arith.constant 0 : i32
    %c0_i32_0 = arith.constant 0 : i32
    %c0_i32_1 = arith.constant 0 : i32
    return %c0_i32, %c0_i32_0 : i32, i32
  }
  func.func @transform_10(%arg0: i32) -> (i32, i32, i32) {
    %c0_i32 = arith.constant 0 : i32
    %c0_i32_0 = arith.constant 0 : i32
    %c0_i32_1 = arith.constant 0 : i32
    %c0_i32_2 = arith.constant 0 : i32
    return %c0_i32, %c0_i32_0, %c0_i32_1 : i32, i32, i32
  }
}

module attributes {stable_mosaic.version = 11 : i64} {
  func.func @_block_s2_kernel(%arg0: i32, %arg1: memref<2x4x6x64xf32, #tpu.memory_space<vmem>>, %arg2: memref<4x6x1xf32, #tpu.memory_space<vmem>>, %arg3: memref<64x64xf32, #tpu.memory_space<vmem>>, %arg4: memref<1x64xf32, #tpu.memory_space<vmem>>, %arg5: memref<9x1x64xf32, #tpu.memory_space<vmem>>, %arg6: memref<1x64xf32, #tpu.memory_space<vmem>>, %arg7: memref<64x128xf32, #tpu.memory_space<vmem>>, %arg8: memref<1x128xf32, #tpu.memory_space<vmem>>, %arg9: memref<9x1x64xf32, #tpu.memory_space<vmem>>, %arg10: memref<1x64xf32, #tpu.memory_space<vmem>>, %arg11: memref<64x128xf32, #tpu.memory_space<vmem>>, %arg12: memref<1x128xf32, #tpu.memory_space<vmem>>, %arg13: memref<2x2x128xf32, #tpu.memory_space<vmem>>) attributes {dimension_semantics = [#tpu.dimension_semantics<arbitrary>], iteration_bounds = array<i64: 1>, scalar_prefetch = 0 : i64, scratch_operands = 0 : i64, tpu.core_type = #tpu.core_type<tc>, window_params = [{pipeline_mode = #tpu.pipeline_mode<synchronous>, transform_indices = @transform_0, window_bounds = array<i64: 2, 4, 6, 64>}, {pipeline_mode = #tpu.pipeline_mode<synchronous>, transform_indices = @transform_1, window_bounds = array<i64: 4, 6, 1>}, {pipeline_mode = #tpu.pipeline_mode<synchronous>, transform_indices = @transform_2, window_bounds = array<i64: 64, 64>}, {pipeline_mode = #tpu.pipeline_mode<synchronous>, transform_indices = @transform_3, window_bounds = array<i64: 1, 64>}, {pipeline_mode = #tpu.pipeline_mode<synchronous>, transform_indices = @transform_4, window_bounds = array<i64: 9, 1, 64>}, {pipeline_mode = #tpu.pipeline_mode<synchronous>, transform_indices = @transform_5, window_bounds = array<i64: 1, 64>}, {pipeline_mode = #tpu.pipeline_mode<synchronous>, transform_indices = @transform_6, window_bounds = array<i64: 64, 128>}, {pipeline_mode = #tpu.pipeline_mode<synchronous>, transform_indices = @transform_7, window_bounds = array<i64: 1, 128>}, {pipeline_mode = #tpu.pipeline_mode<synchronous>, transform_indices = @transform_8, window_bounds = array<i64: 9, 1, 64>}, {pipeline_mode = #tpu.pipeline_mode<synchronous>, transform_indices = @transform_9, window_bounds = array<i64: 1, 64>}, {pipeline_mode = #tpu.pipeline_mode<synchronous>, transform_indices = @transform_10, window_bounds = array<i64: 64, 128>}, {pipeline_mode = #tpu.pipeline_mode<synchronous>, transform_indices = @transform_11, window_bounds = array<i64: 1, 128>}, {pipeline_mode = #tpu.pipeline_mode<synchronous>, transform_indices = @transform_12, window_bounds = array<i64: 2, 2, 128>}]} {
    %c0 = arith.constant 0 : index
    %c0_0 = arith.constant 0 : index
    %0 = vector.load %arg3[%c0, %c0_0] : memref<64x64xf32, #tpu.memory_space<vmem>>, vector<64x64xf32>
    %c0_1 = arith.constant 0 : index
    %c0_2 = arith.constant 0 : index
    %1 = vector.load %arg4[%c0_1, %c0_2] : memref<1x64xf32, #tpu.memory_space<vmem>>, vector<1x64xf32>
    %c0_3 = arith.constant 0 : index
    %c0_4 = arith.constant 0 : index
    %2 = vector.load %arg7[%c0_3, %c0_4] : memref<64x128xf32, #tpu.memory_space<vmem>>, vector<64x128xf32>
    %c0_5 = arith.constant 0 : index
    %c0_6 = arith.constant 0 : index
    %3 = vector.load %arg8[%c0_5, %c0_6] : memref<1x128xf32, #tpu.memory_space<vmem>>, vector<1x128xf32>
    %c0_7 = arith.constant 0 : index
    %c0_8 = arith.constant 0 : index
    %4 = vector.load %arg11[%c0_7, %c0_8] : memref<64x128xf32, #tpu.memory_space<vmem>>, vector<64x128xf32>
    %c0_9 = arith.constant 0 : index
    %c0_10 = arith.constant 0 : index
    %5 = vector.load %arg12[%c0_9, %c0_10] : memref<1x128xf32, #tpu.memory_space<vmem>>, vector<1x128xf32>
    %c0_11 = arith.constant 0 : index
    %c0_12 = arith.constant 0 : index
    %c0_13 = arith.constant 0 : index
    %6 = vector.load %arg9[%c0_11, %c0_12, %c0_13] : memref<9x1x64xf32, #tpu.memory_space<vmem>>, vector<9x1x64xf32>
    %c0_14 = arith.constant 0 : index
    %c0_15 = arith.constant 0 : index
    %7 = vector.load %arg10[%c0_14, %c0_15] : memref<1x64xf32, #tpu.memory_space<vmem>>, vector<1x64xf32>
    %c0_16 = arith.constant 0 : index
    %c0_17 = arith.constant 0 : index
    %c0_18 = arith.constant 0 : index
    %8 = vector.load %arg5[%c0_16, %c0_17, %c0_18] : memref<9x1x64xf32, #tpu.memory_space<vmem>>, vector<9x1x64xf32>
    %c0_19 = arith.constant 0 : index
    %c0_20 = arith.constant 0 : index
    %9 = vector.load %arg6[%c0_19, %c0_20] : memref<1x64xf32, #tpu.memory_space<vmem>>, vector<1x64xf32>
    %c0_21 = arith.constant 0 : index
    %c0_22 = arith.constant 0 : index
    %c0_23 = arith.constant 0 : index
    %c0_24 = arith.constant 0 : index
    %10 = vector.load %arg1[%c0_21, %c0_22, %c0_23, %c0_24] : memref<2x4x6x64xf32, #tpu.memory_space<vmem>>, vector<1x1x6x64xf32>
    %11 = vector.shape_cast %10 : vector<1x1x6x64xf32> to vector<6x64xf32>
    %c0_25 = arith.constant 0 : index
    %c1 = arith.constant 1 : index
    %c0_26 = arith.constant 0 : index
    %c0_27 = arith.constant 0 : index
    %12 = vector.load %arg1[%c0_25, %c1, %c0_26, %c0_27] : memref<2x4x6x64xf32, #tpu.memory_space<vmem>>, vector<1x1x6x64xf32>
    %13 = vector.shape_cast %12 : vector<1x1x6x64xf32> to vector<6x64xf32>
    %c0_28 = arith.constant 0 : index
    %c2 = arith.constant 2 : index
    %c0_29 = arith.constant 0 : index
    %c0_30 = arith.constant 0 : index
    %14 = vector.load %arg1[%c0_28, %c2, %c0_29, %c0_30] : memref<2x4x6x64xf32, #tpu.memory_space<vmem>>, vector<1x1x6x64xf32>
    %15 = vector.shape_cast %14 : vector<1x1x6x64xf32> to vector<6x64xf32>
    %c0_31 = arith.constant 0 : index
    %c3 = arith.constant 3 : index
    %c0_32 = arith.constant 0 : index
    %c0_33 = arith.constant 0 : index
    %16 = vector.load %arg1[%c0_31, %c3, %c0_32, %c0_33] : memref<2x4x6x64xf32, #tpu.memory_space<vmem>>, vector<1x1x6x64xf32>
    %17 = vector.shape_cast %16 : vector<1x1x6x64xf32> to vector<6x64xf32>
    %cst = arith.constant dense<0.000000e+00> : vector<6x64xf32>
    %18 = tpu.matmul %11, %0, %cst {dimension_numbers = #tpu.dot_dimension_numbers<[1], [0], [0], [1], [0, 0, 1, 1], [], []>} : vector<6x64xf32>, vector<64x64xf32>, vector<6x64xf32> -> vector<6x64xf32>
    %19 = vector.broadcast %1 : vector<1x64xf32> to vector<6x64xf32>
    %20 = arith.addf %18, %19 : vector<6x64xf32>
    %cst_34 = arith.constant 0.000000e+00 : f32
    %21 = vector.broadcast %cst_34 : f32 to vector<6x64xf32>
    %22 = arith.maximumf %20, %21 : vector<6x64xf32>
    %c0_35 = arith.constant 0 : index
    %c0_36 = arith.constant 0 : index
    %c0_37 = arith.constant 0 : index
    %23 = vector.load %arg2[%c0_35, %c0_36, %c0_37] : memref<4x6x1xf32, #tpu.memory_space<vmem>>, vector<1x6x1xf32>
    %24 = vector.shape_cast %23 : vector<1x6x1xf32> to vector<6x1xf32>
    %25 = vector.broadcast %24 : vector<6x1xf32> to vector<6x64xf32>
    %26 = arith.mulf %22, %25 : vector<6x64xf32>
    %cst_38 = arith.constant dense<0.000000e+00> : vector<6x64xf32>
    %27 = tpu.matmul %13, %0, %cst_38 {dimension_numbers = #tpu.dot_dimension_numbers<[1], [0], [0], [1], [0, 0, 1, 1], [], []>} : vector<6x64xf32>, vector<64x64xf32>, vector<6x64xf32> -> vector<6x64xf32>
    %28 = vector.broadcast %1 : vector<1x64xf32> to vector<6x64xf32>
    %29 = arith.addf %27, %28 : vector<6x64xf32>
    %cst_39 = arith.constant 0.000000e+00 : f32
    %30 = vector.broadcast %cst_39 : f32 to vector<6x64xf32>
    %31 = arith.maximumf %29, %30 : vector<6x64xf32>
    %c1_40 = arith.constant 1 : index
    %c0_41 = arith.constant 0 : index
    %c0_42 = arith.constant 0 : index
    %32 = vector.load %arg2[%c1_40, %c0_41, %c0_42] : memref<4x6x1xf32, #tpu.memory_space<vmem>>, vector<1x6x1xf32>
    %33 = vector.shape_cast %32 : vector<1x6x1xf32> to vector<6x1xf32>
    %34 = vector.broadcast %33 : vector<6x1xf32> to vector<6x64xf32>
    %35 = arith.mulf %31, %34 : vector<6x64xf32>
    %cst_43 = arith.constant dense<0.000000e+00> : vector<6x64xf32>
    %36 = tpu.matmul %15, %0, %cst_43 {dimension_numbers = #tpu.dot_dimension_numbers<[1], [0], [0], [1], [0, 0, 1, 1], [], []>} : vector<6x64xf32>, vector<64x64xf32>, vector<6x64xf32> -> vector<6x64xf32>
    %37 = vector.broadcast %1 : vector<1x64xf32> to vector<6x64xf32>
    %38 = arith.addf %36, %37 : vector<6x64xf32>
    %cst_44 = arith.constant 0.000000e+00 : f32
    %39 = vector.broadcast %cst_44 : f32 to vector<6x64xf32>
    %40 = arith.maximumf %38, %39 : vector<6x64xf32>
    %c2_45 = arith.constant 2 : index
    %c0_46 = arith.constant 0 : index
    %c0_47 = arith.constant 0 : index
    %41 = vector.load %arg2[%c2_45, %c0_46, %c0_47] : memref<4x6x1xf32, #tpu.memory_space<vmem>>, vector<1x6x1xf32>
    %42 = vector.shape_cast %41 : vector<1x6x1xf32> to vector<6x1xf32>
    %43 = vector.broadcast %42 : vector<6x1xf32> to vector<6x64xf32>
    %44 = arith.mulf %40, %43 : vector<6x64xf32>
    %cst_48 = arith.constant dense<0.000000e+00> : vector<6x64xf32>
    %45 = tpu.matmul %17, %0, %cst_48 {dimension_numbers = #tpu.dot_dimension_numbers<[1], [0], [0], [1], [0, 0, 1, 1], [], []>} : vector<6x64xf32>, vector<64x64xf32>, vector<6x64xf32> -> vector<6x64xf32>
    %46 = vector.broadcast %1 : vector<1x64xf32> to vector<6x64xf32>
    %47 = arith.addf %45, %46 : vector<6x64xf32>
    %cst_49 = arith.constant 0.000000e+00 : f32
    %48 = vector.broadcast %cst_49 : f32 to vector<6x64xf32>
    %49 = arith.maximumf %47, %48 : vector<6x64xf32>
    %c3_50 = arith.constant 3 : index
    %c0_51 = arith.constant 0 : index
    %c0_52 = arith.constant 0 : index
    %50 = vector.load %arg2[%c3_50, %c0_51, %c0_52] : memref<4x6x1xf32, #tpu.memory_space<vmem>>, vector<1x6x1xf32>
    %51 = vector.shape_cast %50 : vector<1x6x1xf32> to vector<6x1xf32>
    %52 = vector.broadcast %51 : vector<6x1xf32> to vector<6x64xf32>
    %53 = arith.mulf %49, %52 : vector<6x64xf32>
    %54 = vector.extract_strided_slice %11 {offsets = [0, 0], sizes = [2, 64], strides = [1, 1]} : vector<6x64xf32> to vector<2x64xf32>
    %55 = vector.extract_strided_slice %6 {offsets = [0, 0, 0], sizes = [1, 1, 64], strides = [1, 1, 1]} : vector<9x1x64xf32> to vector<1x1x64xf32>
    %56 = vector.shape_cast %55 : vector<1x1x64xf32> to vector<1x64xf32>
    %57 = vector.broadcast %56 : vector<1x64xf32> to vector<2x64xf32>
    %58 = arith.mulf %54, %57 : vector<2x64xf32>
    %59 = vector.extract_strided_slice %26 {offsets = [0, 0], sizes = [2, 64], strides = [1, 1]} : vector<6x64xf32> to vector<2x64xf32>
    %60 = vector.extract_strided_slice %8 {offsets = [0, 0, 0], sizes = [1, 1, 64], strides = [1, 1, 1]} : vector<9x1x64xf32> to vector<1x1x64xf32>
    %61 = vector.shape_cast %60 : vector<1x1x64xf32> to vector<1x64xf32>
    %62 = vector.broadcast %61 : vector<1x64xf32> to vector<2x64xf32>
    %63 = arith.mulf %59, %62 : vector<2x64xf32>
    %64 = vector.extract_strided_slice %13 {offsets = [0, 0], sizes = [2, 64], strides = [1, 1]} : vector<6x64xf32> to vector<2x64xf32>
    %65 = vector.extract_strided_slice %6 {offsets = [1, 0, 0], sizes = [1, 1, 64], strides = [1, 1, 1]} : vector<9x1x64xf32> to vector<1x1x64xf32>
    %66 = vector.shape_cast %65 : vector<1x1x64xf32> to vector<1x64xf32>
    %67 = vector.broadcast %66 : vector<1x64xf32> to vector<2x64xf32>
    %68 = arith.mulf %64, %67 : vector<2x64xf32>
    %69 = vector.extract_strided_slice %35 {offsets = [0, 0], sizes = [2, 64], strides = [1, 1]} : vector<6x64xf32> to vector<2x64xf32>
    %70 = vector.extract_strided_slice %8 {offsets = [1, 0, 0], sizes = [1, 1, 64], strides = [1, 1, 1]} : vector<9x1x64xf32> to vector<1x1x64xf32>
    %71 = vector.shape_cast %70 : vector<1x1x64xf32> to vector<1x64xf32>
    %72 = vector.broadcast %71 : vector<1x64xf32> to vector<2x64xf32>
    %73 = arith.mulf %69, %72 : vector<2x64xf32>
    %74 = arith.addf %58, %68 : vector<2x64xf32>
    %75 = arith.addf %63, %73 : vector<2x64xf32>
    %76 = vector.extract_strided_slice %11 {offsets = [1, 0], sizes = [2, 64], strides = [1, 1]} : vector<6x64xf32> to vector<2x64xf32>
    %77 = vector.extract_strided_slice %6 {offsets = [2, 0, 0], sizes = [1, 1, 64], strides = [1, 1, 1]} : vector<9x1x64xf32> to vector<1x1x64xf32>
    %78 = vector.shape_cast %77 : vector<1x1x64xf32> to vector<1x64xf32>
    %79 = vector.broadcast %78 : vector<1x64xf32> to vector<2x64xf32>
    %80 = arith.mulf %76, %79 : vector<2x64xf32>
    %81 = vector.extract_strided_slice %26 {offsets = [1, 0], sizes = [2, 64], strides = [1, 1]} : vector<6x64xf32> to vector<2x64xf32>
    %82 = vector.extract_strided_slice %8 {offsets = [2, 0, 0], sizes = [1, 1, 64], strides = [1, 1, 1]} : vector<9x1x64xf32> to vector<1x1x64xf32>
    %83 = vector.shape_cast %82 : vector<1x1x64xf32> to vector<1x64xf32>
    %84 = vector.broadcast %83 : vector<1x64xf32> to vector<2x64xf32>
    %85 = arith.mulf %81, %84 : vector<2x64xf32>
    %86 = arith.addf %74, %80 : vector<2x64xf32>
    %87 = arith.addf %75, %85 : vector<2x64xf32>
    %88 = vector.extract_strided_slice %15 {offsets = [0, 0], sizes = [2, 64], strides = [1, 1]} : vector<6x64xf32> to vector<2x64xf32>
    %89 = vector.extract_strided_slice %6 {offsets = [3, 0, 0], sizes = [1, 1, 64], strides = [1, 1, 1]} : vector<9x1x64xf32> to vector<1x1x64xf32>
    %90 = vector.shape_cast %89 : vector<1x1x64xf32> to vector<1x64xf32>
    %91 = vector.broadcast %90 : vector<1x64xf32> to vector<2x64xf32>
    %92 = arith.mulf %88, %91 : vector<2x64xf32>
    %93 = vector.extract_strided_slice %44 {offsets = [0, 0], sizes = [2, 64], strides = [1, 1]} : vector<6x64xf32> to vector<2x64xf32>
    %94 = vector.extract_strided_slice %8 {offsets = [3, 0, 0], sizes = [1, 1, 64], strides = [1, 1, 1]} : vector<9x1x64xf32> to vector<1x1x64xf32>
    %95 = vector.shape_cast %94 : vector<1x1x64xf32> to vector<1x64xf32>
    %96 = vector.broadcast %95 : vector<1x64xf32> to vector<2x64xf32>
    %97 = arith.mulf %93, %96 : vector<2x64xf32>
    %98 = arith.addf %86, %92 : vector<2x64xf32>
    %99 = arith.addf %87, %97 : vector<2x64xf32>
    %100 = vector.extract_strided_slice %17 {offsets = [0, 0], sizes = [2, 64], strides = [1, 1]} : vector<6x64xf32> to vector<2x64xf32>
    %101 = vector.extract_strided_slice %6 {offsets = [4, 0, 0], sizes = [1, 1, 64], strides = [1, 1, 1]} : vector<9x1x64xf32> to vector<1x1x64xf32>
    %102 = vector.shape_cast %101 : vector<1x1x64xf32> to vector<1x64xf32>
    %103 = vector.broadcast %102 : vector<1x64xf32> to vector<2x64xf32>
    %104 = arith.mulf %100, %103 : vector<2x64xf32>
    %105 = vector.extract_strided_slice %53 {offsets = [0, 0], sizes = [2, 64], strides = [1, 1]} : vector<6x64xf32> to vector<2x64xf32>
    %106 = vector.extract_strided_slice %8 {offsets = [4, 0, 0], sizes = [1, 1, 64], strides = [1, 1, 1]} : vector<9x1x64xf32> to vector<1x1x64xf32>
    %107 = vector.shape_cast %106 : vector<1x1x64xf32> to vector<1x64xf32>
    %108 = vector.broadcast %107 : vector<1x64xf32> to vector<2x64xf32>
    %109 = arith.mulf %105, %108 : vector<2x64xf32>
    %110 = arith.addf %98, %104 : vector<2x64xf32>
    %111 = arith.addf %99, %109 : vector<2x64xf32>
    %112 = vector.extract_strided_slice %15 {offsets = [1, 0], sizes = [2, 64], strides = [1, 1]} : vector<6x64xf32> to vector<2x64xf32>
    %113 = vector.extract_strided_slice %6 {offsets = [5, 0, 0], sizes = [1, 1, 64], strides = [1, 1, 1]} : vector<9x1x64xf32> to vector<1x1x64xf32>
    %114 = vector.shape_cast %113 : vector<1x1x64xf32> to vector<1x64xf32>
    %115 = vector.broadcast %114 : vector<1x64xf32> to vector<2x64xf32>
    %116 = arith.mulf %112, %115 : vector<2x64xf32>
    %117 = vector.extract_strided_slice %44 {offsets = [1, 0], sizes = [2, 64], strides = [1, 1]} : vector<6x64xf32> to vector<2x64xf32>
    %118 = vector.extract_strided_slice %8 {offsets = [5, 0, 0], sizes = [1, 1, 64], strides = [1, 1, 1]} : vector<9x1x64xf32> to vector<1x1x64xf32>
    %119 = vector.shape_cast %118 : vector<1x1x64xf32> to vector<1x64xf32>
    %120 = vector.broadcast %119 : vector<1x64xf32> to vector<2x64xf32>
    %121 = arith.mulf %117, %120 : vector<2x64xf32>
    %122 = arith.addf %110, %116 : vector<2x64xf32>
    %123 = arith.addf %111, %121 : vector<2x64xf32>
    %124 = vector.extract_strided_slice %11 {offsets = [2, 0], sizes = [2, 64], strides = [1, 1]} : vector<6x64xf32> to vector<2x64xf32>
    %125 = vector.extract_strided_slice %6 {offsets = [6, 0, 0], sizes = [1, 1, 64], strides = [1, 1, 1]} : vector<9x1x64xf32> to vector<1x1x64xf32>
    %126 = vector.shape_cast %125 : vector<1x1x64xf32> to vector<1x64xf32>
    %127 = vector.broadcast %126 : vector<1x64xf32> to vector<2x64xf32>
    %128 = arith.mulf %124, %127 : vector<2x64xf32>
    %129 = vector.extract_strided_slice %26 {offsets = [2, 0], sizes = [2, 64], strides = [1, 1]} : vector<6x64xf32> to vector<2x64xf32>
    %130 = vector.extract_strided_slice %8 {offsets = [6, 0, 0], sizes = [1, 1, 64], strides = [1, 1, 1]} : vector<9x1x64xf32> to vector<1x1x64xf32>
    %131 = vector.shape_cast %130 : vector<1x1x64xf32> to vector<1x64xf32>
    %132 = vector.broadcast %131 : vector<1x64xf32> to vector<2x64xf32>
    %133 = arith.mulf %129, %132 : vector<2x64xf32>
    %134 = arith.addf %122, %128 : vector<2x64xf32>
    %135 = arith.addf %123, %133 : vector<2x64xf32>
    %136 = vector.extract_strided_slice %13 {offsets = [2, 0], sizes = [2, 64], strides = [1, 1]} : vector<6x64xf32> to vector<2x64xf32>
    %137 = vector.extract_strided_slice %6 {offsets = [7, 0, 0], sizes = [1, 1, 64], strides = [1, 1, 1]} : vector<9x1x64xf32> to vector<1x1x64xf32>
    %138 = vector.shape_cast %137 : vector<1x1x64xf32> to vector<1x64xf32>
    %139 = vector.broadcast %138 : vector<1x64xf32> to vector<2x64xf32>
    %140 = arith.mulf %136, %139 : vector<2x64xf32>
    %141 = vector.extract_strided_slice %35 {offsets = [2, 0], sizes = [2, 64], strides = [1, 1]} : vector<6x64xf32> to vector<2x64xf32>
    %142 = vector.extract_strided_slice %8 {offsets = [7, 0, 0], sizes = [1, 1, 64], strides = [1, 1, 1]} : vector<9x1x64xf32> to vector<1x1x64xf32>
    %143 = vector.shape_cast %142 : vector<1x1x64xf32> to vector<1x64xf32>
    %144 = vector.broadcast %143 : vector<1x64xf32> to vector<2x64xf32>
    %145 = arith.mulf %141, %144 : vector<2x64xf32>
    %146 = arith.addf %134, %140 : vector<2x64xf32>
    %147 = arith.addf %135, %145 : vector<2x64xf32>
    %148 = vector.extract_strided_slice %11 {offsets = [3, 0], sizes = [2, 64], strides = [1, 1]} : vector<6x64xf32> to vector<2x64xf32>
    %149 = vector.extract_strided_slice %6 {offsets = [8, 0, 0], sizes = [1, 1, 64], strides = [1, 1, 1]} : vector<9x1x64xf32> to vector<1x1x64xf32>
    %150 = vector.shape_cast %149 : vector<1x1x64xf32> to vector<1x64xf32>
    %151 = vector.broadcast %150 : vector<1x64xf32> to vector<2x64xf32>
    %152 = arith.mulf %148, %151 : vector<2x64xf32>
    %153 = vector.extract_strided_slice %26 {offsets = [3, 0], sizes = [2, 64], strides = [1, 1]} : vector<6x64xf32> to vector<2x64xf32>
    %154 = vector.extract_strided_slice %8 {offsets = [8, 0, 0], sizes = [1, 1, 64], strides = [1, 1, 1]} : vector<9x1x64xf32> to vector<1x1x64xf32>
    %155 = vector.shape_cast %154 : vector<1x1x64xf32> to vector<1x64xf32>
    %156 = vector.broadcast %155 : vector<1x64xf32> to vector<2x64xf32>
    %157 = arith.mulf %153, %156 : vector<2x64xf32>
    %158 = arith.addf %146, %152 : vector<2x64xf32>
    %159 = arith.addf %147, %157 : vector<2x64xf32>
    %160 = vector.broadcast %7 : vector<1x64xf32> to vector<2x64xf32>
    %161 = arith.addf %158, %160 : vector<2x64xf32>
    %162 = vector.broadcast %9 : vector<1x64xf32> to vector<2x64xf32>
    %163 = arith.addf %159, %162 : vector<2x64xf32>
    %cst_53 = arith.constant dense<0.000000e+00> : vector<2x128xf32>
    %164 = tpu.matmul %161, %4, %cst_53 {dimension_numbers = #tpu.dot_dimension_numbers<[1], [0], [0], [1], [0, 0, 1, 1], [], []>} : vector<2x64xf32>, vector<64x128xf32>, vector<2x128xf32> -> vector<2x128xf32>
    %165 = vector.broadcast %5 : vector<1x128xf32> to vector<2x128xf32>
    %166 = arith.addf %164, %165 : vector<2x128xf32>
    %cst_54 = arith.constant 0.000000e+00 : f32
    %167 = vector.broadcast %cst_54 : f32 to vector<2x128xf32>
    %168 = arith.maximumf %166, %167 : vector<2x128xf32>
    %cst_55 = arith.constant dense<0.000000e+00> : vector<2x128xf32>
    %169 = tpu.matmul %163, %2, %cst_55 {dimension_numbers = #tpu.dot_dimension_numbers<[1], [0], [0], [1], [0, 0, 1, 1], [], []>} : vector<2x64xf32>, vector<64x128xf32>, vector<2x128xf32> -> vector<2x128xf32>
    %170 = vector.broadcast %3 : vector<1x128xf32> to vector<2x128xf32>
    %171 = arith.addf %169, %170 : vector<2x128xf32>
    %cst_56 = arith.constant 0.000000e+00 : f32
    %172 = vector.broadcast %cst_56 : f32 to vector<2x128xf32>
    %173 = arith.maximumf %171, %172 : vector<2x128xf32>
    %174 = arith.addf %168, %173 : vector<2x128xf32>
    %c0_57 = arith.constant 0 : index
    %c0_58 = arith.constant 0 : index
    %c0_59 = arith.constant 0 : index
    %175 = vector.load %arg13[%c0_57, %c0_58, %c0_59] : memref<2x2x128xf32, #tpu.memory_space<vmem>>, vector<1x2x128xf32>
    %176 = vector.shape_cast %175 : vector<1x2x128xf32> to vector<2x128xf32>
    %177 = vector.shape_cast %174 : vector<2x128xf32> to vector<1x2x128xf32>
    tpu.vector_store %arg13[%c0_57, %c0_58, %c0_59], %177 {strides = array<i32>} : memref<2x2x128xf32, #tpu.memory_space<vmem>>, vector<1x2x128xf32>,
    %c1_60 = arith.constant 1 : index
    %c0_61 = arith.constant 0 : index
    %c0_62 = arith.constant 0 : index
    %c0_63 = arith.constant 0 : index
    %178 = vector.load %arg1[%c1_60, %c0_61, %c0_62, %c0_63] : memref<2x4x6x64xf32, #tpu.memory_space<vmem>>, vector<1x1x6x64xf32>
    %179 = vector.shape_cast %178 : vector<1x1x6x64xf32> to vector<6x64xf32>
    %c1_64 = arith.constant 1 : index
    %c1_65 = arith.constant 1 : index
    %c0_66 = arith.constant 0 : index
    %c0_67 = arith.constant 0 : index
    %180 = vector.load %arg1[%c1_64, %c1_65, %c0_66, %c0_67] : memref<2x4x6x64xf32, #tpu.memory_space<vmem>>, vector<1x1x6x64xf32>
    %181 = vector.shape_cast %180 : vector<1x1x6x64xf32> to vector<6x64xf32>
    %c1_68 = arith.constant 1 : index
    %c2_69 = arith.constant 2 : index
    %c0_70 = arith.constant 0 : index
    %c0_71 = arith.constant 0 : index
    %182 = vector.load %arg1[%c1_68, %c2_69, %c0_70, %c0_71] : memref<2x4x6x64xf32, #tpu.memory_space<vmem>>, vector<1x1x6x64xf32>
    %183 = vector.shape_cast %182 : vector<1x1x6x64xf32> to vector<6x64xf32>
    %c1_72 = arith.constant 1 : index
    %c3_73 = arith.constant 3 : index
    %c0_74 = arith.constant 0 : index
    %c0_75 = arith.constant 0 : index
    %184 = vector.load %arg1[%c1_72, %c3_73, %c0_74, %c0_75] : memref<2x4x6x64xf32, #tpu.memory_space<vmem>>, vector<1x1x6x64xf32>
    %185 = vector.shape_cast %184 : vector<1x1x6x64xf32> to vector<6x64xf32>
    %cst_76 = arith.constant dense<0.000000e+00> : vector<6x64xf32>
    %186 = tpu.matmul %179, %0, %cst_76 {dimension_numbers = #tpu.dot_dimension_numbers<[1], [0], [0], [1], [0, 0, 1, 1], [], []>} : vector<6x64xf32>, vector<64x64xf32>, vector<6x64xf32> -> vector<6x64xf32>
    %187 = vector.broadcast %1 : vector<1x64xf32> to vector<6x64xf32>
    %188 = arith.addf %186, %187 : vector<6x64xf32>
    %cst_77 = arith.constant 0.000000e+00 : f32
    %189 = vector.broadcast %cst_77 : f32 to vector<6x64xf32>
    %190 = arith.maximumf %188, %189 : vector<6x64xf32>
    %c0_78 = arith.constant 0 : index
    %c0_79 = arith.constant 0 : index
    %c0_80 = arith.constant 0 : index
    %191 = vector.load %arg2[%c0_78, %c0_79, %c0_80] : memref<4x6x1xf32, #tpu.memory_space<vmem>>, vector<1x6x1xf32>
    %192 = vector.shape_cast %191 : vector<1x6x1xf32> to vector<6x1xf32>
    %193 = vector.broadcast %192 : vector<6x1xf32> to vector<6x64xf32>
    %194 = arith.mulf %190, %193 : vector<6x64xf32>
    %cst_81 = arith.constant dense<0.000000e+00> : vector<6x64xf32>
    %195 = tpu.matmul %181, %0, %cst_81 {dimension_numbers = #tpu.dot_dimension_numbers<[1], [0], [0], [1], [0, 0, 1, 1], [], []>} : vector<6x64xf32>, vector<64x64xf32>, vector<6x64xf32> -> vector<6x64xf32>
    %196 = vector.broadcast %1 : vector<1x64xf32> to vector<6x64xf32>
    %197 = arith.addf %195, %196 : vector<6x64xf32>
    %cst_82 = arith.constant 0.000000e+00 : f32
    %198 = vector.broadcast %cst_82 : f32 to vector<6x64xf32>
    %199 = arith.maximumf %197, %198 : vector<6x64xf32>
    %c1_83 = arith.constant 1 : index
    %c0_84 = arith.constant 0 : index
    %c0_85 = arith.constant 0 : index
    %200 = vector.load %arg2[%c1_83, %c0_84, %c0_85] : memref<4x6x1xf32, #tpu.memory_space<vmem>>, vector<1x6x1xf32>
    %201 = vector.shape_cast %200 : vector<1x6x1xf32> to vector<6x1xf32>
    %202 = vector.broadcast %201 : vector<6x1xf32> to vector<6x64xf32>
    %203 = arith.mulf %199, %202 : vector<6x64xf32>
    %cst_86 = arith.constant dense<0.000000e+00> : vector<6x64xf32>
    %204 = tpu.matmul %183, %0, %cst_86 {dimension_numbers = #tpu.dot_dimension_numbers<[1], [0], [0], [1], [0, 0, 1, 1], [], []>} : vector<6x64xf32>, vector<64x64xf32>, vector<6x64xf32> -> vector<6x64xf32>
    %205 = vector.broadcast %1 : vector<1x64xf32> to vector<6x64xf32>
    %206 = arith.addf %204, %205 : vector<6x64xf32>
    %cst_87 = arith.constant 0.000000e+00 : f32
    %207 = vector.broadcast %cst_87 : f32 to vector<6x64xf32>
    %208 = arith.maximumf %206, %207 : vector<6x64xf32>
    %c2_88 = arith.constant 2 : index
    %c0_89 = arith.constant 0 : index
    %c0_90 = arith.constant 0 : index
    %209 = vector.load %arg2[%c2_88, %c0_89, %c0_90] : memref<4x6x1xf32, #tpu.memory_space<vmem>>, vector<1x6x1xf32>
    %210 = vector.shape_cast %209 : vector<1x6x1xf32> to vector<6x1xf32>
    %211 = vector.broadcast %210 : vector<6x1xf32> to vector<6x64xf32>
    %212 = arith.mulf %208, %211 : vector<6x64xf32>
    %cst_91 = arith.constant dense<0.000000e+00> : vector<6x64xf32>
    %213 = tpu.matmul %185, %0, %cst_91 {dimension_numbers = #tpu.dot_dimension_numbers<[1], [0], [0], [1], [0, 0, 1, 1], [], []>} : vector<6x64xf32>, vector<64x64xf32>, vector<6x64xf32> -> vector<6x64xf32>
    %214 = vector.broadcast %1 : vector<1x64xf32> to vector<6x64xf32>
    %215 = arith.addf %213, %214 : vector<6x64xf32>
    %cst_92 = arith.constant 0.000000e+00 : f32
    %216 = vector.broadcast %cst_92 : f32 to vector<6x64xf32>
    %217 = arith.maximumf %215, %216 : vector<6x64xf32>
    %c3_93 = arith.constant 3 : index
    %c0_94 = arith.constant 0 : index
    %c0_95 = arith.constant 0 : index
    %218 = vector.load %arg2[%c3_93, %c0_94, %c0_95] : memref<4x6x1xf32, #tpu.memory_space<vmem>>, vector<1x6x1xf32>
    %219 = vector.shape_cast %218 : vector<1x6x1xf32> to vector<6x1xf32>
    %220 = vector.broadcast %219 : vector<6x1xf32> to vector<6x64xf32>
    %221 = arith.mulf %217, %220 : vector<6x64xf32>
    %222 = vector.extract_strided_slice %179 {offsets = [0, 0], sizes = [2, 64], strides = [1, 1]} : vector<6x64xf32> to vector<2x64xf32>
    %223 = vector.extract_strided_slice %6 {offsets = [0, 0, 0], sizes = [1, 1, 64], strides = [1, 1, 1]} : vector<9x1x64xf32> to vector<1x1x64xf32>
    %224 = vector.shape_cast %223 : vector<1x1x64xf32> to vector<1x64xf32>
    %225 = vector.broadcast %224 : vector<1x64xf32> to vector<2x64xf32>
    %226 = arith.mulf %222, %225 : vector<2x64xf32>
    %227 = vector.extract_strided_slice %194 {offsets = [0, 0], sizes = [2, 64], strides = [1, 1]} : vector<6x64xf32> to vector<2x64xf32>
    %228 = vector.extract_strided_slice %8 {offsets = [0, 0, 0], sizes = [1, 1, 64], strides = [1, 1, 1]} : vector<9x1x64xf32> to vector<1x1x64xf32>
    %229 = vector.shape_cast %228 : vector<1x1x64xf32> to vector<1x64xf32>
    %230 = vector.broadcast %229 : vector<1x64xf32> to vector<2x64xf32>
    %231 = arith.mulf %227, %230 : vector<2x64xf32>
    %232 = vector.extract_strided_slice %181 {offsets = [0, 0], sizes = [2, 64], strides = [1, 1]} : vector<6x64xf32> to vector<2x64xf32>
    %233 = vector.extract_strided_slice %6 {offsets = [1, 0, 0], sizes = [1, 1, 64], strides = [1, 1, 1]} : vector<9x1x64xf32> to vector<1x1x64xf32>
    %234 = vector.shape_cast %233 : vector<1x1x64xf32> to vector<1x64xf32>
    %235 = vector.broadcast %234 : vector<1x64xf32> to vector<2x64xf32>
    %236 = arith.mulf %232, %235 : vector<2x64xf32>
    %237 = vector.extract_strided_slice %203 {offsets = [0, 0], sizes = [2, 64], strides = [1, 1]} : vector<6x64xf32> to vector<2x64xf32>
    %238 = vector.extract_strided_slice %8 {offsets = [1, 0, 0], sizes = [1, 1, 64], strides = [1, 1, 1]} : vector<9x1x64xf32> to vector<1x1x64xf32>
    %239 = vector.shape_cast %238 : vector<1x1x64xf32> to vector<1x64xf32>
    %240 = vector.broadcast %239 : vector<1x64xf32> to vector<2x64xf32>
    %241 = arith.mulf %237, %240 : vector<2x64xf32>
    %242 = arith.addf %226, %236 : vector<2x64xf32>
    %243 = arith.addf %231, %241 : vector<2x64xf32>
    %244 = vector.extract_strided_slice %179 {offsets = [1, 0], sizes = [2, 64], strides = [1, 1]} : vector<6x64xf32> to vector<2x64xf32>
    %245 = vector.extract_strided_slice %6 {offsets = [2, 0, 0], sizes = [1, 1, 64], strides = [1, 1, 1]} : vector<9x1x64xf32> to vector<1x1x64xf32>
    %246 = vector.shape_cast %245 : vector<1x1x64xf32> to vector<1x64xf32>
    %247 = vector.broadcast %246 : vector<1x64xf32> to vector<2x64xf32>
    %248 = arith.mulf %244, %247 : vector<2x64xf32>
    %249 = vector.extract_strided_slice %194 {offsets = [1, 0], sizes = [2, 64], strides = [1, 1]} : vector<6x64xf32> to vector<2x64xf32>
    %250 = vector.extract_strided_slice %8 {offsets = [2, 0, 0], sizes = [1, 1, 64], strides = [1, 1, 1]} : vector<9x1x64xf32> to vector<1x1x64xf32>
    %251 = vector.shape_cast %250 : vector<1x1x64xf32> to vector<1x64xf32>
    %252 = vector.broadcast %251 : vector<1x64xf32> to vector<2x64xf32>
    %253 = arith.mulf %249, %252 : vector<2x64xf32>
    %254 = arith.addf %242, %248 : vector<2x64xf32>
    %255 = arith.addf %243, %253 : vector<2x64xf32>
    %256 = vector.extract_strided_slice %183 {offsets = [0, 0], sizes = [2, 64], strides = [1, 1]} : vector<6x64xf32> to vector<2x64xf32>
    %257 = vector.extract_strided_slice %6 {offsets = [3, 0, 0], sizes = [1, 1, 64], strides = [1, 1, 1]} : vector<9x1x64xf32> to vector<1x1x64xf32>
    %258 = vector.shape_cast %257 : vector<1x1x64xf32> to vector<1x64xf32>
    %259 = vector.broadcast %258 : vector<1x64xf32> to vector<2x64xf32>
    %260 = arith.mulf %256, %259 : vector<2x64xf32>
    %261 = vector.extract_strided_slice %212 {offsets = [0, 0], sizes = [2, 64], strides = [1, 1]} : vector<6x64xf32> to vector<2x64xf32>
    %262 = vector.extract_strided_slice %8 {offsets = [3, 0, 0], sizes = [1, 1, 64], strides = [1, 1, 1]} : vector<9x1x64xf32> to vector<1x1x64xf32>
    %263 = vector.shape_cast %262 : vector<1x1x64xf32> to vector<1x64xf32>
    %264 = vector.broadcast %263 : vector<1x64xf32> to vector<2x64xf32>
    %265 = arith.mulf %261, %264 : vector<2x64xf32>
    %266 = arith.addf %254, %260 : vector<2x64xf32>
    %267 = arith.addf %255, %265 : vector<2x64xf32>
    %268 = vector.extract_strided_slice %185 {offsets = [0, 0], sizes = [2, 64], strides = [1, 1]} : vector<6x64xf32> to vector<2x64xf32>
    %269 = vector.extract_strided_slice %6 {offsets = [4, 0, 0], sizes = [1, 1, 64], strides = [1, 1, 1]} : vector<9x1x64xf32> to vector<1x1x64xf32>
    %270 = vector.shape_cast %269 : vector<1x1x64xf32> to vector<1x64xf32>
    %271 = vector.broadcast %270 : vector<1x64xf32> to vector<2x64xf32>
    %272 = arith.mulf %268, %271 : vector<2x64xf32>
    %273 = vector.extract_strided_slice %221 {offsets = [0, 0], sizes = [2, 64], strides = [1, 1]} : vector<6x64xf32> to vector<2x64xf32>
    %274 = vector.extract_strided_slice %8 {offsets = [4, 0, 0], sizes = [1, 1, 64], strides = [1, 1, 1]} : vector<9x1x64xf32> to vector<1x1x64xf32>
    %275 = vector.shape_cast %274 : vector<1x1x64xf32> to vector<1x64xf32>
    %276 = vector.broadcast %275 : vector<1x64xf32> to vector<2x64xf32>
    %277 = arith.mulf %273, %276 : vector<2x64xf32>
    %278 = arith.addf %266, %272 : vector<2x64xf32>
    %279 = arith.addf %267, %277 : vector<2x64xf32>
    %280 = vector.extract_strided_slice %183 {offsets = [1, 0], sizes = [2, 64], strides = [1, 1]} : vector<6x64xf32> to vector<2x64xf32>
    %281 = vector.extract_strided_slice %6 {offsets = [5, 0, 0], sizes = [1, 1, 64], strides = [1, 1, 1]} : vector<9x1x64xf32> to vector<1x1x64xf32>
    %282 = vector.shape_cast %281 : vector<1x1x64xf32> to vector<1x64xf32>
    %283 = vector.broadcast %282 : vector<1x64xf32> to vector<2x64xf32>
    %284 = arith.mulf %280, %283 : vector<2x64xf32>
    %285 = vector.extract_strided_slice %212 {offsets = [1, 0], sizes = [2, 64], strides = [1, 1]} : vector<6x64xf32> to vector<2x64xf32>
    %286 = vector.extract_strided_slice %8 {offsets = [5, 0, 0], sizes = [1, 1, 64], strides = [1, 1, 1]} : vector<9x1x64xf32> to vector<1x1x64xf32>
    %287 = vector.shape_cast %286 : vector<1x1x64xf32> to vector<1x64xf32>
    %288 = vector.broadcast %287 : vector<1x64xf32> to vector<2x64xf32>
    %289 = arith.mulf %285, %288 : vector<2x64xf32>
    %290 = arith.addf %278, %284 : vector<2x64xf32>
    %291 = arith.addf %279, %289 : vector<2x64xf32>
    %292 = vector.extract_strided_slice %179 {offsets = [2, 0], sizes = [2, 64], strides = [1, 1]} : vector<6x64xf32> to vector<2x64xf32>
    %293 = vector.extract_strided_slice %6 {offsets = [6, 0, 0], sizes = [1, 1, 64], strides = [1, 1, 1]} : vector<9x1x64xf32> to vector<1x1x64xf32>
    %294 = vector.shape_cast %293 : vector<1x1x64xf32> to vector<1x64xf32>
    %295 = vector.broadcast %294 : vector<1x64xf32> to vector<2x64xf32>
    %296 = arith.mulf %292, %295 : vector<2x64xf32>
    %297 = vector.extract_strided_slice %194 {offsets = [2, 0], sizes = [2, 64], strides = [1, 1]} : vector<6x64xf32> to vector<2x64xf32>
    %298 = vector.extract_strided_slice %8 {offsets = [6, 0, 0], sizes = [1, 1, 64], strides = [1, 1, 1]} : vector<9x1x64xf32> to vector<1x1x64xf32>
    %299 = vector.shape_cast %298 : vector<1x1x64xf32> to vector<1x64xf32>
    %300 = vector.broadcast %299 : vector<1x64xf32> to vector<2x64xf32>
    %301 = arith.mulf %297, %300 : vector<2x64xf32>
    %302 = arith.addf %290, %296 : vector<2x64xf32>
    %303 = arith.addf %291, %301 : vector<2x64xf32>
    %304 = vector.extract_strided_slice %181 {offsets = [2, 0], sizes = [2, 64], strides = [1, 1]} : vector<6x64xf32> to vector<2x64xf32>
    %305 = vector.extract_strided_slice %6 {offsets = [7, 0, 0], sizes = [1, 1, 64], strides = [1, 1, 1]} : vector<9x1x64xf32> to vector<1x1x64xf32>
    %306 = vector.shape_cast %305 : vector<1x1x64xf32> to vector<1x64xf32>
    %307 = vector.broadcast %306 : vector<1x64xf32> to vector<2x64xf32>
    %308 = arith.mulf %304, %307 : vector<2x64xf32>
    %309 = vector.extract_strided_slice %203 {offsets = [2, 0], sizes = [2, 64], strides = [1, 1]} : vector<6x64xf32> to vector<2x64xf32>
    %310 = vector.extract_strided_slice %8 {offsets = [7, 0, 0], sizes = [1, 1, 64], strides = [1, 1, 1]} : vector<9x1x64xf32> to vector<1x1x64xf32>
    %311 = vector.shape_cast %310 : vector<1x1x64xf32> to vector<1x64xf32>
    %312 = vector.broadcast %311 : vector<1x64xf32> to vector<2x64xf32>
    %313 = arith.mulf %309, %312 : vector<2x64xf32>
    %314 = arith.addf %302, %308 : vector<2x64xf32>
    %315 = arith.addf %303, %313 : vector<2x64xf32>
    %316 = vector.extract_strided_slice %179 {offsets = [3, 0], sizes = [2, 64], strides = [1, 1]} : vector<6x64xf32> to vector<2x64xf32>
    %317 = vector.extract_strided_slice %6 {offsets = [8, 0, 0], sizes = [1, 1, 64], strides = [1, 1, 1]} : vector<9x1x64xf32> to vector<1x1x64xf32>
    %318 = vector.shape_cast %317 : vector<1x1x64xf32> to vector<1x64xf32>
    %319 = vector.broadcast %318 : vector<1x64xf32> to vector<2x64xf32>
    %320 = arith.mulf %316, %319 : vector<2x64xf32>
    %321 = vector.extract_strided_slice %194 {offsets = [3, 0], sizes = [2, 64], strides = [1, 1]} : vector<6x64xf32> to vector<2x64xf32>
    %322 = vector.extract_strided_slice %8 {offsets = [8, 0, 0], sizes = [1, 1, 64], strides = [1, 1, 1]} : vector<9x1x64xf32> to vector<1x1x64xf32>
    %323 = vector.shape_cast %322 : vector<1x1x64xf32> to vector<1x64xf32>
    %324 = vector.broadcast %323 : vector<1x64xf32> to vector<2x64xf32>
    %325 = arith.mulf %321, %324 : vector<2x64xf32>
    %326 = arith.addf %314, %320 : vector<2x64xf32>
    %327 = arith.addf %315, %325 : vector<2x64xf32>
    %328 = vector.broadcast %7 : vector<1x64xf32> to vector<2x64xf32>
    %329 = arith.addf %326, %328 : vector<2x64xf32>
    %330 = vector.broadcast %9 : vector<1x64xf32> to vector<2x64xf32>
    %331 = arith.addf %327, %330 : vector<2x64xf32>
    %cst_96 = arith.constant dense<0.000000e+00> : vector<2x128xf32>
    %332 = tpu.matmul %329, %4, %cst_96 {dimension_numbers = #tpu.dot_dimension_numbers<[1], [0], [0], [1], [0, 0, 1, 1], [], []>} : vector<2x64xf32>, vector<64x128xf32>, vector<2x128xf32> -> vector<2x128xf32>
    %333 = vector.broadcast %5 : vector<1x128xf32> to vector<2x128xf32>
    %334 = arith.addf %332, %333 : vector<2x128xf32>
    %cst_97 = arith.constant 0.000000e+00 : f32
    %335 = vector.broadcast %cst_97 : f32 to vector<2x128xf32>
    %336 = arith.maximumf %334, %335 : vector<2x128xf32>
    %cst_98 = arith.constant dense<0.000000e+00> : vector<2x128xf32>
    %337 = tpu.matmul %331, %2, %cst_98 {dimension_numbers = #tpu.dot_dimension_numbers<[1], [0], [0], [1], [0, 0, 1, 1], [], []>} : vector<2x64xf32>, vector<64x128xf32>, vector<2x128xf32> -> vector<2x128xf32>
    %338 = vector.broadcast %3 : vector<1x128xf32> to vector<2x128xf32>
    %339 = arith.addf %337, %338 : vector<2x128xf32>
    %cst_99 = arith.constant 0.000000e+00 : f32
    %340 = vector.broadcast %cst_99 : f32 to vector<2x128xf32>
    %341 = arith.maximumf %339, %340 : vector<2x128xf32>
    %342 = arith.addf %336, %341 : vector<2x128xf32>
    %c1_100 = arith.constant 1 : index
    %c0_101 = arith.constant 0 : index
    %c0_102 = arith.constant 0 : index
    %343 = vector.load %arg13[%c1_100, %c0_101, %c0_102] : memref<2x2x128xf32, #tpu.memory_space<vmem>>, vector<1x2x128xf32>
    %344 = vector.shape_cast %343 : vector<1x2x128xf32> to vector<2x128xf32>
    %345 = vector.shape_cast %342 : vector<2x128xf32> to vector<1x2x128xf32>
    tpu.vector_store %arg13[%c1_100, %c0_101, %c0_102], %345 {strides = array<i32>} : memref<2x2x128xf32, #tpu.memory_space<vmem>>, vector<1x2x128xf32>,
    return
  }
  func.func @transform_0(%arg0: i32) -> (i32, i32, i32, i32) {
    %c0_i32 = arith.constant 0 : i32
    %c0_i32_0 = arith.constant 0 : i32
    %c0_i32_1 = arith.constant 0 : i32
    %c0_i32_2 = arith.constant 0 : i32
    %c0_i32_3 = arith.constant 0 : i32
    return %c0_i32, %c0_i32_0, %c0_i32_1, %c0_i32_2 : i32, i32, i32, i32
  }
  func.func @transform_1(%arg0: i32) -> (i32, i32, i32) {
    %c0_i32 = arith.constant 0 : i32
    %c0_i32_0 = arith.constant 0 : i32
    %c0_i32_1 = arith.constant 0 : i32
    %c0_i32_2 = arith.constant 0 : i32
    return %c0_i32, %c0_i32_0, %c0_i32_1 : i32, i32, i32
  }
  func.func @transform_2(%arg0: i32) -> (i32, i32) {
    %c0_i32 = arith.constant 0 : i32
    %c0_i32_0 = arith.constant 0 : i32
    %c0_i32_1 = arith.constant 0 : i32
    return %c0_i32, %c0_i32_0 : i32, i32
  }
  func.func @transform_3(%arg0: i32) -> (i32, i32) {
    %c0_i32 = arith.constant 0 : i32
    %c0_i32_0 = arith.constant 0 : i32
    %c0_i32_1 = arith.constant 0 : i32
    return %c0_i32, %c0_i32_0 : i32, i32
  }
  func.func @transform_4(%arg0: i32) -> (i32, i32, i32) {
    %c0_i32 = arith.constant 0 : i32
    %c0_i32_0 = arith.constant 0 : i32
    %c0_i32_1 = arith.constant 0 : i32
    %c0_i32_2 = arith.constant 0 : i32
    return %c0_i32, %c0_i32_0, %c0_i32_1 : i32, i32, i32
  }
  func.func @transform_5(%arg0: i32) -> (i32, i32) {
    %c0_i32 = arith.constant 0 : i32
    %c0_i32_0 = arith.constant 0 : i32
    %c0_i32_1 = arith.constant 0 : i32
    return %c0_i32, %c0_i32_0 : i32, i32
  }
  func.func @transform_6(%arg0: i32) -> (i32, i32) {
    %c0_i32 = arith.constant 0 : i32
    %c0_i32_0 = arith.constant 0 : i32
    %c0_i32_1 = arith.constant 0 : i32
    return %c0_i32, %c0_i32_0 : i32, i32
  }
  func.func @transform_7(%arg0: i32) -> (i32, i32) {
    %c0_i32 = arith.constant 0 : i32
    %c0_i32_0 = arith.constant 0 : i32
    %c0_i32_1 = arith.constant 0 : i32
    return %c0_i32, %c0_i32_0 : i32, i32
  }
  func.func @transform_8(%arg0: i32) -> (i32, i32, i32) {
    %c0_i32 = arith.constant 0 : i32
    %c0_i32_0 = arith.constant 0 : i32
    %c0_i32_1 = arith.constant 0 : i32
    %c0_i32_2 = arith.constant 0 : i32
    return %c0_i32, %c0_i32_0, %c0_i32_1 : i32, i32, i32
  }
  func.func @transform_9(%arg0: i32) -> (i32, i32) {
    %c0_i32 = arith.constant 0 : i32
    %c0_i32_0 = arith.constant 0 : i32
    %c0_i32_1 = arith.constant 0 : i32
    return %c0_i32, %c0_i32_0 : i32, i32
  }
  func.func @transform_10(%arg0: i32) -> (i32, i32) {
    %c0_i32 = arith.constant 0 : i32
    %c0_i32_0 = arith.constant 0 : i32
    %c0_i32_1 = arith.constant 0 : i32
    return %c0_i32, %c0_i32_0 : i32, i32
  }
  func.func @transform_11(%arg0: i32) -> (i32, i32) {
    %c0_i32 = arith.constant 0 : i32
    %c0_i32_0 = arith.constant 0 : i32
    %c0_i32_1 = arith.constant 0 : i32
    return %c0_i32, %c0_i32_0 : i32, i32
  }
  func.func @transform_12(%arg0: i32) -> (i32, i32, i32) {
    %c0_i32 = arith.constant 0 : i32
    %c0_i32_0 = arith.constant 0 : i32
    %c0_i32_1 = arith.constant 0 : i32
    %c0_i32_2 = arith.constant 0 : i32
    return %c0_i32, %c0_i32_0, %c0_i32_1 : i32, i32, i32
  }
}

module attributes {stable_mosaic.version = 11 : i64} {
  func.func @_block_s1_kernel(%arg0: i32, %arg1: memref<2x12x64xf32, #tpu.memory_space<vmem>>, %arg2: memref<2x12x64xf32, #tpu.memory_space<vmem>>, %arg3: memref<12x1xf32, #tpu.memory_space<vmem>>, %arg4: memref<64x64xf32, #tpu.memory_space<vmem>>, %arg5: memref<1x64xf32, #tpu.memory_space<vmem>>, %arg6: memref<9x1x64xf32, #tpu.memory_space<vmem>>, %arg7: memref<1x64xf32, #tpu.memory_space<vmem>>, %arg8: memref<64x128xf32, #tpu.memory_space<vmem>>, %arg9: memref<1x128xf32, #tpu.memory_space<vmem>>, %arg10: memref<64x128xf32, #tpu.memory_space<vmem>>, %arg11: memref<2x3x128xf32, #tpu.memory_space<vmem>>) attributes {dimension_semantics = [#tpu.dimension_semantics<arbitrary>], iteration_bounds = array<i64: 1>, scalar_prefetch = 0 : i64, scratch_operands = 0 : i64, tpu.core_type = #tpu.core_type<tc>, window_params = [{pipeline_mode = #tpu.pipeline_mode<synchronous>, transform_indices = @transform_0, window_bounds = array<i64: 2, 12, 64>}, {pipeline_mode = #tpu.pipeline_mode<synchronous>, transform_indices = @transform_1, window_bounds = array<i64: 2, 12, 64>}, {pipeline_mode = #tpu.pipeline_mode<synchronous>, transform_indices = @transform_2, window_bounds = array<i64: 12, 1>}, {pipeline_mode = #tpu.pipeline_mode<synchronous>, transform_indices = @transform_3, window_bounds = array<i64: 64, 64>}, {pipeline_mode = #tpu.pipeline_mode<synchronous>, transform_indices = @transform_4, window_bounds = array<i64: 1, 64>}, {pipeline_mode = #tpu.pipeline_mode<synchronous>, transform_indices = @transform_5, window_bounds = array<i64: 9, 1, 64>}, {pipeline_mode = #tpu.pipeline_mode<synchronous>, transform_indices = @transform_6, window_bounds = array<i64: 1, 64>}, {pipeline_mode = #tpu.pipeline_mode<synchronous>, transform_indices = @transform_7, window_bounds = array<i64: 64, 128>}, {pipeline_mode = #tpu.pipeline_mode<synchronous>, transform_indices = @transform_8, window_bounds = array<i64: 1, 128>}, {pipeline_mode = #tpu.pipeline_mode<synchronous>, transform_indices = @transform_9, window_bounds = array<i64: 64, 128>}, {pipeline_mode = #tpu.pipeline_mode<synchronous>, transform_indices = @transform_10, window_bounds = array<i64: 2, 3, 128>}]} {
    %c0 = arith.constant 0 : index
    %c0_0 = arith.constant 0 : index
    %0 = vector.load %arg3[%c0, %c0_0] : memref<12x1xf32, #tpu.memory_space<vmem>>, vector<12x1xf32>
    %c0_1 = arith.constant 0 : index
    %c0_2 = arith.constant 0 : index
    %1 = vector.load %arg4[%c0_1, %c0_2] : memref<64x64xf32, #tpu.memory_space<vmem>>, vector<64x64xf32>
    %c0_3 = arith.constant 0 : index
    %c0_4 = arith.constant 0 : index
    %2 = vector.load %arg5[%c0_3, %c0_4] : memref<1x64xf32, #tpu.memory_space<vmem>>, vector<1x64xf32>
    %c0_5 = arith.constant 0 : index
    %c0_6 = arith.constant 0 : index
    %3 = vector.load %arg8[%c0_5, %c0_6] : memref<64x128xf32, #tpu.memory_space<vmem>>, vector<64x128xf32>
    %c0_7 = arith.constant 0 : index
    %c0_8 = arith.constant 0 : index
    %4 = vector.load %arg9[%c0_7, %c0_8] : memref<1x128xf32, #tpu.memory_space<vmem>>, vector<1x128xf32>
    %c0_9 = arith.constant 0 : index
    %c0_10 = arith.constant 0 : index
    %5 = vector.load %arg10[%c0_9, %c0_10] : memref<64x128xf32, #tpu.memory_space<vmem>>, vector<64x128xf32>
    %c0_11 = arith.constant 0 : index
    %c0_12 = arith.constant 0 : index
    %c0_13 = arith.constant 0 : index
    %6 = vector.load %arg6[%c0_11, %c0_12, %c0_13] : memref<9x1x64xf32, #tpu.memory_space<vmem>>, vector<9x1x64xf32>
    %c0_14 = arith.constant 0 : index
    %c0_15 = arith.constant 0 : index
    %7 = vector.load %arg7[%c0_14, %c0_15] : memref<1x64xf32, #tpu.memory_space<vmem>>, vector<1x64xf32>
    %c0_16 = arith.constant 0 : index
    %c0_17 = arith.constant 0 : index
    %c0_18 = arith.constant 0 : index
    %8 = vector.load %arg2[%c0_16, %c0_17, %c0_18] : memref<2x12x64xf32, #tpu.memory_space<vmem>>, vector<1x12x64xf32>
    %9 = vector.shape_cast %8 : vector<1x12x64xf32> to vector<12x64xf32>
    %cst = arith.constant dense<0.000000e+00> : vector<12x64xf32>
    %10 = tpu.matmul %9, %1, %cst {dimension_numbers = #tpu.dot_dimension_numbers<[1], [0], [0], [1], [0, 0, 1, 1], [], []>} : vector<12x64xf32>, vector<64x64xf32>, vector<12x64xf32> -> vector<12x64xf32>
    %11 = vector.broadcast %2 : vector<1x64xf32> to vector<12x64xf32>
    %12 = arith.addf %10, %11 : vector<12x64xf32>
    %cst_19 = arith.constant 0.000000e+00 : f32
    %13 = vector.broadcast %cst_19 : f32 to vector<12x64xf32>
    %14 = arith.maximumf %12, %13 : vector<12x64xf32>
    %15 = vector.broadcast %0 : vector<12x1xf32> to vector<12x64xf32>
    %16 = arith.mulf %14, %15 : vector<12x64xf32>
    %17 = vector.extract_strided_slice %16 {offsets = [0, 0], sizes = [3, 64], strides = [1, 1]} : vector<12x64xf32> to vector<3x64xf32>
    %18 = vector.extract_strided_slice %6 {offsets = [0, 0, 0], sizes = [1, 1, 64], strides = [1, 1, 1]} : vector<9x1x64xf32> to vector<1x1x64xf32>
    %19 = vector.shape_cast %18 : vector<1x1x64xf32> to vector<1x64xf32>
    %20 = vector.broadcast %19 : vector<1x64xf32> to vector<3x64xf32>
    %21 = arith.mulf %17, %20 : vector<3x64xf32>
    %22 = vector.extract_strided_slice %16 {offsets = [1, 0], sizes = [3, 64], strides = [1, 1]} : vector<12x64xf32> to vector<3x64xf32>
    %23 = vector.extract_strided_slice %6 {offsets = [1, 0, 0], sizes = [1, 1, 64], strides = [1, 1, 1]} : vector<9x1x64xf32> to vector<1x1x64xf32>
    %24 = vector.shape_cast %23 : vector<1x1x64xf32> to vector<1x64xf32>
    %25 = vector.broadcast %24 : vector<1x64xf32> to vector<3x64xf32>
    %26 = arith.mulf %22, %25 : vector<3x64xf32>
    %27 = arith.addf %21, %26 : vector<3x64xf32>
    %28 = vector.extract_strided_slice %16 {offsets = [2, 0], sizes = [3, 64], strides = [1, 1]} : vector<12x64xf32> to vector<3x64xf32>
    %29 = vector.extract_strided_slice %6 {offsets = [2, 0, 0], sizes = [1, 1, 64], strides = [1, 1, 1]} : vector<9x1x64xf32> to vector<1x1x64xf32>
    %30 = vector.shape_cast %29 : vector<1x1x64xf32> to vector<1x64xf32>
    %31 = vector.broadcast %30 : vector<1x64xf32> to vector<3x64xf32>
    %32 = arith.mulf %28, %31 : vector<3x64xf32>
    %33 = arith.addf %27, %32 : vector<3x64xf32>
    %34 = vector.extract_strided_slice %16 {offsets = [3, 0], sizes = [3, 64], strides = [1, 1]} : vector<12x64xf32> to vector<3x64xf32>
    %35 = vector.extract_strided_slice %6 {offsets = [3, 0, 0], sizes = [1, 1, 64], strides = [1, 1, 1]} : vector<9x1x64xf32> to vector<1x1x64xf32>
    %36 = vector.shape_cast %35 : vector<1x1x64xf32> to vector<1x64xf32>
    %37 = vector.broadcast %36 : vector<1x64xf32> to vector<3x64xf32>
    %38 = arith.mulf %34, %37 : vector<3x64xf32>
    %39 = arith.addf %33, %38 : vector<3x64xf32>
    %40 = vector.extract_strided_slice %16 {offsets = [4, 0], sizes = [3, 64], strides = [1, 1]} : vector<12x64xf32> to vector<3x64xf32>
    %41 = vector.extract_strided_slice %6 {offsets = [4, 0, 0], sizes = [1, 1, 64], strides = [1, 1, 1]} : vector<9x1x64xf32> to vector<1x1x64xf32>
    %42 = vector.shape_cast %41 : vector<1x1x64xf32> to vector<1x64xf32>
    %43 = vector.broadcast %42 : vector<1x64xf32> to vector<3x64xf32>
    %44 = arith.mulf %40, %43 : vector<3x64xf32>
    %45 = arith.addf %39, %44 : vector<3x64xf32>
    %46 = vector.extract_strided_slice %16 {offsets = [5, 0], sizes = [3, 64], strides = [1, 1]} : vector<12x64xf32> to vector<3x64xf32>
    %47 = vector.extract_strided_slice %6 {offsets = [5, 0, 0], sizes = [1, 1, 64], strides = [1, 1, 1]} : vector<9x1x64xf32> to vector<1x1x64xf32>
    %48 = vector.shape_cast %47 : vector<1x1x64xf32> to vector<1x64xf32>
    %49 = vector.broadcast %48 : vector<1x64xf32> to vector<3x64xf32>
    %50 = arith.mulf %46, %49 : vector<3x64xf32>
    %51 = arith.addf %45, %50 : vector<3x64xf32>
    %52 = vector.extract_strided_slice %16 {offsets = [6, 0], sizes = [3, 64], strides = [1, 1]} : vector<12x64xf32> to vector<3x64xf32>
    %53 = vector.extract_strided_slice %6 {offsets = [6, 0, 0], sizes = [1, 1, 64], strides = [1, 1, 1]} : vector<9x1x64xf32> to vector<1x1x64xf32>
    %54 = vector.shape_cast %53 : vector<1x1x64xf32> to vector<1x64xf32>
    %55 = vector.broadcast %54 : vector<1x64xf32> to vector<3x64xf32>
    %56 = arith.mulf %52, %55 : vector<3x64xf32>
    %57 = arith.addf %51, %56 : vector<3x64xf32>
    %58 = vector.extract_strided_slice %16 {offsets = [7, 0], sizes = [3, 64], strides = [1, 1]} : vector<12x64xf32> to vector<3x64xf32>
    %59 = vector.extract_strided_slice %6 {offsets = [7, 0, 0], sizes = [1, 1, 64], strides = [1, 1, 1]} : vector<9x1x64xf32> to vector<1x1x64xf32>
    %60 = vector.shape_cast %59 : vector<1x1x64xf32> to vector<1x64xf32>
    %61 = vector.broadcast %60 : vector<1x64xf32> to vector<3x64xf32>
    %62 = arith.mulf %58, %61 : vector<3x64xf32>
    %63 = arith.addf %57, %62 : vector<3x64xf32>
    %64 = vector.extract_strided_slice %16 {offsets = [8, 0], sizes = [3, 64], strides = [1, 1]} : vector<12x64xf32> to vector<3x64xf32>
    %65 = vector.extract_strided_slice %6 {offsets = [8, 0, 0], sizes = [1, 1, 64], strides = [1, 1, 1]} : vector<9x1x64xf32> to vector<1x1x64xf32>
    %66 = vector.shape_cast %65 : vector<1x1x64xf32> to vector<1x64xf32>
    %67 = vector.broadcast %66 : vector<1x64xf32> to vector<3x64xf32>
    %68 = arith.mulf %64, %67 : vector<3x64xf32>
    %69 = arith.addf %63, %68 : vector<3x64xf32>
    %70 = vector.broadcast %7 : vector<1x64xf32> to vector<3x64xf32>
    %71 = arith.addf %69, %70 : vector<3x64xf32>
    %cst_20 = arith.constant dense<0.000000e+00> : vector<3x128xf32>
    %72 = tpu.matmul %71, %3, %cst_20 {dimension_numbers = #tpu.dot_dimension_numbers<[1], [0], [0], [1], [0, 0, 1, 1], [], []>} : vector<3x64xf32>, vector<64x128xf32>, vector<3x128xf32> -> vector<3x128xf32>
    %73 = vector.broadcast %4 : vector<1x128xf32> to vector<3x128xf32>
    %74 = arith.addf %72, %73 : vector<3x128xf32>
    %cst_21 = arith.constant 0.000000e+00 : f32
    %75 = vector.broadcast %cst_21 : f32 to vector<3x128xf32>
    %76 = arith.maximumf %74, %75 : vector<3x128xf32>
    %c0_22 = arith.constant 0 : index
    %c0_23 = arith.constant 0 : index
    %c0_24 = arith.constant 0 : index
    %77 = vector.load %arg1[%c0_22, %c0_23, %c0_24] : memref<2x12x64xf32, #tpu.memory_space<vmem>>, vector<1x12x64xf32>
    %78 = vector.shape_cast %77 : vector<1x12x64xf32> to vector<12x64xf32>
    %79 = vector.extract_strided_slice %78 {offsets = [4, 0], sizes = [3, 64], strides = [1, 1]} : vector<12x64xf32> to vector<3x64xf32>
    %cst_25 = arith.constant dense<0.000000e+00> : vector<3x128xf32>
    %80 = tpu.matmul %79, %5, %cst_25 {dimension_numbers = #tpu.dot_dimension_numbers<[1], [0], [0], [1], [0, 0, 1, 1], [], []>} : vector<3x64xf32>, vector<64x128xf32>, vector<3x128xf32> -> vector<3x128xf32>
    %81 = arith.addf %80, %76 : vector<3x128xf32>
    %c0_26 = arith.constant 0 : index
    %c0_27 = arith.constant 0 : index
    %c0_28 = arith.constant 0 : index
    %82 = vector.load %arg11[%c0_26, %c0_27, %c0_28] : memref<2x3x128xf32, #tpu.memory_space<vmem>>, vector<1x3x128xf32>
    %83 = vector.shape_cast %82 : vector<1x3x128xf32> to vector<3x128xf32>
    %84 = vector.shape_cast %81 : vector<3x128xf32> to vector<1x3x128xf32>
    tpu.vector_store %arg11[%c0_26, %c0_27, %c0_28], %84 {strides = array<i32>} : memref<2x3x128xf32, #tpu.memory_space<vmem>>, vector<1x3x128xf32>,
    %c1 = arith.constant 1 : index
    %c0_29 = arith.constant 0 : index
    %c0_30 = arith.constant 0 : index
    %85 = vector.load %arg2[%c1, %c0_29, %c0_30] : memref<2x12x64xf32, #tpu.memory_space<vmem>>, vector<1x12x64xf32>
    %86 = vector.shape_cast %85 : vector<1x12x64xf32> to vector<12x64xf32>
    %cst_31 = arith.constant dense<0.000000e+00> : vector<12x64xf32>
    %87 = tpu.matmul %86, %1, %cst_31 {dimension_numbers = #tpu.dot_dimension_numbers<[1], [0], [0], [1], [0, 0, 1, 1], [], []>} : vector<12x64xf32>, vector<64x64xf32>, vector<12x64xf32> -> vector<12x64xf32>
    %88 = vector.broadcast %2 : vector<1x64xf32> to vector<12x64xf32>
    %89 = arith.addf %87, %88 : vector<12x64xf32>
    %cst_32 = arith.constant 0.000000e+00 : f32
    %90 = vector.broadcast %cst_32 : f32 to vector<12x64xf32>
    %91 = arith.maximumf %89, %90 : vector<12x64xf32>
    %92 = vector.broadcast %0 : vector<12x1xf32> to vector<12x64xf32>
    %93 = arith.mulf %91, %92 : vector<12x64xf32>
    %94 = vector.extract_strided_slice %93 {offsets = [0, 0], sizes = [3, 64], strides = [1, 1]} : vector<12x64xf32> to vector<3x64xf32>
    %95 = vector.extract_strided_slice %6 {offsets = [0, 0, 0], sizes = [1, 1, 64], strides = [1, 1, 1]} : vector<9x1x64xf32> to vector<1x1x64xf32>
    %96 = vector.shape_cast %95 : vector<1x1x64xf32> to vector<1x64xf32>
    %97 = vector.broadcast %96 : vector<1x64xf32> to vector<3x64xf32>
    %98 = arith.mulf %94, %97 : vector<3x64xf32>
    %99 = vector.extract_strided_slice %93 {offsets = [1, 0], sizes = [3, 64], strides = [1, 1]} : vector<12x64xf32> to vector<3x64xf32>
    %100 = vector.extract_strided_slice %6 {offsets = [1, 0, 0], sizes = [1, 1, 64], strides = [1, 1, 1]} : vector<9x1x64xf32> to vector<1x1x64xf32>
    %101 = vector.shape_cast %100 : vector<1x1x64xf32> to vector<1x64xf32>
    %102 = vector.broadcast %101 : vector<1x64xf32> to vector<3x64xf32>
    %103 = arith.mulf %99, %102 : vector<3x64xf32>
    %104 = arith.addf %98, %103 : vector<3x64xf32>
    %105 = vector.extract_strided_slice %93 {offsets = [2, 0], sizes = [3, 64], strides = [1, 1]} : vector<12x64xf32> to vector<3x64xf32>
    %106 = vector.extract_strided_slice %6 {offsets = [2, 0, 0], sizes = [1, 1, 64], strides = [1, 1, 1]} : vector<9x1x64xf32> to vector<1x1x64xf32>
    %107 = vector.shape_cast %106 : vector<1x1x64xf32> to vector<1x64xf32>
    %108 = vector.broadcast %107 : vector<1x64xf32> to vector<3x64xf32>
    %109 = arith.mulf %105, %108 : vector<3x64xf32>
    %110 = arith.addf %104, %109 : vector<3x64xf32>
    %111 = vector.extract_strided_slice %93 {offsets = [3, 0], sizes = [3, 64], strides = [1, 1]} : vector<12x64xf32> to vector<3x64xf32>
    %112 = vector.extract_strided_slice %6 {offsets = [3, 0, 0], sizes = [1, 1, 64], strides = [1, 1, 1]} : vector<9x1x64xf32> to vector<1x1x64xf32>
    %113 = vector.shape_cast %112 : vector<1x1x64xf32> to vector<1x64xf32>
    %114 = vector.broadcast %113 : vector<1x64xf32> to vector<3x64xf32>
    %115 = arith.mulf %111, %114 : vector<3x64xf32>
    %116 = arith.addf %110, %115 : vector<3x64xf32>
    %117 = vector.extract_strided_slice %93 {offsets = [4, 0], sizes = [3, 64], strides = [1, 1]} : vector<12x64xf32> to vector<3x64xf32>
    %118 = vector.extract_strided_slice %6 {offsets = [4, 0, 0], sizes = [1, 1, 64], strides = [1, 1, 1]} : vector<9x1x64xf32> to vector<1x1x64xf32>
    %119 = vector.shape_cast %118 : vector<1x1x64xf32> to vector<1x64xf32>
    %120 = vector.broadcast %119 : vector<1x64xf32> to vector<3x64xf32>
    %121 = arith.mulf %117, %120 : vector<3x64xf32>
    %122 = arith.addf %116, %121 : vector<3x64xf32>
    %123 = vector.extract_strided_slice %93 {offsets = [5, 0], sizes = [3, 64], strides = [1, 1]} : vector<12x64xf32> to vector<3x64xf32>
    %124 = vector.extract_strided_slice %6 {offsets = [5, 0, 0], sizes = [1, 1, 64], strides = [1, 1, 1]} : vector<9x1x64xf32> to vector<1x1x64xf32>
    %125 = vector.shape_cast %124 : vector<1x1x64xf32> to vector<1x64xf32>
    %126 = vector.broadcast %125 : vector<1x64xf32> to vector<3x64xf32>
    %127 = arith.mulf %123, %126 : vector<3x64xf32>
    %128 = arith.addf %122, %127 : vector<3x64xf32>
    %129 = vector.extract_strided_slice %93 {offsets = [6, 0], sizes = [3, 64], strides = [1, 1]} : vector<12x64xf32> to vector<3x64xf32>
    %130 = vector.extract_strided_slice %6 {offsets = [6, 0, 0], sizes = [1, 1, 64], strides = [1, 1, 1]} : vector<9x1x64xf32> to vector<1x1x64xf32>
    %131 = vector.shape_cast %130 : vector<1x1x64xf32> to vector<1x64xf32>
    %132 = vector.broadcast %131 : vector<1x64xf32> to vector<3x64xf32>
    %133 = arith.mulf %129, %132 : vector<3x64xf32>
    %134 = arith.addf %128, %133 : vector<3x64xf32>
    %135 = vector.extract_strided_slice %93 {offsets = [7, 0], sizes = [3, 64], strides = [1, 1]} : vector<12x64xf32> to vector<3x64xf32>
    %136 = vector.extract_strided_slice %6 {offsets = [7, 0, 0], sizes = [1, 1, 64], strides = [1, 1, 1]} : vector<9x1x64xf32> to vector<1x1x64xf32>
    %137 = vector.shape_cast %136 : vector<1x1x64xf32> to vector<1x64xf32>
    %138 = vector.broadcast %137 : vector<1x64xf32> to vector<3x64xf32>
    %139 = arith.mulf %135, %138 : vector<3x64xf32>
    %140 = arith.addf %134, %139 : vector<3x64xf32>
    %141 = vector.extract_strided_slice %93 {offsets = [8, 0], sizes = [3, 64], strides = [1, 1]} : vector<12x64xf32> to vector<3x64xf32>
    %142 = vector.extract_strided_slice %6 {offsets = [8, 0, 0], sizes = [1, 1, 64], strides = [1, 1, 1]} : vector<9x1x64xf32> to vector<1x1x64xf32>
    %143 = vector.shape_cast %142 : vector<1x1x64xf32> to vector<1x64xf32>
    %144 = vector.broadcast %143 : vector<1x64xf32> to vector<3x64xf32>
    %145 = arith.mulf %141, %144 : vector<3x64xf32>
    %146 = arith.addf %140, %145 : vector<3x64xf32>
    %147 = vector.broadcast %7 : vector<1x64xf32> to vector<3x64xf32>
    %148 = arith.addf %146, %147 : vector<3x64xf32>
    %cst_33 = arith.constant dense<0.000000e+00> : vector<3x128xf32>
    %149 = tpu.matmul %148, %3, %cst_33 {dimension_numbers = #tpu.dot_dimension_numbers<[1], [0], [0], [1], [0, 0, 1, 1], [], []>} : vector<3x64xf32>, vector<64x128xf32>, vector<3x128xf32> -> vector<3x128xf32>
    %150 = vector.broadcast %4 : vector<1x128xf32> to vector<3x128xf32>
    %151 = arith.addf %149, %150 : vector<3x128xf32>
    %cst_34 = arith.constant 0.000000e+00 : f32
    %152 = vector.broadcast %cst_34 : f32 to vector<3x128xf32>
    %153 = arith.maximumf %151, %152 : vector<3x128xf32>
    %c1_35 = arith.constant 1 : index
    %c0_36 = arith.constant 0 : index
    %c0_37 = arith.constant 0 : index
    %154 = vector.load %arg1[%c1_35, %c0_36, %c0_37] : memref<2x12x64xf32, #tpu.memory_space<vmem>>, vector<1x12x64xf32>
    %155 = vector.shape_cast %154 : vector<1x12x64xf32> to vector<12x64xf32>
    %156 = vector.extract_strided_slice %155 {offsets = [4, 0], sizes = [3, 64], strides = [1, 1]} : vector<12x64xf32> to vector<3x64xf32>
    %cst_38 = arith.constant dense<0.000000e+00> : vector<3x128xf32>
    %157 = tpu.matmul %156, %5, %cst_38 {dimension_numbers = #tpu.dot_dimension_numbers<[1], [0], [0], [1], [0, 0, 1, 1], [], []>} : vector<3x64xf32>, vector<64x128xf32>, vector<3x128xf32> -> vector<3x128xf32>
    %158 = arith.addf %157, %153 : vector<3x128xf32>
    %c1_39 = arith.constant 1 : index
    %c0_40 = arith.constant 0 : index
    %c0_41 = arith.constant 0 : index
    %159 = vector.load %arg11[%c1_39, %c0_40, %c0_41] : memref<2x3x128xf32, #tpu.memory_space<vmem>>, vector<1x3x128xf32>
    %160 = vector.shape_cast %159 : vector<1x3x128xf32> to vector<3x128xf32>
    %161 = vector.shape_cast %158 : vector<3x128xf32> to vector<1x3x128xf32>
    tpu.vector_store %arg11[%c1_39, %c0_40, %c0_41], %161 {strides = array<i32>} : memref<2x3x128xf32, #tpu.memory_space<vmem>>, vector<1x3x128xf32>,
    return
  }
  func.func @transform_0(%arg0: i32) -> (i32, i32, i32) {
    %c0_i32 = arith.constant 0 : i32
    %c0_i32_0 = arith.constant 0 : i32
    %c0_i32_1 = arith.constant 0 : i32
    %c0_i32_2 = arith.constant 0 : i32
    return %c0_i32, %c0_i32_0, %c0_i32_1 : i32, i32, i32
  }
  func.func @transform_1(%arg0: i32) -> (i32, i32, i32) {
    %c0_i32 = arith.constant 0 : i32
    %c0_i32_0 = arith.constant 0 : i32
    %c0_i32_1 = arith.constant 0 : i32
    %c0_i32_2 = arith.constant 0 : i32
    return %c0_i32, %c0_i32_0, %c0_i32_1 : i32, i32, i32
  }
  func.func @transform_2(%arg0: i32) -> (i32, i32) {
    %c0_i32 = arith.constant 0 : i32
    %c0_i32_0 = arith.constant 0 : i32
    %c0_i32_1 = arith.constant 0 : i32
    return %c0_i32, %c0_i32_0 : i32, i32
  }
  func.func @transform_3(%arg0: i32) -> (i32, i32) {
    %c0_i32 = arith.constant 0 : i32
    %c0_i32_0 = arith.constant 0 : i32
    %c0_i32_1 = arith.constant 0 : i32
    return %c0_i32, %c0_i32_0 : i32, i32
  }
  func.func @transform_4(%arg0: i32) -> (i32, i32) {
    %c0_i32 = arith.constant 0 : i32
    %c0_i32_0 = arith.constant 0 : i32
    %c0_i32_1 = arith.constant 0 : i32
    return %c0_i32, %c0_i32_0 : i32, i32
  }
  func.func @transform_5(%arg0: i32) -> (i32, i32, i32) {
    %c0_i32 = arith.constant 0 : i32
    %c0_i32_0 = arith.constant 0 : i32
    %c0_i32_1 = arith.constant 0 : i32
    %c0_i32_2 = arith.constant 0 : i32
    return %c0_i32, %c0_i32_0, %c0_i32_1 : i32, i32, i32
  }
  func.func @transform_6(%arg0: i32) -> (i32, i32) {
    %c0_i32 = arith.constant 0 : i32
    %c0_i32_0 = arith.constant 0 : i32
    %c0_i32_1 = arith.constant 0 : i32
    return %c0_i32, %c0_i32_0 : i32, i32
  }
  func.func @transform_7(%arg0: i32) -> (i32, i32) {
    %c0_i32 = arith.constant 0 : i32
    %c0_i32_0 = arith.constant 0 : i32
    %c0_i32_1 = arith.constant 0 : i32
    return %c0_i32, %c0_i32_0 : i32, i32
  }
  func.func @transform_8(%arg0: i32) -> (i32, i32) {
    %c0_i32 = arith.constant 0 : i32
    %c0_i32_0 = arith.constant 0 : i32
    %c0_i32_1 = arith.constant 0 : i32
    return %c0_i32, %c0_i32_0 : i32, i32
  }
  func.func @transform_9(%arg0: i32) -> (i32, i32) {
    %c0_i32 = arith.constant 0 : i32
    %c0_i32_0 = arith.constant 0 : i32
    %c0_i32_1 = arith.constant 0 : i32
    return %c0_i32, %c0_i32_0 : i32, i32
  }
  func.func @transform_10(%arg0: i32) -> (i32, i32, i32) {
    %c0_i32 = arith.constant 0 : i32
    %c0_i32_0 = arith.constant 0 : i32
    %c0_i32_1 = arith.constant 0 : i32
    %c0_i32_2 = arith.constant 0 : i32
    return %c0_i32, %c0_i32_0, %c0_i32_1 : i32, i32, i32
  }
}

module attributes {stable_mosaic.version = 11 : i64} {
  func.func @_head_kernel(%arg0: i32, %arg1: memref<2x1x128xf32, #tpu.memory_space<vmem>>, %arg2: memref<128x128xf32, #tpu.memory_space<vmem>>, %arg3: memref<1x128xf32, #tpu.memory_space<vmem>>, %arg4: memref<128x10xf32, #tpu.memory_space<vmem>>, %arg5: memref<1x10xf32, #tpu.memory_space<vmem>>, %arg6: memref<2x10xf32, #tpu.memory_space<vmem>>) attributes {dimension_semantics = [#tpu.dimension_semantics<arbitrary>], iteration_bounds = array<i64: 1>, scalar_prefetch = 0 : i64, scratch_operands = 0 : i64, tpu.core_type = #tpu.core_type<tc>, window_params = [{pipeline_mode = #tpu.pipeline_mode<synchronous>, transform_indices = @transform_0, window_bounds = array<i64: 2, 1, 128>}, {pipeline_mode = #tpu.pipeline_mode<synchronous>, transform_indices = @transform_1, window_bounds = array<i64: 128, 128>}, {pipeline_mode = #tpu.pipeline_mode<synchronous>, transform_indices = @transform_2, window_bounds = array<i64: 1, 128>}, {pipeline_mode = #tpu.pipeline_mode<synchronous>, transform_indices = @transform_3, window_bounds = array<i64: 128, 10>}, {pipeline_mode = #tpu.pipeline_mode<synchronous>, transform_indices = @transform_4, window_bounds = array<i64: 1, 10>}, {pipeline_mode = #tpu.pipeline_mode<synchronous>, transform_indices = @transform_5, window_bounds = array<i64: 2, 10>}]} {
    %c0 = arith.constant 0 : index
    %c0_0 = arith.constant 0 : index
    %0 = vector.load %arg2[%c0, %c0_0] : memref<128x128xf32, #tpu.memory_space<vmem>>, vector<128x128xf32>
    %c0_1 = arith.constant 0 : index
    %c0_2 = arith.constant 0 : index
    %1 = vector.load %arg3[%c0_1, %c0_2] : memref<1x128xf32, #tpu.memory_space<vmem>>, vector<1x128xf32>
    %c0_3 = arith.constant 0 : index
    %c0_4 = arith.constant 0 : index
    %2 = vector.load %arg4[%c0_3, %c0_4] : memref<128x10xf32, #tpu.memory_space<vmem>>, vector<128x10xf32>
    %c0_5 = arith.constant 0 : index
    %c0_6 = arith.constant 0 : index
    %3 = vector.load %arg5[%c0_5, %c0_6] : memref<1x10xf32, #tpu.memory_space<vmem>>, vector<1x10xf32>
    %c0_7 = arith.constant 0 : index
    %c0_8 = arith.constant 0 : index
    %c0_9 = arith.constant 0 : index
    %4 = vector.load %arg1[%c0_7, %c0_8, %c0_9] : memref<2x1x128xf32, #tpu.memory_space<vmem>>, vector<1x1x128xf32>
    %5 = vector.shape_cast %4 : vector<1x1x128xf32> to vector<1x128xf32>
    %cst = arith.constant dense<0.000000e+00> : vector<1x128xf32>
    %6 = tpu.matmul %5, %0, %cst {dimension_numbers = #tpu.dot_dimension_numbers<[1], [0], [0], [1], [0, 0, 1, 1], [], []>} : vector<1x128xf32>, vector<128x128xf32>, vector<1x128xf32> -> vector<1x128xf32>
    %7 = arith.addf %6, %1 : vector<1x128xf32>
    %cst_10 = arith.constant 0.000000e+00 : f32
    %8 = vector.broadcast %cst_10 : f32 to vector<1x128xf32>
    %9 = arith.maximumf %7, %8 : vector<1x128xf32>
    %cst_11 = arith.constant dense<0.000000e+00> : vector<128xf32>
    %10 = vector.multi_reduction <add>, %9, %cst_11 [0] : vector<1x128xf32> to vector<128xf32>
    %11 = vector.shape_cast %10 : vector<128xf32> to vector<1x128xf32>
    %cst_12 = arith.constant 1.000000e+00 : f32
    %12 = vector.broadcast %cst_12 : f32 to vector<1x128xf32>
    %13 = arith.divf %11, %12 : vector<1x128xf32>
    %cst_13 = arith.constant dense<0.000000e+00> : vector<1x10xf32>
    %14 = tpu.matmul %13, %2, %cst_13 {dimension_numbers = #tpu.dot_dimension_numbers<[1], [0], [0], [1], [0, 0, 1, 1], [], []>} : vector<1x128xf32>, vector<128x10xf32>, vector<1x10xf32> -> vector<1x10xf32>
    %15 = arith.addf %14, %3 : vector<1x10xf32>
    %c0_14 = arith.constant 0 : index
    %c0_15 = arith.constant 0 : index
    %16 = vector.load %arg6[%c0_14, %c0_15] : memref<2x10xf32, #tpu.memory_space<vmem>>, vector<1x10xf32>
    tpu.vector_store %arg6[%c0_14, %c0_15], %15 {strides = array<i32>} : memref<2x10xf32, #tpu.memory_space<vmem>>, vector<1x10xf32>,
    %c1 = arith.constant 1 : index
    %c0_16 = arith.constant 0 : index
    %c0_17 = arith.constant 0 : index
    %17 = vector.load %arg1[%c1, %c0_16, %c0_17] : memref<2x1x128xf32, #tpu.memory_space<vmem>>, vector<1x1x128xf32>
    %18 = vector.shape_cast %17 : vector<1x1x128xf32> to vector<1x128xf32>
    %cst_18 = arith.constant dense<0.000000e+00> : vector<1x128xf32>
    %19 = tpu.matmul %18, %0, %cst_18 {dimension_numbers = #tpu.dot_dimension_numbers<[1], [0], [0], [1], [0, 0, 1, 1], [], []>} : vector<1x128xf32>, vector<128x128xf32>, vector<1x128xf32> -> vector<1x128xf32>
    %20 = arith.addf %19, %1 : vector<1x128xf32>
    %cst_19 = arith.constant 0.000000e+00 : f32
    %21 = vector.broadcast %cst_19 : f32 to vector<1x128xf32>
    %22 = arith.maximumf %20, %21 : vector<1x128xf32>
    %cst_20 = arith.constant dense<0.000000e+00> : vector<128xf32>
    %23 = vector.multi_reduction <add>, %22, %cst_20 [0] : vector<1x128xf32> to vector<128xf32>
    %24 = vector.shape_cast %23 : vector<128xf32> to vector<1x128xf32>
    %cst_21 = arith.constant 1.000000e+00 : f32
    %25 = vector.broadcast %cst_21 : f32 to vector<1x128xf32>
    %26 = arith.divf %24, %25 : vector<1x128xf32>
    %cst_22 = arith.constant dense<0.000000e+00> : vector<1x10xf32>
    %27 = tpu.matmul %26, %2, %cst_22 {dimension_numbers = #tpu.dot_dimension_numbers<[1], [0], [0], [1], [0, 0, 1, 1], [], []>} : vector<1x128xf32>, vector<128x10xf32>, vector<1x10xf32> -> vector<1x10xf32>
    %28 = arith.addf %27, %3 : vector<1x10xf32>
    %c1_23 = arith.constant 1 : index
    %c0_24 = arith.constant 0 : index
    %29 = vector.load %arg6[%c1_23, %c0_24] : memref<2x10xf32, #tpu.memory_space<vmem>>, vector<1x10xf32>
    tpu.vector_store %arg6[%c1_23, %c0_24], %28 {strides = array<i32>} : memref<2x10xf32, #tpu.memory_space<vmem>>, vector<1x10xf32>,
    return
  }
  func.func @transform_0(%arg0: i32) -> (i32, i32, i32) {
    %c0_i32 = arith.constant 0 : i32
    %c0_i32_0 = arith.constant 0 : i32
    %c0_i32_1 = arith.constant 0 : i32
    %c0_i32_2 = arith.constant 0 : i32
    return %c0_i32, %c0_i32_0, %c0_i32_1 : i32, i32, i32
  }
  func.func @transform_1(%arg0: i32) -> (i32, i32) {
    %c0_i32 = arith.constant 0 : i32
    %c0_i32_0 = arith.constant 0 : i32
    %c0_i32_1 = arith.constant 0 : i32
    return %c0_i32, %c0_i32_0 : i32, i32
  }
  func.func @transform_2(%arg0: i32) -> (i32, i32) {
    %c0_i32 = arith.constant 0 : i32
    %c0_i32_0 = arith.constant 0 : i32
    %c0_i32_1 = arith.constant 0 : i32
    return %c0_i32, %c0_i32_0 : i32, i32
  }
  func.func @transform_3(%arg0: i32) -> (i32, i32) {
    %c0_i32 = arith.constant 0 : i32
    %c0_i32_0 = arith.constant 0 : i32
    %c0_i32_1 = arith.constant 0 : i32
    return %c0_i32, %c0_i32_0 : i32, i32
  }
  func.func @transform_4(%arg0: i32) -> (i32, i32) {
    %c0_i32 = arith.constant 0 : i32
    %c0_i32_0 = arith.constant 0 : i32
    %c0_i32_1 = arith.constant 0 : i32
    return %c0_i32, %c0_i32_0 : i32, i32
  }
  func.func @transform_5(%arg0: i32) -> (i32, i32) {
    %c0_i32 = arith.constant 0 : i32
    %c0_i32_0 = arith.constant 0 : i32
    %c0_i32_1 = arith.constant 0 : i32
    return %c0_i32, %c0_i32_0 : i32, i32
  }
}

</mosaic_0001>

<bundles_post_ra>
// kernel: shufflenet_forward.8
= control target key start
LH: loop header
LB: loop body
LE: loop exit
PB: predicated region body
PF: predicated region fallthrough
CT: control target
= control target key end

     0   :  { %v3210_v0 = vmov 0   ;;  %vm77_vm0 = vcmask 1042432   ;;  %vm3211_vm1 = vmmov 1   ;;  %vm40_vm3 = vcmask 220160   ;;  %s5084_s1 = inlined_call_operand.vmem [shape: f32[4,90,1], index: 1, kind: input, shape index: {}]   ;;  %s5085_s2 = inlined_call_operand.vmem [shape: f32[27,16], index: 2, kind: input, shape index: {}]   ;;  %s5086_s0 = inlined_call_operand.vmem [shape: f32[2,4,90,27], index: 0, kind: input, shape index: {}]   ;;  %s5087_s3 = inlined_call_operand.vmem [shape: f32[1,16], index: 3, kind: input, shape index: {}]   ;;  %s5088_s4 = inlined_call_operand.vmem [shape: f32[2,72,16], index: 4, kind: output, shape index: {}]  }
   0x1   :  { %3208 = vset.pattern.permute.xlu1 %v3210_v0  ;;  %3207 = vset.pattern.permute.xlu0 %v3210_v0  ;;  %v3240_v1 = vld [vmem:[%s5084_s1 + $0x10] sm:$0xff]  ;;  %v3245_v2 = vld [vmem:[%s5084_s1] sm:$0xff]  ;;  %v18_v4 = vld [vmem:[%s5085_s2 + $0x8] sm:$0xff]  ;;  %vm1234_vm4 = vcmask 1045504   ;;  %vm1071_vm5 = vcmask 1046528   ;;  %vm1272_vm6 = vcmask 130048  }
   0x2   :  { %v17_v3 = vld [vmem:[%s5085_s2] sm:$0xff]  ;;  %239 = vperm.xlu1 %3208, %v3240_v1   ;;  %229 = vperm.xlu0 %3207, %v3245_v2   ;;  %v19_v6 = vld [vmem:[%s5085_s2 + $0x10] sm:$0xff]  ;;  %v20_v7 = vld [vmem:[%s5085_s2 + $0x18] sm:$0x7] }
   0x3   :  { %v3255_v5 = vpack.c.bf16 %v18_v4, %v17_v3  ;;  %v3266_v8 = vld [vmem:[%s5084_s1 + $0x18] sm:$0xff]  ;;  %v3271_v9 = vld [vmem:[%s5084_s1 + $0x8] sm:$0xff]  ;;  %v3273_v10 = vpack.c.bf16 %v20_v7, %v19_v6  ;;  %vm3277_vm2 = vmpackc.low %vm77_vm0, %vm3211_vm1 }
   0x4   :  { %v22_v12 = vld [vmem:[%s5086_s0] sm:$0xff]  ;;  %v3300_v14 = vld [vmem:[%s5084_s1 + $0x28] sm:$0xff]  ;;  %v24_v18 = vld [vmem:[%s5086_s0 + $0x10] sm:$0xff] }
   0x5   :  { %3126 = vmatprep.subr.bf16.mxu0 %v3255_v5  ;;  %3136 = vmatprep.subr.bf16.mxu1 %v3255_v5  ;;  %v2545_v13 = vld [vmem:[%s5086_s0 + $0x60] sm:$0xff]  ;;  %v23_v16 = vld [vmem:[%s5086_s0 + $0x8] sm:$0xff]  ;;  %v3331_v19 = vld [vmem:[%s5084_s1 + $0x38] sm:$0xff] }
   0x6   :  { %3128 = vmatpush3.bf16.msra.mxu0 %v3255_v5  ;;  %3138 = vmatpush3.bf16.msra.mxu1 %v3255_v5  ;;  %v3305_v15 = vld [vmem:[%s5084_s1 + $0x20] sm:$0xff]  ;;  %v2546_v17 = vld [vmem:[%s5086_s0 + $0x68] sm:$0xff]  ;;  %v3336_v20 = vld [vmem:[%s5084_s1 + $0x30] sm:$0xff] }
   0x7   :  { %244 = vperm.xlu1 %3208, %v3266_v8   ;;  %234 = vperm.xlu0 %3207, %v3271_v9   ;;  %v2547_v21 = vld [vmem:[%s5086_s0 + $0x70] sm:$0xff]  ;;  %v25_v22 = vld [vmem:[%s5086_s0 + $0x18] sm:$0xff]  ;;  %v26_v24 = vld [vmem:[%s5086_s0 + $0x20] sm:$0xff] }
   0x8   :  { %3131 = vmatprep.subr.msk.bf16.mxu0 %vm3277_vm2, %v3273_v10  ;;  %3141 = vmatprep.subr.msk.bf16.mxu1 %vm3277_vm2, %v3273_v10  ;;  %v2548_v23 = vld [vmem:[%s5086_s0 + $0x78] sm:$0xff]  ;;  %v2549_v25 = vld [vmem:[%s5086_s0 + $0x80] sm:$0xff]  ;;  %v3364_v26 = vld [vmem:[%s5084_s1 + $0x48] sm:$0xff] }
   0x9   :  { %2925 = vmatprep.mubr.msk.f32.mxu0 %vm40_vm3, %v22_v12  ;;  %2951 = vmatprep.mubr.msk.f32.mxu1 %vm40_vm3, %v2545_v13  ;;  %v3369_v27 = vld [vmem:[%s5084_s1 + $0x40] sm:$0xff]  ;;  %v27_v28 = vld [vmem:[%s5086_s0 + $0x28] sm:$0xff]  ;;  %v28_v30 = vld [vmem:[%s5086_s0 + $0x30] sm:$0xff] }
   0xa   :  { %3134 = vmatpush3.bf16.msk.msra.mxu0 %vm3277_vm2, %v3273_v10  ;;  %3144 = vmatpush3.bf16.msk.msra.mxu1 %vm3277_vm2, %v3273_v10  ;;  %v2550_v29 = vld [vmem:[%s5086_s0 + $0x88] sm:$0xff]  ;;  %v2551_v31 = vld [vmem:[%s5086_s0 + $0x90] sm:$0xff]  ;;  %v3392_v32 = vld [vmem:[%s5084_s1 + $0x60] sm:$0xff] }
   0xb   :  { %254 = vperm.xlu1 %3208, %v3300_v14   ;;  %249 = vperm.xlu0 %3207, %v3305_v15   ;;  %v3397_v33 = vld [vmem:[%s5084_s1 + $0x50] sm:$0xff]  ;;  %v29_v34 = vld [vmem:[%s5086_s0 + $0x38] sm:$0xff]  ;;  %v30_v36 = vld [vmem:[%s5086_s0 + $0x40] sm:$0xff] }
   0xc   :  { %3146 = vmatprep.subr.bf16.mxu0 %v3255_v5  ;;  %3156 = vmatprep.subr.bf16.mxu1 %v3255_v5  ;;  %v2552_v35 = vld [vmem:[%s5086_s0 + $0x98] sm:$0xff]  ;;  %v2553_v37 = vld [vmem:[%s5086_s0 + $0xa0] sm:$0xff]  ;;  %v3429_v38 = vld [vmem:[%s5084_s1 + $0x70] sm:$0xff] }
   0xd   :  { %2926 = vmatmul.mubr.msk.f32.vlgmr.msra.gmra.mrb[0].mxu0 %vm40_vm3, %v23_v16  ;;  %2952 = vmatmul.mubr.msk.f32.vlgmr.msra.gmra.mrb[0].mxu1 %vm40_vm3, %v2546_v17  ;;  %v3434_v39 = vld [vmem:[%s5084_s1 + $0x68] sm:$0xff]  ;;  %v32_v42 = vld [vmem:[%s5086_s0 + $0x50] sm:$0xff]  ;;  %v3460_v44 = vld [vmem:[%s5084_s1 + $0x80] sm:$0xff] }
   0xe   :  { %3148 = vmatpush3.bf16.msra.mxu0 %v3255_v5  ;;  %2928 = vmatprep.mubr.msk.f32.mxu0 %vm40_vm3, %v24_v18  ;;  %v31_v40 = vld [vmem:[%s5086_s0 + $0x48] sm:$0xff]  ;;  %v2555_v43 = vld [vmem:[%s5086_s0 + $0xb0] sm:$0xff]  ;;  %v3465_v45 = vld [vmem:[%s5084_s1 + $0x78] sm:$0xff] }
   0xf   :  { %264 = vperm.xlu1 %3208, %v3331_v19   ;;  %259 = vperm.xlu0 %3207, %v3336_v20   ;;  %v2554_v41 = vld [vmem:[%s5086_s0 + $0xa8] sm:$0xff]  ;;  %v33_v46 = vld [vmem:[%s5086_s0 + $0x58] sm:$0x3]  ;;  %v2581_v48 = vld [vmem:[%s5086_s0 + $0xc0] sm:$0xff] }
  0x10   :  { %2954 = vmatprep.mubr.msk.f32.mxu1 %vm40_vm3, %v2547_v21  ;;  %3158 = vmatpush3.bf16.msra.mxu1 %v3255_v5  ;;  %v2556_v47 = vld [vmem:[%s5086_s0 + $0xb8] sm:$0x3]  ;;  %v2616_v49 = vld [vmem:[%s5086_s0 + $0x120] sm:$0xff]  ;;  %v3490_v50 = vld [vmem:[%s5084_s1 + $0x90] sm:$0xff] }
  0x11   :  { %2929 = vmatmul.mubr.msk.f32.gmra.mrb[2].mxu0 %vm40_vm3, %v25_v22  ;;  %2955 = vmatmul.mubr.msk.f32.gmra.mrb[2].mxu1 %vm40_vm3, %v2548_v23  ;;  %v3495_v51 = vld [vmem:[%s5084_s1 + $0x88] sm:$0xff]  ;;  %v2583_v54 = vld [vmem:[%s5086_s0 + $0xd0] sm:$0xff]  ;;  %v3515_v55 = vld [vmem:[%s5084_s1 + $0xa0] sm:$0xff] }
  0x12   :  { %2931 = vmatprep.mubr.msk.f32.mxu0 %vm40_vm3, %v26_v24  ;;  %2957 = vmatprep.mubr.msk.f32.mxu1 %vm40_vm3, %v2549_v25  ;;  %v2582_v52 = vld [vmem:[%s5086_s0 + $0xc8] sm:$0xff]  ;;  %v3520_v56 = vld [vmem:[%s5084_s1 + $0x98] sm:$0xff]  ;;  %v2618_v57 = vld [vmem:[%s5086_s0 + $0x130] sm:$0xff] }
  0x13   :  { %274 = vperm.xlu1 %3208, %v3364_v26   ;;  %269 = vperm.xlu0 %3207, %v3369_v27   ;;  %v2617_v53 = vld [vmem:[%s5086_s0 + $0x128] sm:$0xff]  ;;  %v2584_v58 = vld [vmem:[%s5086_s0 + $0xd8] sm:$0xff]  ;;  %v2585_v60 = vld [vmem:[%s5086_s0 + $0xe0] sm:$0xff] }
  0x14   :  { %3151 = vmatprep.subr.msk.bf16.mxu0 %vm3277_vm2, %v3273_v10  ;;  %3161 = vmatprep.subr.msk.bf16.mxu1 %vm3277_vm2, %v3273_v10  ;;  %v2619_v59 = vld [vmem:[%s5086_s0 + $0x138] sm:$0xff]  ;;  %v2620_v61 = vld [vmem:[%s5086_s0 + $0x140] sm:$0xff]  ;;  %v3548_v62 = vld [vmem:[%s5084_s1 + $0xb0] sm:$0xff] }
  0x15   :  { %2932 = vmatmul.mubr.msk.f32.gmra.mrb[4].mxu0 %vm40_vm3, %v27_v28  ;;  %2958 = vmatmul.mubr.msk.f32.gmra.mrb[4].mxu1 %vm40_vm3, %v2550_v29  ;;  %v3553_v63 = vld [vmem:[%s5084_s1 + $0xa8] sm:$0xff]  ;;  %v2587_v4 = vld [vmem:[%s5086_s0 + $0xf0] sm:$0xff]  ;;  %v3581_v12 = vld [vmem:[%s5084_s1 + $0xc0] sm:$0xff] }
  0x16   :  { %2934 = vmatprep.mubr.msk.f32.mxu0 %vm40_vm3, %v28_v30  ;;  %2960 = vmatprep.mubr.msk.f32.mxu1 %vm40_vm3, %v2551_v31  ;;  %v2586_v0 = vld [vmem:[%s5086_s0 + $0xe8] sm:$0xff]  ;;  %v2622_v6 = vld [vmem:[%s5086_s0 + $0x150] sm:$0xff]  ;;  %v2588_v13 = vld [vmem:[%s5086_s0 + $0xf8] sm:$0xff] }
  0x17   :  { %491 = vperm.xlu1 %3208, %v3392_v32   ;;  %279 = vperm.xlu0 %3207, %v3397_v33   ;;  %v2621_v3 = vld [vmem:[%s5086_s0 + $0x148] sm:$0xff]  ;;  %v2623_v16 = vld [vmem:[%s5086_s0 + $0x158] sm:$0xff]  ;;  %v2589_v17 = vld [vmem:[%s5086_s0 + $0x100] sm:$0xff] }
  0x18   :  { %3154 = vmatpush3.bf16.msk.msra.mxu0 %vm3277_vm2, %v3273_v10  ;;  %3164 = vmatpush3.bf16.msk.msra.mxu1 %vm3277_vm2, %v3273_v10  ;;  %v3576_v7 = vld [vmem:[%s5084_s1 + $0xc8] sm:$0xff]  ;;  %v2624_v18 = vld [vmem:[%s5086_s0 + $0x160] sm:$0xff]  ;;  %v3613_v21 = vld [vmem:[%s5084_s1 + $0xd8] sm:$0xff] }
  0x19   :  { %2935 = vmatmul.mubr.msk.f32.gmra.mrb[6].mxu0 %vm40_vm3, %v29_v34  ;;  %2961 = vmatmul.mubr.msk.f32.gmra.mrb[6].mxu1 %vm40_vm3, %v2552_v35  ;;  %v3618_v22 = vld [vmem:[%s5084_s1 + $0xd0] sm:$0xff]  ;;  %v2590_v23 = vld [vmem:[%s5086_s0 + $0x108] sm:$0xff]  ;;  %v3649_v30 = vld [vmem:[%s5084_s1 + $0xe0] sm:$0xff] }
  0x1a   :  { %2937 = vmatprep.mubr.msk.f32.mxu0 %vm40_vm3, %v30_v36  ;;  %2963 = vmatprep.mubr.msk.f32.mxu1 %vm40_vm3, %v2553_v37  ;;  %v2625_v24 = vld [vmem:[%s5086_s0 + $0x168] sm:$0xff]  ;;  %v2591_v25 = vld [vmem:[%s5086_s0 + $0x110] sm:$0xff]  ;;  %v2592_v31 = vld [vmem:[%s5086_s0 + $0x118] sm:$0x3] }
  0x1b   :  { %501 = vperm.xlu1 %3208, %v3429_v38   ;;  %496 = vperm.xlu0 %3207, %v3434_v39   ;;  %v2626_v28 = vld [vmem:[%s5086_s0 + $0x170] sm:$0xff]  ;;  %v3644_v29 = vld [vmem:[%s5084_s1 + $0xe8] sm:$0xff]  ;;  %v2627_v34 = vld [vmem:[%s5086_s0 + $0x178] sm:$0x3] }
  0x1c   :  { %3166 = vmatprep.subr.bf16.mxu0 %v3255_v5  ;;  %3176 = vmatprep.subr.bf16.mxu1 %v3255_v5  ;;  %v2650_v35 = vld [vmem:[%s5086_s0 + $0x180] sm:$0xff]  ;;  %v3674_v37 = vld [vmem:[%s5084_s1 + $0xf8] sm:$0xff]  ;;  %v2685_v11 = vld [vmem:[%s5086_s0 + $0x230] sm:$0xff] }
  0x1d   :  { %2938 = vmatmul.mubr.msk.f32.gmra.mrb[8].mxu0 %vm40_vm3, %v31_v40  ;;  %2964 = vmatmul.mubr.msk.f32.gmra.mrb[8].mxu1 %vm40_vm3, %v2554_v41  ;;  %v2675_v36 = vld [vmem:[%s5086_s0 + $0x1e0] sm:$0xff]  ;;  %v3679_v40 = vld [vmem:[%s5084_s1 + $0xf0] sm:$0xff]  ;;  %v2651_v41 = vld [vmem:[%s5086_s0 + $0x188] sm:$0xff] }
  0x1e   :  { %2940 = vmatprep.mubr.msk.f32.mxu0 %vm40_vm3, %v32_v42  ;;  %2966 = vmatprep.mubr.msk.f32.mxu1 %vm40_vm3, %v2555_v43  ;;  %v2676_v42 = vld [vmem:[%s5086_s0 + $0x1e8] sm:$0xff]  ;;  %v2652_v43 = vld [vmem:[%s5086_s0 + $0x190] sm:$0xff] }
  0x1f   :  { %511 = vperm.xlu1 %3208, %v3460_v44   ;;  %506 = vperm.xlu0 %3207, %v3465_v45  }
  0x21   :  { %2941 = vmatmul.mubr.msk.f32.gmra.mrb[10].mxu0 %vm40_vm3, %v33_v46  ;;  %2967 = vmatmul.mubr.msk.f32.gmra.mrb[10].mxu1 %vm40_vm3, %v2556_v47  ;;  %v3699_v46 = vld [vmem:[%s5084_s1 + $0x108] sm:$0xff]  ;;  %v3704_v47 = vld [vmem:[%s5084_s1 + $0x100] sm:$0xff] }
  0x22   :  { %2977 = vmatprep.mubr.msk.f32.mxu0 %vm40_vm3, %v2581_v48  ;;  %3003 = vmatprep.mubr.msk.f32.mxu1 %vm40_vm3, %v2616_v49  ;;  %v2677_v48 = vld [vmem:[%s5086_s0 + $0x1f0] sm:$0xff]  ;;  %v2653_v49 = vld [vmem:[%s5086_s0 + $0x198] sm:$0xff] }
  0x23   :  { %521 = vperm.xlu1 %3208, %v3490_v50   ;;  %516 = vperm.xlu0 %3207, %v3495_v51  }
  0x25   :  { %2978 = vmatmul.mubr.msk.f32.vlgmr.msra.gmra.mrb[12].mxu0 %vm40_vm3, %v2582_v52  ;;  %3004 = vmatmul.mubr.msk.f32.vlgmr.msra.gmra.mrb[12].mxu1 %vm40_vm3, %v2617_v53  ;;  %v2678_v52 = vld [vmem:[%s5086_s0 + $0x1f8] sm:$0xff]  ;;  %v2654_v53 = vld [vmem:[%s5086_s0 + $0x1a0] sm:$0xff] }
  0x26   :  { %3168 = vmatpush3.bf16.msra.mxu0 %v3255_v5  ;;  %2980 = vmatprep.mubr.msk.f32.mxu0 %vm40_vm3, %v2583_v54  ;;  %v2679_v54 = vld [vmem:[%s5086_s0 + $0x200] sm:$0xff] }
  0x27   :  { %531 = vperm.xlu1 %3208, %v3515_v55   ;;  %526 = vperm.xlu0 %3207, %v3520_v56  }
  0x28   :  { %3006 = vmatprep.mubr.msk.f32.mxu1 %vm40_vm3, %v2618_v57  ;;  %3178 = vmatpush3.bf16.msra.mxu1 %v3255_v5  ;;  %v3732_v57 = vld [vmem:[%s5084_s1 + $0x128] sm:$0xff] }
  0x29   :  { %2981 = vmatmul.mubr.msk.f32.gmra.mrb[14].mxu0 %vm40_vm3, %v2584_v58  ;;  %3007 = vmatmul.mubr.msk.f32.gmra.mrb[14].mxu1 %vm40_vm3, %v2619_v59  ;;  %v3737_v58 = vld [vmem:[%s5084_s1 + $0x120] sm:$0xff]  ;;  %v2680_v59 = vld [vmem:[%s5086_s0 + $0x208] sm:$0xff] }
  0x2a   :  { %2983 = vmatprep.mubr.msk.f32.mxu0 %vm40_vm3, %v2585_v60  ;;  %3009 = vmatprep.mubr.msk.f32.mxu1 %vm40_vm3, %v2620_v61  ;;  %v2656_v60 = vld [vmem:[%s5086_s0 + $0x1b0] sm:$0xff] }
  0x2b   :  { %541 = vperm.xlu1 %3208, %v3548_v62   ;;  %536 = vperm.xlu0 %3207, %v3553_v63   ;;  %v2681_v61 = vld [vmem:[%s5086_s0 + $0x210] sm:$0xff] }
  0x2c   :  { %3171 = vmatprep.subr.msk.bf16.mxu0 %vm3277_vm2, %v3273_v10  ;;  %3181 = vmatprep.subr.msk.bf16.mxu1 %vm3277_vm2, %v3273_v10 }
  0x2d   :  { %2984 = vmatmul.mubr.msk.f32.gmra.mrb[16].mxu0 %vm40_vm3, %v2586_v0  ;;  %3010 = vmatmul.mubr.msk.f32.gmra.mrb[16].mxu1 %vm40_vm3, %v2621_v3  ;;  %v3760_v0 = vld [vmem:[%s5084_s1 + $0x138] sm:$0xff]  ;;  %v3765_v3 = vld [vmem:[%s5084_s1 + $0x130] sm:$0xff] }
  0x2e   :  { %2986 = vmatprep.mubr.msk.f32.mxu0 %vm40_vm3, %v2587_v4  ;;  %3012 = vmatprep.mubr.msk.f32.mxu1 %vm40_vm3, %v2622_v6  ;;  %v2657_v4 = vld [vmem:[%s5086_s0 + $0x1b8] sm:$0xff] }
  0x2f   :  { %755 = vperm.xlu1 %3208, %v3576_v7   ;;  %750 = vperm.xlu0 %3207, %v3581_v12   ;;  %v2682_v6 = vld [vmem:[%s5086_s0 + $0x218] sm:$0xff] }
  0x30   :  { %3174 = vmatpush3.bf16.msk.msra.mxu0 %vm3277_vm2, %v3273_v10  ;;  %3184 = vmatpush3.bf16.msk.msra.mxu1 %vm3277_vm2, %v3273_v10 }
  0x31   :  { %2987 = vmatmul.mubr.msk.f32.gmra.mrb[18].mxu0 %vm40_vm3, %v2588_v13  ;;  %3013 = vmatmul.mubr.msk.f32.gmra.mrb[18].mxu1 %vm40_vm3, %v2623_v16  ;;  %v2658_v13 = vld [vmem:[%s5086_s0 + $0x1c0] sm:$0xff] }
  0x32   :  { %2989 = vmatprep.mubr.msk.f32.mxu0 %vm40_vm3, %v2589_v17  ;;  %3015 = vmatprep.mubr.msk.f32.mxu1 %vm40_vm3, %v2624_v18  ;;  %v2683_v16 = vld [vmem:[%s5086_s0 + $0x220] sm:$0xff]  ;;  %v3797_v17 = vld [vmem:[%s5084_s1 + $0x148] sm:$0xff] }
  0x33   :  { %765 = vperm.xlu1 %3208, %v3613_v21   ;;  %760 = vperm.xlu0 %3207, %v3618_v22   ;;  %v3802_v18 = vld [vmem:[%s5084_s1 + $0x140] sm:$0xff] }
  0x34   :  { %3186 = vmatprep.subr.bf16.mxu0 %v3255_v5  ;;  %3196 = vmatprep.subr.bf16.mxu1 %v3255_v5 }
  0x35   :  { %2990 = vmatmul.mubr.msk.f32.gmra.mrb[20].mxu0 %vm40_vm3, %v2590_v23  ;;  %3016 = vmatmul.mubr.msk.f32.gmra.mrb[20].mxu1 %vm40_vm3, %v2625_v24  ;;  %v2659_v23 = vld [vmem:[%s5086_s0 + $0x1c8] sm:$0xff] }
  0x36   :  { %2992 = vmatprep.mubr.msk.f32.mxu0 %vm40_vm3, %v2591_v25  ;;  %3018 = vmatprep.mubr.msk.f32.mxu1 %vm40_vm3, %v2626_v28  ;;  %v2684_v24 = vld [vmem:[%s5086_s0 + $0x228] sm:$0xff]  ;;  %v3828_v25 = vld [vmem:[%s5084_s1 + $0x158] sm:$0xff]  ;;  %v3833_v28 = vld [vmem:[%s5084_s1 + $0x150] sm:$0xff] }
  0x37   :  { %775 = vperm.xlu1 %3208, %v3644_v29   ;;  %770 = vperm.xlu0 %3207, %v3649_v30  }
  0x39   :  { %2993 = vmatmul.mubr.msk.f32.gmra.mrb[22].mxu0 %vm40_vm3, %v2592_v31  ;;  %3019 = vmatmul.mubr.msk.f32.gmra.mrb[22].mxu1 %vm40_vm3, %v2627_v34  ;;  %v2661_v31 = vld [vmem:[%s5086_s0 + $0x1d8] sm:$0x3] }
  0x3a   :  { %3029 = vmatprep.mubr.msk.f32.mxu0 %vm40_vm3, %v2650_v35  ;;  %3055 = vmatprep.mubr.msk.f32.mxu1 %vm40_vm3, %v2675_v36  ;;  %v2686_v34 = vld [vmem:[%s5086_s0 + $0x238] sm:$0x3]  ;;  %v2711_v35 = vld [vmem:[%s5086_s0 + $0x240] sm:$0xff] }
  0x3b   :  { %785 = vperm.xlu1 %3208, %v3674_v37   ;;  %780 = vperm.xlu0 %3207, %v3679_v40   ;;  %v2746_v36 = vld [vmem:[%s5086_s0 + $0x2a0] sm:$0xff] }
  0x3d   :  { %3030 = vmatmul.mubr.msk.f32.vlgmr.msra.gmra.mrb[24].mxu0 %vm40_vm3, %v2651_v41  ;;  %3056 = vmatmul.mubr.msk.f32.vlgmr.msra.gmra.mrb[24].mxu1 %vm40_vm3, %v2676_v42  ;;  %v3856_v41 = vld [vmem:[%s5084_s1 + $0x160] sm:$0xff]  ;;  %v2712_v42 = vld [vmem:[%s5086_s0 + $0x248] sm:$0xff] }
  0x3e   :  { %3188 = vmatpush3.bf16.msra.mxu0 %v3255_v5  ;;  %3032 = vmatprep.mubr.msk.f32.mxu0 %vm40_vm3, %v2652_v43  ;;  %v2747_v43 = vld [vmem:[%s5086_s0 + $0x2a8] sm:$0xff] }
  0x3f   :  { %795 = vperm.xlu1 %3208, %v3699_v46   ;;  %790 = vperm.xlu0 %3207, %v3704_v47  }
  0x40   :  { %3058 = vmatprep.mubr.msk.f32.mxu1 %vm40_vm3, %v2677_v48  ;;  %3198 = vmatpush3.bf16.msra.mxu1 %v3255_v5  ;;  %v2655_v5 = vld [vmem:[%s5086_s0 + $0x1a8] sm:$0xff]  ;;  %v2713_v48 = vld [vmem:[%s5086_s0 + $0x250] sm:$0xff] }
  0x41   :  { %3033 = vmatmul.mubr.msk.f32.gmra.mrb[26].mxu0 %vm40_vm3, %v2653_v49  ;;  %3059 = vmatmul.mubr.msk.f32.gmra.mrb[26].mxu1 %vm40_vm3, %v2678_v52  ;;  %v2748_v49 = vld [vmem:[%s5086_s0 + $0x2b0] sm:$0xff]  ;;  %v2749_v52 = vld [vmem:[%s5086_s0 + $0x2b8] sm:$0xff] }
  0x42   :  { %3035 = vmatprep.mubr.msk.f32.mxu0 %vm40_vm3, %v2654_v53  ;;  %3061 = vmatprep.mubr.msk.f32.mxu1 %vm40_vm3, %v2679_v54  ;;  %v2715_v53 = vld [vmem:[%s5086_s0 + $0x260] sm:$0xff] }
  0x43   :  { %1005 = vperm.xlu1 %3208, %v3732_v57   ;;  %1000 = vperm.xlu0 %3207, %v3737_v58   ;;  %v2750_v54 = vld [vmem:[%s5086_s0 + $0x2c0] sm:$0xff] }
  0x44   :  { %3191 = vmatprep.subr.msk.bf16.mxu0 %vm3277_vm2, %v3273_v10  ;;  %3201 = vmatprep.subr.msk.bf16.mxu1 %vm3277_vm2, %v3273_v10 }
  0x45   :  { %3036 = vmatmul.mubr.msk.f32.gmra.mrb[28].mxu0 %vm40_vm3, %v2655_v5  ;;  %3062 = vmatmul.mubr.msk.f32.gmra.mrb[28].mxu1 %vm40_vm3, %v2680_v59  ;;  %v2717_v5 = vld [vmem:[%s5086_s0 + $0x270] sm:$0xff] }
  0x46   :  { %3038 = vmatprep.mubr.msk.f32.mxu0 %vm40_vm3, %v2656_v60  ;;  %3064 = vmatprep.mubr.msk.f32.mxu1 %vm40_vm3, %v2681_v61  ;;  %v2752_v59 = vld [vmem:[%s5086_s0 + $0x2d0] sm:$0xff]  ;;  %v2719_v60 = vld [vmem:[%s5086_s0 + $0x280] sm:$0xff] }
  0x47   :  { %1015 = vperm.xlu1 %3208, %v3760_v0   ;;  %1010 = vperm.xlu0 %3207, %v3765_v3   ;;  %v2754_v61 = vld [vmem:[%s5086_s0 + $0x2e0] sm:$0xff] }
  0x48   :  { %3194 = vmatpush3.bf16.msk.msra.mxu0 %vm3277_vm2, %v3273_v10  ;;  %3204 = vmatpush3.bf16.msk.msra.mxu1 %vm3277_vm2, %v3273_v10  ;;  %v2660_v10 = vld [vmem:[%s5086_s0 + $0x1d0] sm:$0xff] }
  0x49   :  { %3039 = vmatmul.mubr.msk.f32.gmra.mrb[30].mxu0 %vm40_vm3, %v2657_v4  ;;  %3065 = vmatmul.mubr.msk.f32.gmra.mrb[30].mxu1 %vm40_vm3, %v2682_v6  ;;  %v2721_v4 = vld [vmem:[%s5086_s0 + $0x290] sm:$0xff] }
  0x4a   :  { %3041 = vmatprep.mubr.msk.f32.mxu0 %vm40_vm3, %v2658_v13  ;;  %3067 = vmatprep.mubr.msk.f32.mxu1 %vm40_vm3, %v2683_v16  ;;  %v2756_v6 = vld [vmem:[%s5086_s0 + $0x2f0] sm:$0xff] }
  0x4b   :  { %1025 = vperm.xlu1 %3208, %v3797_v17   ;;  %1020 = vperm.xlu0 %3207, %v3802_v18  }
  0x4d   :  { %3042 = vmatmul.mubr.msk.f32.gmra.mrb[32].mxu0 %vm40_vm3, %v2659_v23  ;;  %3068 = vmatmul.mubr.msk.f32.gmra.mrb[32].mxu1 %vm40_vm3, %v2684_v24 }
  0x4e   :  { %3044 = vmatprep.mubr.msk.f32.mxu0 %vm40_vm3, %v2660_v10  ;;  %3070 = vmatprep.mubr.msk.f32.mxu1 %vm40_vm3, %v2685_v11 }
  0x4f   :  { %1035 = vperm.xlu1 %3208, %v3828_v25   ;;  %1030 = vperm.xlu0 %3207, %v3833_v28  }
  0x51   :  { %3045 = vmatmul.mubr.msk.f32.gmra.mrb[34].mxu0 %vm40_vm3, %v2661_v31  ;;  %3071 = vmatmul.mubr.msk.f32.gmra.mrb[34].mxu1 %vm40_vm3, %v2686_v34 }
  0x52   :  { %3081 = vmatprep.mubr.msk.f32.mxu0 %vm40_vm3, %v2711_v35  ;;  %3107 = vmatprep.mubr.msk.f32.mxu1 %vm40_vm3, %v2746_v36 }
  0x53   :  { %1479 = vperm.xlu1 %3208, %v3245_v2   ;;  %1040 = vperm.xlu0 %3207, %v3856_v41   ;;  %v2714_v2 = vld [vmem:[%s5086_s0 + $0x258] sm:$0xff] }
  0x55   :  { %3082 = vmatmul.mubr.msk.f32.vlgmr.msra.gmra.mrb[36].mxu0 %vm40_vm3, %v2712_v42  ;;  %3108 = vmatmul.mubr.msk.f32.vlgmr.msra.gmra.mrb[36].mxu1 %vm40_vm3, %v2747_v43 }
  0x56   :  { %3084 = vmatprep.mubr.msk.f32.mxu0 %vm40_vm3, %v2713_v48  ;;  %3110 = vmatprep.mubr.msk.f32.mxu1 %vm40_vm3, %v2748_v49 }
  0x57   :  { %1489 = vperm.xlu1 %3208, %v3240_v1   ;;  %1484 = vperm.xlu0 %3207, %v3271_v9   ;;  %v2716_v1 = vld [vmem:[%s5086_s0 + $0x268] sm:$0xff] }
  0x58   :  { %v2751_v9 = vld [vmem:[%s5086_s0 + $0x2c8] sm:$0xff] }
  0x59   :  { %3085 = vmatmul.mubr.msk.f32.gmra.mrb[38].mxu0 %vm40_vm3, %v2714_v2  ;;  %3111 = vmatmul.mubr.msk.f32.gmra.mrb[38].mxu1 %vm40_vm3, %v2749_v52  ;;  %v4085_v2 = vld [vmem:[%s5087_s3] ss:$0 sm:$0xff] }
  0x5a   :  { %3087 = vmatprep.mubr.msk.f32.mxu0 %vm40_vm3, %v2715_v53  ;;  %3113 = vmatprep.mubr.msk.f32.mxu1 %vm40_vm3, %v2750_v54 }
  0x5b   :  { %1499 = vperm.xlu1 %3208, %v3305_v15   ;;  %1494 = vperm.xlu0 %3207, %v3266_v8   ;;  %v2718_v8 = vld [vmem:[%s5086_s0 + $0x278] sm:$0xff] }
  0x5c   :  { %v2753_v15 = vld [vmem:[%s5086_s0 + $0x2d8] sm:$0xff] }
  0x5d   :  { %3088 = vmatmul.mubr.msk.f32.gmra.mrb[40].mxu0 %vm40_vm3, %v2716_v1  ;;  %3114 = vmatmul.mubr.msk.f32.gmra.mrb[40].mxu1 %vm40_vm3, %v2751_v9 }
  0x5e   :  { %3090 = vmatprep.mubr.msk.f32.mxu0 %vm40_vm3, %v2717_v5  ;;  %3116 = vmatprep.mubr.msk.f32.mxu1 %vm40_vm3, %v2752_v59 }
  0x5f   :  { %1509 = vperm.xlu1 %3208, %v3336_v20   ;;  %1504 = vperm.xlu0 %3207, %v3300_v14   ;;  %v2720_v14 = vld [vmem:[%s5086_s0 + $0x288] sm:$0xff] }
  0x60   :  { %v2755_v20 = vld [vmem:[%s5086_s0 + $0x2e8] sm:$0xff] }
  0x61   :  { %3091 = vmatmul.mubr.msk.f32.gmra.mrb[42].mxu0 %vm40_vm3, %v2718_v8  ;;  %3117 = vmatmul.mubr.msk.f32.gmra.mrb[42].mxu1 %vm40_vm3, %v2753_v15 }
  0x62   :  { %3093 = vmatprep.mubr.msk.f32.mxu0 %vm40_vm3, %v2719_v60  ;;  %3119 = vmatprep.mubr.msk.f32.mxu1 %vm40_vm3, %v2754_v61 }
  0x63   :  { %1519 = vperm.xlu1 %3208, %v3369_v27   ;;  %1514 = vperm.xlu0 %3207, %v3331_v19   ;;  %v2722_v19 = vld [vmem:[%s5086_s0 + $0x298] sm:$0x3] }
  0x64   :  { %v2757_v27 = vld [vmem:[%s5086_s0 + $0x2f8] sm:$0x3] }
  0x65   :  { %3094 = vmatmul.mubr.msk.f32.gmra.mrb[44].mxu0 %vm40_vm3, %v2720_v14  ;;  %3120 = vmatmul.mubr.msk.f32.gmra.mrb[44].mxu1 %vm40_vm3, %v2755_v20 }
  0x66   :  { %3096 = vmatprep.mubr.msk.f32.mxu0 %vm40_vm3, %v2721_v4  ;;  %3122 = vmatprep.mubr.msk.f32.mxu1 %vm40_vm3, %v2756_v6 }
  0x67   :  { %1529 = vperm.xlu1 %3208, %v3397_v33   ;;  %1524 = vperm.xlu0 %3207, %v3364_v26  }
  0x69   :  { %3097 = vmatmul.mubr.msk.f32.gmra.mrb[46].mxu0 %vm40_vm3, %v2722_v19  ;;  %3123 = vmatmul.mubr.msk.f32.gmra.mrb[46].mxu1 %vm40_vm3, %v2757_v27 }
  0x6b   :  { %1745 = vperm.xlu1 %3208, %v3434_v39   ;;  %1740 = vperm.xlu0 %3207, %v3392_v32  }
  0x6f   :  { %1755 = vperm.xlu1 %3208, %v3465_v45   ;;  %1750 = vperm.xlu0 %3207, %v3429_v38  }
  0x73   :  { %1765 = vperm.xlu1 %3208, %v3495_v51   ;;  %1760 = vperm.xlu0 %3207, %v3460_v44  }
  0x77   :  { %1775 = vperm.xlu1 %3208, %v3520_v56   ;;  %1770 = vperm.xlu0 %3207, %v3490_v50  }
  0x7b   :  { %1785 = vperm.xlu1 %3208, %v3553_v63   ;;  %1780 = vperm.xlu0 %3207, %v3515_v55  }
  0x7f   :  { %1998 = vperm.xlu1 %3208, %v3581_v12   ;;  %1790 = vperm.xlu0 %3207, %v3548_v62  }
  0x81   :  { %v3974_v26 = vpop.permute.xlu1 %239  ;;  %v3976_v32 = vpop.permute.xlu0 %229 }
  0x83   :  { %2008 = vperm.xlu1 %3208, %v3618_v22   ;;  %2003 = vperm.xlu0 %3207, %v3576_v7  }
  0x86   :  { %v3980_v33 = vpop.permute.xlu1 %244  ;;  %v3982_v38 = vpop.permute.xlu0 %234 }
  0x87   :  { %2018 = vperm.xlu1 %3208, %v3649_v30   ;;  %2013 = vperm.xlu0 %3207, %v3613_v21  }
  0x8a   :  { %v3986_v39 = vpop.permute.xlu1 %254  ;;  %v3988_v44 = vpop.permute.xlu0 %249 }
  0x8b   :  { %2028 = vperm.xlu1 %3208, %v3679_v40   ;;  %2023 = vperm.xlu0 %3207, %v3644_v29  }
  0x8e   :  { %v3992_v45 = vpop.permute.xlu1 %264  ;;  %v3994_v50 = vpop.permute.xlu0 %259 }
  0x8f   :  { %2038 = vperm.xlu1 %3208, %v3704_v47   ;;  %2033 = vperm.xlu0 %3207, %v3674_v37  }
  0x92   :  { %v3998_v51 = vpop.permute.xlu1 %274  ;;  %v4000_v55 = vpop.permute.xlu0 %269 }
  0x93   :  { %2247 = vperm.xlu1 %3208, %v3737_v58   ;;  %2043 = vperm.xlu0 %3207, %v3699_v46  }
  0x96   :  { %v4004_v56 = vpop.permute.xlu1 %491  ;;  %v4006_v62 = vpop.permute.xlu0 %279 }
  0x97   :  { %2257 = vperm.xlu1 %3208, %v3765_v3   ;;  %2252 = vperm.xlu0 %3207, %v3732_v57  }
  0x9a   :  { %v4010_v63 = vpop.permute.xlu1 %501  ;;  %v497_v7 = vpop.permute.xlu0 %496 }
  0x9b   :  { %2267 = vperm.xlu1 %3208, %v3802_v18   ;;  %2262 = vperm.xlu0 %3207, %v3760_v0  }
  0x9e   :  { %v4014_v12 = vpop.permute.xlu1 %511  ;;  %v4016_v21 = vpop.permute.xlu0 %506 }
  0x9f   :  { %2277 = vperm.xlu1 %3208, %v3833_v28   ;;  %2272 = vperm.xlu0 %3207, %v3797_v17  }
  0xa2   :  { %v4020_v22 = vpop.permute.xlu1 %521  ;;  %v4022_v29 = vpop.permute.xlu0 %516 }
  0xa3   :  { %2287 = vperm.xlu1 %3208, %v3856_v41   ;;  %2282 = vperm.xlu0 %3207, %v3828_v25  }
  0xa6   :  { %v4026_v30 = vpop.permute.xlu1 %531  ;;  %v4028_v37 = vpop.permute.xlu0 %526 }
  0xaa   :  { %v4030_v40 = vpop.permute.xlu1 %541  ;;  %v4032_v46 = vpop.permute.xlu0 %536 }
  0xae   :  { %v4034_v47 = vpop.permute.xlu1 %755  ;;  %v4036_v57 = vpop.permute.xlu0 %750 }
  0xb2   :  { %v4038_v58 = vpop.permute.xlu1 %765  ;;  %v4040_v0 = vpop.permute.xlu0 %760 }
  0xb6   :  { %v4042_v3 = vpop.permute.xlu1 %775  ;;  %v4044_v13 = vpop.permute.xlu0 %770 }
  0xba   :  { %v4046_v16 = vpop.permute.xlu1 %785  ;;  %v4048_v17 = vpop.permute.xlu0 %780 }
  0xbb   :  { %5093 = vst [vmem:[#allocation2_spill] sm:$0xff] %v4046_v16  ;;  %5094 = vst [vmem:[#allocation3_spill] sm:$0xff] %v4048_v17 }
  0xbe   :  { %v4050_v18 = vpop.permute.xlu1 %795  ;;  %v4052_v23 = vpop.permute.xlu0 %790 }
  0xbf   :  { %5095 = vst [vmem:[#allocation4_spill] sm:$0xff] %v4050_v18  ;;  %5096 = vst [vmem:[#allocation5_spill] sm:$0xff] %v4052_v23 }
  0xc2   :  { %v4054_v24 = vpop.permute.xlu1 %1005  ;;  %v4056_v10 = vpop.permute.xlu0 %1000 }
  0xc6   :  { %v4058_v11 = vpop.permute.xlu1 %1015  ;;  %v4060_v25 = vpop.permute.xlu0 %1010 }
  0xca   :  { %v4062_v28 = vpop.permute.xlu1 %1025  ;;  %v4064_v31 = vpop.permute.xlu0 %1020 }
  0xcb   :  { %5097 = vst [vmem:[#allocation6_spill] sm:$0xff] %v4064_v31 }
  0xce   :  { %v4066_v34 = vpop.permute.xlu1 %1035  ;;  %v4068_v35 = vpop.permute.xlu0 %1030 }
  0xcf   :  { %5098 = vst [vmem:[#allocation7_spill] sm:$0xff] %v4066_v34  ;;  %5099 = vst [vmem:[#allocation8_spill] sm:$0xff] %v4068_v35 }
  0xd2   :  { %v4070_v36 = vpop.permute.xlu0 %1040  ;;  %v4072_v41 = vpop.permute.xlu1 %1479 }
  0xd3   :  { %5100 = vst [vmem:[#allocation9_spill] sm:$0xff] %v4070_v36  ;;  %5101 = vst [vmem:[#allocation10_spill] sm:$0xff] %v4072_v41 }
  0xd6   :  { %v4074_v42 = vpop.permute.xlu0 %1484  ;;  %v4076_v43 = vpop.permute.xlu1 %1489 }
  0xd7   :  { %5102 = vst [vmem:[#allocation11_spill] sm:$0xff] %v4074_v42  ;;  %5103 = vst [vmem:[#allocation12_spill] sm:$0xff] %v4076_v43 }
  0xda   :  { %v4078_v48 = vpop.permute.xlu0 %1494  ;;  %v4087_v52 = vpop.permute.xlu1 %1499 }
  0xdb   :  { %5104 = vst [vmem:[#allocation13_spill] sm:$0xff] %v4078_v48  ;;  %5106 = vst [vmem:[#allocation15_spill] sm:$0xff] %v4087_v52 }
  0xde   :  { %v4080_v49 = vpop.permute.xlu0 %1504 }
  0xdf   :  { %5105 = vst [vmem:[#allocation14_spill] sm:$0xff] %v4080_v49 }
  0xe0   :  { %v2927_v53 = vpop.f32.mrb[0].mxu0  ;;  %v2953_v54 = vpop.f32.mrb[0].mxu1 }
  0xe1   :  { %v153_v1 = vadd.f32 %v2927_v53, %v4085_v2  ;;  %v414_v9 = vadd.f32 %v2953_v54, %v4085_v2  ;;  %v147_v5 = vpop.f32.mrb[1].mxu0  ;;  %v408_v59 = vpop.f32.mrb[1].mxu1 }
  0xe2   :  { %v148_v8 = vadd.f32 %v4085_v2, %v147_v5  ;;  %v409_v15 = vadd.f32 %v4085_v2, %v408_v59  ;;  %v4093_v14 = vpop.permute.xlu0 %1514 }
  0xe3   :  { %v206_v60 = vmax.f32 %v153_v1, 0.0  ;;  %v467_v61 = vmax.f32 %v414_v9, 0.0  ;;  %5107 = vst [vmem:[#allocation16_spill] sm:$0xff] %v4093_v14 }
  0xe4   :  { %v205_v20 = vmax.f32 %v148_v8, 0.0  ;;  %v466_v4 = vmax.f32 %v409_v15, 0.0  ;;  %v2930_v6 = vpop.f32.mrb[2].mxu0  ;;  %v2956_v19 = vpop.f32.mrb[2].mxu1 }
  0xe5   :  { %v4096_v27 = vmul.f32 %v3982_v38, %v206_v60  ;;  %v4098_v53 = vmul.f32 %v497_v7, %v467_v61  ;;  %v163_v54 = vadd.f32 %v2930_v6, %v4085_v2  ;;  %v424_v5 = vadd.f32 %v2956_v19, %v4085_v2  ;;  %v157_v52 = vpop.f32.mrb[3].mxu0  ;;  %v418_v59 = vpop.f32.mrb[3].mxu1 }
  0xe6   :  { %v4103_v1 = vmul.f32 %v3976_v32, %v205_v20  ;;  %v4106_v9 = vmul.f32 %v4004_v56, %v466_v4  ;;  %v158_v8 = vadd.f32 %v4085_v2, %v157_v52  ;;  %v419_v15 = vadd.f32 %v4085_v2, %v418_v59  ;;  %v4110_v38 = vpop.permute.xlu1 %1509 }
  0xe7   :  { %5108 = vst [vmem:[#allocation17_spill] sm:$0xff] %v4110_v38  ;;  %v1235_v60 = vrot.slane %v4096_v27, 2  ;;  %v1197_v32 = vrot.slane %v4098_v53, 1  ;;  %v208_v52 = vmax.f32 %v163_v54, 0.0  ;;  %v469_v4 = vmax.f32 %v424_v5, 0.0 }
  0xe8   :  { %v2933_v6 = vpop.f32.mrb[4].mxu0  ;;  %v2959_v19 = vpop.f32.mrb[4].mxu1  ;;  %v207_v59 = vmax.f32 %v158_v8, 0.0  ;;  %v468_v38 = vmax.f32 %v419_v15, 0.0 }
  0xe9   :  { %v173_v7 = vadd.f32 %v2933_v6, %v4085_v2  ;;  %v434_v14 = vadd.f32 %v2959_v19, %v4085_v2  ;;  %v167_v49 = vpop.f32.mrb[5].mxu0  ;;  %v428_v43 = vpop.f32.mrb[5].mxu1  ;;  %v4123_v61 = vmul.f32 %v3980_v33, %v208_v52  ;;  %v4126_v20 = vmul.f32 %v4016_v21, %v469_v4 }
  0xea   :  { %v168_v56 = vadd.f32 %v4085_v2, %v167_v49  ;;  %v429_v54 = vadd.f32 %v4085_v2, %v428_v43  ;;  %v4131_v5 = vmul.f32 %v3974_v26, %v207_v59  ;;  %v4134_v8 = vmul.f32 %v4010_v63, %v468_v38  ;;  %v4136_v15 = vpop.permute.xlu0 %1524  ;;  %v4154_v41 = vpop.permute.xlu1 %1519 }
  0xeb   :  { %5109 = vst [vmem:[#allocation18_spill] sm:$0xff] %v4136_v15  ;;  %v210_v6 = vmax.f32 %v173_v7, 0.0  ;;  %v471_v19 = vmax.f32 %v434_v14, 0.0  ;;  %v1238_v52 = vrot.slane %v4123_v61, 2  ;;  %v1200_v49 = vrot.slane %v4126_v20, 1  ;;  %5110 = vst [vmem:[#allocation19_spill] sm:$0xff] %v4154_v41 }
  0xec   :  { %v2936_v43 = vpop.f32.mrb[6].mxu0  ;;  %v2962_v4 = vpop.f32.mrb[6].mxu1  ;;  %v1236_v63 = vrot.slane %v4131_v5, 2  ;;  %v1198_v14 = vrot.slane %v4134_v8, 1  ;;  %v209_v15 = vmax.f32 %v168_v56, 0.0  ;;  %v470_v48 = vmax.f32 %v429_v54, 0.0 }
  0xed   :  { %v177_v7 = vpop.f32.mrb[7].mxu0  ;;  %v438_v59 = vpop.f32.mrb[7].mxu1  ;;  %v4149_v33 = vmul.f32 %v3986_v39, %v210_v6  ;;  %v4152_v21 = vmul.f32 %v4022_v29, %v471_v19 }
  0xee   :  { %v4157_v26 = vsel %vm1234_vm4, %v1235_v60, %v1236_v63  ;;  %v4160_v42 = vsel %vm1234_vm4, %v1236_v63, %v1238_v52  ;;  %v4163_v38 = vsel %vm1071_vm5, %v1197_v32, %v1198_v14  ;;  %v4166_v36 = vsel %vm1071_vm5, %v1198_v14, %v1200_v49 }
  0xef   :  { %v1242_v29 = vrot.slane %v4149_v33, 2  ;;  %v1204_v54 = vrot.slane %v4152_v21, 1  ;;  %v4174_v19 = vmul.f32 %v3988_v44, %v209_v15  ;;  %v4177_v32 = vmul.f32 %v4014_v12, %v470_v48 }
  0xf0   :  { %v2939_v60 = vpop.f32.mrb[8].mxu0  ;;  %v2965_v6 = vpop.f32.mrb[8].mxu1  ;;  %v183_v63 = vadd.f32 %v2936_v43, %v4085_v2  ;;  %v444_v14 = vadd.f32 %v2962_v4, %v4085_v2  ;;  %v178_v23 = vadd.f32 %v4085_v2, %v177_v7  ;;  %v439_v56 = vadd.f32 %v4085_v2, %v438_v59 }
  0xf1   :  { %v187_v39 = vpop.f32.mrb[9].mxu0  ;;  %v448_v41 = vpop.f32.mrb[9].mxu1  ;;  %v193_v18 = vadd.f32 %v2939_v60, %v4085_v2  ;;  %v454_v35 = vadd.f32 %v2965_v6, %v4085_v2  ;;  %v1240_v15 = vrot.slane %v4174_v19, 2  ;;  %v1202_v48 = vrot.slane %v4177_v32, 1 }
  0xf2   :  { %v4190_v43 = vpop.permute.xlu0 %1740  ;;  %v212_v4 = vmax.f32 %v183_v63, 0.0  ;;  %v473_v17 = vmax.f32 %v444_v14, 0.0  ;;  %v211_v7 = vmax.f32 %v178_v23, 0.0  ;;  %v472_v34 = vmax.f32 %v439_v56, 0.0  ;;  %v4216_v56 = vpop.permute.xlu1 %1529 }
  0xf3   :  { %5111 = vst [vmem:[#allocation20_spill] sm:$0xff] %v4190_v43  ;;  %v4193_v60 = vsel %vm1234_vm4, %v1238_v52, %v1240_v15  ;;  %v4196_v6 = vsel %vm1234_vm4, %v1240_v15, %v1242_v29  ;;  %v4199_v44 = vsel %vm1071_vm5, %v1200_v49, %v1202_v48  ;;  %v4202_v12 = vsel %vm1071_vm5, %v1202_v48, %v1204_v54 }
  0xf4   :  { %v2942_v59 = vpop.f32.mrb[10].mxu0  ;;  %v2968_v16 = vpop.f32.mrb[10].mxu1  ;;  %5112 = vst [vmem:[#allocation21_spill] sm:$0xff] %v4193_v60  ;;  %5113 = vst [vmem:[#allocation22_spill] sm:$0xff] %v4196_v6  ;;  %v4205_v63 = vmul.f32 %v3992_v45, %v212_v4  ;;  %v4208_v23 = vmul.f32 %v4028_v37, %v473_v17  ;;  %v4214_v52 = vmul.f32 %v4020_v22, %v472_v34  ;;  %v214_v49 = vmax.f32 %v193_v18, 0.0 }
  0xf5   :  { %5114 = vst [vmem:[#allocation23_spill] sm:$0xff] %v4202_v12  ;;  %v197_v31 = vpop.f32.mrb[11].mxu0  ;;  %v458_v43 = vpop.f32.mrb[11].mxu1  ;;  %v4211_v16 = vmul.f32 %v3994_v50, %v211_v7  ;;  %5116 = vst [vmem:[#allocation25_spill] sm:$0xff] %v4216_v56  ;;  %v475_v14 = vmax.f32 %v454_v35, 0.0  ;;  %v188_v15 = vadd.f32 %v4085_v2, %v187_v39  ;;  %v449_v48 = vadd.f32 %v4085_v2, %v448_v41 }
  0xf6   :  { %5115 = vst [vmem:[#allocation24_spill] sm:$0xff] %v4214_v52  ;;  %v1246_v4 = vrot.slane %v4205_v63, 2  ;;  %v1208_v50 = vrot.slane %v4208_v23, 1  ;;  %v1206_v41 = vrot.slane %v4214_v52, 1  ;;  %v4231_v59 = vmul.f32 %v3998_v51, %v214_v49  ;;  %v4246_v52 = vpop.permute.xlu0 %1750 }
  0xf7   :  { %v1244_v18 = vrot.slane %v4211_v16, 2  ;;  %v553_v37 = vmul.f32 %v4032_v46, %v475_v14  ;;  %v213_v45 = vmax.f32 %v188_v15, 0.0  ;;  %v474_v56 = vmax.f32 %v449_v48, 0.0  ;;  %5121 = vst [vmem:[#allocation30_spill] sm:$0xff] %v4246_v52 }
  0xf8   :  { %v2979_v17 = vpop.f32.mrb[12].mxu0  ;;  %v3005_v22 = vpop.f32.mrb[12].mxu1  ;;  %v4241_v12 = vsel %vm1071_vm5, %v1204_v54, %v1206_v41  ;;  %v4244_v35 = vsel %vm1071_vm5, %v1206_v41, %v1208_v50  ;;  %v1250_v46 = vrot.slane %v4231_v59, 2  ;;  %v198_v54 = vadd.f32 %v4085_v2, %v197_v31 }
  0xf9   :  { %v670_v39 = vpop.f32.mrb[13].mxu0  ;;  %v923_v7 = vpop.f32.mrb[13].mxu1  ;;  %v4235_v6 = vsel %vm1234_vm4, %v1242_v29, %v1244_v18  ;;  %v4238_v34 = vsel %vm1234_vm4, %v1244_v18, %v1246_v4  ;;  %5119 = vst [vmem:[#allocation28_spill] sm:$0xff] %v4241_v12  ;;  %5120 = vst [vmem:[#allocation29_spill] sm:$0xff] %v4244_v35  ;;  %v1212_v49 = vrot.slane %v553_v37, 1  ;;  %v4251_v14 = vmul.f32 %v4000_v55, %v213_v45 }
  0xfa   :  { %5117 = vst [vmem:[#allocation26_spill] sm:$0xff] %v4235_v6  ;;  %5118 = vst [vmem:[#allocation27_spill] sm:$0xff] %v4238_v34  ;;  %v4254_v48 = vmul.f32 %v4026_v30, %v474_v56  ;;  %v459_v18 = vadd.f32 %v4085_v2, %v458_v43  ;;  %v676_v41 = vadd.f32 %v2979_v17, %v4085_v2  ;;  %v5123_v55 = vrot.slane %v4131_v5, 1  ;;  %v4271_v56 = vpop.permute.xlu1 %1745 }
  0xfb   :  { %v1248_v37 = vrot.slane %v4251_v14, 2  ;;  %v5124_v45 = vrot.slane %v4096_v27, 1  ;;  %v929_v31 = vadd.f32 %v3005_v22, %v4085_v2  ;;  %5125 = vst [vmem:[#allocation32_spill] sm:$0xff] %v4271_v56  ;;  %v215_v35 = vmax.f32 %v198_v54, 0.0 }
  0xfc   :  { %v2982_v29 = vpop.f32.mrb[14].mxu0  ;;  %v3008_v15 = vpop.f32.mrb[14].mxu1  ;;  %5122 = vst [vmem:[#allocation31_spill] sm:$0xff] %v4254_v48  ;;  %v1210_v17 = vrot.slane %v4254_v48, 1  ;;  %v476_v51 = vmax.f32 %v459_v18, 0.0  ;;  %v728_v60 = vmax.f32 %v676_v41, 0.0  ;;  %v5128_v22 = vmax.f32 %v4096_v27, %v4098_v53 }
  0xfd   :  { %v680_v52 = vpop.f32.mrb[15].mxu0  ;;  %v4259_v34 = vpop.f32.mrb[15].mxu1  ;;  %v4268_v30 = vsel %vm1071_vm5, %v5124_v45, %v5123_v55  ;;  %v4277_v6 = vsel %vm1234_vm4, %v1246_v4, %v1248_v37  ;;  %v4280_v12 = vsel %vm1234_vm4, %v1248_v37, %v1250_v46  ;;  %v292_v4 = vmul.f32 %v4006_v62, %v215_v35 }
  0xfe   :  { %5126 = vst [vmem:[#allocation33_spill] sm:$0xff] %v4277_v6  ;;  %5127 = vst [vmem:[#allocation34_spill] sm:$0xff] %v4280_v12  ;;  %v1101_v55 = vmax.f32 %v5128_v22, %v4268_v30  ;;  %v4289_v43 = vsel %vm1071_vm5, %v1208_v50, %v1210_v17  ;;  %v4292_v54 = vsel %vm1071_vm5, %v1210_v17, %v1212_v49  ;;  %v980_v22 = vmax.f32 %v929_v31, 0.0 }
  0xff   :  { %5129 = vst [vmem:[#allocation35_spill] sm:$0xff] %v4289_v43  ;;  %5130 = vst [vmem:[#allocation36_spill] sm:$0xff] %v4292_v54  ;;  %v554_v18 = vmul.f32 %v4030_v40, %v476_v51  ;;  %v4301_v53 = vmul.f32 %v4034_v47, %v728_v60  ;;  %v671_v12 = vadd.f32 %v4085_v2, %v670_v39  ;;  %v5131_v50 = vrot.slane %v4096_v27, 1  ;;  %v4309_v54 = vpop.permute.xlu0 %1760 }
 0x100   :  { %v2985_v45 = vpop.f32.mrb[16].mxu0  ;;  %v4286_v56 = vpop.f32.mrb[16].mxu1  ;;  %v5132_v6 = vrot.slane %v4103_v1, 1  ;;  %v1175_v62 = vrot.slane %v292_v4, 1  ;;  %v1252_v40 = vrot.slane %v292_v4, 2  ;;  %v5133_v51 = vmax.f32 %v4103_v1, %v4106_v9 }
 0x101   :  { %v4296_v37 = vpop.f32.mrb[17].mxu0  ;;  %v4298_v41 = vpop.f32.mrb[17].mxu1  ;;  %v1214_v35 = vrot.slane %v554_v18, 1  ;;  %v1110_v47 = vmax.f32 %v1101_v55, %v4301_v53  ;;  %v1138_v60 = vrot.slane %v4301_v53, 1  ;;  %v1044_v39 = vmul.f32 %v4054_v24, %v980_v22 }
 0x102   :  { %v1074_v17 = vsel %vm1071_vm5, %v5132_v6, %v5131_v50  ;;  %v727_v27 = vmax.f32 %v671_v12, 0.0  ;;  %v5134_v6 = vrot.slane %v4231_v59, 1  ;;  %v4327_v18 = vsel %vm1234_vm4, %v1250_v46, %v1252_v40 }
 0x103   :  { %v1100_v43 = vmax.f32 %v5133_v51, %v1074_v17  ;;  %v4330_v1 = vsel %vm1071_vm5, %v1212_v49, %v1214_v35  ;;  %v924_v9 = vadd.f32 %v4085_v2, %v923_v7  ;;  %v4337_v12 = vmax.f32 %v1110_v47, %v1044_v39  ;;  %v4348_v49 = vpop.permute.xlu1 %1755 }
 0x104   :  { %v4317_v31 = vpop.f32.mrb[18].mxu0  ;;  %v4319_v48 = vpop.f32.mrb[18].mxu1  ;;  %v4324_v4 = vsel %vm1071_vm5, %v5134_v6, %v1175_v62  ;;  %v798_v53 = vmul.f32 %v4036_v57, %v727_v27  ;;  %v686_v22 = vadd.f32 %v2982_v29, %v4085_v2  ;;  %v5135_v50 = vrot.slane %v4174_v19, 1 }
 0x105   :  { %v4333_v55 = vpop.f32.mrb[19].mxu0  ;;  %v4335_v24 = vpop.f32.mrb[19].mxu1  ;;  %v5136_v46 = vrot.slane %v4123_v61, 1  ;;  %v979_v7 = vmax.f32 %v924_v9, 0.0  ;;  %v5137_v62 = vmax.f32 %v4123_v61, %v4126_v20  ;;  %v939_v35 = vadd.f32 %v3008_v15, %v4085_v2 }
 0x106   :  { %v681_v57 = vadd.f32 %v4085_v2, %v680_v52  ;;  %v1109_v29 = vmax.f32 %v1100_v43, %v798_v53  ;;  %v1137_v51 = vrot.slane %v798_v53, 1  ;;  %v730_v47 = vmax.f32 %v686_v22, 0.0 }
 0x107   :  { %v4346_v17 = vsel %vm1071_vm5, %v5136_v46, %v5135_v50  ;;  %v5138_v39 = vmov %v5136_v46  ;;  %v5139_v27 = vrot.slane %v4131_v5, 1  ;;  %v1043_v46 = vmul.f32 %v4056_v10, %v979_v7  ;;  %v4378_v7 = vpop.permute.xlu0 %1770 }
 0x108   :  { %v1103_v40 = vmax.f32 %v5137_v62, %v4346_v17  ;;  %v4361_v50 = vpop.f32.mrb[20].mxu0  ;;  %v3017_v9 = vpop.f32.mrb[20].mxu1  ;;  %v982_v20 = vmax.f32 %v939_v35, 0.0  ;;  %v729_v62 = vmax.f32 %v681_v57, 0.0  ;;  %v5140_v15 = vmax.f32 %v4131_v5, %v4134_v8  ;;  %5141 = vst [vmem:[#allocation37_spill] sm:$0xff] %v4378_v7 }
 0x109   :  { %v1078_v6 = vsel %vm1071_vm5, %v5139_v27, %v5138_v39  ;;  %v4367_v43 = vpop.f32.mrb[21].mxu0  ;;  %v4369_v53 = vpop.f32.mrb[21].mxu1  ;;  %v1139_v61 = vsel %vm1071_vm5, %v1137_v51, %v1138_v60  ;;  %v4373_v22 = vmul.f32 %v4038_v58, %v730_v47  ;;  %v934_v39 = vadd.f32 %v4085_v2, %v4259_v34 }
 0x10a   :  { %v1102_v52 = vmax.f32 %v5140_v15, %v1078_v6  ;;  %v696_v10 = vadd.f32 %v2985_v45, %v4085_v2  ;;  %v1118_v35 = vmax.f32 %v1109_v29, %v1043_v46  ;;  %v1046_v5 = vmul.f32 %v4058_v11, %v982_v20 }
 0x10b   :  { %v800_v8 = vmul.f32 %v4040_v0, %v729_v62  ;;  %v5142_v57 = vrot.slane %v4211_v16, 1  ;;  %v5143_v51 = vrot.slane %v4149_v33, 1  ;;  %v1112_v58 = vmax.f32 %v1103_v40, %v4373_v22 }
 0x10c   :  { %v1142_v34 = vrot.slane %v4373_v22, 1  ;;  %v981_v47 = vmax.f32 %v934_v39, 0.0  ;;  %v732_v45 = vmax.f32 %v696_v10, 0.0  ;;  %v2994_v9 = vpop.f32.mrb[22].mxu0  ;;  %v3020_v15 = vpop.f32.mrb[22].mxu1  ;;  %v1165_v29 = vmax.f32 %v1118_v35, %v1139_v61 }
 0x10d   :  { %v4387_v27 = vsel %vm1071_vm5, %v5143_v51, %v5142_v57  ;;  %v1111_v46 = vmax.f32 %v1102_v52, %v800_v8  ;;  %v1140_v11 = vrot.slane %v800_v8, 1  ;;  %v5144_v0 = vmax.f32 %v4149_v33, %v4152_v21  ;;  %v720_v62 = vpop.f32.mrb[23].mxu0  ;;  %v972_v7 = vpop.f32.mrb[23].mxu1 }
 0x10e   :  { %v4395_v57 = vmax.f32 %v1112_v58, %v1046_v5  ;;  %v1045_v40 = vmul.f32 %v4060_v25, %v981_v47  ;;  %v4399_v22 = vmul.f32 %v4042_v3, %v732_v45  ;;  %v949_v39 = vadd.f32 %v4286_v56, %v4085_v2  ;;  %v4403_v61 = vpop.permute.xlu1 %1765 }
 0x10f   :  { %v1105_v20 = vmax.f32 %v5144_v0, %v4387_v27  ;;  %v1178_v52 = vmax.f32 %v1165_v29, %v4268_v30  ;;  %v1141_v10 = vsel %vm1071_vm5, %v1138_v60, %v1140_v11  ;;  %v1143_v21 = vsel %vm1071_vm5, %v1140_v11, %v1142_v34 }
 0x110   :  { %v691_v7 = vadd.f32 %v4085_v2, %v4296_v37  ;;  %v1166_v35 = vmax.f32 %v4337_v12, %v1141_v10  ;;  %v1120_v25 = vmax.f32 %v1111_v46, %v1045_v40  ;;  %v1146_v5 = vrot.slane %v4399_v22, 1  ;;  %v4413_v8 = vpop.f32.mrb[24].mxu0  ;;  %v4415_v56 = vpop.f32.mrb[24].mxu1 }
 0x111   :  { %v1114_v3 = vmax.f32 %v1105_v20, %v4399_v22  ;;  %v1225_v30 = vmax.f32 %v1178_v52, %v4163_v38  ;;  %v984_v51 = vmax.f32 %v949_v39, 0.0  ;;  %v5145_v58 = vrot.slane %v4149_v33, 1  ;;  %v4423_v12 = vpop.f32.mrb[25].mxu0  ;;  %v4425_v45 = vpop.f32.mrb[25].mxu1 }
 0x112   :  { %v731_v60 = vmax.f32 %v691_v7, 0.0  ;;  %v5146_v47 = vrot.slane %v4174_v19, 1  ;;  %v1179_v9 = vmax.f32 %v1166_v35, %v1078_v6  ;;  %v1167_v15 = vmax.f32 %v1120_v25, %v1143_v21  ;;  %v4433_v33 = vpop.permute.xlu0 %1780  ;;  %v5150_v35 = vld [vmem:[#allocation6_spill] sm:$0xff] }
 0x113   :  { %v5147_v29 = vmax.f32 %v4174_v19, %v4177_v32  ;;  %v944_v38 = vadd.f32 %v4085_v2, %v4298_v41  ;;  %v1263_v11 = vmax.f32 %v1225_v30, %v4157_v26  ;;  %v1048_v0 = vmul.f32 %v4062_v28, %v984_v51 }
 0x114   :  { %v1082_v37 = vsel %vm1071_vm5, %v5146_v47, %v5145_v58  ;;  %v802_v20 = vmul.f32 %v4044_v13, %v731_v60  ;;  %v706_v62 = vadd.f32 %v4317_v31, %v4085_v2  ;;  %v1226_v6 = vmax.f32 %v1179_v9, %v4166_v36  ;;  %v4448_v39 = vpop.f32.mrb[26].mxu0  ;;  %v4450_v28 = vpop.f32.mrb[26].mxu1  ;;  %v5152_v47 = vld [vmem:[#allocation2_spill] sm:$0xff] }
 0x115   :  { %v1104_v46 = vmax.f32 %v5147_v29, %v1082_v37  ;;  %v1180_v40 = vmax.f32 %v1167_v15, %v4346_v17  ;;  %v983_v19 = vmax.f32 %v944_v38, 0.0  ;;  %v5148_v32 = vrot.slane %v4251_v14, 1  ;;  %1273 = vst.msk [vmem:[%s5088_s4] sm:$0xff] %vm1272_vm6, %v1263_v11  ;;  %v4458_v52 = vpop.f32.mrb[27].mxu0  ;;  %v4460_v10 = vpop.f32.mrb[27].mxu1 }
 0x116   :  { %v5149_v41 = vrot.slane %v4205_v63, 1  ;;  %v4456_v13 = vmax.f32 %v1114_v3, %v1048_v0  ;;  %v1144_v31 = vrot.slane %v802_v20, 1  ;;  %v734_v17 = vmax.f32 %v706_v62, 0.0  ;;  %v4469_v3 = vpop.permute.xlu1 %1775 }
 0x117   :  { %v1113_v36 = vmax.f32 %v1104_v46, %v802_v20  ;;  %v1264_v21 = vmax.f32 %v1226_v6, %v4160_v42  ;;  %v1227_v7 = vmax.f32 %v1180_v40, %v4199_v44  ;;  %v1047_v25 = vmul.f32 %v5150_v35, %v983_v19  ;;  %v5153_v44 = vld [vmem:[#allocation21_spill] sm:$0xff] }
 0x118   :  { %v4446_v26 = vsel %vm1071_vm5, %v5149_v41, %v5148_v32  ;;  %v5151_v30 = vmax.f32 %v4205_v63, %v4208_v23  ;;  %v1145_v60 = vsel %vm1071_vm5, %v1142_v34, %v1144_v31  ;;  %v1147_v58 = vsel %vm1071_vm5, %v1144_v31, %v1146_v5  ;;  %v4488_v46 = vpop.f32.mrb[28].mxu0  ;;  %v4490_v38 = vpop.f32.mrb[28].mxu1 }
 0x119   :  { %v4476_v9 = vmul.f32 %v5152_v47, %v734_v17  ;;  %v959_v42 = vadd.f32 %v4319_v48, %v4085_v2  ;;  %1274 = vst.msk [vmem:[%s5088_s4 + $0x8] sm:$0xff] %vm1272_vm6, %v1264_v21  ;;  %v1265_v23 = vmax.f32 %v1227_v7, %v5153_v44  ;;  %v1168_v15 = vmax.f32 %v4395_v57, %v1145_v60  ;;  %v4499_v57 = vpop.f32.mrb[29].mxu0  ;;  %v4501_v40 = vpop.f32.mrb[29].mxu1  ;;  %v5158_v17 = vld [vmem:[#allocation7_spill] sm:$0xff] }
 0x11a   :  { %v1107_v51 = vmax.f32 %v5151_v30, %v4446_v26  ;;  %v1122_v34 = vmax.f32 %v1113_v36, %v1047_v25  ;;  %v701_v29 = vadd.f32 %v4085_v2, %v4333_v55  ;;  %v5154_v20 = vmov %v5149_v41  ;;  %v5156_v41 = vld [vmem:[#allocation24_spill] sm:$0xff]  ;;  %v4510_v31 = vpop.permute.xlu0 %1790  ;;  %v5160_v60 = vld [vmem:[#allocation3_spill] sm:$0xff] }
 0x11b   :  { %v1150_v48 = vrot.slane %v4476_v9, 1  ;;  %v986_v0 = vmax.f32 %v959_v42, 0.0  ;;  %v5155_v62 = vrot.slane %v4211_v16, 1  ;;  %1275 = vst.msk [vmem:[%s5088_s4 + $0x10] sm:$0xff] %vm1272_vm6, %v1265_v23  ;;  %v1181_v55 = vmax.f32 %v1168_v15, %v1082_v37  ;;  %v5159_v37 = vld [vmem:[#allocation23_spill] sm:$0xff] }
 0x11c   :  { %v1116_v11 = vmax.f32 %v1107_v51, %v4476_v9  ;;  %v1169_v19 = vmax.f32 %v1122_v34, %v1147_v58  ;;  %v733_v32 = vmax.f32 %v701_v29, 0.0  ;;  %v5157_v36 = vmax.f32 %v4211_v16, %v5156_v41  ;;  %v4527_v42 = vpop.f32.mrb[30].mxu0  ;;  %v5166_v41 = vld [vmem:[#allocation4_spill] sm:$0xff] }
 0x11d   :  { %v1086_v6 = vsel %vm1071_vm5, %v5155_v62, %v5154_v20  ;;  %v1050_v21 = vmul.f32 %v5158_v17, %v986_v0  ;;  %v954_v7 = vadd.f32 %v4085_v2, %v4335_v24  ;;  %v716_v35 = vadd.f32 %v4361_v50, %v4085_v2  ;;  %v4529_v24 = vpop.f32.mrb[30].mxu1  ;;  %v4531_v15 = vpop.f32.mrb[31].mxu0  ;;  %v5164_v0 = vld [vmem:[#allocation28_spill] sm:$0xff] }
 0x11e   :  { %v1106_v63 = vmax.f32 %v5157_v36, %v1086_v6  ;;  %v711_v25 = vadd.f32 %v4085_v2, %v4367_v43  ;;  %v1228_v30 = vmax.f32 %v1181_v55, %v5159_v37  ;;  %v1182_v51 = vmax.f32 %v1169_v19, %v4387_v27  ;;  %v4533_v34 = vpop.f32.mrb[31].mxu1  ;;  %v5163_v27 = vld [vmem:[#allocation22_spill] sm:$0xff]  ;;  %v4537_v55 = vpop.permute.xlu1 %1785  ;;  %v5165_v19 = vld [vmem:[#allocation8_spill] sm:$0xff] }
 0x11f   :  { %v804_v16 = vmul.f32 %v5160_v60, %v733_v32  ;;  %v5161_v58 = vrot.slane %v4231_v59, 1  ;;  %v5162_v47 = vrot.slane %v4251_v14, 1  ;;  %v1125_v50 = vmax.f32 %v1116_v11, %v1050_v21  ;;  %v5167_v11 = vld [vmem:[#allocation5_spill] sm:$0xff]  ;;  %v5168_v21 = vld [vmem:[#allocation31_spill] sm:$0xff] }
 0x120   :  { %v985_v44 = vmax.f32 %v954_v7, 0.0  ;;  %v736_v23 = vmax.f32 %v716_v35, 0.0  ;;  %v735_v43 = vmax.f32 %v711_v25, 0.0  ;;  %v1266_v29 = vmax.f32 %v1228_v30, %v5163_v27  ;;  %v5170_v25 = vld [vmem:[#allocation26_spill] sm:$0xff]  ;;  %v4556_v60 = vpop.f32.mrb[32].mxu0  ;;  %v4573_v27 = vpop.permute.xlu0 %2003 }
 0x121   :  { %v1090_v9 = vsel %vm1071_vm5, %v5162_v47, %v5161_v58  ;;  %v1229_v59 = vmax.f32 %v1182_v51, %v5164_v0  ;;  %v1115_v20 = vmax.f32 %v1106_v63, %v804_v16  ;;  %v1148_v62 = vrot.slane %v804_v16, 1 }
 0x122   :  { %v1049_v32 = vmul.f32 %v5165_v19, %v985_v44  ;;  %v807_v36 = vmul.f32 %v5166_v41, %v736_v23  ;;  %v806_v17 = vmul.f32 %v5167_v11, %v735_v43  ;;  %v5169_v7 = vmax.f32 %v4251_v14, %v5168_v21  ;;  %1276 = vst.msk [vmem:[%s5088_s4 + $0x18] sm:$0xff] %vm1272_vm6, %v1266_v29  ;;  %v4558_v14 = vpop.f32.mrb[32].mxu1  ;;  %v4561_v23 = vpop.f32.mrb[33].mxu0  ;;  %v5171_v19 = vld [vmem:[#allocation9_spill] sm:$0xff] }
 0x123   :  { %v1267_v63 = vmax.f32 %v1229_v59, %v5170_v25  ;;  %v1149_v37 = vsel %vm1071_vm5, %v1146_v5, %v1148_v62  ;;  %v1151_v30 = vsel %vm1071_vm5, %v1148_v62, %v1150_v48  ;;  %v964_v51 = vadd.f32 %v4085_v2, %v4369_v53  ;;  %v4563_v43 = vpop.f32.mrb[33].mxu1  ;;  %v5173_v25 = vld [vmem:[#allocation11_spill] sm:$0xff] }
 0x124   :  { %v1108_v35 = vmax.f32 %v5169_v7, %v1090_v9  ;;  %v1170_v16 = vmax.f32 %v4456_v13, %v1149_v37  ;;  %v1124_v58 = vmax.f32 %v1115_v20, %v1049_v32  ;;  %v1154_v47 = vrot.slane %v807_v36, 1  ;;  %v3046_v36 = vpop.f32.mrb[34].mxu0  ;;  %v3072_v11 = vpop.f32.mrb[34].mxu1 }
 0x125   :  { %1277 = vst.msk [vmem:[%s5088_s4 + $0x20] sm:$0xff] %vm1272_vm6, %v1267_v63  ;;  %v1152_v22 = vrot.slane %v806_v17, 1  ;;  %v987_v53 = vmax.f32 %v964_v51, 0.0  ;;  %v1403_v5 = vadd.f32 %v4413_v8, %v4085_v2  ;;  %v1664_v13 = vadd.f32 %v4415_v56, %v4085_v2  ;;  %v5172_v56 = vld [vmem:[#allocation29_spill] sm:$0xff]  ;;  %v5174_v51 = vld [vmem:[#allocation27_spill] sm:$0xff] }
 0x126   :  { %v1117_v44 = vmax.f32 %v1108_v35, %v806_v17  ;;  %v1183_v29 = vmax.f32 %v1170_v16, %v1086_v6  ;;  %v1171_v0 = vmax.f32 %v1124_v58, %v1151_v30  ;;  %v1398_v59 = vadd.f32 %v4085_v2, %v4423_v12  ;;  %v4584_v35 = vpop.f32.mrb[35].mxu0  ;;  %v4586_v12 = vpop.f32.mrb[35].mxu1  ;;  %v5175_v58 = vld [vmem:[#allocation35_spill] sm:$0xff] }
 0x127   :  { %v1659_v20 = vadd.f32 %v4085_v2, %v4425_v45  ;;  %v1153_v62 = vsel %vm1071_vm5, %v1150_v48, %v1152_v22  ;;  %v1051_v32 = vmul.f32 %v5171_v19, %v987_v53  ;;  %v1155_v41 = vsel %vm1071_vm5, %v1152_v22, %v1154_v47  ;;  %v4591_v30 = vpop.permute.xlu1 %1998 }
 0x128   :  { %v1456_v8 = vmax.f32 %v1403_v5, 0.0  ;;  %v1230_v17 = vmax.f32 %v1183_v29, %v5172_v56  ;;  %v1184_v6 = vmax.f32 %v1171_v0, %v4446_v26  ;;  %v1172_v21 = vmax.f32 %v1125_v50, %v1153_v62  ;;  %v5176_v26 = vld [vmem:[#allocation32_spill] sm:$0xff]  ;;  %v4603_v0 = vpop.f32.mrb[36].mxu0 }
 0x129   :  { %v1717_v7 = vmax.f32 %v1664_v13, 0.0  ;;  %v1126_v45 = vmax.f32 %v1117_v44, %v1051_v32  ;;  %v1455_v63 = vmax.f32 %v1398_v59, 0.0  ;;  %v1716_v37 = vmax.f32 %v1659_v20, 0.0  ;;  %v5177_v13 = vld [vmem:[#allocation10_spill] sm:$0xff]  ;;  %v4605_v59 = vpop.f32.mrb[36].mxu1  ;;  %v5179_v62 = vld [vmem:[#allocation36_spill] sm:$0xff] }
 0x12a   :  { %v4589_v48 = vmul.f32 %v5173_v25, %v1456_v8  ;;  %v1268_v16 = vmax.f32 %v1230_v17, %v5174_v51  ;;  %v1231_v47 = vmax.f32 %v1184_v6, %v5175_v58  ;;  %v1185_v22 = vmax.f32 %v1172_v21, %v1090_v9  ;;  %v5178_v9 = vld [vmem:[#allocation33_spill] sm:$0xff]  ;;  %v4616_v8 = vpop.f32.mrb[37].mxu0  ;;  %v4618_v36 = vpop.f32.mrb[37].mxu1  ;;  %v5180_v17 = vld [vmem:[#allocation20_spill] sm:$0xff] }
 0x12b   :  { %v4596_v50 = vmul.f32 %v5176_v26, %v1717_v7  ;;  %v1173_v53 = vmax.f32 %v1126_v45, %v1155_v41  ;;  %v4601_v29 = vmul.f32 %v5177_v13, %v1455_v63  ;;  %v4623_v6 = vmul.f32 %v5180_v17, %v1716_v37  ;;  %v4631_v7 = vpop.permute.xlu0 %2013  ;;  %v5181_v45 = vld [vmem:[#allocation34_spill] sm:$0xff]  ;;  %v5182_v13 = vld [vmem:[#allocation13_spill] sm:$0xff]  ;;  %v5183_v17 = vld [vmem:[#allocation12_spill] sm:$0xff] }
 0x12c   :  { %v2480_v44 = vrot.slane %v4589_v48, 2  ;;  %1278 = vst.msk [vmem:[%s5088_s4 + $0x28] sm:$0xff] %vm1272_vm6, %v1268_v16  ;;  %v1269_v20 = vmax.f32 %v1231_v47, %v5178_v9  ;;  %v1232_v19 = vmax.f32 %v1185_v22, %v5179_v62  ;;  %v1413_v21 = vadd.f32 %v4448_v39, %v4085_v2  ;;  %v4645_v47 = vpop.f32.mrb[38].mxu0  ;;  %v4647_v22 = vpop.f32.mrb[38].mxu1 }
 0x12d   :  { %v2443_v41 = vrot.slane %v4596_v50, 1  ;;  %v1186_v11 = vmax.f32 %v1173_v53, %v4324_v4  ;;  %v1674_v4 = vadd.f32 %v4450_v28, %v4085_v2  ;;  %v1408_v63 = vadd.f32 %v4085_v2, %v4458_v52  ;;  %v4655_v26 = vpop.f32.mrb[39].mxu0  ;;  %v4657_v53 = vpop.f32.mrb[39].mxu1 }
 0x12e   :  { %1279 = vst.msk [vmem:[%s5088_s4 + $0x30] sm:$0xff] %vm1272_vm6, %v1269_v20  ;;  %v1270_v25 = vmax.f32 %v1232_v19, %v5181_v45  ;;  %v1669_v37 = vadd.f32 %v4085_v2, %v4460_v10  ;;  %v1458_v16 = vmax.f32 %v1413_v21, 0.0  ;;  %v1423_v58 = vadd.f32 %v4488_v46, %v4085_v2  ;;  %v4665_v19 = vpop.permute.xlu1 %2008  ;;  %v5184_v21 = vld [vmem:[#allocation30_spill] sm:$0xff] }
 0x12f   :  { %v1233_v39 = vmax.f32 %v1186_v11, %v4330_v1  ;;  %v1719_v28 = vmax.f32 %v1674_v4, 0.0  ;;  %v1457_v52 = vmax.f32 %v1408_v63, 0.0  ;;  %v1684_v1 = vadd.f32 %v4490_v38, %v4085_v2  ;;  %v5185_v4 = vld [vmem:[#allocation14_spill] sm:$0xff] }
 0x130   :  { %1280 = vst.msk [vmem:[%s5088_s4 + $0x38] sm:$0xff] %vm1272_vm6, %v1270_v25  ;;  %v1718_v10 = vmax.f32 %v1669_v37, 0.0  ;;  %v4661_v9 = vmul.f32 %v5182_v13, %v1458_v16  ;;  %v1460_v20 = vmax.f32 %v1423_v58, 0.0  ;;  %v1418_v62 = vadd.f32 %v4085_v2, %v4499_v57  ;;  %v4685_v37 = vpop.f32.mrb[40].mxu0 }
 0x131   :  { %v1271_v46 = vmax.f32 %v1233_v39, %v4327_v18  ;;  %v4668_v11 = vmul.f32 %v4348_v49, %v1719_v28  ;;  %v4671_v38 = vmul.f32 %v5183_v17, %v1457_v52  ;;  %v1721_v25 = vmax.f32 %v1684_v1, 0.0  ;;  %v4687_v39 = vpop.f32.mrb[40].mxu1  ;;  %v4703_v17 = vpop.permute.xlu0 %2023  ;;  %v5187_v18 = vld [vmem:[#allocation15_spill] sm:$0xff] }
 0x132   :  { %v4674_v45 = vmul.f32 %v5184_v21, %v1718_v10  ;;  %v2483_v57 = vrot.slane %v4661_v9, 2  ;;  %v4683_v63 = vmul.f32 %v5185_v4, %v1460_v20  ;;  %v1459_v49 = vmax.f32 %v1418_v62, 0.0  ;;  %v4694_v10 = vpop.f32.mrb[41].mxu0  ;;  %v4696_v1 = vpop.f32.mrb[41].mxu1 }
 0x133   :  { %1281 = vst.msk [vmem:[%s5088_s4 + $0x40] sm:$0xff] %vm1272_vm6, %v1271_v46  ;;  %v2446_v58 = vrot.slane %v4668_v11, 1  ;;  %v2481_v52 = vrot.slane %v4671_v38, 2  ;;  %v4712_v16 = vmul.f32 %v4403_v61, %v1721_v25  ;;  %v1679_v56 = vadd.f32 %v4085_v2, %v4501_v40  ;;  %v4744_v62 = vpop.permute.xlu1 %2018 }
 0x134   :  { %v2444_v13 = vrot.slane %v4674_v45, 1  ;;  %v4715_v51 = vmul.f32 %v5187_v18, %v1459_v49  ;;  %v4729_v32 = vpop.f32.mrb[42].mxu1  ;;  %v1428_v28 = vadd.f32 %v4085_v2, %v4531_v15  ;;  %5191 = vst [vmem:[#allocation7_spill] sm:$0xff] %v4744_v62  ;;  %v5195_v15 = vld [vmem:[#allocation16_spill] sm:$0xff] }
 0x135   :  { %v4706_v21 = vsel %vm1234_vm4, %v2480_v44, %v2481_v52  ;;  %v4709_v4 = vsel %vm1234_vm4, %v2481_v52, %v2483_v57  ;;  %v1433_v44 = vadd.f32 %v4527_v42, %v4085_v2  ;;  %v4727_v52 = vpop.f32.mrb[42].mxu0  ;;  %5188 = vst [vmem:[#allocation2_spill] sm:$0xff] %v4729_v32  ;;  %v2450_v25 = vrot.slane %v4712_v16, 1 }
 0x136   :  { %5186 = vst [vmem:[#allocation6_spill] sm:$0xff] %v4709_v4  ;;  %v4718_v46 = vsel %vm1071_vm5, %v2443_v41, %v2444_v13  ;;  %v4721_v20 = vsel %vm1071_vm5, %v2444_v13, %v2446_v58  ;;  %v2485_v18 = vrot.slane %v4715_v51, 2  ;;  %v4736_v49 = vpop.f32.mrb[43].mxu0  ;;  %v4738_v13 = vpop.f32.mrb[43].mxu1  ;;  %v1720_v40 = vmax.f32 %v1679_v56, 0.0 }
 0x137   :  { %5189 = vst [vmem:[#allocation21_spill] sm:$0xff] %v4736_v49  ;;  %5190 = vst [vmem:[#allocation24_spill] sm:$0xff] %v4738_v13  ;;  %v1462_v5 = vmax.f32 %v1433_v44, 0.0  ;;  %v1694_v42 = vadd.f32 %v4529_v24, %v4085_v2  ;;  %v5193_v41 = vrot.slane %v4683_v63, 2  ;;  %v1689_v56 = vadd.f32 %v4085_v2, %v4533_v34 }
 0x138   :  { %v4747_v61 = vsel %vm1234_vm4, %v2483_v57, %v2485_v18  ;;  %v1443_v44 = vadd.f32 %v4556_v60, %v4085_v2  ;;  %v4759_v24 = vmul.f32 %v4309_v54, %v1720_v40  ;;  %v1461_v57 = vmax.f32 %v1428_v28, 0.0  ;;  %v3121_v4 = vpop.f32.mrb[44].mxu1 }
 0x139   :  { %5192 = vst [vmem:[#allocation23_spill] sm:$0xff] %v4747_v61  ;;  %v4752_v32 = vsel %vm1234_vm4, %v2485_v18, %v5193_v41  ;;  %v4762_v13 = vmul.f32 %v5195_v15, %v1462_v5  ;;  %v1723_v49 = vmax.f32 %v1694_v42, 0.0  ;;  %v4764_v61 = vpop.f32.mrb[44].mxu0  ;;  %v1722_v62 = vmax.f32 %v1689_v56, 0.0  ;;  %v4772_v54 = vpop.f32.mrb[45].mxu1  ;;  %v5200_v56 = vld [vmem:[#allocation17_spill] sm:$0xff] }
 0x13a   :  { %5194 = vst [vmem:[#allocation3_spill] sm:$0xff] %v4752_v32  ;;  %5196 = vst [vmem:[#allocation22_spill] sm:$0xff] %v4764_v61  ;;  %v1464_v41 = vmax.f32 %v1443_v44, 0.0  ;;  %v1704_v18 = vadd.f32 %v4558_v14, %v4085_v2  ;;  %v1438_v34 = vadd.f32 %v4085_v2, %v4561_v23  ;;  %v4770_v60 = vpop.f32.mrb[45].mxu0  ;;  %v2448_v28 = vrot.slane %v4759_v24, 1  ;;  %v4779_v42 = vpop.permute.xlu0 %2033  ;;  %v5201_v44 = vld [vmem:[#allocation37_spill] sm:$0xff] }
 0x13b   :  { %5197 = vst [vmem:[#allocation28_spill] sm:$0xff] %v4770_v60  ;;  %5198 = vst [vmem:[#allocation8_spill] sm:$0xff] %v4772_v54  ;;  %v2491_v4 = vrot.slane %v4762_v13, 2  ;;  %v4782_v14 = vmul.f32 %v4469_v3, %v1723_v49  ;;  %v4785_v23 = vmul.f32 %v5200_v56, %v1461_v57  ;;  %v4788_v15 = vmul.f32 %v5201_v44, %v1722_v62  ;;  %v5202_v54 = vld [vmem:[#allocation18_spill] sm:$0xff] }
 0x13c   :  { %5199 = vst [vmem:[#allocation4_spill] sm:$0xff] %v4779_v42  ;;  %v4791_v32 = vmul.f32 %v5202_v54, %v1464_v41  ;;  %v4794_v5 = vsel %vm1071_vm5, %v2446_v58, %v2448_v28  ;;  %v4797_v40 = vsel %vm1071_vm5, %v2448_v28, %v2450_v25  ;;  %v1725_v60 = vmax.f32 %v1704_v18, 0.0  ;;  %v3098_v42 = vpop.f32.mrb[46].mxu0  ;;  %v3124_v3 = vpop.f32.mrb[46].mxu1 }
 0x13d   :  { %5203 = vst [vmem:[#allocation5_spill] sm:$0xff] %v4797_v40  ;;  %v1463_v61 = vmax.f32 %v1438_v34, 0.0  ;;  %v2454_v57 = vrot.slane %v4782_v14, 1  ;;  %v2489_v41 = vrot.slane %v4785_v23, 2  ;;  %v1969_v54 = vpop.f32.mrb[47].mxu0  ;;  %v2220_v56 = vpop.f32.mrb[47].mxu1  ;;  %v1699_v40 = vadd.f32 %v4085_v2, %v4563_v43 }
 0x13e   :  { %v2452_v28 = vrot.slane %v4788_v15, 1  ;;  %v2495_v34 = vrot.slane %v4791_v32, 2  ;;  %v4809_v42 = vpop.permute.xlu1 %2028  ;;  %v5204_v44 = vrot.slane %v4683_v63, 2  ;;  %v1802_v54 = vmul.f32 %v4537_v55, %v1725_v60  ;;  %v5207_v56 = vld [vmem:[#allocation19_spill] sm:$0xff]  ;;  %v4842_v60 = vpop.permute.xlu0 %2043 }
 0x13f   :  { %v4817_v49 = vsel %vm1234_vm4, %v2489_v41, %v2491_v4  ;;  %v4821_v58 = vmul.f32 %v5207_v56, %v1463_v61  ;;  %v4838_v61 = vld [vmem:[%s5087_s3] ss:$0 sm:$0xff]  ;;  %5210 = vst [vmem:[#allocation11_spill] sm:$0xff] %v4842_v60 }
 0x140   :  { %v4814_v3 = vsel %vm1234_vm4, %v5204_v44, %v2489_v41  ;;  %5206 = vst [vmem:[#allocation26_spill] sm:$0xff] %v4817_v49  ;;  %v4824_v62 = vsel %vm1071_vm5, %v2450_v25, %v2452_v28  ;;  %v4827_v18 = vsel %vm1071_vm5, %v2452_v28, %v2454_v57  ;;  %v1448_v44 = vadd.f32 %v4085_v2, %v4584_v35 }
 0x141   :  { %5205 = vst [vmem:[#allocation31_spill] sm:$0xff] %v4814_v3  ;;  %5208 = vst [vmem:[#allocation9_spill] sm:$0xff] %v4824_v62  ;;  %v2458_v3 = vrot.slane %v1802_v54, 1  ;;  %v2493_v55 = vrot.slane %v4821_v58, 2  ;;  %v1709_v25 = vadd.f32 %v4838_v61, %v4586_v12  ;;  %v1724_v28 = vmax.f32 %v1699_v40, 0.0 }
 0x142   :  { %5209 = vst [vmem:[#allocation29_spill] sm:$0xff] %v4827_v18  ;;  %v1465_v43 = vmax.f32 %v1448_v44, 0.0  ;;  %v1925_v2 = vadd.f32 %v4838_v61, %v4603_v0  ;;  %v5211_v35 = vrot.slane %v4671_v38, 1  ;;  %v5212_v54 = vrot.slane %v4589_v48, 1  ;;  %v5215_v18 = vld [vmem:[#allocation25_spill] sm:$0xff] }
 0x143   :  { %v4854_v41 = vsel %vm1234_vm4, %v2491_v4, %v2493_v55  ;;  %v4857_v49 = vsel %vm1234_vm4, %v2493_v55, %v2495_v34  ;;  %v1726_v12 = vmax.f32 %v1709_v25, 0.0  ;;  %v5214_v40 = vmax.f32 %v4589_v48, %v4596_v50  ;;  %v4869_v4 = vpop.permute.xlu1 %2038  ;;  %v2253_v48 = vpop.permute.xlu0 %2252 }
 0x144   :  { %v4851_v56 = vsel %vm1071_vm5, %v5212_v54, %v5211_v35  ;;  %5213 = vst [vmem:[#allocation27_spill] sm:$0xff] %v4857_v49  ;;  %v4864_v0 = vmul.f32 %v4433_v33, %v1724_v28  ;;  %v1542_v60 = vmul.f32 %v5215_v18, %v1465_v43  ;;  %v1977_v62 = vmax.f32 %v1925_v2, 0.0 }
 0x145   :  { %v2347_v44 = vmax.f32 %v5214_v40, %v4851_v56  ;;  %v2177_v35 = vadd.f32 %v4838_v61, %v4605_v59  ;;  %v1803_v55 = vmul.f32 %v4510_v31, %v1726_v12  ;;  %v1920_v25 = vadd.f32 %v4838_v61, %v4616_v8 }
 0x146   :  { %v5216_v50 = vrot.slane %v4601_v29, 1  ;;  %v2172_v18 = vadd.f32 %v4838_v61, %v4618_v36  ;;  %v2456_v59 = vrot.slane %v4864_v0, 1  ;;  %v2421_v43 = vrot.slane %v1542_v60, 1 }
 0x147   :  { %v2497_v2 = vrot.slane %v1542_v60, 2  ;;  %v2460_v31 = vrot.slane %v1803_v55, 1  ;;  %v2047_v12 = vmul.f32 %v4573_v27, %v1977_v62  ;;  %v2228_v8 = vmax.f32 %v2177_v35, 0.0 }
 0x148   :  { %v2320_v33 = vsel %vm1071_vm5, %v5216_v50, %v5212_v54  ;;  %v1976_v40 = vmax.f32 %v1920_v25, 0.0  ;;  %v4886_v49 = vsel %vm1071_vm5, %v2454_v57, %v2456_v59  ;;  %v4889_v54 = vsel %vm1071_vm5, %v2456_v59, %v2458_v3 }
 0x149   :  { %v5217_v36 = vrot.slane %v4791_v32, 1  ;;  %v4897_v28 = vsel %vm1234_vm4, %v2495_v34, %v2497_v2  ;;  %v4900_v60 = vsel %vm1071_vm5, %v2458_v3, %v2460_v31  ;;  %v2356_v27 = vmax.f32 %v2347_v44, %v2047_v12 }
 0x14a   :  { %v2384_v62 = vrot.slane %v2047_v12, 1  ;;  %v2291_v35 = vmul.f32 %v2253_v48, %v2228_v8  ;;  %v2046_v57 = vmul.f32 %v4591_v30, %v1976_v40  ;;  %v5219_v55 = vmax.f32 %v4601_v29, %v4623_v6 }
 0x14b   :  { %v4894_v50 = vsel %vm1071_vm5, %v5217_v36, %v2421_v43  ;;  %v2227_v59 = vmax.f32 %v2172_v18, 0.0  ;;  %v1935_v43 = vadd.f32 %v4838_v61, %v4645_v47  ;;  %v2248_v36 = vpop.permute.xlu1 %2247  ;;  %v5220_v34 = vrot.slane %v4715_v51, 1 }
 0x14c   :  { %5218 = vst [vmem:[#allocation35_spill] sm:$0xff] %v4894_v50  ;;  %v2346_v25 = vmax.f32 %v5219_v55, %v2320_v33  ;;  %v2365_v50 = vmax.f32 %v2356_v27, %v2291_v35  ;;  %v5221_v3 = vrot.slane %v4661_v9, 1  ;;  %v2187_v2 = vadd.f32 %v4838_v61, %v4647_v22  ;;  %v2263_v22 = vpop.permute.xlu0 %2262 }
 0x14d   :  { %v1930_v30 = vadd.f32 %v4838_v61, %v4655_v26  ;;  %v2383_v6 = vrot.slane %v2046_v57, 1  ;;  %v2290_v33 = vmul.f32 %v2248_v36, %v2227_v59  ;;  %v1979_v18 = vmax.f32 %v1935_v43, 0.0 }
 0x14e   :  { %v2326_v44 = vsel %vm1071_vm5, %v5221_v3, %v5220_v34  ;;  %v2355_v29 = vmax.f32 %v2346_v25, %v2046_v57  ;;  %v5222_v47 = vmax.f32 %v4661_v9, %v4668_v11  ;;  %v2230_v12 = vmax.f32 %v2187_v2, 0.0 }
 0x14f   :  { %v1978_v8 = vmax.f32 %v1930_v30, 0.0  ;;  %v5223_v40 = vmov %v5221_v3  ;;  %v5224_v48 = vrot.slane %v4671_v38, 1  ;;  %v2385_v26 = vsel %vm1071_vm5, %v2383_v6, %v2384_v62  ;;  %v2258_v6 = vpop.permute.xlu1 %2257 }
 0x150   :  { %v2349_v31 = vmax.f32 %v5222_v47, %v2326_v44  ;;  %v2364_v35 = vmax.f32 %v2355_v29, %v2290_v33  ;;  %v2049_v57 = vmul.f32 %v4631_v7, %v1979_v18  ;;  %v5225_v55 = vmax.f32 %v4671_v38, %v4674_v45 }
 0x151   :  { %v2324_v27 = vsel %vm1071_vm5, %v5224_v48, %v5223_v40  ;;  %v2293_v11 = vmul.f32 %v2263_v22, %v2230_v12  ;;  %v2048_v59 = vmul.f32 %v4665_v19, %v1978_v8  ;;  %v2182_v9 = vadd.f32 %v4838_v61, %v4657_v53 }
 0x152   :  { %v2348_v25 = vmax.f32 %v5225_v55, %v2324_v27  ;;  %v1945_v43 = vadd.f32 %v4838_v61, %v4685_v37  ;;  %v2411_v36 = vmax.f32 %v2364_v35, %v2385_v26  ;;  %v2358_v34 = vmax.f32 %v2349_v31, %v2049_v57 }
 0x153   :  { %v2388_v3 = vrot.slane %v2049_v57, 1  ;;  %v5226_v2 = vrot.slane %v4785_v23, 1  ;;  %v5227_v7 = vrot.slane %v4683_v63, 1  ;;  %v2386_v45 = vrot.slane %v2048_v59, 1 }
 0x154   :  { %v2357_v38 = vmax.f32 %v2348_v25, %v2048_v59  ;;  %v2229_v29 = vmax.f32 %v2182_v9, 0.0  ;;  %v1981_v19 = vmax.f32 %v1945_v43, 0.0  ;;  %v2424_v53 = vmax.f32 %v2411_v36, %v4851_v56  ;;  %v5232_v36 = vld [vmem:[#allocation7_spill] sm:$0xff] }
 0x155   :  { %v4940_v30 = vsel %vm1071_vm5, %v5227_v7, %v5226_v2  ;;  %v2367_v33 = vmax.f32 %v2358_v34, %v2293_v11  ;;  %v5228_v37 = vmax.f32 %v4683_v63, %v4712_v16  ;;  %v2197_v47 = vadd.f32 %v4838_v61, %v4687_v39  ;;  %v2273_v16 = vpop.permute.xlu0 %2272 }
 0x156   :  { %v2387_v31 = vsel %vm1071_vm5, %v2384_v62, %v2386_v45  ;;  %v2292_v12 = vmul.f32 %v2258_v6, %v2229_v29  ;;  %v2389_v8 = vsel %vm1071_vm5, %v2386_v45, %v2388_v3  ;;  %v4952_v40 = vmul.f32 %v4703_v17, %v1981_v19  ;;  %v5236_v29 = vld [vmem:[#allocation6_spill] sm:$0xff] }
 0x157   :  { %v2351_v18 = vmax.f32 %v5228_v37, %v4940_v30  ;;  %v2471_v48 = vmax.f32 %v2424_v53, %v4718_v46  ;;  %v2412_v56 = vmax.f32 %v2365_v50, %v2387_v31  ;;  %v2232_v22 = vmax.f32 %v2197_v47, 0.0  ;;  %v5237_v37 = vld [vmem:[#allocation2_spill] sm:$0xff] }
 0x158   :  { %v1940_v35 = vadd.f32 %v4838_v61, %v4694_v10  ;;  %v2366_v26 = vmax.f32 %v2357_v38, %v2292_v12  ;;  %v2392_v39 = vrot.slane %v4952_v40, 1  ;;  %v5229_v62 = vmov %v5227_v7  ;;  %v5238_v12 = vld [vmem:[#allocation4_spill] sm:$0xff] }
 0x159   :  { %v2360_v57 = vmax.f32 %v2351_v18, %v4952_v40  ;;  %v5230_v55 = vrot.slane %v4715_v51, 1  ;;  %v2508_v25 = vmax.f32 %v2471_v48, %v4706_v21  ;;  %v2425_v46 = vmax.f32 %v2412_v56, %v2324_v27 }
 0x15a   :  { %v2295_v50 = vmul.f32 %v2273_v16, %v2232_v22  ;;  %v1980_v11 = vmax.f32 %v1940_v35, 0.0  ;;  %v2413_v59 = vmax.f32 %v2366_v26, %v2389_v8  ;;  %v5231_v10 = vmax.f32 %v4715_v51, %v4759_v24  ;;  %v5239_v8 = vld [vmem:[#allocation21_spill] sm:$0xff]  ;;  %v2283_v26 = vpop.permute.xlu0 %2282 }
 0x15b   :  { %v2328_v17 = vsel %vm1071_vm5, %v5230_v55, %v5229_v62  ;;  %v2192_v43 = vadd.f32 %v4838_v61, %v4696_v1  ;;  %v1955_v63 = vadd.f32 %v4838_v61, %v4727_v52  ;;  %2780 = vst.msk [vmem:[%s5088_s4 + $0x48] sm:$0xff] %vm1272_vm6, %v2508_v25  ;;  %v2472_v21 = vmax.f32 %v2425_v46, %v4721_v20  ;;  %v2268_v20 = vpop.permute.xlu1 %2267 }
 0x15c   :  { %v2350_v9 = vmax.f32 %v5231_v10, %v2328_v17  ;;  %v4977_v27 = vmax.f32 %v2360_v57, %v2295_v50  ;;  %v2050_v34 = vmul.f32 %v5232_v36, %v1980_v11  ;;  %v5233_v51 = vrot.slane %v4821_v58, 1  ;;  %v5242_v57 = vld [vmem:[#allocation23_spill] sm:$0xff] }
 0x15d   :  { %v5234_v24 = vrot.slane %v4762_v13, 1  ;;  %v2426_v2 = vmax.f32 %v2413_v59, %v2326_v44  ;;  %v2231_v52 = vmax.f32 %v2192_v43, 0.0  ;;  %v1983_v7 = vmax.f32 %v1955_v63, 0.0  ;;  %v5244_v43 = vld [vmem:[#allocation24_spill] sm:$0xff] }
 0x15e   :  { %v5235_v38 = vmax.f32 %v4762_v13, %v4782_v14  ;;  %v2509_v19 = vmax.f32 %v2472_v21, %v5236_v29  ;;  %v2359_v6 = vmax.f32 %v2350_v9, %v2050_v34  ;;  %v2390_v53 = vrot.slane %v2050_v34, 1 }
 0x15f   :  { %v4985_v1 = vsel %vm1071_vm5, %v5234_v24, %v5233_v51  ;;  %v2207_v18 = vadd.f32 %v4838_v61, %v5237_v37  ;;  %v2473_v47 = vmax.f32 %v2426_v2, %v4794_v5  ;;  %v2294_v31 = vmul.f32 %v2268_v20, %v2231_v52  ;;  %v5246_v51 = vld [vmem:[#allocation28_spill] sm:$0xff]  ;;  %v5249_v52 = vld [vmem:[#allocation5_spill] sm:$0xff]  ;;  %v5251_v37 = vld [vmem:[#allocation3_spill] sm:$0xff] }
 0x160   :  { %v2353_v45 = vmax.f32 %v5235_v38, %v4985_v1  ;;  %v2053_v44 = vmul.f32 %v5238_v12, %v1983_v7  ;;  %v1950_v48 = vadd.f32 %v4838_v61, %v5239_v8  ;;  %2781 = vst.msk [vmem:[%s5088_s4 + $0x50] sm:$0xff] %vm1272_vm6, %v2509_v19  ;;  %v2391_v14 = vsel %vm1071_vm5, %v2388_v3, %v2390_v53  ;;  %v5253_v12 = vld [vmem:[#allocation11_spill] sm:$0xff] }
 0x161   :  { %v2393_v56 = vsel %vm1071_vm5, %v2390_v53, %v2392_v39  ;;  %v2234_v22 = vmax.f32 %v2207_v18, 0.0  ;;  %v5240_v5 = vmov %v5234_v24  ;;  %v5241_v35 = vrot.slane %v4785_v23, 1  ;;  %v5252_v18 = vld [vmem:[#allocation9_spill] sm:$0xff] }
 0x162   :  { %v2510_v62 = vmax.f32 %v2473_v47, %v5242_v57  ;;  %v2414_v55 = vmax.f32 %v2367_v33, %v2391_v14  ;;  %v2368_v25 = vmax.f32 %v2359_v6, %v2294_v31  ;;  %v2362_v46 = vmax.f32 %v2353_v45, %v2053_v44  ;;  %v5245_v33 = vld [vmem:[#allocation22_spill] sm:$0xff]  ;;  %v5254_v14 = vld [vmem:[#allocation8_spill] sm:$0xff] }
 0x163   :  { %v2332_v16 = vsel %vm1071_vm5, %v5241_v35, %v5240_v5  ;;  %v2396_v50 = vrot.slane %v2053_v44, 1  ;;  %v2297_v11 = vmul.f32 %v2283_v26, %v2234_v22  ;;  %v1982_v3 = vmax.f32 %v1950_v48, 0.0 }
 0x164   :  { %v5243_v59 = vmax.f32 %v4785_v23, %v4788_v15  ;;  %2782 = vst.msk [vmem:[%s5088_s4 + $0x58] sm:$0xff] %vm1272_vm6, %v2510_v62  ;;  %v2427_v13 = vmax.f32 %v2414_v55, %v2328_v17  ;;  %v2415_v9 = vmax.f32 %v2368_v25, %v2393_v56  ;;  %v2202_v63 = vadd.f32 %v4838_v61, %v5244_v43  ;;  %v2278_v17 = vpop.permute.xlu1 %2277 }
 0x165   :  { %v1965_v21 = vadd.f32 %v4838_v61, %v5245_v33  ;;  %v2371_v36 = vmax.f32 %v2362_v46, %v2297_v11  ;;  %v2052_v34 = vmul.f32 %v4809_v42, %v1982_v3  ;;  %v1960_v23 = vadd.f32 %v4838_v61, %v5246_v51  ;;  %v5256_v46 = vld [vmem:[#allocation29_spill] sm:$0xff]  ;;  %v5258_v33 = vld [vmem:[#allocation35_spill] sm:$0xff] }
 0x166   :  { %v2352_v10 = vmax.f32 %v5243_v59, %v2332_v16  ;;  %v5247_v15 = vrot.slane %v4791_v32, 1  ;;  %v5248_v24 = vrot.slane %v4821_v58, 1  ;;  %v2474_v7 = vmax.f32 %v2427_v13, %v5249_v52 }
 0x167   :  { %v2428_v38 = vmax.f32 %v2415_v9, %v4940_v30  ;;  %v2233_v45 = vmax.f32 %v2202_v63, 0.0  ;;  %v1985_v20 = vmax.f32 %v1965_v21, 0.0  ;;  %v2394_v19 = vrot.slane %v2052_v34, 1 }
 0x168   :  { %v2336_v2 = vsel %vm1071_vm5, %v5248_v24, %v5247_v15  ;;  %v2361_v29 = vmax.f32 %v2352_v10, %v2052_v34  ;;  %v1984_v6 = vmax.f32 %v1960_v23, 0.0  ;;  %v5250_v42 = vmax.f32 %v4821_v58, %v4864_v0  ;;  %v5255_v58 = vld [vmem:[#allocation31_spill] sm:$0xff]  ;;  %v2288_v57 = vpop.permute.xlu1 %2287  ;;  %v5257_v10 = vld [vmem:[#allocation26_spill] sm:$0xff] }
 0x169   :  { %v2511_v32 = vmax.f32 %v2474_v7, %v5251_v37  ;;  %v2475_v47 = vmax.f32 %v2428_v38, %v5252_v18  ;;  %v2296_v31 = vmul.f32 %v2278_v17, %v2233_v45  ;;  %v2055_v44 = vmul.f32 %v5253_v12, %v1985_v20 }
 0x16a   :  { %v2354_v53 = vmax.f32 %v5250_v42, %v2336_v2  ;;  %v2395_v30 = vsel %vm1071_vm5, %v2392_v39, %v2394_v19  ;;  %v2397_v8 = vsel %vm1071_vm5, %v2394_v19, %v2396_v50  ;;  %v2054_v48 = vmul.f32 %v4869_v4, %v1984_v6 }
 0x16b   :  { %v2212_v56 = vadd.f32 %v4838_v61, %v5254_v14  ;;  %2783 = vst.msk [vmem:[%s5088_s4 + $0x60] sm:$0xff] %vm1272_vm6, %v2511_v32  ;;  %v2512_v0 = vmax.f32 %v2475_v47, %v5255_v58  ;;  %v2416_v22 = vmax.f32 %v4977_v27, %v2395_v30  ;;  %v2370_v5 = vmax.f32 %v2361_v29, %v2296_v31 }
 0x16c   :  { %v2400_v40 = vrot.slane %v2055_v44, 1  ;;  %v2363_v35 = vmax.f32 %v2354_v53, %v2054_v48  ;;  %v2398_v39 = vrot.slane %v2054_v48, 1 }
 0x16d   :  { %v2235_v26 = vmax.f32 %v2212_v56, 0.0  ;;  %2784 = vst.msk [vmem:[%s5088_s4 + $0x68] sm:$0xff] %vm1272_vm6, %v2512_v0  ;;  %v2429_v61 = vmax.f32 %v2416_v22, %v2332_v16  ;;  %v2417_v4 = vmax.f32 %v2370_v5, %v2397_v8 }
 0x16e   :  { %v2399_v62 = vsel %vm1071_vm5, %v2396_v50, %v2398_v39  ;;  %v2401_v25 = vsel %vm1071_vm5, %v2398_v39, %v2400_v40 }
 0x16f   :  { %v2298_v55 = vmul.f32 %v2288_v57, %v2235_v26  ;;  %v2476_v27 = vmax.f32 %v2429_v61, %v5256_v46  ;;  %v2430_v11 = vmax.f32 %v2417_v4, %v4985_v1  ;;  %v2418_v3 = vmax.f32 %v2371_v36, %v2399_v62  ;;  %v5259_v1 = vld [vmem:[#allocation27_spill] sm:$0xff] }
 0x171   :  { %v2372_v59 = vmax.f32 %v2363_v35, %v2298_v55  ;;  %v2513_v13 = vmax.f32 %v2476_v27, %v5257_v10  ;;  %v2477_v9 = vmax.f32 %v2430_v11, %v4886_v49  ;;  %v2431_v43 = vmax.f32 %v2418_v3, %v2336_v2 }
 0x173   :  { %v2419_v63 = vmax.f32 %v2372_v59, %v2401_v25  ;;  %2785 = vst.msk [vmem:[%s5088_s4 + $0x70] sm:$0xff] %vm1272_vm6, %v2513_v13  ;;  %v2514_v16 = vmax.f32 %v2477_v9, %v4854_v41  ;;  %v2478_v50 = vmax.f32 %v2431_v43, %v4889_v54 }
 0x175   :  { %v2432_v21 = vmax.f32 %v2419_v63, %v5258_v33  ;;  %2786 = vst.msk [vmem:[%s5088_s4 + $0x78] sm:$0xff] %vm1272_vm6, %v2514_v16  ;;  %v2515_v49 = vmax.f32 %v2478_v50, %v5259_v1 }
 0x177   :  { %v2479_v36 = vmax.f32 %v2432_v21, %v4900_v60  ;;  %2787 = vst.msk [vmem:[%s5088_s4 + $0x80] sm:$0xff] %vm1272_vm6, %v2515_v49 }
 0x179   :  { %v2516_v41 = vmax.f32 %v2479_v36, %v4897_v28 }
 0x17b   :  { %2788 = vst.msk [vmem:[%s5088_s4 + $0x88] sm:$0xff] %vm1272_vm6, %v2516_v41 }

// kernel: shufflenet_forward.10
= control target key start
LH: loop header
LB: loop body
LE: loop exit
PB: predicated region body
PF: predicated region fallthrough
CT: control target
= control target key end

     0   :  { %vm70_vm0 = vcmask 130048   ;;  %v1325_v3 = vmov 0   ;;  %v1326_v15 = vmov 0.0|0.0   ;;  %vm1327_vm1 = vmmov 0   ;;  %s1897_s3 = inlined_call_operand.vmem [shape: f32[16,16], index: 3, kind: input, shape index: {}]   ;;  %s1898_s1 = inlined_call_operand.vmem [shape: f32[2,42,16], index: 1, kind: input, shape index: {}]   ;;  %s1899_s2 = inlined_call_operand.vmem [shape: f32[42,1], index: 2, kind: input, shape index: {}]   ;;  %s1900_s7 = inlined_call_operand.vmem [shape: f32[16,32], index: 7, kind: input, shape index: {}]   ;;  %s1901_s9 = inlined_call_operand.vmem [shape: f32[16,32], index: 9, kind: input, shape index: {}]   ;;  %s1902_s0 = inlined_call_operand.vmem [shape: f32[2,42,16], index: 0, kind: input, shape index: {}]   ;;  %s1903_s4 = inlined_call_operand.vmem [shape: f32[1,16], index: 4, kind: input, shape index: {}]   ;;  %s1904_s5 = inlined_call_operand.vmem [shape: f32[9,1,16], index: 5, kind: input, shape index: {}]   ;;  %s1905_s6 = inlined_call_operand.vmem [shape: f32[1,16], index: 6, kind: input, shape index: {}]   ;;  %s1906_s8 = inlined_call_operand.vmem [shape: f32[1,32], index: 8, kind: input, shape index: {}]   ;;  %s1907_s10 = inlined_call_operand.vmem [shape: f32[2,24,32], index: 10, kind: output, shape index: {}]  }
   0x1   :  { %v40_v0 = vld [vmem:[%s1897_s3] sm:$0xff]  ;;  %v41_v1 = vld [vmem:[%s1897_s3 + $0x8] sm:$0xff]  ;;  %1323 = vset.pattern.permute.xlu0 %v1325_v3  ;;  %1324 = vset.pattern.permute.xlu1 %v1325_v3  ;;  %v37_v6 = vld [vmem:[%s1899_s2 + $0x10] sm:$0xff]  ;;  %v1328_v18 = vmov 0.0   ;;  %vm325_vm2 = vcmask 1040384   ;;  %vm241_vm3 = vcmask 1046528  }
   0x2   :  { %v58_v2 = vld [vmem:[%s1898_s1] sm:$0xff]  ;;  %v1393_v4 = vpack.c.bf16 %v41_v1, %v40_v0  ;;  %v59_v7 = vld [vmem:[%s1898_s1 + $0x8] sm:$0xff]  ;;  %200 = vperm.xlu1 %1324, %v37_v6   ;;  %v60_v9 = vld [vmem:[%s1898_s1 + $0x10] sm:$0xff]  ;;  %1303 = vmatprep.subr.bf16.mxu1 %v1326_v15  ;;  %vm269_vm4 = vcmask 1045504   ;;  %vm297_vm5 = vcmask 1041408   ;;  %vm365_vm6 = vcmask 1043456  }
   0x3   :  { %1225 = vmatprep.mubr.msk.f32.mxu0 %vm70_vm0, %v58_v2  ;;  %v35_v5 = vld [vmem:[%s1899_s2] sm:$0xff]  ;;  %v36_v8 = vld [vmem:[%s1899_s2 + $0x8] sm:$0xff]  ;;  %v38_v10 = vld [vmem:[%s1899_s2 + $0x18] sm:$0xff]  ;;  %1238 = vmatprep.mubr.msk.f32.mxu1 %vm1327_vm1, %v1328_v18  ;;  %vm393_vm7 = vcmask 1042432   ;;  %vm642_vm8 = vcmask 261120  }
   0x4   :  { %1300 = vmatprep.subr.bf16.mxu0 %v1393_v4  ;;  %190 = vperm.xlu0 %1323, %v35_v5   ;;  %v61_v11 = vld [vmem:[%s1898_s1 + $0x18] sm:$0xff]  ;;  %v39_v12 = vld [vmem:[%s1899_s2 + $0x20] sm:$0xff]  ;;  %v63_v14 = vld [vmem:[%s1898_s1 + $0x28] sm:$0x3] }
   0x5   :  { %1302 = vmatpush3.bf16.msra.mxu0 %v1393_v4  ;;  %v62_v13 = vld [vmem:[%s1898_s1 + $0x20] sm:$0xff]  ;;  %v44_v17 = vld [vmem:[%s1900_s7 + $0x8] sm:$0xff]  ;;  %v543_v28 = vld [vmem:[%s1902_s0 + $0x10] sm:$0xff] }
   0x6   :  { %205 = vperm.xlu1 %1324, %v38_v10   ;;  %v43_v16 = vld [vmem:[%s1900_s7] sm:$0xff]  ;;  %1306 = vmatprep.subr.bf16.mxu0 %v1326_v15  ;;  %v47_v21 = vld [vmem:[%s1901_s9 + $0x8] sm:$0xff]  ;;  %v552_v29 = vrot.slane %v543_v28, 7  ;;  %v544_v30 = vld [vmem:[%s1902_s0 + $0x18] sm:$0xff] }
   0x7   :  { %v1304_v19 = vpack.c.bf16 %v44_v17, %v43_v16  ;;  %v46_v20 = vld [vmem:[%s1901_s9] sm:$0xff]  ;;  %v542_v24 = vld [vmem:[%s1902_s0 + $0x8] sm:$0xff]  ;;  %v554_v31 = vrot.slane %v544_v30, 7 }
   0x8   :  { %1226 = vmatmul.mubr.msk.f32.vlgmr.msra.gmra.mrb[0].mxu0 %vm70_vm0, %v59_v7  ;;  %195 = vperm.xlu0 %1323, %v36_v8   ;;  %v1452_v22 = vpack.c.bf16 %v47_v21, %v46_v20  ;;  %v541_v23 = vld [vmem:[%s1902_s0] sm:$0xff]  ;;  %v550_v26 = vrot.slane %v542_v24, 7 }
   0x9   :  { %1228 = vmatprep.mubr.msk.f32.mxu0 %vm70_vm0, %v60_v9  ;;  %1305 = vmatpush3.bf16.msra.mxu1 %v1304_v19  ;;  %v549_v25 = vrot.slane %v541_v23, 7  ;;  %v555_v33 = vsel %vm325_vm2, %v552_v29, %v554_v31  ;;  %v1485_v35 = vld [vmem:[%s1903_s4] ss:$0 sm:$0xff]  ;;  %v1494_v42 = vld [vmem:[%s1904_s5 + $0x1] ss:$0 sm:$0xff] }
   0xa   :  { %1310 = vmatprep.subr.bf16.mxu1 %v1393_v4  ;;  %1308 = vmatpush3.bf16.msra.mxu0 %v1452_v22  ;;  %v553_v32 = vsel %vm325_vm2, %v550_v26, %v552_v29  ;;  %v1501_v44 = vld [vmem:[%s1904_s5 + $0x2] ss:$0 sm:$0xff]  ;;  %v1506_v45 = vld [vmem:[%s1904_s5 + $0x3] ss:$0 sm:$0xff]  ;;  %v1515_v51 = vld [vmem:[%s1904_s5 + $0x4] ss:$0 sm:$0xff] }
   0xb   :  { %1313 = vmatprep.subr.bf16.mxu0 %v1326_v15  ;;  %v551_v27 = vsel %vm325_vm2, %v549_v25, %v550_v26  ;;  %v1536_v59 = vld [vmem:[%s1904_s5] ss:$0 sm:$0xff]  ;;  %v1572_v21 = vld [vmem:[%s1904_s5 + $0x7] ss:$0 sm:$0xff]  ;;  %v1579_v25 = vld [vmem:[%s1904_s5 + $0x8] ss:$0 sm:$0xff] }
   0xc   :  { %1229 = vmatmul.mubr.msk.f32.gmra.mrb[2].mxu0 %vm70_vm0, %v61_v11  ;;  %210 = vperm.xlu0 %1323, %v39_v12   ;;  %v1554_v12 = vld [vmem:[%s1904_s5 + $0x6] ss:$0 sm:$0xff] }
   0xd   :  { %1231 = vmatprep.mubr.msk.f32.mxu0 %vm70_vm0, %v62_v13 }
  0x10   :  { %1232 = vmatmul.mubr.msk.f32.gmra.mrb[4].mxu0 %vm70_vm0, %v63_v14  ;;  %v1560_v14 = vld [vmem:[%s1904_s5 + $0x5] ss:$0 sm:$0xff] }
  0x11   :  { %1251 = vmatprep.mubr.msk.f32.mxu0 %vm1327_vm1, %v1328_v18 }
  0x14   :  { %1252 = vmatmul.mubr.msk.f32.vlgmr.msra.gmra.mrb[6].mxu0 %vm70_vm0, %v551_v27 }
  0x15   :  { %1254 = vmatprep.mubr.msk.f32.mxu0 %vm1327_vm1, %v1328_v18  ;;  %1315 = vmatpush3.bf16.msra.mxu0 %v1304_v19 }
  0x18   :  { %1255 = vmatmul.mubr.msk.f32.gmra.mrb[8].mxu0 %vm70_vm0, %v553_v32 }
  0x19   :  { %1257 = vmatprep.mubr.msk.f32.mxu0 %vm1327_vm1, %v1328_v18 }
  0x1c   :  { %1258 = vmatmul.mubr.msk.f32.gmra.mrb[10].mxu0 %vm70_vm0, %v555_v33 }
  0x1d   :  { %1277 = vmatprep.mubr.msk.f32.mxu0 %vm1327_vm1, %v1328_v18 }
  0x81   :  { %v1488_v39 = vpop.permute.xlu1 %200 }
  0x83   :  { %v1480_v34 = vpop.permute.xlu0 %190 }
  0x85   :  { %v1527_v57 = vpop.permute.xlu1 %205 }
  0x87   :  { %v1496_v43 = vpop.permute.xlu0 %195 }
  0x8b   :  { %v1586_v29 = vpop.permute.xlu0 %210 }
  0xdb   :  { %v1227_v36 = vpop.f32.mrb[0].mxu0 }
  0xdc   :  { %v161_v37 = vadd.f32 %v1227_v36, %v1485_v35  ;;  %v155_v38 = vpop.f32.mrb[1].mxu0 }
  0xdd   :  { %v156_v40 = vadd.f32 %v1485_v35, %v155_v38 }
  0xde   :  { %v184_v41 = vmax.f32 %v161_v37, 0.0 }
  0xdf   :  { %v183_v46 = vmax.f32 %v156_v40, 0.0  ;;  %v1230_v47 = vpop.f32.mrb[2].mxu0 }
  0xe0   :  { %v1509_v48 = vmul.f32 %v1496_v43, %v184_v41  ;;  %v171_v49 = vadd.f32 %v1230_v47, %v1485_v35  ;;  %v165_v50 = vpop.f32.mrb[3].mxu0 }
  0xe1   :  { %v213_v52 = vmul.f32 %v1480_v34, %v183_v46  ;;  %v166_v53 = vadd.f32 %v1485_v35, %v165_v50 }
  0xe2   :  { %v1521_v54 = vmul.f32 %v1494_v42, %v1509_v48  ;;  %v1525_v55 = vmul.f32 %v1501_v44, %v1509_v48  ;;  %v186_v56 = vmax.f32 %v171_v49, 0.0  ;;  %v1531_v58 = vmul.f32 %v1506_v45, %v1509_v48 }
  0xe3   :  { %v233_v60 = vmul.f32 %v1494_v42, %v213_v52  ;;  %v261_v61 = vmul.f32 %v1501_v44, %v213_v52  ;;  %v289_v62 = vmul.f32 %v1506_v45, %v213_v52  ;;  %v1233_v63 = vpop.f32.mrb[4].mxu0  ;;  %v317_v2 = vmul.f32 %v1515_v51, %v213_v52 }
  0xe4   :  { %v243_v0 = vrot.slane %v1521_v54, 1  ;;  %v271_v1 = vrot.slane %v1525_v55, 2  ;;  %v185_v3 = vmax.f32 %v166_v53, 0.0  ;;  %v175_v5 = vpop.f32.mrb[5].mxu0  ;;  %v1545_v9 = vmul.f32 %v1527_v57, %v186_v56 }
  0xe5   :  { %v242_v6 = vrot.slane %v233_v60, 1  ;;  %v270_v7 = vrot.slane %v261_v61, 2  ;;  %v298_v8 = vrot.slane %v289_v62, 6  ;;  %v224_v10 = vmul.f32 %v1536_v59, %v213_v52 }
  0xe6   :  { %v1549_v11 = vmul.f32 %v1488_v39, %v185_v3  ;;  %v176_v13 = vadd.f32 %v1485_v35, %v175_v5  ;;  %v299_v16 = vrot.slane %v1531_v58, 6  ;;  %v326_v20 = vrot.slane %v317_v2, 7 }
  0xe7   :  { %v244_v17 = vsel %vm241_vm3, %v242_v6, %v243_v0  ;;  %v272_v19 = vsel %vm269_vm4, %v270_v7, %v271_v1  ;;  %v318_v23 = vmul.f32 %v1515_v51, %v1509_v48  ;;  %v359_v27 = vmul.f32 %v1554_v12, %v1545_v9 }
  0xe8   :  { %v252_v24 = vadd.f32 %v244_v17, %v224_v10  ;;  %v187_v26 = vmax.f32 %v176_v13, 0.0  ;;  %v300_v28 = vsel %vm297_vm5, %v298_v8, %v299_v16  ;;  %v345_v31 = vmul.f32 %v1560_v14, %v1509_v48 }
  0xe9   :  { %v327_v30 = vrot.slane %v318_v23, 7  ;;  %v357_v32 = vmul.f32 %v1554_v12, %v1509_v48  ;;  %v358_v33 = vmul.f32 %v1554_v12, %v1549_v11  ;;  %v385_v38 = vmul.f32 %v1572_v21, %v1509_v48 }
  0xea   :  { %v280_v36 = vadd.f32 %v272_v19, %v252_v24  ;;  %v217_v37 = vmul.f32 %v1586_v29, %v187_v26  ;;  %v386_v40 = vmul.f32 %v1572_v21, %v1549_v11  ;;  %v413_v49 = vmul.f32 %v1579_v25, %v1509_v48 }
  0xeb   :  { %v328_v41 = vsel %vm325_vm2, %v326_v20, %v327_v30  ;;  %v366_v46 = vrot.slane %v357_v32, 4  ;;  %v367_v47 = vrot.slane %v358_v33, 4  ;;  %v394_v61 = vrot.slane %v385_v38, 5 }
  0xec   :  { %v360_v50 = vmul.f32 %v1554_v12, %v217_v37  ;;  %v388_v52 = vmul.f32 %v1572_v21, %v217_v37  ;;  %v416_v53 = vmul.f32 %v1579_v25, %v217_v37  ;;  %v308_v56 = vadd.f32 %v300_v28, %v280_v36 }
  0xed   :  { %v368_v60 = vsel %vm365_vm6, %v366_v46, %v367_v47  ;;  %v395_v62 = vrot.slane %v386_v40, 5  ;;  %v414_v63 = vmul.f32 %v1579_v25, %v1549_v11  ;;  %v369_v2 = vrot.slane %v359_v27, 4 }
  0xee   :  { %v371_v3 = vrot.slane %v360_v50, 4  ;;  %v399_v5 = vrot.slane %v388_v52, 5  ;;  %v336_v6 = vadd.f32 %v328_v41, %v308_v56  ;;  %v426_v7 = vrot.slane %v416_v53, 6  ;;  %v1639_v50 = vld [vmem:[%s1905_s6] ss:$0 sm:$0xff] }
  0xef   :  { %v396_v8 = vsel %vm393_vm7, %v394_v61, %v395_v62  ;;  %v421_v10 = vrot.slane %v413_v49, 6  ;;  %v422_v13 = vrot.slane %v414_v63, 6  ;;  %v235_v20 = vmul.f32 %v1494_v42, %v1549_v11 }
  0xf0   :  { %v1610_v17 = vsel %vm365_vm6, %v369_v2, %v371_v3  ;;  %v348_v19 = vadd.f32 %v345_v31, %v336_v6  ;;  %v263_v23 = vmul.f32 %v1501_v44, %v1549_v11  ;;  %v225_v26 = vmul.f32 %v1536_v59, %v1509_v48 }
  0xf1   :  { %v423_v24 = vsel %vm297_vm5, %v421_v10, %v422_v13  ;;  %v291_v27 = vmul.f32 %v1506_v45, %v1549_v11  ;;  %v319_v28 = vmul.f32 %v1515_v51, %v1549_v11  ;;  %v245_v33 = vrot.slane %v235_v20, 1 }
  0xf2   :  { %v376_v32 = vadd.f32 %v368_v60, %v348_v19  ;;  %v273_v31 = vrot.slane %v263_v23, 2  ;;  %v370_v36 = vsel %vm365_vm6, %v367_v47, %v369_v2  ;;  %v387_v40 = vmul.f32 %v1572_v21, %v1545_v9 }
  0xf3   :  { %v301_v37 = vrot.slane %v291_v27, 6  ;;  %v329_v38 = vrot.slane %v319_v28, 7  ;;  %v415_v41 = vmul.f32 %v1579_v25, %v1545_v9  ;;  %v246_v46 = vsel %vm241_vm3, %v243_v0, %v245_v33 }
  0xf4   :  { %v404_v48 = vadd.f32 %v396_v8, %v376_v32  ;;  %v274_v49 = vsel %vm269_vm4, %v271_v1, %v273_v31  ;;  %v346_v47 = vmul.f32 %v1560_v14, %v1549_v11  ;;  %v253_v52 = vadd.f32 %v246_v46, %v225_v26 }
  0xf5   :  { %v302_v53 = vsel %vm297_vm5, %v299_v16, %v301_v37  ;;  %v330_v54 = vsel %vm325_vm2, %v327_v30, %v329_v38  ;;  %v397_v0 = vrot.slane %v387_v40, 5  ;;  %v424_v55 = vrot.slane %v415_v41, 6 }
  0xf6   :  { %v431_v56 = vadd.f32 %v423_v24, %v404_v48  ;;  %v236_v1 = vmul.f32 %v1494_v42, %v1545_v9  ;;  %v264_v60 = vmul.f32 %v1501_v44, %v1545_v9  ;;  %v281_v61 = vadd.f32 %v274_v49, %v253_v52  ;;  %v1164_v52 = vld [vmem:[%s1898_s1 + $0x50] sm:$0xff] }
  0xf7   :  { %v398_v63 = vsel %vm393_vm7, %v395_v62, %v397_v0  ;;  %v292_v2 = vmul.f32 %v1506_v45, %v1545_v9  ;;  %v320_v58 = vmul.f32 %v1515_v51, %v1545_v9  ;;  %v425_v30 = vsel %vm297_vm5, %v422_v13, %v424_v55 }
  0xf8   :  { %v440_v16 = vadd.f32 %v1639_v50, %v431_v56  ;;  %v247_v3 = vrot.slane %v236_v1, 1  ;;  %v275_v6 = vrot.slane %v264_v60, 2  ;;  %v309_v8 = vadd.f32 %v302_v53, %v281_v61  ;;  %v1165_v53 = vld [vmem:[%s1898_s1 + $0x58] sm:$0x3]  ;;  %v1175_v60 = vld [vmem:[%s1902_s0 + $0x30] sm:$0xff] }
  0xf9   :  { %v226_v10 = vmul.f32 %v1536_v59, %v1549_v11  ;;  %v303_v19 = vrot.slane %v292_v2, 6  ;;  %v331_v20 = vrot.slane %v320_v58, 7  ;;  %v400_v24 = vsel %vm393_vm7, %v397_v0, %v399_v5  ;;  %v1176_v61 = vld [vmem:[%s1902_s0 + $0x38] sm:$0xff] }
  0xfa   :  { %1239 = vmatmul.mubr.msk.f32.vlgmr.msra.gmra.mrb[0].mxu1 %vm70_vm0, %v440_v16  ;;  %v248_v62 = vsel %vm241_vm3, %v245_v33, %v247_v3  ;;  %v276_v23 = vsel %vm269_vm4, %v273_v31, %v275_v6  ;;  %v427_v26 = vsel %vm297_vm5, %v424_v55, %v426_v7  ;;  %v337_v13 = vadd.f32 %v330_v54, %v309_v8  ;;  %v628_v54 = vpop.f32.mrb[6].mxu0  ;;  %v1177_v16 = vld [vmem:[%s1902_s0 + $0x40] sm:$0xff]  ;;  %v1178_v6 = vld [vmem:[%s1902_s0 + $0x48] sm:$0xff] }
  0xfb   :  { %1312 = vmatpush3.bf16.msra.mxu1 %v1393_v4  ;;  %1241 = vmatprep.mubr.msk.f32.mxu1 %vm1327_vm1, %v1328_v18  ;;  %v254_v27 = vadd.f32 %v248_v62, %v226_v10  ;;  %v304_v11 = vsel %vm297_vm5, %v301_v37, %v303_v19  ;;  %v332_v28 = vsel %vm325_vm2, %v329_v38, %v331_v20  ;;  %v1160_v38 = vld [vmem:[%s1898_s1 + $0x30] sm:$0xff]  ;;  %v1253_v0 = vpop.f32.mrb[7].mxu0  ;;  %v1036_v2 = vrot.slane %v1176_v61, 7  ;;  %v1730_v19 = vld [vmem:[%s1906_s8] ss:$0 sm:$0xff] }
  0xfc   :  { %1316 = vmatprep.subr.bf16.mxu1 %v1326_v15  ;;  %v349_v32 = vadd.f32 %v346_v47, %v337_v13  ;;  %v347_v4 = vmul.f32 %v1560_v14, %v1545_v9  ;;  %v1161_v9 = vld [vmem:[%s1898_s1 + $0x38] sm:$0xff]  ;;  %v1163_v47 = vld [vmem:[%s1898_s1 + $0x48] sm:$0xff]  ;;  %v1040_v8 = vrot.slane %v1178_v6, 7 }
  0xfd   :  { %v282_v33 = vadd.f32 %v276_v23, %v254_v27 }
  0xfe   :  { %v377_v31 = vadd.f32 %v370_v36, %v349_v32 }
  0xff   :  { %v310_v40 = vadd.f32 %v304_v11, %v282_v33 }
 0x100   :  { %v405_v5 = vadd.f32 %v398_v63, %v377_v31  ;;  %v1035_v63 = vrot.slane %v1175_v60, 7 }
 0x101   :  { %v338_v41 = vadd.f32 %v332_v28, %v310_v40 }
 0x102   :  { %v432_v7 = vadd.f32 %v425_v30, %v405_v5  ;;  %v1037_v58 = vsel %vm325_vm2, %v1035_v63, %v1036_v2  ;;  %v1038_v30 = vrot.slane %v1177_v16, 7 }
 0x103   :  { %v350_v48 = vadd.f32 %v347_v4, %v338_v41 }
 0x104   :  { %v441_v46 = vadd.f32 %v1639_v50, %v432_v7  ;;  %v1039_v3 = vsel %vm325_vm2, %v1036_v2, %v1038_v30  ;;  %v1041_v10 = vsel %vm325_vm2, %v1038_v30, %v1040_v8 }
 0x105   :  { %v378_v49 = vadd.f32 %v1610_v17, %v350_v48  ;;  %v1162_v17 = vld [vmem:[%s1898_s1 + $0x40] sm:$0xff] }
 0x106   :  { %1242 = vmatmul.mubr.msk.f32.gmra.mrb[2].mxu1 %vm70_vm0, %v441_v46 }
 0x107   :  { %v406_v37 = vadd.f32 %v400_v24, %v378_v49  ;;  %1244 = vmatprep.mubr.msk.f32.mxu1 %vm1327_vm1, %v1328_v18 }
 0x109   :  { %v433_v15 = vadd.f32 %v427_v26, %v406_v37 }
 0x10b   :  { %v442_v36 = vadd.f32 %v1639_v50, %v433_v15 }
 0x10d   :  { %1245 = vmatmul.mubr.msk.f32.gmra.mrb[4].mxu1 %vm70_vm0, %v442_v36 }
 0x10e   :  { %1264 = vmatprep.mubr.msk.f32.mxu1 %vm70_vm0, %v1160_v38 }
 0x111   :  { %1265 = vmatmul.mubr.msk.f32.vlgmr.msra.gmra.mrb[6].mxu1 %vm70_vm0, %v1161_v9 }
 0x112   :  { %1267 = vmatprep.mubr.msk.f32.mxu1 %vm70_vm0, %v1162_v17  ;;  %1318 = vmatpush3.bf16.msra.mxu1 %v1452_v22  ;;  %v633_v22 = vpop.f32.mrb[8].mxu0 }
 0x113   :  { %v1256_v56 = vpop.f32.mrb[9].mxu0 }
 0x114   :  { %v638_v55 = vpop.f32.mrb[10].mxu0 }
 0x115   :  { %1268 = vmatmul.mubr.msk.f32.gmra.mrb[8].mxu1 %vm70_vm0, %v1163_v47  ;;  %v1259_v1 = vpop.f32.mrb[11].mxu0 }
 0x116   :  { %1270 = vmatprep.mubr.msk.f32.mxu1 %vm70_vm0, %v1164_v52 }
 0x119   :  { %1271 = vmatmul.mubr.msk.f32.gmra.mrb[10].mxu1 %vm70_vm0, %v1165_v53 }
 0x11a   :  { %1290 = vmatprep.mubr.msk.f32.mxu1 %vm1327_vm1, %v1328_v18 }
 0x11d   :  { %1291 = vmatmul.mubr.msk.f32.vlgmr.msra.gmra.mrb[12].mxu1 %vm70_vm0, %v1037_v58 }
 0x11e   :  { %1293 = vmatprep.mubr.msk.f32.mxu1 %vm1327_vm1, %v1328_v18 }
 0x121   :  { %1294 = vmatmul.mubr.msk.f32.gmra.mrb[14].mxu1 %vm70_vm0, %v1039_v3 }
 0x122   :  { %1296 = vmatprep.mubr.msk.f32.mxu1 %vm1327_vm1, %v1328_v18 }
 0x125   :  { %1297 = vmatmul.mubr.msk.f32.gmra.mrb[16].mxu1 %vm70_vm0, %v1041_v10 }
 0x1cd   :  { %v524_v20 = vpop.f32.mrb[0].mxu1 }
 0x1ce   :  { %v525_v62 = vadd.f32 %v1730_v19, %v524_v20  ;;  %v1240_v23 = vpop.f32.mrb[1].mxu1 }
 0x1d0   :  { %v538_v24 = vmax.f32 %v525_v62, 0.0 }
 0x1d2   :  { %v629_v26 = vadd.f32 %v628_v54, %v538_v24 }
 0x1d4   :  { %643 = vst.msk [vmem:[%s1907_s10] sm:$0xff] %vm642_vm8, %v629_v26 }
 0x1d9   :  { %v529_v13 = vpop.f32.mrb[2].mxu1 }
 0x1da   :  { %v530_v27 = vadd.f32 %v1730_v19, %v529_v13  ;;  %v1243_v11 = vpop.f32.mrb[3].mxu1 }
 0x1dc   :  { %v539_v28 = vmax.f32 %v530_v27, 0.0 }
 0x1de   :  { %v634_v32 = vadd.f32 %v633_v22, %v539_v28 }
 0x1e0   :  { %v534_v33 = vpop.f32.mrb[4].mxu1  ;;  %644 = vst.msk [vmem:[%s1907_s10 + $0x8] sm:$0xff] %vm642_vm8, %v634_v32 }
 0x1e1   :  { %v535_v31 = vadd.f32 %v1730_v19, %v534_v33  ;;  %v1246_v40 = vpop.f32.mrb[5].mxu1 }
 0x1e3   :  { %v540_v5 = vmax.f32 %v535_v31, 0.0 }
 0x1e4   :  { %v1266_v41 = vpop.f32.mrb[6].mxu1 }
 0x1e5   :  { %v639_v4 = vadd.f32 %v638_v55, %v540_v5  ;;  %v743_v7 = vadd.f32 %v1266_v41, %v1485_v35  ;;  %v737_v48 = vpop.f32.mrb[7].mxu1 }
 0x1e6   :  { %v738_v46 = vadd.f32 %v1485_v35, %v737_v48 }
 0x1e7   :  { %645 = vst.msk [vmem:[%s1907_s10 + $0x10] sm:$0xff] %vm642_vm8, %v639_v4  ;;  %v766_v49 = vmax.f32 %v743_v7, 0.0 }
 0x1e8   :  { %v765_v37 = vmax.f32 %v738_v46, 0.0  ;;  %v1269_v15 = vpop.f32.mrb[8].mxu1 }
 0x1e9   :  { %v1750_v36 = vmul.f32 %v766_v49, %v1496_v43  ;;  %v747_v38 = vpop.f32.mrb[9].mxu1  ;;  %v753_v17 = vadd.f32 %v1269_v15, %v1485_v35 }
 0x1ea   :  { %v770_v9 = vmul.f32 %v765_v37, %v1480_v34  ;;  %v748_v47 = vadd.f32 %v1485_v35, %v747_v38 }
 0x1eb   :  { %v1757_v52 = vmul.f32 %v1494_v42, %v1750_v36  ;;  %v1761_v53 = vmul.f32 %v1501_v44, %v1750_v36  ;;  %v1765_v54 = vmul.f32 %v1506_v45, %v1750_v36  ;;  %v1769_v43 = vmul.f32 %v1515_v51, %v1750_v36 }
 0x1ec   :  { %v775_v34 = vmul.f32 %v1536_v59, %v770_v9  ;;  %v778_v0 = vmul.f32 %v1494_v42, %v770_v9  ;;  %v799_v22 = vmul.f32 %v1501_v44, %v770_v9  ;;  %v820_v56 = vmul.f32 %v1506_v45, %v770_v9  ;;  %v1272_v55 = vpop.f32.mrb[10].mxu1 }
 0x1ed   :  { %v787_v1 = vrot.slane %v1757_v52, 1  ;;  %v808_v60 = vrot.slane %v1761_v53, 2  ;;  %v829_v61 = vrot.slane %v1765_v54, 6  ;;  %v841_v63 = vmul.f32 %v1515_v51, %v770_v9  ;;  %v757_v2 = vpop.f32.mrb[11].mxu1 }
 0x1ee   :  { %v786_v58 = vrot.slane %v778_v0, 1  ;;  %v807_v16 = vrot.slane %v799_v22, 2  ;;  %v828_v30 = vrot.slane %v820_v56, 6  ;;  %v850_v3 = vrot.slane %v1769_v43, 7 }
 0x1ef   :  { %v849_v6 = vrot.slane %v841_v63, 7  ;;  %v862_v8 = vmul.f32 %v1560_v14, %v1750_v36  ;;  %v768_v10 = vmax.f32 %v753_v17, 0.0  ;;  %v767_v20 = vmax.f32 %v748_v47, 0.0 }
 0x1f0   :  { %v788_v62 = vsel %vm241_vm3, %v786_v58, %v787_v1  ;;  %v809_v23 = vsel %vm269_vm4, %v807_v16, %v808_v60  ;;  %v830_v24 = vsel %vm297_vm5, %v828_v30, %v829_v61  ;;  %v758_v26 = vadd.f32 %v1485_v35, %v757_v2 }
 0x1f1   :  { %v796_v13 = vadd.f32 %v788_v62, %v775_v34  ;;  %v851_v27 = vsel %vm325_vm2, %v849_v6, %v850_v3  ;;  %v1796_v11 = vmul.f32 %v768_v10, %v1527_v57  ;;  %v1799_v28 = vmul.f32 %v767_v20, %v1488_v39 }
 0x1f2   :  { %v769_v32 = vmax.f32 %v758_v26, 0.0  ;;  %v868_v33 = vmul.f32 %v1554_v12, %v1750_v36  ;;  %v889_v31 = vmul.f32 %v1572_v21, %v1750_v36  ;;  %v910_v35 = vmul.f32 %v1579_v25, %v1750_v36 }
 0x1f3   :  { %v817_v40 = vadd.f32 %v809_v23, %v796_v13  ;;  %v870_v5 = vmul.f32 %v1554_v12, %v1796_v11  ;;  %v869_v57 = vmul.f32 %v1554_v12, %v1799_v28  ;;  %v890_v39 = vmul.f32 %v1572_v21, %v1799_v28 }
 0x1f4   :  { %v774_v41 = vmul.f32 %v769_v32, %v1586_v29  ;;  %v876_v4 = vrot.slane %v868_v33, 4  ;;  %v897_v7 = vrot.slane %v889_v31, 5  ;;  %v911_v48 = vmul.f32 %v1579_v25, %v1799_v28 }
 0x1f5   :  { %v838_v46 = vadd.f32 %v830_v24, %v817_v40  ;;  %v879_v49 = vrot.slane %v870_v5, 4  ;;  %v877_v37 = vrot.slane %v869_v57, 4  ;;  %v898_v15 = vrot.slane %v890_v39, 5 }
 0x1f6   :  { %v871_v38 = vmul.f32 %v1554_v12, %v774_v41  ;;  %v892_v9 = vmul.f32 %v1572_v21, %v774_v41  ;;  %v913_v17 = vmul.f32 %v1579_v25, %v774_v41  ;;  %v918_v47 = vrot.slane %v910_v35, 6 }
 0x1f7   :  { %v859_v34 = vadd.f32 %v851_v27, %v838_v46  ;;  %v878_v0 = vsel %vm365_vm6, %v876_v4, %v877_v37  ;;  %v899_v29 = vsel %vm393_vm7, %v897_v7, %v898_v15  ;;  %v919_v22 = vrot.slane %v911_v48, 6 }
 0x1f8   :  { %v881_v56 = vrot.slane %v871_v38, 4  ;;  %v902_v55 = vrot.slane %v892_v9, 5  ;;  %v923_v63 = vrot.slane %v913_v17, 6  ;;  %v780_v12 = vmul.f32 %v1494_v42, %v1799_v28 }
 0x1f9   :  { %v865_v2 = vadd.f32 %v862_v8, %v859_v34  ;;  %v920_v58 = vsel %vm297_vm5, %v918_v47, %v919_v22  ;;  %v801_v16 = vmul.f32 %v1501_v44, %v1799_v28  ;;  %v776_v6 = vmul.f32 %v1536_v59, %v1750_v36 }
 0x1fa   :  { %v882_v30 = vsel %vm365_vm6, %v879_v49, %v881_v56  ;;  %v822_v10 = vmul.f32 %v1506_v45, %v1799_v28  ;;  %v843_v20 = vmul.f32 %v1515_v51, %v1799_v28  ;;  %v789_v62 = vrot.slane %v780_v12, 1 }
 0x1fb   :  { %v886_v8 = vadd.f32 %v878_v0, %v865_v2  ;;  %v810_v23 = vrot.slane %v801_v16, 2  ;;  %v880_v24 = vsel %vm365_vm6, %v877_v37, %v879_v49  ;;  %v891_v27 = vmul.f32 %v1572_v21, %v1796_v11  ;;  %v1114_v16 = vpop.f32.mrb[12].mxu1 }
 0x1fc   :  { %v831_v26 = vrot.slane %v822_v10, 6  ;;  %v852_v13 = vrot.slane %v843_v20, 7  ;;  %v912_v32 = vmul.f32 %v1579_v25, %v1796_v11  ;;  %v790_v33 = vsel %vm241_vm3, %v787_v1, %v789_v62 }
 0x1fd   :  { %v907_v36 = vadd.f32 %v899_v29, %v886_v8  ;;  %v811_v31 = vsel %vm269_vm4, %v808_v60, %v810_v23  ;;  %v863_v35 = vmul.f32 %v1560_v14, %v1799_v28  ;;  %v797_v40 = vadd.f32 %v790_v33, %v776_v6  ;;  %v1292_v6 = vpop.f32.mrb[13].mxu1 }
 0x1fe   :  { %v832_v21 = vsel %vm297_vm5, %v829_v61, %v831_v26  ;;  %v853_v25 = vsel %vm325_vm2, %v850_v3, %v852_v13  ;;  %v900_v5 = vrot.slane %v891_v27, 5  ;;  %v921_v57 = vrot.slane %v912_v32, 6  ;;  %v1119_v10 = vpop.f32.mrb[14].mxu1 }
 0x1ff   :  { %v928_v52 = vadd.f32 %v920_v58, %v907_v36  ;;  %v781_v53 = vmul.f32 %v1494_v42, %v1796_v11  ;;  %v802_v1 = vmul.f32 %v1501_v44, %v1796_v11  ;;  %v818_v60 = vadd.f32 %v811_v31, %v797_v40 }
 0x200   :  { %v901_v39 = vsel %vm393_vm7, %v898_v15, %v900_v5  ;;  %v823_v54 = vmul.f32 %v1506_v45, %v1796_v11  ;;  %v844_v43 = vmul.f32 %v1515_v51, %v1796_v11  ;;  %v922_v3 = vsel %vm297_vm5, %v919_v22, %v921_v57 }
 0x201   :  { %v931_v61 = vadd.f32 %v1639_v50, %v928_v52  ;;  %v791_v41 = vrot.slane %v781_v53, 1  ;;  %v812_v4 = vrot.slane %v802_v1, 2  ;;  %v839_v7 = vadd.f32 %v832_v21, %v818_v60 }
 0x202   :  { %v777_v42 = vmul.f32 %v1536_v59, %v1799_v28  ;;  %v833_v44 = vrot.slane %v823_v54, 6  ;;  %v854_v48 = vrot.slane %v844_v43, 7  ;;  %v903_v51 = vsel %vm393_vm7, %v900_v5, %v902_v55 }
 0x203   :  { %1278 = vmatmul.mubr.msk.f32.vlgmr.msra.gmra.mrb[12].mxu0 %vm70_vm0, %v931_v61  ;;  %v792_v46 = vsel %vm241_vm3, %v789_v62, %v791_v41  ;;  %v813_v45 = vsel %vm269_vm4, %v810_v23, %v812_v4  ;;  %v924_v49 = vsel %vm297_vm5, %v921_v57, %v923_v63  ;;  %v860_v37 = vadd.f32 %v853_v25, %v839_v7 }
 0x204   :  { %1280 = vmatprep.mubr.msk.f32.mxu0 %vm1327_vm1, %v1328_v18  ;;  %v798_v15 = vadd.f32 %v792_v46, %v777_v42  ;;  %v834_v38 = vsel %vm297_vm5, %v831_v26, %v833_v44  ;;  %v855_v59 = vsel %vm325_vm2, %v852_v13, %v854_v48  ;;  %v864_v29 = vmul.f32 %v1560_v14, %v1796_v11  ;;  %v1295_v14 = vpop.f32.mrb[15].mxu1 }
 0x205   :  { %v866_v28 = vadd.f32 %v863_v35, %v860_v37  ;;  %v1124_v11 = vpop.f32.mrb[16].mxu1 }
 0x206   :  { %v819_v9 = vadd.f32 %v813_v45, %v798_v15  ;;  %v1298_v20 = vpop.f32.mrb[17].mxu1 }
 0x207   :  { %v887_v17 = vadd.f32 %v880_v24, %v866_v28 }
 0x208   :  { %v840_v47 = vadd.f32 %v834_v38, %v819_v9 }
 0x209   :  { %v908_v34 = vadd.f32 %v901_v39, %v887_v17 }
 0x20a   :  { %v861_v0 = vadd.f32 %v855_v59, %v840_v47 }
 0x20b   :  { %v929_v22 = vadd.f32 %v922_v3, %v908_v34 }
 0x20c   :  { %v867_v56 = vadd.f32 %v864_v29, %v861_v0 }
 0x20d   :  { %v932_v55 = vadd.f32 %v1639_v50, %v929_v22 }
 0x20e   :  { %v888_v63 = vadd.f32 %v882_v30, %v867_v56 }
 0x20f   :  { %1281 = vmatmul.mubr.msk.f32.gmra.mrb[14].mxu0 %vm70_vm0, %v932_v55 }
 0x210   :  { %v909_v2 = vadd.f32 %v903_v51, %v888_v63  ;;  %1283 = vmatprep.mubr.msk.f32.mxu0 %vm1327_vm1, %v1328_v18 }
 0x212   :  { %v930_v58 = vadd.f32 %v924_v49, %v909_v2 }
 0x214   :  { %v933_v12 = vadd.f32 %v1639_v50, %v930_v58 }
 0x216   :  { %1284 = vmatmul.mubr.msk.f32.gmra.mrb[16].mxu0 %vm70_vm0, %v933_v12 }
 0x2d6   :  { %v1009_v8 = vpop.f32.mrb[12].mxu0 }
 0x2d7   :  { %v1010_v30 = vadd.f32 %v1730_v19, %v1009_v8  ;;  %v1279_v62 = vpop.f32.mrb[13].mxu0 }
 0x2d9   :  { %v1023_v23 = vmax.f32 %v1010_v30, 0.0 }
 0x2db   :  { %v1115_v24 = vadd.f32 %v1114_v16, %v1023_v23 }
 0x2dd   :  { %1182 = vst.msk [vmem:[%s1907_s10 + $0x18] sm:$0xff] %vm642_vm8, %v1115_v24 }
 0x2e2   :  { %v1014_v18 = vpop.f32.mrb[14].mxu0 }
 0x2e3   :  { %v1015_v50 = vadd.f32 %v1730_v19, %v1014_v18  ;;  %v1282_v26 = vpop.f32.mrb[15].mxu0 }
 0x2e5   :  { %v1024_v13 = vmax.f32 %v1015_v50, 0.0 }
 0x2e7   :  { %v1120_v27 = vadd.f32 %v1119_v10, %v1024_v13 }
 0x2e9   :  { %v1019_v32 = vpop.f32.mrb[16].mxu0  ;;  %1183 = vst.msk [vmem:[%s1907_s10 + $0x20] sm:$0xff] %vm642_vm8, %v1120_v27 }
 0x2ea   :  { %v1020_v36 = vadd.f32 %v1730_v19, %v1019_v32  ;;  %v1285_v33 = vpop.f32.mrb[17].mxu0 }
 0x2ec   :  { %v1025_v31 = vmax.f32 %v1020_v36, 0.0 }
 0x2ee   :  { %v1125_v35 = vadd.f32 %v1124_v11, %v1025_v31 }
 0x2f0   :  { %1184 = vst.msk [vmem:[%s1907_s10 + $0x28] sm:$0xff] %vm642_vm8, %v1125_v35 }

// kernel: shufflenet_forward.9
= control target key start
LH: loop header
LB: loop body
LE: loop exit
PB: predicated region body
PF: predicated region fallthrough
CT: control target
= control target key end

     0   :  { %vm95_vm0 = vcmask 130048   ;;  %vm660_vm1 = vcmask 1046528   ;;  %vm804_vm2 = vcmask 1042432   ;;  %v3582_v41 = vmov 0.0|0.0   ;;  %s3565_s2 = inlined_call_operand.vmem [shape: f32[16,16], index: 2, kind: input, shape index: {}]   ;;  %s3566_s0 = inlined_call_operand.vmem [shape: f32[2,4,30,16], index: 0, kind: input, shape index: {}]   ;;  %s3567_s8 = inlined_call_operand.vmem [shape: f32[9,1,16], index: 8, kind: input, shape index: {}]   ;;  %s3568_s1 = inlined_call_operand.vmem [shape: f32[4,30,1], index: 1, kind: input, shape index: {}]   ;;  %s3569_s10 = inlined_call_operand.vmem [shape: f32[16,32], index: 10, kind: input, shape index: {}]   ;;  %s3570_s9 = inlined_call_operand.vmem [shape: f32[1,16], index: 9, kind: input, shape index: {}]   ;;  %s3571_s6 = inlined_call_operand.vmem [shape: f32[16,32], index: 6, kind: input, shape index: {}]   ;;  %s3572_s3 = inlined_call_operand.vmem [shape: f32[1,16], index: 3, kind: input, shape index: {}]   ;;  %s3573_s4 = inlined_call_operand.vmem [shape: f32[9,1,16], index: 4, kind: input, shape index: {}]   ;;  %s3574_s5 = inlined_call_operand.vmem [shape: f32[1,16], index: 5, kind: input, shape index: {}]   ;;  %s3575_s11 = inlined_call_operand.vmem [shape: f32[1,32], index: 11, kind: input, shape index: {}]   ;;  %s3576_s7 = inlined_call_operand.vmem [shape: f32[1,32], index: 7, kind: input, shape index: {}]   ;;  %s3577_s12 = inlined_call_operand.vmem [shape: f32[2,20,32], index: 12, kind: output, shape index: {}]  }
   0x1   :  { %v41_v0 = vld [vmem:[%s3565_s2] sm:$0xff]  ;;  %v42_v1 = vld [vmem:[%s3565_s2 + $0x8] sm:$0xff]  ;;  %v72_v17 = vld [vmem:[%s3566_s0 + $0x10] sm:$0xff]  ;;  %vm913_vm3 = vcmask 1041408   ;;  %v2492_v59 = vmov 0   ;;  %vm2493_vm4 = vmmov 0  }
   0x2   :  { %v2569_v2 = vld [vmem:[%s3567_s8 + $0x2] ss:$0 sm:$0xff]  ;;  %v2571_v3 = vpack.c.bf16 %v42_v1, %v41_v0  ;;  %v2576_v4 = vld [vmem:[%s3567_s8 + $0x6] ss:$0 sm:$0xff]  ;;  %v2584_v6 = vld [vmem:[%s3567_s8 + $0x8] ss:$0 sm:$0xff]  ;;  %2487 = vset.pattern.permute.xlu0 %v2492_v59  ;;  %2488 = vset.pattern.permute.xlu1 %v2492_v59 }
   0x3   :  { %v70_v5 = vld [vmem:[%s3566_s0] sm:$0xff]  ;;  %v71_v12 = vld [vmem:[%s3566_s0 + $0x8] sm:$0xff]  ;;  %v2123_v21 = vld [vmem:[%s3566_s0 + $0x30] sm:$0xff]  ;;  %v2649_v29 = vmul.f32 %v2569_v2, %v72_v17  ;;  %v2668_v38 = vmul.f32 %v2576_v4, %v72_v17  ;;  %v2720_v56 = vmul.f32 %v2584_v6, %v72_v17  ;;  %v3583_v59 = vmov 0.0  }
   0x4   :  { %2311 = vmatprep.mubr.msk.f32.mxu0 %vm95_vm0, %v70_v5  ;;  %v2590_v7 = vld [vmem:[%s3567_s8] ss:$0 sm:$0xff]  ;;  %v2595_v8 = vld [vmem:[%s3567_s8 + $0x1] ss:$0 sm:$0xff]  ;;  %2440 = vmatprep.subr.bf16.mxu0 %v2571_v3  ;;  %v645_v9 = vmul.f32 %v2569_v2, %v70_v5  ;;  %v2603_v10 = vld [vmem:[%s3567_s8 + $0x7] ss:$0 sm:$0xff]  ;;  %v646_v16 = vmul.f32 %v2569_v2, %v71_v12  ;;  %v2624_v18 = vmul.f32 %v2576_v4, %v70_v5 }
   0x5   :  { %2444 = vmatprep.subr.bf16.mxu1 %v2571_v3  ;;  %v2121_v11 = vld [vmem:[%s3566_s0 + $0x20] sm:$0xff]  ;;  %2442 = vmatpush3.bf16.msra.mxu0 %v2571_v3  ;;  %v603_v13 = vmul.f32 %v2590_v7, %v70_v5  ;;  %v2122_v15 = vld [vmem:[%s3566_s0 + $0x28] sm:$0xff]  ;;  %v2627_v19 = vmul.f32 %v2584_v6, %v70_v5  ;;  %v2638_v23 = vmul.f32 %v2576_v4, %v71_v12  ;;  %v73_v30 = vld [vmem:[%s3566_s0 + $0x18] sm:$0x3f]  ;;  %v664_v37 = vrot.slane %v2649_v29, 1 }
   0x6   :  { %2446 = vmatpush3.bf16.msra.mxu1 %v2571_v3  ;;  %v621_v14 = vmul.f32 %v2595_v8, %v2121_v11  ;;  %2321 = vmatprep.mubr.msk.f32.mxu1 %vm95_vm0, %v2121_v11  ;;  %v2630_v20 = vmul.f32 %v2603_v10, %v2121_v11  ;;  %v661_v22 = vrot.slane %v645_v9, 1  ;;  %v604_v24 = vmul.f32 %v2590_v7, %v71_v12  ;;  %v2124_v31 = vld [vmem:[%s3566_s0 + $0x38] sm:$0x3f]  ;;  %v2674_v39 = vld [vmem:[%s3567_s8 + $0x3] ss:$0 sm:$0xff]  ;;  %v2126_v53 = vld [vmem:[%s3566_s0 + $0x48] sm:$0xff] }
   0x7   :  { %2448 = vmatprep.subr.bf16.mxu0 %v2571_v3  ;;  %v622_v25 = vmul.f32 %v2595_v8, %v2122_v15  ;;  %v662_v27 = vrot.slane %v646_v16, 1  ;;  %v2644_v28 = vmul.f32 %v2584_v6, %v71_v12  ;;  %2452 = vmatprep.subr.bf16.mxu1 %v2571_v3  ;;  %v2658_v32 = vmul.f32 %v2603_v10, %v2122_v15  ;;  %v2125_v40 = vld [vmem:[%s3566_s0 + $0x40] sm:$0xff]  ;;  %v2130_v0 = vld [vmem:[%s3566_s0 + $0x68] sm:$0xff]  ;;  %v2131_v1 = vld [vmem:[%s3566_s0 + $0x70] sm:$0xff] }
   0x8   :  { %2312 = vmatmul.mubr.msk.f32.vlgmr.msra.gmra.mrb[0].mxu0 %vm95_vm0, %v71_v12  ;;  %v633_v26 = vadd.f32 %v621_v14, %v603_v13  ;;  %v605_v33 = vmul.f32 %v2590_v7, %v72_v17  ;;  %v623_v34 = vmul.f32 %v2595_v8, %v2123_v21  ;;  %v805_v35 = vrot.slane %v2624_v18, 5  ;;  %v2687_v45 = vld [vmem:[%s3567_s8 + $0x5] ss:$0 sm:$0xff]  ;;  %v2707_v52 = vld [vmem:[%s3567_s8 + $0x4] ss:$0 sm:$0xff]  ;;  %v2127_v13 = vld [vmem:[%s3566_s0 + $0x50] sm:$0xff] }
   0x9   :  { %2322 = vmatmul.mubr.msk.f32.vlgmr.msra.gmra.mrb[0].mxu1 %vm95_vm0, %v2122_v15  ;;  %2450 = vmatpush3.bf16.msra.mxu0 %v2571_v3  ;;  %v914_v36 = vrot.slane %v2627_v19, 6  ;;  %v859_v42 = vrot.slane %v2630_v20, 5  ;;  %v806_v43 = vrot.slane %v2638_v23, 5  ;;  %v634_v44 = vadd.f32 %v622_v25, %v604_v24  ;;  %v2129_v46 = vld [vmem:[%s3566_s0 + $0x60] sm:$0xff]  ;;  %v2748_v14 = vld [vmem:[%s3568_s1 + $0x8] sm:$0xff]  ;;  %v2790_v18 = vld [vmem:[%s3568_s1 + $0x10] sm:$0xff] }
   0xa   :  { %2314 = vmatprep.mubr.msk.f32.mxu0 %vm95_vm0, %v72_v17  ;;  %2324 = vmatprep.mubr.msk.f32.mxu1 %vm95_vm0, %v2123_v21  ;;  %v2695_v47 = vld [vmem:[%s3568_s1] sm:$0xff]  ;;  %v915_v48 = vrot.slane %v2644_v28, 6  ;;  %v665_v49 = vsel %vm660_vm1, %v662_v27, %v664_v37  ;;  %v2700_v50 = vmul.f32 %v2576_v4, %v73_v30  ;;  %v663_v51 = vsel %vm660_vm1, %v661_v22, %v662_v27  ;;  %v2128_v22 = vld [vmem:[%s3566_s0 + $0x58] sm:$0x3f]  ;;  %v48_v25 = vld [vmem:[%s3569_s10 + $0x8] sm:$0xff] }
   0xb   :  { %2454 = vmatpush3.bf16.msra.mxu1 %v2571_v3  ;;  %2455 = vmatprep.subr.bf16.mxu0 %v3582_v41  ;;  %v2716_v54 = vld [vmem:[%s3568_s1 + $0x20] sm:$0xff]  ;;  %v860_v55 = vrot.slane %v2658_v32, 5  ;;  %v635_v57 = vadd.f32 %v623_v34, %v605_v33  ;;  %v669_v58 = vadd.f32 %v663_v51, %v633_v26  ;;  %v808_v60 = vrot.slane %v2668_v38, 5 }
   0xc   :  { %2315 = vmatmul.mubr.msk.f32.gmra.mrb[2].mxu0 %vm95_vm0, %v73_v30  ;;  %v2724_v61 = vmul.f32 %v2603_v10, %v2123_v21  ;;  %v692_v62 = vmul.f32 %v2674_v39, %v2125_v40  ;;  %v740_v63 = vmul.f32 %v2687_v45, %v2125_v40  ;;  %203 = vperm.xlu0 %2487, %v2695_v47   ;;  %v810_v15 = vrot.slane %v2700_v50, 5  ;;  %v47_v24 = vld [vmem:[%s3569_s10] sm:$0xff] }
   0xd   :  { %2325 = vmatmul.mubr.msk.f32.gmra.mrb[2].mxu1 %vm95_vm0, %v2124_v31  ;;  %2331 = vmatprep.mubr.msk.f32.mxu0 %vm95_vm0, %v2125_v40  ;;  %v670_v5 = vadd.f32 %v665_v49, %v634_v44  ;;  %v2737_v9 = vmul.f32 %v2584_v6, %v73_v30  ;;  %v716_v11 = vmul.f32 %v2707_v52, %v2129_v46  ;;  %v2833_v19 = vld [vmem:[%s3568_s1 + $0x40] sm:$0xff]  ;;  %vm1161_vm5 = vcmask 261120  }
   0xe   :  { %2341 = vmatprep.mubr.msk.f32.mxu1 %vm95_vm0, %v2129_v46  ;;  %333 = vperm.xlu1 %2488, %v2716_v54   ;;  %v741_v12 = vmul.f32 %v2687_v45, %v2126_v53  ;;  %v844_v16 = vmul.f32 %v2603_v10, %v2124_v31  ;;  %v704_v17 = vadd.f32 %v692_v62, %v669_v58  ;;  %v755_v21 = vrot.slane %v740_v63, 1  ;;  %v2132_v31 = vld [vmem:[%s3566_s0 + $0x78] sm:$0x3f] }
   0xf   :  { %v693_v27 = vmul.f32 %v2674_v39, %v2126_v53  ;;  %v717_v29 = vmul.f32 %v2707_v52, %v2130_v0  ;;  %v671_v30 = vadd.f32 %v664_v37, %v635_v57  ;;  %2458 = vmatprep.subr.bf16.mxu1 %v3582_v41  ;;  %v694_v34 = vmul.f32 %v2674_v39, %v2127_v13 }
  0x10   :  { %2332 = vmatmul.mubr.msk.f32.vlgmr.msra.gmra.mrb[4].mxu0 %vm95_vm0, %v2126_v53  ;;  %v756_v26 = vrot.slane %v741_v12, 1  ;;  %v728_v33 = vadd.f32 %v716_v11, %v704_v17  ;;  %v742_v40 = vmul.f32 %v2687_v45, %v2127_v13  ;;  %v718_v44 = vmul.f32 %v2707_v52, %v2131_v1  ;;  %208 = vperm.xlu0 %2487, %v2748_v14  }
  0x11   :  { %2342 = vmatmul.mubr.msk.f32.vlgmr.msra.gmra.mrb[4].mxu1 %vm95_vm0, %v2130_v0  ;;  %2334 = vmatprep.mubr.msk.f32.mxu0 %vm95_vm0, %v2127_v13  ;;  %v807_v37 = vsel %vm804_vm2, %v805_v35, %v806_v43  ;;  %v705_v49 = vadd.f32 %v693_v27, %v670_v5  ;;  %v2781_v50 = vpack.c.bf16 %v48_v25, %v47_v24  ;;  %v862_v51 = vrot.slane %v2724_v61, 5  ;;  %v2795_v35 = vld [vmem:[%s3568_s1 + $0x28] sm:$0xff] }
  0x12   :  { %2344 = vmatprep.mubr.msk.f32.mxu1 %vm95_vm0, %v2131_v1  ;;  %v757_v46 = vsel %vm660_vm1, %v755_v21, %v756_v26  ;;  %v706_v57 = vadd.f32 %v694_v34, %v671_v30  ;;  %v758_v58 = vrot.slane %v742_v40, 1  ;;  %v861_v61 = vsel %vm804_vm2, %v859_v42, %v860_v55  ;;  %213 = vperm.xlu1 %2488, %v2790_v18   ;;  %v2196_v30 = vld [vmem:[%s3566_s0 + $0xc0] sm:$0xff] }
  0x13   :  { %v763_v53 = vadd.f32 %v757_v46, %v728_v33  ;;  %v917_v62 = vrot.slane %v2720_v56, 6  ;;  %v864_v63 = vrot.slane %v844_v16, 5  ;;  %v729_v0 = vadd.f32 %v717_v29, %v705_v49  ;;  %2457 = vmatpush3.bf16.msra.mxu0 %v2781_v50  ;;  %v2157_v46 = vld [vmem:[%s3568_s1 + $0x60] sm:$0xff] }
  0x14   :  { %2335 = vmatmul.mubr.msk.f32.gmra.mrb[6].mxu0 %vm95_vm0, %v2128_v22  ;;  %v759_v5 = vsel %vm660_vm1, %v756_v26, %v758_v58  ;;  %v730_v11 = vadd.f32 %v718_v44, %v706_v57  ;;  %v809_v12 = vsel %vm804_vm2, %v806_v43, %v808_v60  ;;  %2462 = vmatprep.subr.bf16.mxu0 %v2571_v3  ;;  %v919_v42 = vrot.slane %v2737_v9, 6  ;;  %v2191_v22 = vld [vmem:[%s3566_s0 + $0x98] sm:$0x3f]  ;;  %v2197_v44 = vld [vmem:[%s3566_s0 + $0xc8] sm:$0xff]  ;;  %v2144_v57 = vld [vmem:[%s3568_s1 + $0x30] sm:$0xff] }
  0x15   :  { %2345 = vmatmul.mubr.msk.f32.gmra.mrb[6].mxu1 %vm95_vm0, %v2132_v31  ;;  %2351 = vmatprep.mubr.msk.f32.mxu0 %vm2493_vm4, %v3583_v59  ;;  %v815_v1 = vadd.f32 %v807_v37, %v763_v53  ;;  %v811_v20 = vsel %vm804_vm2, %v808_v60, %v810_v15  ;;  %v916_v56 = vsel %vm913_vm3, %v914_v36, %v915_v48  ;;  %v2828_v60 = vld [vmem:[%s3566_s0 + $0x90] sm:$0xff]  ;;  %v2838_v36 = vld [vmem:[%s3568_s1 + $0x48] sm:$0xff]  ;;  %vm1164_vm6 = vcmask 257024  }
  0x16   :  { %v764_v13 = vadd.f32 %v759_v5, %v729_v0  ;;  %338 = vperm.xlu0 %2487, %v2795_v35   ;;  %v863_v23 = vsel %vm804_vm2, %v860_v55, %v862_v51  ;;  %v765_v43 = vadd.f32 %v758_v58, %v730_v11  ;;  %2364 = vmatprep.mubr.msk.f32.mxu1 %vm2493_vm4, %v3583_v59  ;;  %v2846_v55 = vld [vmem:[%s3570_s9] ss:$0 sm:$0xff]  ;;  %v2198_v53 = vld [vmem:[%s3566_s0 + $0xd0] sm:$0xff]  ;;  %v200_v11 = vld [vmem:[%s3568_s1 + $0x18] sm:$0x3f] }
  0x17   :  { %v869_v38 = vadd.f32 %v861_v61, %v815_v1  ;;  %v865_v32 = vsel %vm804_vm2, %v862_v51, %v864_v63  ;;  %3592 = vst [vmem:[#allocation2_spill] sm:$0xff] %v2846_v55  ;;  %v2850_v15 = vmul.f32 %v2828_v60, %v2576_v4  ;;  %v918_v21 = vsel %vm913_vm3, %v915_v48, %v917_v62  ;;  %v2152_v0 = vld [vmem:[%s3568_s1 + $0x50] sm:$0xff] }
  0x18   :  { %v816_v9 = vadd.f32 %v809_v12, %v764_v13  ;;  %v817_v17 = vadd.f32 %v811_v20, %v765_v43  ;;  %v920_v25 = vsel %vm913_vm3, %v917_v62, %v919_v42  ;;  %v1797_v26 = vmul.f32 %v2191_v22, %v2576_v4  ;;  %460 = vperm.xlu1 %2488, %v2833_v19   ;;  %v2159_v5 = vld [vmem:[%s3568_s1 + $0x70] sm:$0xff]  ;;  %v2938_v12 = vld [vmem:[%s3566_s0 + $0x88] sm:$0xff]  ;;  %v2145_v20 = vld [vmem:[%s3568_s1 + $0x38] sm:$0x3f] }
  0x19   :  { %v924_v16 = vadd.f32 %v916_v56, %v869_v38  ;;  %v3580_v28 = vrot.slane %v2850_v15, 5  ;;  %v2865_v48 = vmul.f32 %v2191_v22, %v2584_v6  ;;  %v2871_v34 = vmul.f32 %v2196_v30, %v2674_v39  ;;  %v2199_v42 = vld [vmem:[%s3566_s0 + $0xd8] sm:$0x3f]  ;;  %v2992_v38 = vld [vmem:[%s3566_s0 + $0xa0] sm:$0xff] }
  0x1a   :  { %v870_v24 = vadd.f32 %v863_v23, %v816_v9  ;;  %465 = vperm.xlu0 %2487, %v2838_v36   ;;  %v871_v29 = vadd.f32 %v865_v32, %v817_v17  ;;  %v1811_v33 = vrot.slane %v1797_v26, 5  ;;  %v2874_v40 = vmul.f32 %v2196_v30, %v2687_v45 }
  0x1b   :  { %v950_v27 = vadd.f32 %v2846_v55, %v924_v16  ;;  %3593 = vst [vmem:[#allocation3_spill] sm:$0xff] %v2865_v48  ;;  %v2884_v49 = vmul.f32 %v2197_v44, %v2674_v39  ;;  %v2887_v51 = vmul.f32 %v2197_v44, %v2687_v45  ;;  %v2905_v62 = vmul.f32 %v2198_v53, %v2674_v39  ;;  %v2158_v39 = vld [vmem:[%s3568_s1 + $0x68] sm:$0xff] }
  0x1c   :  { %v925_v31 = vadd.f32 %v918_v21, %v870_v24  ;;  %v926_v37 = vadd.f32 %v920_v25, %v871_v29  ;;  %v2902_v61 = vsel %vm804_vm2, %v3580_v28, %v1811_v33  ;;  %v2909_v63 = vmul.f32 %v2198_v53, %v2687_v45  ;;  %581 = vperm.xlu1 %2488, %v2157_v46   ;;  %v2924_v45 = vld [vmem:[%s3566_s0 + $0x80] sm:$0xff]  ;;  %v3016_v21 = vld [vmem:[%s3566_s0 + $0xb0] sm:$0xff] }
  0x1d   :  { %2352 = vmatmul.mubr.msk.f32.vlgmr.msra.gmra.mrb[8].mxu0 %vm95_vm0, %v950_v27  ;;  %v1703_v56 = vmul.f32 %v2938_v12, %v2569_v2  ;;  %v1704_v23 = vmul.f32 %v2828_v60, %v2569_v2  ;;  %v1684_v43 = vmul.f32 %v2924_v45, %v2590_v7  ;;  %v1685_v32 = vmul.f32 %v2938_v12, %v2590_v7 }
  0x1e   :  { %2354 = vmatprep.mubr.msk.f32.mxu0 %vm2493_vm4, %v3583_v59  ;;  %v951_v58 = vadd.f32 %v2846_v55, %v925_v31  ;;  %2464 = vmatpush3.bf16.msra.mxu0 %v2571_v3  ;;  %v952_v1 = vadd.f32 %v2846_v55, %v926_v37  ;;  %v3007_v9 = vmul.f32 %v2938_v12, %v2576_v4  ;;  %v1769_v26 = vrot.slane %v2874_v40, 1 }
  0x1f   :  { %2470 = vmatprep.subr.bf16.mxu0 %v2571_v3  ;;  %343 = vperm.xlu0 %2487, %v2144_v57   ;;  %v1690_v16 = vmul.f32 %v2992_v38, %v2595_v8  ;;  %v1686_v24 = vmul.f32 %v2828_v60, %v2590_v7  ;;  %v1714_v25 = vrot.slane %v1704_v23, 1  ;;  %v1770_v27 = vrot.slane %v2887_v51, 1 }
  0x20   :  { %470 = vperm.xlu1 %2488, %v2152_v0   ;;  %v1878_v40 = vmul.f32 %v2924_v45, %v2584_v6 }
  0x21   :  { %2355 = vmatmul.mubr.msk.f32.gmra.mrb[10].mxu0 %vm95_vm0, %v951_v58  ;;  %v1696_v29 = vadd.f32 %v1690_v16, %v1684_v43  ;;  %v1772_v58 = vrot.slane %v2909_v63, 1  ;;  %v3060_v63 = vld [vmem:[%s3566_s0 + $0xf0] sm:$0xff] }
  0x22   :  { %2357 = vmatprep.mubr.msk.f32.mxu0 %vm2493_vm4, %v3583_v59 }
  0x23   :  { %586 = vperm.xlu0 %2487, %v2158_v39  }
  0x24   :  { %591 = vperm.xlu1 %2488, %v2159_v5  }
  0x25   :  { %2358 = vmatmul.mubr.msk.f32.gmra.mrb[12].mxu0 %vm95_vm0, %v952_v1 }
  0x26   :  { %2377 = vmatprep.mubr.msk.f32.mxu0 %vm95_vm0, %v2924_v45 }
  0x27   :  { %218 = vperm.xlu0 %2487, %v200_v11  }
  0x28   :  { %348 = vperm.xlu1 %2488, %v2145_v20   ;;  %v1750_v20 = vmul.f32 %v3060_v63, %v2707_v52 }
  0x29   :  { %2378 = vmatmul.mubr.msk.f32.vlgmr.msra.gmra.mrb[14].mxu0 %vm95_vm0, %v2938_v12 }
  0x2a   :  { %2380 = vmatprep.mubr.msk.f32.mxu0 %vm95_vm0, %v2828_v60  ;;  %2472 = vmatpush3.bf16.msra.mxu0 %v2571_v3 }
  0x2b   :  { %2477 = vmatprep.subr.bf16.mxu0 %v3582_v41  ;;  %1293 = vperm.xlu0 %2487, %v2695_v47   ;;  %v1290_v47 = vld [vmem:[%s3568_s1 + $0x18] sm:$0x3f] }
  0x2c   :  { %1298 = vperm.xlu1 %2488, %v2748_v14   ;;  %v44_v14 = vld [vmem:[%s3571_s6] sm:$0xff] }
  0x2d   :  { %2381 = vmatmul.mubr.msk.f32.gmra.mrb[16].mxu0 %vm95_vm0, %v2191_v22 }
  0x2e   :  { %2397 = vmatprep.mubr.msk.f32.mxu0 %vm95_vm0, %v2196_v30  ;;  %v1836_v30 = vmul.f32 %v2992_v38, %v2603_v10 }
  0x2f   :  { %1422 = vperm.xlu0 %2487, %v2716_v54   ;;  %v2215_v54 = vld [vmem:[%s3568_s1 + $0x38] sm:$0x3f] }
  0x30   :  { %1303 = vperm.xlu1 %2488, %v2790_v18  }
  0x31   :  { %2398 = vmatmul.mubr.msk.f32.vlgmr.msra.gmra.mrb[18].mxu0 %vm95_vm0, %v2197_v44 }
  0x32   :  { %2400 = vmatprep.mubr.msk.f32.mxu0 %vm95_vm0, %v2198_v53  ;;  %2479 = vmatpush3.bf16.msra.mxu0 %v2781_v50  ;;  %v45_v50 = vld [vmem:[%s3571_s6 + $0x8] sm:$0xff]  ;;  %v3579_v53 = vrot.slane %v3007_v9, 5 }
  0x33   :  { %1427 = vperm.xlu0 %2487, %v2795_v35   ;;  %v2979_v18 = vpack.c.bf16 %v45_v50, %v44_v14  ;;  %v1702_v35 = vmul.f32 %v2924_v45, %v2569_v2  ;;  %v1794_v2 = vmul.f32 %v2924_v45, %v2576_v4  ;;  %v1692_v4 = vmul.f32 %v3016_v21, %v2595_v8 }
  0x34   :  { %1548 = vperm.xlu1 %2488, %v2833_v19   ;;  %v1712_v19 = vrot.slane %v1703_v56, 1  ;;  %v1773_v50 = vsel %vm660_vm1, %v1770_v27, %v1772_v58 }
  0x35   :  { %2401 = vmatmul.mubr.msk.f32.gmra.mrb[20].mxu0 %vm95_vm0, %v2199_v42  ;;  %2460 = vmatpush3.bf16.msra.mxu1 %v2979_v18  ;;  %v1711_v13 = vrot.slane %v1702_v35, 1  ;;  %v1698_v44 = vadd.f32 %v1692_v4, %v1686_v24  ;;  %v1806_v51 = vrot.slane %v1794_v2, 5  ;;  %v1890_v42 = vrot.slane %v1878_v40, 6 }
  0x36   :  { %2417 = vmatprep.mubr.msk.f32.mxu0 %vm2493_vm4, %v3583_v59  ;;  %2466 = vmatprep.subr.bf16.mxu1 %v2571_v3  ;;  %v1715_v7 = vsel %vm660_vm1, %v1712_v19, %v1714_v25 }
  0x37   :  { %1553 = vperm.xlu0 %2487, %v2838_v36   ;;  %v2999_v36 = vld [vmem:[%s3566_s0 + $0xa8] sm:$0xff]  ;;  %v1713_v22 = vsel %vm660_vm1, %v1711_v13, %v1712_v19 }
  0x38   :  { %1668 = vperm.xlu1 %2488, %v2157_v46   ;;  %v1691_v17 = vmul.f32 %v2999_v36, %v2595_v8  ;;  %v3029_v33 = vmul.f32 %v2999_v36, %v2603_v10  ;;  %v3035_v8 = vld [vmem:[%s3566_s0 + $0xe0] sm:$0xff]  ;;  %v1719_v46 = vadd.f32 %v1713_v22, %v1696_v29  ;;  %v3044_v10 = vmul.f32 %v2938_v12, %v2584_v6 }
  0x39   :  { %v1748_v37 = vmul.f32 %v3035_v8, %v2707_v52 }
  0x3a   :  { %v1697_v31 = vadd.f32 %v1691_v17, %v1685_v32  ;;  %3594 = vst [vmem:[#allocation4_spill] sm:$0xff] %v3044_v10  ;;  %v1742_v1 = vadd.f32 %v2871_v34, %v1719_v46  ;;  %v3581_v45 = vrot.slane %v3029_v33, 5 }
  0x3b   :  { %1432 = vperm.xlu0 %2487, %v2144_v57   ;;  %v1721_v57 = vadd.f32 %v1714_v25, %v1698_v44  ;;  %v3103_v44 = vld [vmem:[%s3572_s3] ss:$0 sm:$0xff] }
  0x3c   :  { %1558 = vperm.xlu1 %2488, %v2152_v0   ;;  %v1848_v0 = vrot.slane %v1836_v30, 5  ;;  %v1720_v11 = vadd.f32 %v1715_v7, %v1697_v31  ;;  %v1754_v12 = vadd.f32 %v1748_v37, %v1742_v1 }
  0x3d   :  { %v1744_v34 = vadd.f32 %v2905_v62, %v1721_v57 }
  0x3e   :  { %v1743_v14 = vadd.f32 %v2884_v49, %v1720_v11  ;;  %v1850_v62 = vsel %vm804_vm2, %v1848_v0, %v3581_v45  ;;  %v3112_v0 = vld [vmem:[%s3573_s4 + $0x2] ss:$0 sm:$0xff] }
  0x3f   :  { %1673 = vperm.xlu0 %2487, %v2158_v39   ;;  %v3051_v39 = vld [vmem:[%s3566_s0 + $0xe8] sm:$0xff]  ;;  %v1756_v56 = vadd.f32 %v1750_v20, %v1744_v34 }
  0x40   :  { %1678 = vperm.xlu1 %2488, %v2159_v5   ;;  %v1771_v5 = vsel %vm660_vm1, %v1769_v26, %v1770_v27  ;;  %v1749_v6 = vmul.f32 %v3051_v39, %v2707_v52 }
  0x41   :  { %v1777_v35 = vadd.f32 %v1771_v5, %v1754_v12  ;;  %v1779_v52 = vadd.f32 %v1772_v58, %v1756_v56  ;;  %v3126_v12 = vld [vmem:[%s3573_s4 + $0x8] ss:$0 sm:$0xff] }
  0x42   :  { %v1755_v13 = vadd.f32 %v1749_v6, %v1743_v14  ;;  %v3121_v6 = vld [vmem:[%s3573_s4 + $0x6] ss:$0 sm:$0xff] }
  0x43   :  { %1308 = vperm.xlu0 %2487, %v1290_v47   ;;  %v3578_v47 = vrot.slane %v3044_v10, 6  ;;  %v3080_v49 = vadd.f32 %v2902_v61, %v1779_v52 }
  0x44   :  { %1437 = vperm.xlu1 %2488, %v2215_v54   ;;  %v1808_v54 = vsel %vm804_vm2, %v1806_v51, %v3579_v53  ;;  %v3077_v19 = vadd.f32 %v1773_v50, %v1755_v13  ;;  %v3141_v13 = vld [vmem:[%s3573_s4 + $0x7] ss:$0 sm:$0xff] }
  0x45   :  { %v1816_v23 = vadd.f32 %v1808_v54, %v1777_v35  ;;  %v1892_v43 = vsel %vm913_vm3, %v1890_v42, %v3578_v47  ;;  %3596 = vst [vmem:[#allocation6_spill] sm:$0xff] %v3080_v49  ;;  %v3131_v42 = vld [vmem:[%s3573_s4] ss:$0 sm:$0xff]  ;;  %3598 = vst [vmem:[#allocation8_spill] sm:$0xff] %v3141_v13 }
  0x46   :  { %3595 = vst [vmem:[#allocation5_spill] sm:$0xff] %v3077_v19 }
  0x47   :  { %v1858_v32 = vadd.f32 %v1850_v62, %v1816_v23  ;;  %v3136_v62 = vld [vmem:[%s3573_s4 + $0x1] ss:$0 sm:$0xff] }
  0x48   :  { %3597 = vst [vmem:[#allocation7_spill] sm:$0xff] %v3136_v62 }
  0x49   :  { %v1900_v2 = vadd.f32 %v1892_v43, %v1858_v32 }
  0x4b   :  { %v1920_v16 = vadd.f32 %v2846_v55, %v1900_v2 }
  0x4d   :  { %2418 = vmatmul.mubr.msk.f32.vlgmr.msra.gmra.mrb[22].mxu0 %vm95_vm0, %v1920_v16 }
  0x4e   :  { %2420 = vmatprep.mubr.msk.f32.mxu0 %vm2493_vm4, %v3583_v59 }
  0x8b   :  { %v204_v17 = vpop.permute.xlu0 %203 }
  0x8d   :  { %v334_v24 = vpop.permute.xlu1 %333 }
  0x8f   :  { %v209_v22 = vpop.permute.xlu0 %208 }
  0x91   :  { %v3086_v25 = vpop.permute.xlu1 %213 }
  0x95   :  { %v339_v4 = vpop.permute.xlu0 %338 }
  0x97   :  { %v3090_v27 = vpop.permute.xlu1 %460 }
  0x99   :  { %v3088_v26 = vpop.permute.xlu0 %465 }
  0x9b   :  { %v3094_v29 = vpop.permute.xlu1 %581 }
  0x9e   :  { %v3092_v61 = vpop.permute.xlu0 %343 }
  0x9f   :  { %v3098_v31 = vpop.permute.xlu1 %470 }
  0xa2   :  { %v3096_v30 = vpop.permute.xlu0 %586 }
  0xa3   :  { %v3116_v11 = vpop.permute.xlu1 %591 }
  0xa6   :  { %v3105_v7 = vpop.permute.xlu0 %218 }
  0xa7   :  { %v349_v28 = vpop.permute.xlu1 %348 }
  0xaa   :  { %v3145_v16 = vpop.permute.xlu0 %1293 }
  0xdb   :  { %v2313_v40 = vpop.f32.mrb[0].mxu0 }
  0xdc   :  { %v2323_v46 = vpop.f32.mrb[0].mxu1  ;;  %v180_v37 = vadd.f32 %v2313_v40, %v3103_v44  ;;  %v174_v57 = vpop.f32.mrb[1].mxu0 }
  0xdd   :  { %v309_v51 = vadd.f32 %v2323_v46, %v3103_v44  ;;  %v303_v58 = vpop.f32.mrb[1].mxu1  ;;  %v175_v1 = vadd.f32 %v3103_v44, %v174_v57 }
  0xde   :  { %v304_v5 = vadd.f32 %v3103_v44, %v303_v58  ;;  %v194_v34 = vmax.f32 %v180_v37, 0.0 }
  0xdf   :  { %v323_v20 = vmax.f32 %v309_v51, 0.0  ;;  %v193_v54 = vmax.f32 %v175_v1, 0.0  ;;  %v2316_v50 = vpop.f32.mrb[2].mxu0 }
  0xe0   :  { %v322_v14 = vmax.f32 %v304_v5, 0.0  ;;  %v2326_v35 = vpop.f32.mrb[2].mxu1  ;;  %v222_v56 = vmul.f32 %v209_v22, %v194_v34  ;;  %v190_v52 = vadd.f32 %v2316_v50, %v3103_v44  ;;  %v184_v32 = vpop.f32.mrb[3].mxu0 }
  0xe1   :  { %v352_v23 = vmul.f32 %v339_v4, %v323_v20  ;;  %v319_v43 = vadd.f32 %v2326_v35, %v3103_v44  ;;  %v313_v2 = vpop.f32.mrb[3].mxu1  ;;  %v221_v22 = vmul.f32 %v204_v17, %v193_v54  ;;  %v185_v46 = vadd.f32 %v3103_v44, %v184_v32  ;;  %v3182_v54 = vpop.permute.xlu0 %1422 }
  0xe2   :  { %v351_v40 = vmul.f32 %v334_v24, %v322_v14  ;;  %v314_v37 = vadd.f32 %v3103_v44, %v313_v2  ;;  %v3150_v51 = vmul.f32 %v3112_v0, %v222_v56  ;;  %v3153_v57 = vmul.f32 %v3121_v6, %v222_v56  ;;  %3599 = vst [vmem:[#allocation9_spill] sm:$0xff] %v3182_v54 }
  0xe3   :  { %v3156_v4 = vmul.f32 %v3126_v12, %v222_v56  ;;  %v613_v58 = vmul.f32 %v3131_v42, %v222_v56  ;;  %v631_v1 = vmul.f32 %v3136_v62, %v352_v23  ;;  %v3161_v17 = vmul.f32 %v3141_v13, %v352_v23  ;;  %v2333_v34 = vpop.f32.mrb[4].mxu0 }
  0xe4   :  { %v3164_v24 = vmul.f32 %v3112_v0, %v221_v22  ;;  %v3167_v5 = vmul.f32 %v3121_v6, %v221_v22  ;;  %v3173_v50 = vmul.f32 %v3126_v12, %v221_v22  ;;  %v2343_v35 = vpop.f32.mrb[4].mxu1  ;;  %v433_v56 = vpop.f32.mrb[5].mxu0  ;;  %v612_v41 = vmul.f32 %v3131_v42, %v221_v22 }
  0xe5   :  { %v637_v23 = vadd.f32 %v631_v1, %v613_v58  ;;  %v554_v53 = vpop.f32.mrb[5].mxu1  ;;  %v630_v59 = vmul.f32 %v3136_v62, %v351_v40  ;;  %v851_v14 = vmul.f32 %v3141_v13, %v351_v40  ;;  %v196_v20 = vmax.f32 %v190_v52, 0.0 }
  0xe6   :  { %v675_v2 = vrot.slane %v3164_v24, 1  ;;  %v325_v58 = vmax.f32 %v319_v43, 0.0  ;;  %v195_v1 = vmax.f32 %v185_v46, 0.0  ;;  %v324_v32 = vmax.f32 %v314_v37, 0.0 }
  0xe7   :  { %v2336_v49 = vpop.f32.mrb[6].mxu0  ;;  %v636_v24 = vadd.f32 %v630_v59, %v612_v41  ;;  %v876_v55 = vrot.slane %v851_v14, 5  ;;  %v439_v47 = vadd.f32 %v2333_v34, %v3103_v44  ;;  %v560_v10 = vadd.f32 %v2343_v35, %v3103_v44  ;;  %v3209_v35 = vld [vmem:[%s3573_s4 + $0x3] ss:$0 sm:$0xff] }
  0xe8   :  { %v2346_v45 = vpop.f32.mrb[6].mxu1  ;;  %v443_v48 = vpop.f32.mrb[7].mxu0  ;;  %v224_v22 = vmul.f32 %v3105_v7, %v196_v20  ;;  %v354_v19 = vmul.f32 %v349_v28, %v325_v58  ;;  %v223_v40 = vmul.f32 %v3086_v25, %v195_v1  ;;  %v353_v54 = vmul.f32 %v3092_v61, %v324_v32 }
  0xe9   :  { %v564_v52 = vpop.f32.mrb[7].mxu1  ;;  %v3600_v43 = vrot.slane %v3161_v17, 5  ;;  %v452_v41 = vmax.f32 %v439_v47, 0.0  ;;  %v573_v59 = vmax.f32 %v560_v10, 0.0  ;;  %v434_v46 = vadd.f32 %v3103_v44, %v433_v56 }
  0xea   :  { %v799_v45 = vmul.f32 %v3121_v6, %v224_v22  ;;  %v3197_v37 = vmul.f32 %v3126_v12, %v224_v22  ;;  %v854_v28 = vmul.f32 %v3141_v13, %v354_v19  ;;  %v656_v25 = vmul.f32 %v3112_v0, %v223_v40  ;;  %v3211_v19 = vpop.permute.xlu0 %1427  ;;  %v3217_v22 = vld [vmem:[%s3573_s4 + $0x5] ss:$0 sm:$0xff] }
  0xeb   :  { %v3192_v49 = vsel %vm804_vm2, %v876_v55, %v3600_v43  ;;  %v798_v61 = vmul.f32 %v3121_v6, %v223_v40  ;;  %v907_v7 = vmul.f32 %v3126_v12, %v223_v40  ;;  %v614_v55 = vmul.f32 %v3131_v42, %v223_v40  ;;  %v3222_v40 = vld [vmem:[%s3573_s4 + $0x4] ss:$0 sm:$0xff] }
  0xec   :  { %v632_v47 = vmul.f32 %v3136_v62, %v353_v54  ;;  %v827_v10 = vrot.slane %v799_v45, 5  ;;  %v936_v34 = vrot.slane %v3197_v37, 6  ;;  %v881_v20 = vrot.slane %v854_v28, 5 }
  0xed   :  { %v678_v14 = vrot.slane %v656_v25, 1  ;;  %v825_v56 = vrot.slane %v798_v61, 5  ;;  %v934_v32 = vrot.slane %v907_v7, 6  ;;  %v853_v1 = vmul.f32 %v3141_v13, %v353_v54 }
  0xee   :  { %v638_v58 = vadd.f32 %v632_v47, %v614_v55  ;;  %v474_v43 = vmul.f32 %v3088_v26, %v452_v41  ;;  %v3601_v45 = vrot.slane %v3150_v51, 1  ;;  %v595_v28 = vmul.f32 %v3096_v30, %v573_v59 }
  0xef   :  { %v451_v25 = vmax.f32 %v434_v46, 0.0  ;;  %v879_v54 = vrot.slane %v853_v1, 5  ;;  %v555_v47 = vadd.f32 %v3103_v44, %v554_v53 }
  0xf0   :  { %v679_v37 = vsel %vm660_vm1, %v3601_v45, %v678_v14  ;;  %v3602_v7 = vmov %v3601_v45  ;;  %v702_v13 = vmul.f32 %v3209_v35, %v474_v43  ;;  %v750_v62 = vmul.f32 %v3217_v22, %v474_v43  ;;  %v3245_v59 = vpop.f32.mrb[8].mxu0 }
  0xf1   :  { %v684_v61 = vadd.f32 %v679_v37, %v637_v23  ;;  %v677_v55 = vsel %vm660_vm1, %v675_v2, %v3602_v7  ;;  %v726_v26 = vmul.f32 %v3222_v40, %v595_v28  ;;  %v473_v41 = vmul.f32 %v3090_v27, %v451_v25  ;;  %v2353_v37 = vpop.f32.mrb[9].mxu0  ;;  %v3249_v27 = vpop.permute.xlu0 %1553 }
  0xf2   :  { %v3603_v45 = vrot.slane %v3161_v17, 5  ;;  %v3243_v23 = vsel %vm804_vm2, %v879_v54, %v881_v20  ;;  %v683_v51 = vadd.f32 %v677_v55, %v636_v24  ;;  %v572_v2 = vmax.f32 %v555_v47, 0.0 }
  0xf3   :  { %v708_v53 = vadd.f32 %v702_v13, %v684_v61  ;;  %v770_v46 = vrot.slane %v750_v62, 1  ;;  %v701_v1 = vmul.f32 %v3209_v35, %v473_v41  ;;  %v749_v43 = vmul.f32 %v3217_v22, %v473_v41 }
  0xf4   :  { %v3240_v30 = vsel %vm804_vm2, %v3603_v45, %v879_v54  ;;  %v594_v17 = vmul.f32 %v3094_v29, %v572_v2  ;;  %v3604_v28 = vrot.slane %v3153_v57, 5  ;;  %v3605_v20 = vrot.slane %v3167_v5, 5  ;;  %v3268_v37 = vpop.f32.mrb[10].mxu0 }
  0xf5   :  { %v3606_v25 = vrot.slane %v3156_v4, 6  ;;  %v3607_v13 = vrot.slane %v3173_v50, 6  ;;  %v444_v54 = vadd.f32 %v3103_v44, %v443_v48  ;;  %v732_v61 = vadd.f32 %v726_v26, %v708_v53  ;;  %v2356_v48 = vpop.f32.mrb[11].mxu0  ;;  %v1299_v26 = vpop.permute.xlu1 %1298 }
  0xf6   :  { %v824_v24 = vsel %vm804_vm2, %v3605_v20, %v3604_v28  ;;  %v707_v7 = vadd.f32 %v701_v1, %v683_v51  ;;  %v769_v55 = vrot.slane %v749_v43, 1  ;;  %v685_v47 = vadd.f32 %v678_v14, %v638_v58 }
  0xf7   :  { %v933_v62 = vsel %vm913_vm3, %v3607_v13, %v3606_v25  ;;  %v725_v29 = vmul.f32 %v3222_v40, %v594_v17  ;;  %v453_v41 = vmax.f32 %v444_v54, 0.0  ;;  %v3608_v45 = vmov %v3604_v28 }
  0xf8   :  { %v826_v5 = vsel %vm804_vm2, %v3608_v45, %v825_v56  ;;  %v565_v2 = vadd.f32 %v3103_v44, %v564_v52  ;;  %v771_v50 = vsel %vm660_vm1, %v769_v55, %v770_v46  ;;  %v828_v28 = vsel %vm804_vm2, %v825_v56, %v827_v10  ;;  %v3281_v52 = vpop.permute.xlu0 %1432  ;;  %v3286_v20 = vpop.f32.mrb[12].mxu0 }
  0xf9   :  { %v731_v51 = vadd.f32 %v725_v29, %v707_v7  ;;  %v475_v14 = vmul.f32 %v3098_v31, %v453_v41  ;;  %v3609_v53 = vmov %v3606_v25  ;;  %v3279_v1 = vsel %vm913_vm3, %v934_v32, %v936_v34  ;;  %v2359_v31 = vpop.f32.mrb[13].mxu0  ;;  %v1304_v7 = vpop.permute.xlu1 %1303  ;;  %v3294_v41 = vld [vmem:[%s3574_s5] ss:$0 sm:$0xff] }
  0xfa   :  { %v574_v58 = vmax.f32 %v565_v2, 0.0  ;;  %v3276_v57 = vsel %vm913_vm3, %v3609_v53, %v934_v32 }
  0xfb   :  { %v777_v43 = vadd.f32 %v771_v50, %v731_v51  ;;  %v703_v17 = vmul.f32 %v3209_v35, %v475_v14  ;;  %v751_v10 = vmul.f32 %v3217_v22, %v475_v14 }
  0xfc   :  { %v596_v56 = vmul.f32 %v3116_v11, %v574_v58  ;;  %v2379_v29 = vpop.f32.mrb[14].mxu0 }
  0xfd   :  { %v832_v25 = vadd.f32 %v824_v24, %v777_v43  ;;  %v709_v4 = vadd.f32 %v703_v17, %v685_v47  ;;  %v772_v13 = vrot.slane %v751_v10, 1  ;;  %v1270_v45 = vadd.f32 %v2379_v29, %v3103_v44  ;;  %v1264_v24 = vpop.f32.mrb[15].mxu0  ;;  %v3297_v47 = vpop.permute.xlu0 %1673 }
  0xfe   :  { %v727_v54 = vmul.f32 %v3222_v40, %v596_v56  ;;  %v1265_v48 = vadd.f32 %v3103_v44, %v1264_v24  ;;  %v1549_v56 = vpop.permute.xlu1 %1548 }
  0xff   :  { %v886_v34 = vadd.f32 %v3192_v49, %v832_v25  ;;  %v773_v32 = vsel %vm660_vm1, %v770_v46, %v772_v13  ;;  %v1284_v51 = vmax.f32 %v1270_v45, 0.0 }
 0x100   :  { %v733_v55 = vadd.f32 %v727_v54, %v709_v4  ;;  %v778_v11 = vadd.f32 %v773_v32, %v732_v61  ;;  %v1283_v58 = vmax.f32 %v1265_v48, 0.0  ;;  %v2382_v53 = vpop.f32.mrb[16].mxu0 }
 0x101   :  { %v941_v2 = vadd.f32 %v933_v62, %v886_v34  ;;  %v1312_v43 = vmul.f32 %v1299_v26, %v1284_v51  ;;  %v1280_v17 = vadd.f32 %v2382_v53, %v3103_v44  ;;  %v1274_v61 = vpop.f32.mrb[17].mxu0 }
 0x102   :  { %v779_v50 = vadd.f32 %v772_v13, %v733_v55  ;;  %v833_v49 = vadd.f32 %v826_v5, %v778_v11  ;;  %v1311_v31 = vmul.f32 %v3145_v16, %v1283_v58  ;;  %v1275_v62 = vadd.f32 %v3103_v44, %v1274_v61  ;;  %v1309_v16 = vpop.permute.xlu0 %1308  ;;  %v3327_v53 = vpop.permute.xlu1 %1668 }
 0x103   :  { %v959_v46 = vadd.f32 %v3294_v41, %v941_v2  ;;  %v1706_v25 = vmul.f32 %v3112_v0, %v1312_v43  ;;  %v3312_v26 = vmul.f32 %v3126_v12, %v1312_v43  ;;  %v1286_v4 = vmax.f32 %v1280_v17, 0.0 }
 0x104   :  { %v834_v14 = vadd.f32 %v828_v28, %v779_v50  ;;  %v887_v10 = vadd.f32 %v3240_v30, %v833_v49  ;;  %v3309_v28 = vmul.f32 %v3121_v6, %v1312_v43  ;;  %v3610_v30 = vmov 0.0   ;;  %v2399_v32 = vpop.f32.mrb[18].mxu0 }
 0x105   :  { %2365 = vmatmul.mubr.msk.f32.vlgmr.msra.gmra.mrb[8].mxu1 %vm95_vm0, %v959_v46  ;;  %v1705_v13 = vmul.f32 %v3112_v0, %v1311_v31  ;;  %v1798_v54 = vmul.f32 %v3121_v6, %v1311_v31  ;;  %v1285_v34 = vmax.f32 %v1275_v62, 0.0  ;;  %v1726_v55 = vrot.slane %v1706_v25, 1  ;;  %v1522_v24 = vpop.f32.mrb[19].mxu0 }
 0x106   :  { %v888_v5 = vadd.f32 %v3243_v23, %v834_v14  ;;  %2468 = vmatpush3.bf16.msra.mxu1 %v2571_v3  ;;  %2367 = vmatprep.mubr.msk.f32.mxu1 %vm2493_vm4, %v3610_v30  ;;  %v1882_v23 = vmul.f32 %v3126_v12, %v1311_v31  ;;  %v1824_v29 = vrot.slane %v3309_v28, 5  ;;  %v1908_v11 = vrot.slane %v3312_v26, 6 }
 0x107   :  { %2474 = vmatprep.subr.bf16.mxu1 %v2571_v3  ;;  %v1314_v45 = vmul.f32 %v1309_v16, %v1286_v4  ;;  %v1725_v2 = vrot.slane %v1705_v13, 1  ;;  %v1823_v50 = vrot.slane %v1798_v54, 5  ;;  %v1313_v49 = vmul.f32 %v1304_v7, %v1285_v34 }
 0x108   :  { %v1907_v48 = vrot.slane %v1882_v23, 6  ;;  %v942_v14 = vadd.f32 %v3276_v57, %v887_v10  ;;  %v1528_v58 = vadd.f32 %v2399_v32, %v3103_v44  ;;  %v1523_v25 = vadd.f32 %v3103_v44, %v1522_v24  ;;  %v2402_v7 = vpop.f32.mrb[20].mxu0 }
 0x109   :  { %v1801_v51 = vmul.f32 %v3121_v6, %v1314_v45  ;;  %v1885_v46 = vmul.f32 %v3126_v12, %v1314_v45  ;;  %v3330_v17 = vmul.f32 %v3112_v0, %v1313_v49  ;;  %v1800_v61 = vmul.f32 %v3121_v6, %v1313_v49  ;;  %v1532_v57 = vpop.f32.mrb[21].mxu0 }
 0x10a   :  { %v1884_v62 = vmul.f32 %v3126_v12, %v1313_v49  ;;  %v960_v4 = vadd.f32 %v3294_v41, %v942_v14  ;;  %v1541_v16 = vmax.f32 %v1528_v58, 0.0  ;;  %v1540_v23 = vmax.f32 %v1523_v25, 0.0 }
 0x10b   :  { %v1828_v28 = vrot.slane %v1801_v51, 5  ;;  %v1912_v26 = vrot.slane %v1885_v46, 6  ;;  %v1728_v10 = vrot.slane %v3330_v17, 1  ;;  %v1826_v13 = vrot.slane %v1800_v61, 5  ;;  %v1559_v51 = vpop.permute.xlu1 %1558 }
 0x10c   :  { %v1910_v54 = vrot.slane %v1884_v62, 6  ;;  %2368 = vmatmul.mubr.msk.f32.gmra.mrb[10].mxu1 %vm95_vm0, %v960_v4  ;;  %v1562_v0 = vmul.f32 %v3249_v27, %v1541_v16  ;;  %v943_v6 = vadd.f32 %v3279_v1, %v888_v5  ;;  %v1533_v12 = vadd.f32 %v3103_v44, %v1532_v57 }
 0x10d   :  { %v3342_v34 = vmul.f32 %v3131_v42, %v1312_v43  ;;  %v1561_v32 = vmul.f32 %v1549_v56, %v1540_v23  ;;  %2370 = vmatprep.mubr.msk.f32.mxu1 %vm2493_vm4, %v3610_v30  ;;  %v3349_v45 = vsel %vm660_vm1, %v1726_v55, %v1728_v10  ;;  %v3352_v24 = vmul.f32 %v3131_v42, %v1311_v31  ;;  %v3615_v23 = vld [vmem:[#allocation5_spill] sm:$0xff] }
 0x10e   :  { %v3355_v27 = vsel %vm660_vm1, %v1725_v2, %v1726_v55  ;;  %v3358_v1 = vmul.f32 %v3209_v35, %v1562_v0  ;;  %v1764_v43 = vmul.f32 %v3217_v22, %v1562_v0  ;;  %v961_v56 = vadd.f32 %v3294_v41, %v943_v6 }
 0x10f   :  { %v1542_v5 = vmax.f32 %v1533_v12, 0.0  ;;  %v3363_v46 = vmul.f32 %v3209_v35, %v1561_v32  ;;  %v1763_v14 = vmul.f32 %v3217_v22, %v1561_v32  ;;  %v3367_v31 = vmul.f32 %v3131_v42, %v1313_v49  ;;  %v3616_v12 = vld [vmem:[#allocation3_spill] sm:$0xff] }
 0x110   :  { %v3370_v55 = vsel %vm804_vm2, %v1824_v29, %v1826_v13  ;;  %v1784_v2 = vrot.slane %v1764_v43, 1  ;;  %2371 = vmatmul.mubr.msk.f32.gmra.mrb[12].mxu1 %vm95_vm0, %v961_v56  ;;  %v3374_v61 = vsel %vm804_vm2, %v1823_v50, %v1824_v29  ;;  %v3377_v62 = vsel %vm913_vm3, %v1907_v48, %v1908_v11  ;;  %v3617_v43 = vld [vmem:[#allocation4_spill] sm:$0xff] }
 0x111   :  { %v1563_v58 = vmul.f32 %v1559_v51, %v1542_v5  ;;  %v1783_v25 = vrot.slane %v1763_v14, 1  ;;  %2387 = vmatprep.mubr.msk.f32.mxu1 %vm95_vm0, %v2992_v38  ;;  %v3382_v42 = vsel %vm804_vm2, %v1826_v13, %v1828_v28  ;;  %v3385_v49 = vsel %vm913_vm3, %v1908_v11, %v1910_v54  ;;  %v3619_v51 = vld [vmem:[#allocation2_spill] sm:$0xff] }
 0x112   :  { %v3388_v7 = vsel %vm913_vm3, %v1910_v54, %v1912_v26  ;;  %v3611_v11 = vmov 0.0|0.0   ;;  %v3612_v26 = vrot.slane %v3029_v33, 5  ;;  %v3613_v13 = vrot.slane %v2850_v15, 5 }
 0x113   :  { %v3391_v4 = vmul.f32 %v3209_v35, %v1563_v58  ;;  %v3394_v29 = vmul.f32 %v3217_v22, %v1563_v58  ;;  %v3397_v50 = vsel %vm660_vm1, %v1783_v25, %v1784_v2  ;;  %v2195_v35 = vld [vmem:[%s3566_s0 + $0xb8] sm:$0x3f]  ;;  %v3614_v54 = vrot.slane %v3007_v9, 5 }
 0x114   :  { %2388 = vmatmul.mubr.msk.f32.vlgmr.msra.gmra.mrb[14].mxu1 %vm95_vm0, %v2999_v36  ;;  %v2489_v36 = vld [vmem:[%s3567_s8 + $0x7] ss:$0 sm:$0xff]  ;;  %v1895_v32 = vrot.slane %v3616_v12, 6  ;;  %v3618_v56 = vrot.slane %v3617_v43, 6 }
 0x115   :  { %v1786_v38 = vrot.slane %v3394_v29, 1  ;;  %2476 = vmatpush3.bf16.msra.mxu1 %v2571_v3  ;;  %2390 = vmatprep.mubr.msk.f32.mxu1 %vm95_vm0, %v3016_v21  ;;  %v2203_v3 = vld [vmem:[%s3566_s0 + $0xf8] sm:$0x3f]  ;;  %v1839_v28 = vmul.f32 %v2489_v36, %v2195_v35 }
 0x116   :  { %2480 = vmatprep.subr.bf16.mxu1 %v3611_v11 }
 0x117   :  { %v3411_v22 = vsel %vm660_vm1, %v1784_v2, %v1786_v38  ;;  %v1853_v57 = vrot.slane %v1839_v28, 5  ;;  %v3620_v2 = vld [vmem:[#allocation6_spill] sm:$0xff] }
 0x118   :  { %2391 = vmatmul.mubr.msk.f32.gmra.mrb[16].mxu1 %vm95_vm0, %v2195_v35 }
 0x119   :  { %2407 = vmatprep.mubr.msk.f32.mxu1 %vm95_vm0, %v3035_v8  ;;  %v1838_v8 = vmul.f32 %v2489_v36, %v3016_v21  ;;  %v1810_v21 = vsel %vm804_vm2, %v3614_v54, %v3613_v13  ;;  %v3468_v36 = vld [vmem:[%s3576_s7] ss:$0 sm:$0xff] }
 0x11a   :  { %v1817_v0 = vadd.f32 %v1810_v21, %v3615_v23 }
 0x11b   :  { %v1851_v48 = vrot.slane %v1838_v8, 5 }
 0x11c   :  { %2408 = vmatmul.mubr.msk.f32.vlgmr.msra.gmra.mrb[18].mxu1 %vm95_vm0, %v3051_v39  ;;  %v2490_v39 = vld [vmem:[%s3567_s8 + $0x8] ss:$0 sm:$0xff] }
 0x11d   :  { %2410 = vmatprep.mubr.msk.f32.mxu1 %vm95_vm0, %v3060_v63  ;;  %2482 = vmatpush3.bf16.msra.mxu1 %v2979_v18  ;;  %v1880_v63 = vmul.f32 %v2490_v39, %v2828_v60  ;;  %v1852_v16 = vsel %vm804_vm2, %v3612_v26, %v1851_v48  ;;  %v1854_v60 = vsel %vm804_vm2, %v1851_v48, %v1853_v57 }
 0x11e   :  { %v1859_v6 = vadd.f32 %v1852_v16, %v1817_v0  ;;  %v1860_v15 = vadd.f32 %v1854_v60, %v3620_v2 }
 0x11f   :  { %v1893_v18 = vrot.slane %v1880_v63, 6 }
 0x120   :  { %2411 = vmatmul.mubr.msk.f32.gmra.mrb[20].mxu1 %vm95_vm0, %v2203_v3  ;;  %v3457_v35 = vpop.f32.mrb[22].mxu0  ;;  %v3463_v3 = vld [vmem:[%s3575_s11] ss:$0 sm:$0xff] }
 0x121   :  { %2430 = vmatprep.mubr.msk.f32.mxu1 %vm2493_vm4, %v3610_v30  ;;  %v1894_v33 = vsel %vm913_vm3, %v3618_v56, %v1893_v18  ;;  %v1896_v9 = vsel %vm913_vm3, %v1893_v18, %v1895_v32  ;;  %v2419_v11 = vpop.f32.mrb[23].mxu0  ;;  %v1044_v8 = vadd.f32 %v3463_v3, %v3245_v59  ;;  %v1049_v16 = vadd.f32 %v3463_v3, %v3268_v37 }
 0x122   :  { %v1901_v5 = vadd.f32 %v1894_v33, %v1859_v6  ;;  %v1902_v58 = vadd.f32 %v1896_v9, %v1860_v15  ;;  %v1054_v21 = vadd.f32 %v3463_v3, %v3286_v20  ;;  %v1679_v20 = vpop.permute.xlu1 %1678  ;;  %v3621_v11 = vld [vmem:[#allocation9_spill] sm:$0xff] }
 0x123   :  { %v1057_v28 = vmax.f32 %v1044_v8, 0.0  ;;  %v1058_v54 = vmax.f32 %v1049_v16, 0.0 }
 0x124   :  { %v1921_v14 = vadd.f32 %v3619_v51, %v1901_v5  ;;  %v1922_v25 = vadd.f32 %v3619_v51, %v1902_v58  ;;  %v1059_v60 = vmax.f32 %v1054_v21, 0.0 }
 0x126   :  { %2421 = vmatmul.mubr.msk.f32.gmra.mrb[24].mxu0 %vm95_vm0, %v1921_v14  ;;  %v1438_v16 = vpop.permute.xlu1 %1437 }
 0x127   :  { %2423 = vmatprep.mubr.msk.f32.mxu0 %vm2493_vm4, %v3610_v30 }
 0x12a   :  { %2424 = vmatmul.mubr.msk.f32.gmra.mrb[26].mxu0 %vm95_vm0, %v1922_v25 }
 0x1d8   :  { %v1141_v39 = vpop.f32.mrb[8].mxu1 }
 0x1d9   :  { %v1142_v63 = vadd.f32 %v3468_v36, %v1141_v39  ;;  %v2366_v48 = vpop.f32.mrb[9].mxu1 }
 0x1db   :  { %v1155_v18 = vmax.f32 %v1142_v63, 0.0  ;;  %v3622_v63 = vld [vmem:[#allocation7_spill] sm:$0xff] }
 0x1dd   :  { %v1158_v26 = vadd.f32 %v1155_v18, %v1057_v28  ;;  %v3623_v28 = vld [vmem:[#allocation8_spill] sm:$0xff] }
 0x1df   :  { %1162 = vst.msk [vmem:[%s3577_s12] sm:$0xff] %vm1161_vm5, %v1158_v26  ;;  %v1146_v57 = vpop.f32.mrb[10].mxu1 }
 0x1e0   :  { %v1147_v13 = vadd.f32 %v3468_v36, %v1146_v57  ;;  %v2369_v59 = vpop.f32.mrb[11].mxu1 }
 0x1e2   :  { %v1156_v23 = vmax.f32 %v1147_v13, 0.0 }
 0x1e3   :  { %v1151_v0 = vpop.f32.mrb[12].mxu1 }
 0x1e4   :  { %v1159_v6 = vadd.f32 %v1156_v23, %v1058_v54  ;;  %v1152_v12 = vadd.f32 %v3468_v36, %v1151_v0  ;;  %v2372_v32 = vpop.f32.mrb[13].mxu1 }
 0x1e6   :  { %1163 = vst.msk [vmem:[%s3577_s12 + $0x8] sm:$0xff] %vm1161_vm5, %v1159_v6  ;;  %v1157_v37 = vmax.f32 %v1152_v12, 0.0 }
 0x1e7   :  { %v2389_v43 = vpop.f32.mrb[14].mxu1 }
 0x1e8   :  { %v1160_v56 = vadd.f32 %v1157_v37, %v1059_v60  ;;  %v1399_v33 = vadd.f32 %v2389_v43, %v3103_v44  ;;  %v1393_v5 = vpop.f32.mrb[15].mxu1 }
 0x1e9   :  { %v1394_v51 = vadd.f32 %v3103_v44, %v1393_v5 }
 0x1ea   :  { %1165 = vst.msk [vmem:[%s3577_s12 + $0x10] sm:$0xf] %vm1164_vm6, %v1160_v56  ;;  %v1413_v14 = vmax.f32 %v1399_v33, 0.0 }
 0x1eb   :  { %v1412_v2 = vmax.f32 %v1394_v51, 0.0  ;;  %v2392_v15 = vpop.f32.mrb[16].mxu1 }
 0x1ec   :  { %v1441_v9 = vmul.f32 %v3211_v19, %v1413_v14  ;;  %v1409_v58 = vadd.f32 %v2392_v15, %v3103_v44  ;;  %v1403_v25 = vpop.f32.mrb[17].mxu1 }
 0x1ed   :  { %v1440_v8 = vmul.f32 %v3621_v11, %v1412_v2  ;;  %v1404_v39 = vadd.f32 %v3103_v44, %v1403_v25 }
 0x1ee   :  { %v1694_v48 = vmul.f32 %v3622_v63, %v1441_v9  ;;  %v1841_v18 = vmul.f32 %v3623_v28, %v1441_v9  ;;  %v1415_v26 = vmax.f32 %v1409_v58, 0.0 }
 0x1ef   :  { %v1693_v57 = vmul.f32 %v3622_v63, %v1440_v8  ;;  %v1840_v13 = vmul.f32 %v3623_v28, %v1440_v8  ;;  %v1414_v59 = vmax.f32 %v1404_v39, 0.0  ;;  %v2409_v54 = vpop.f32.mrb[18].mxu1 }
 0x1f0   :  { %v1700_v19 = vadd.f32 %v1694_v48, %v3342_v34  ;;  %v1866_v21 = vrot.slane %v1841_v18, 5  ;;  %v1443_v23 = vmul.f32 %v1438_v16, %v1415_v26  ;;  %v1648_v0 = vadd.f32 %v2409_v54, %v3103_v44  ;;  %v1642_v6 = vpop.f32.mrb[19].mxu1 }
 0x1f1   :  { %v1699_v12 = vadd.f32 %v1693_v57, %v3352_v24  ;;  %v1865_v32 = vrot.slane %v1840_v13, 5  ;;  %v1442_v60 = vmul.f32 %v3281_v52, %v1414_v59  ;;  %v1643_v37 = vadd.f32 %v3103_v44, %v1642_v6 }
 0x1f2   :  { %v1734_v43 = vadd.f32 %v3349_v45, %v1700_v19  ;;  %v1843_v56 = vmul.f32 %v3623_v28, %v1443_v23  ;;  %v1661_v33 = vmax.f32 %v1648_v0, 0.0 }
 0x1f3   :  { %v1733_v5 = vadd.f32 %v3355_v27, %v1699_v12  ;;  %v1867_v34 = vsel %vm804_vm2, %v1865_v32, %v1866_v21  ;;  %v1695_v51 = vmul.f32 %v3622_v63, %v1442_v60  ;;  %v1842_v14 = vmul.f32 %v3623_v28, %v1442_v60  ;;  %v2412_v2 = vpop.f32.mrb[20].mxu1 }
 0x1f4   :  { %v1870_v24 = vrot.slane %v1843_v56, 5  ;;  %v1682_v15 = vmul.f32 %v3297_v47, %v1661_v33  ;;  %v1746_v52 = vadd.f32 %v3358_v1, %v1734_v43  ;;  %v1660_v9 = vmax.f32 %v1643_v37, 0.0  ;;  %v1652_v58 = vpop.f32.mrb[21].mxu1 }
 0x1f5   :  { %v1701_v45 = vadd.f32 %v1695_v51, %v3367_v31  ;;  %v1868_v25 = vrot.slane %v1842_v14, 5  ;;  %v1745_v11 = vadd.f32 %v3363_v46, %v1733_v5  ;;  %v1653_v27 = vadd.f32 %v3103_v44, %v1652_v58 }
 0x1f6   :  { %v1752_v8 = vmul.f32 %v3222_v40, %v1682_v15  ;;  %v1681_v39 = vmul.f32 %v3327_v53, %v1660_v9 }
 0x1f7   :  { %v1735_v63 = vadd.f32 %v1728_v10, %v1701_v45  ;;  %v1869_v47 = vsel %vm804_vm2, %v1866_v21, %v1868_v25  ;;  %v1871_v1 = vsel %vm804_vm2, %v1868_v25, %v1870_v24  ;;  %v1662_v48 = vmax.f32 %v1653_v27, 0.0 }
 0x1f8   :  { %v1758_v28 = vadd.f32 %v1752_v8, %v1746_v52  ;;  %v1751_v31 = vmul.f32 %v3222_v40, %v1681_v39 }
 0x1f9   :  { %v1683_v18 = vmul.f32 %v1679_v20, %v1662_v48  ;;  %v1747_v46 = vadd.f32 %v3391_v4, %v1735_v63 }
 0x1fa   :  { %v1792_v44 = vadd.f32 %v3411_v22, %v1758_v28  ;;  %v1757_v26 = vadd.f32 %v1751_v31, %v1745_v11 }
 0x1fb   :  { %v1753_v16 = vmul.f32 %v3222_v40, %v1683_v18 }
 0x1fc   :  { %v1834_v53 = vadd.f32 %v3370_v55, %v1792_v44  ;;  %v1791_v17 = vadd.f32 %v3397_v50, %v1757_v26  ;;  %v2002_v50 = vadd.f32 %v3463_v3, %v3457_v35 }
 0x1fd   :  { %v1759_v10 = vadd.f32 %v1753_v16, %v1747_v46 }
 0x1fe   :  { %v1833_v57 = vadd.f32 %v3374_v61, %v1791_v17  ;;  %v1876_v13 = vadd.f32 %v1869_v47, %v1834_v53  ;;  %v2015_v21 = vmax.f32 %v2002_v50, 0.0 }
 0x1ff   :  { %v1793_v59 = vadd.f32 %v1786_v38, %v1759_v10 }
 0x200   :  { %v1875_v54 = vadd.f32 %v1867_v34, %v1833_v57  ;;  %v1918_v20 = vadd.f32 %v3385_v49, %v1876_v13 }
 0x201   :  { %v1835_v4 = vadd.f32 %v3382_v42, %v1793_v59 }
 0x202   :  { %v1917_v22 = vadd.f32 %v3377_v62, %v1875_v54  ;;  %v1924_v61 = vadd.f32 %v3294_v41, %v1918_v20  ;;  %v2006_v62 = vpop.f32.mrb[24].mxu0 }
 0x203   :  { %v1877_v19 = vadd.f32 %v1871_v1, %v1835_v4  ;;  %v2422_v49 = vpop.f32.mrb[25].mxu0  ;;  %v2007_v6 = vadd.f32 %v3463_v3, %v2006_v62 }
 0x204   :  { %v1923_v40 = vadd.f32 %v3294_v41, %v1917_v22  ;;  %v2011_v29 = vpop.f32.mrb[26].mxu0 }
 0x205   :  { %v1919_v55 = vadd.f32 %v3388_v7, %v1877_v19  ;;  %v2425_v7 = vpop.f32.mrb[27].mxu0  ;;  %v2012_v43 = vadd.f32 %v3463_v3, %v2011_v29 }
 0x206   :  { %2431 = vmatmul.mubr.msk.f32.vlgmr.msra.gmra.mrb[22].mxu1 %vm95_vm0, %v1923_v40 }
 0x207   :  { %2433 = vmatprep.mubr.msk.f32.mxu1 %vm2493_vm4, %v3610_v30  ;;  %v1925_v42 = vadd.f32 %v3294_v41, %v1919_v55  ;;  %v2016_v41 = vmax.f32 %v2007_v6, 0.0  ;;  %v2017_v5 = vmax.f32 %v2012_v43, 0.0 }
 0x20a   :  { %2434 = vmatmul.mubr.msk.f32.gmra.mrb[24].mxu1 %vm95_vm0, %v1924_v61 }
 0x20b   :  { %2436 = vmatprep.mubr.msk.f32.mxu1 %vm2493_vm4, %v3610_v30 }
 0x20e   :  { %2437 = vmatmul.mubr.msk.f32.gmra.mrb[26].mxu1 %vm95_vm0, %v1925_v42 }
 0x2d9   :  { %v2093_v38 = vpop.f32.mrb[22].mxu1 }
 0x2da   :  { %v2094_v23 = vadd.f32 %v3468_v36, %v2093_v38  ;;  %v2432_v0 = vpop.f32.mrb[23].mxu1 }
 0x2dc   :  { %v2107_v12 = vmax.f32 %v2094_v23, 0.0 }
 0x2dd   :  { %v2098_v30 = vpop.f32.mrb[24].mxu1 }
 0x2de   :  { %v2110_v32 = vadd.f32 %v2107_v12, %v2015_v21  ;;  %v2099_v60 = vadd.f32 %v3468_v36, %v2098_v30  ;;  %v2435_v37 = vpop.f32.mrb[25].mxu1 }
 0x2e0   :  { %2236 = vst.msk [vmem:[%s3577_s12 + $0x18] sm:$0xff] %vm1161_vm5, %v2110_v32  ;;  %v2108_v35 = vmax.f32 %v2099_v60, 0.0 }
 0x2e1   :  { %v2103_v56 = vpop.f32.mrb[26].mxu1 }
 0x2e2   :  { %v2111_v33 = vadd.f32 %v2108_v35, %v2016_v41  ;;  %v2104_v34 = vadd.f32 %v3468_v36, %v2103_v56  ;;  %v2438_v51 = vpop.f32.mrb[27].mxu1 }
 0x2e4   :  { %2237 = vst.msk [vmem:[%s3577_s12 + $0x20] sm:$0xff] %vm1161_vm5, %v2111_v33  ;;  %v2109_v14 = vmax.f32 %v2104_v34, 0.0 }
 0x2e6   :  { %v2112_v2 = vadd.f32 %v2109_v14, %v2017_v5 }
 0x2e8   :  { %2238 = vst.msk [vmem:[%s3577_s12 + $0x28] sm:$0xf] %vm1164_vm6, %v2112_v2 }

// kernel: shufflenet_forward.11
= control target key start
LH: loop header
LB: loop body
LE: loop exit
PB: predicated region body
PF: predicated region fallthrough
CT: control target
= control target key end

     0   :  { %vm93_vm0 = vcmask 261120   ;;  %v1829_v7 = vmov 0   ;;  %vm591_vm1 = vcmask 1044480   ;;  %vm652_vm2 = vcmask 1043456   ;;  %s2318_s2 = inlined_call_operand.vmem [shape: f32[32,32], index: 2, kind: input, shape index: {}]   ;;  %s2319_s0 = inlined_call_operand.vmem [shape: f32[2,4,12,32], index: 0, kind: input, shape index: {}]   ;;  %s2320_s8 = inlined_call_operand.vmem [shape: f32[9,1,32], index: 8, kind: input, shape index: {}]   ;;  %s2321_s1 = inlined_call_operand.vmem [shape: f32[4,12,1], index: 1, kind: input, shape index: {}]   ;;  %s2322_s10 = inlined_call_operand.vmem [shape: f32[32,64], index: 10, kind: input, shape index: {}]   ;;  %s2323_s9 = inlined_call_operand.vmem [shape: f32[1,32], index: 9, kind: input, shape index: {}]   ;;  %s2324_s6 = inlined_call_operand.vmem [shape: f32[32,64], index: 6, kind: input, shape index: {}]   ;;  %s2325_s3 = inlined_call_operand.vmem [shape: f32[1,32], index: 3, kind: input, shape index: {}]   ;;  %s2326_s4 = inlined_call_operand.vmem [shape: f32[9,1,32], index: 4, kind: input, shape index: {}]   ;;  %s2327_s5 = inlined_call_operand.vmem [shape: f32[1,32], index: 5, kind: input, shape index: {}]   ;;  %s2328_s11 = inlined_call_operand.vmem [shape: f32[1,64], index: 11, kind: input, shape index: {}]   ;;  %s2329_s7 = inlined_call_operand.vmem [shape: f32[1,64], index: 7, kind: input, shape index: {}]   ;;  %s2330_s12 = inlined_call_operand.vmem [shape: f32[2,6,64], index: 12, kind: output, shape index: {}]  }
   0x1   :  { %v41_v0 = vld [vmem:[%s2318_s2] sm:$0xff]  ;;  %v42_v1 = vld [vmem:[%s2318_s2 + $0x8] sm:$0xff]  ;;  %v43_v2 = vld [vmem:[%s2318_s2 + $0x10] sm:$0xff]  ;;  %1827 = vset.pattern.permute.xlu0 %v1829_v7  ;;  %1828 = vset.pattern.permute.xlu1 %v1829_v7  ;;  %v1830_v7 = vmov 0.0|0.0   ;;  %vm1831_vm3 = vmmov 0   ;;  %vm840_vm4 = vcmask 521216  }
   0x2   :  { %v1907_v3 = vpack.c.bf16 %v42_v1, %v41_v0  ;;  %v44_v4 = vld [vmem:[%s2318_s2 + $0x18] sm:$0xff]  ;;  %v76_v5 = vld [vmem:[%s2319_s0] sm:$0xff]  ;;  %v1469_v13 = vld [vmem:[%s2319_s0 + $0x10] sm:$0xff] }
   0x3   :  { %v1918_v6 = vld [vmem:[%s2320_s8] ss:$0 sm:$0xff]  ;;  %v1920_v8 = vpack.c.bf16 %v44_v4, %v43_v2  ;;  %1611 = vmatprep.mubr.msk.f32.mxu0 %vm93_vm0, %v76_v5  ;;  %v1926_v9 = vld [vmem:[%s2320_s8 + $0x1] ss:$0 sm:$0xff]  ;;  %v1931_v10 = vld [vmem:[%s2320_s8 + $0x2] ss:$0 sm:$0xff]  ;;  %1622 = vmatprep.mubr.msk.f32.mxu1 %vm93_vm0, %v1469_v13 }
   0x4   :  { %v473_v11 = vmul.f32 %v1918_v6, %v76_v5  ;;  %1736 = vmatprep.subr.bf16.mxu0 %v1907_v3  ;;  %1744 = vmatprep.subr.bf16.mxu1 %v1907_v3  ;;  %v1939_v12 = vld [vmem:[%s2320_s8 + $0x7] ss:$0 sm:$0xff]  ;;  %v503_v14 = vmul.f32 %v1931_v10, %v76_v5  ;;  %v1948_v15 = vld [vmem:[%s2320_s8 + $0x6] ss:$0 sm:$0xff]  ;;  %v487_v16 = vmul.f32 %v1926_v9, %v1469_v13  ;;  %v1504_v17 = vld [vmem:[%s2320_s8 + $0x8] ss:$0 sm:$0xff] }
   0x5   :  { %1738 = vmatpush3.bf16.msra.mxu0 %v1907_v3  ;;  %1746 = vmatpush3.bf16.msra.mxu1 %v1907_v3  ;;  %v77_v18 = vld [vmem:[%s2319_s0 + $0x8] sm:$0xf]  ;;  %v1494_v19 = vld [vmem:[%s2320_s8 + $0x3] ss:$0 sm:$0xff]  ;;  %v579_v21 = vmul.f32 %v1948_v15, %v76_v5  ;;  %v1498_v23 = vld [vmem:[%s2320_s8 + $0x5] ss:$0 sm:$0xff]  ;;  %v610_v27 = vmul.f32 %v1939_v12, %v1469_v13  ;;  %v640_v30 = vmul.f32 %v1504_v17, %v76_v5 }
   0x6   :  { %1740 = vmatprep.subr.bf16.mxu0 %v1920_v8  ;;  %1748 = vmatprep.subr.bf16.mxu1 %v1920_v8  ;;  %v512_v20 = vrot.slane %v503_v14, 1  ;;  %v580_v22 = vmul.f32 %v1948_v15, %v77_v18  ;;  %v1471_v24 = vld [vmem:[%s2319_s0 + $0x20] sm:$0xff]  ;;  %v495_v26 = vadd.f32 %v487_v16, %v473_v11  ;;  %v1470_v28 = vld [vmem:[%s2319_s0 + $0x18] sm:$0xf]  ;;  %v1473_v29 = vld [vmem:[%s2319_s0 + $0x30] sm:$0xff]  ;;  %v641_v31 = vmul.f32 %v1504_v17, %v77_v18 }
   0x7   :  { %v1975_v25 = vld [vmem:[%s2320_s8 + $0x4] ss:$0 sm:$0xff]  ;;  %v611_v32 = vmul.f32 %v1939_v12, %v1470_v28  ;;  %v525_v33 = vmul.f32 %v1494_v19, %v1471_v24  ;;  %v557_v35 = vmul.f32 %v1498_v23, %v1471_v24  ;;  %v592_v37 = vrot.slane %v579_v21, 3  ;;  %v2002_v46 = vld [vmem:[%s2319_s0 + $0x48] sm:$0xf]  ;;  %v53_v11 = vld [vmem:[%s2322_s10 + $0x10] sm:$0xff] }
   0x8   :  { %v514_v34 = vadd.f32 %v512_v20, %v495_v26  ;;  %v541_v36 = vmul.f32 %v1975_v25, %v1473_v29  ;;  %v593_v38 = vrot.slane %v580_v22, 3  ;;  %v1994_v41 = vld [vmem:[%s2319_s0 + $0x40] sm:$0xff]  ;;  %v622_v42 = vrot.slane %v610_v27, 3  ;;  %v52_v56 = vld [vmem:[%s2322_s10 + $0x8] sm:$0xff]  ;;  %v1474_v1 = vld [vmem:[%s2319_s0 + $0x38] sm:$0xf] }
   0x9   :  { %1742 = vmatpush3.bf16.msra.mxu0 %v1920_v8  ;;  %1750 = vmatpush3.bf16.msra.mxu1 %v1920_v8  ;;  %v566_v40 = vrot.slane %v557_v35, 1  ;;  %v653_v43 = vrot.slane %v640_v30, 4  ;;  %v623_v44 = vrot.slane %v611_v32, 3  ;;  %v1294_v45 = vmul.f32 %v1994_v41, %v1504_v17  ;;  %v2014_v51 = vld [vmem:[%s2319_s0 + $0x60] sm:$0xff]  ;;  %v1472_v0 = vld [vmem:[%s2319_s0 + $0x28] sm:$0xf] }
   0xa   :  { %1752 = vmatprep.subr.bf16.mxu0 %v1907_v3  ;;  %1760 = vmatprep.subr.bf16.mxu1 %v1907_v3  ;;  %v533_v39 = vadd.f32 %v525_v33, %v514_v34  ;;  %v654_v47 = vrot.slane %v641_v31, 4  ;;  %v2008_v49 = vmul.f32 %v2002_v46, %v1948_v15  ;;  %v1295_v50 = vmul.f32 %v2002_v46, %v1504_v17  ;;  %v177_v52 = vld [vmem:[%s2321_s1] sm:$0xff]  ;;  %v54_v13 = vld [vmem:[%s2322_s10 + $0x18] sm:$0xff]  ;;  %v1480_v16 = vld [vmem:[%s2321_s1 + $0x10] sm:$0xff] }
   0xb   :  { %v1484_v53 = vld [vmem:[%s2321_s1 + $0x20] sm:$0xff]  ;;  %v594_v54 = vsel %vm591_vm1, %v592_v37, %v593_v38  ;;  %v1300_v57 = vrot.slane %v1294_v45, 4  ;;  %v2032_v58 = vmul.f32 %v2014_v51, %v1494_v19  ;;  %v2035_v59 = vmul.f32 %v2014_v51, %v1498_v23  ;;  %181 = vperm.xlu0 %1827, %v177_v52   ;;  %v1487_v17 = vld [vmem:[%s2321_s1 + $0x30] sm:$0xff]  ;;  %v178_v22 = vld [vmem:[%s2321_s1 + $0x8] sm:$0xf] }
   0xc   :  { %1612 = vmatmul.mubr.msk.f32.vlgmr.msra.gmra.mrb[0].mxu0 %vm93_vm0, %v77_v18  ;;  %1623 = vmatmul.mubr.msk.f32.vlgmr.msra.gmra.mrb[0].mxu1 %vm93_vm0, %v1470_v28  ;;  %v549_v48 = vadd.f32 %v541_v36, %v533_v39  ;;  %v51_v55 = vld [vmem:[%s2322_s10] sm:$0xff]  ;;  %v1301_v61 = vrot.slane %v1295_v50, 4  ;;  %v624_v62 = vsel %vm591_vm1, %v622_v42, %v623_v44  ;;  %v655_v5 = vsel %vm652_vm2, %v653_v43, %v654_v47  ;;  %v938_v26 = vld [vmem:[%s2321_s1 + $0x8] sm:$0xf]  ;;  %v1525_v27 = vld [vmem:[%s2321_s1 + $0x18] sm:$0xf] }
   0xd   :  { %1754 = vmatpush3.bf16.msra.mxu0 %v1907_v3  ;;  %1762 = vmatpush3.bf16.msra.mxu1 %v1907_v3  ;;  %v1768_v2 = vpack.c.bf16 %v52_v56, %v51_v55  ;;  %v1771_v18 = vpack.c.bf16 %v54_v13, %v53_v11  ;;  %v1832_v19 = vmov 0.0   ;;  %v2073_v20 = vld [vmem:[%s2323_s9] ss:$0 sm:$0xff]  ;;  %v1517_v28 = vld [vmem:[%s2319_s0 + $0x68] sm:$0xf]  ;;  %v48_v32 = vld [vmem:[%s2324_s6 + $0x10] sm:$0xff]  ;;  %v1258_v35 = vmul.f32 %v1994_v41, %v1948_v15 }
   0xe   :  { %1756 = vmatprep.subr.bf16.mxu0 %v1920_v8  ;;  %1764 = vmatprep.subr.bf16.mxu1 %v1920_v8  ;;  %v568_v60 = vadd.f32 %v566_v40, %v549_v48  ;;  %v2049_v4 = vsel %vm652_vm2, %v1300_v57, %v1301_v61  ;;  %v47_v30 = vld [vmem:[%s2324_s6 + $0x8] sm:$0xff]  ;;  %v49_v33 = vld [vmem:[%s2324_s6 + $0x18] sm:$0xff]  ;;  %v1230_v36 = vmul.f32 %v1994_v41, %v1931_v10  ;;  %v1265_v38 = vrot.slane %v2008_v49, 3  ;;  %v2142_v39 = vld [vmem:[%s2319_s0 + $0x50] sm:$0xff] }
   0xf   :  { %1633 = vmatprep.mubr.msk.f32.mxu0 %vm93_vm0, %v1471_v24  ;;  %1644 = vmatprep.mubr.msk.f32.mxu1 %vm93_vm0, %v1473_v29  ;;  %v1481_v24 = vld [vmem:[%s2321_s1 + $0x18] sm:$0xf]  ;;  %v46_v29 = vld [vmem:[%s2324_s6] sm:$0xff]  ;;  %v2130_v34 = vpack.c.bf16 %v49_v33, %v48_v32  ;;  %v1264_v37 = vrot.slane %v1258_v35, 3  ;;  %v1224_v40 = vmul.f32 %v1994_v41, %v1918_v6  ;;  %v1226_v42 = vmul.f32 %v2142_v39, %v1926_v9  ;;  %v2151_v10 = vld [vmem:[%s2319_s0 + $0x70] sm:$0xff] }
  0x10   :  { %374 = vperm.xlu1 %1828, %v1484_v53   ;;  %v596_v63 = vadd.f32 %v594_v54, %v568_v60  ;;  %279 = vperm.xlu0 %1827, %v1480_v16   ;;  %v2120_v31 = vpack.c.bf16 %v47_v30, %v46_v29  ;;  %v1233_v43 = vrot.slane %v1230_v36, 1  ;;  %v1251_v47 = vrot.slane %v2035_v59, 1  ;;  %v2172_v61 = vld [vmem:[%s2326_s4 + $0x6] ss:$0 sm:$0xff] }
  0x11   :  { %1758 = vmatpush3.bf16.msra.mxu0 %v1920_v8  ;;  %1766 = vmatpush3.bf16.msra.mxu1 %v1920_v8  ;;  %v1228_v44 = vadd.f32 %v1226_v42, %v1224_v40  ;;  %v1266_v15 = vsel %vm591_vm1, %v1264_v37, %v1265_v38 }
  0x12   :  { %1767 = vmatprep.subr.bf16.mxu0 %v1830_v7  ;;  %1773 = vmatprep.subr.bf16.mxu1 %v1830_v7  ;;  %v626_v14 = vadd.f32 %v624_v62, %v596_v63 }
  0x13   :  { %v1235_v45 = vadd.f32 %v1233_v43, %v1228_v44 }
  0x14   :  { %1634 = vmatmul.mubr.msk.f32.vlgmr.msra.gmra.mrb[2].mxu0 %vm93_vm0, %v1472_v0  ;;  %1645 = vmatmul.mubr.msk.f32.vlgmr.msra.gmra.mrb[2].mxu1 %vm93_vm0, %v1474_v1  ;;  %v657_v21 = vadd.f32 %v655_v5, %v626_v14  ;;  %v2182_v5 = vld [vmem:[%s2326_s4 + $0x7] ss:$0 sm:$0xff] }
  0x15   :  { %1769 = vmatpush3.bf16.msra.mxu0 %v1768_v2  ;;  %1655 = vmatprep.mubr.msk.f32.mxu0 %vm1831_vm3, %v1832_v19  ;;  %v1242_v6 = vadd.f32 %v2032_v58, %v1235_v45 }
  0x16   :  { %1770 = vmatprep.subr.bf16.mxu0 %v1830_v7  ;;  %463 = vperm.xlu1 %1828, %v1487_v17   ;;  %v671_v23 = vadd.f32 %v2073_v20, %v657_v21 }
  0x17   :  { %1666 = vmatprep.mubr.msk.f32.mxu1 %vm1831_vm3, %v1832_v19  ;;  %186 = vperm.xlu0 %1827, %v178_v22   ;;  %v2197_v22 = vld [vmem:[%s2326_s4 + $0x1] ss:$0 sm:$0xff] }
  0x18   :  { %1775 = vmatpush3.bf16.msra.mxu1 %v2120_v31 }
  0x19   :  { %1772 = vmatpush3.bf16.msra.mxu0 %v1771_v18  ;;  %1776 = vmatprep.subr.bf16.mxu1 %v1830_v7 }
  0x1a   :  { %1780 = vmatprep.subr.bf16.mxu0 %v1907_v3  ;;  %284 = vperm.xlu1 %1828, %v1481_v24  }
  0x1b   :  { %941 = vperm.xlu0 %1827, %v177_v52  }
  0x1c   :  { %1656 = vmatmul.mubr.msk.f32.vlgmr.msra.gmra.mrb[4].mxu0 %vm93_vm0, %v671_v23  ;;  %1778 = vmatpush3.bf16.msra.mxu1 %v2130_v34 }
  0x1d   :  { %1782 = vmatpush3.bf16.msra.mxu0 %v1907_v3  ;;  %1677 = vmatprep.mubr.msk.f32.mxu0 %vm93_vm0, %v1994_v41 }
  0x1e   :  { %1784 = vmatprep.subr.bf16.mxu0 %v1920_v8  ;;  %1038 = vperm.xlu1 %1828, %v1480_v16  }
  0x1f   :  { %1132 = vperm.xlu0 %1827, %v1484_v53   ;;  %1788 = vmatprep.subr.bf16.mxu1 %v1907_v3  ;;  %v2163_v53 = vld [vmem:[%s2325_s3] ss:$0 sm:$0xff] }
  0x21   :  { %1786 = vmatpush3.bf16.msra.mxu0 %v1920_v8 }
  0x22   :  { %1796 = vmatprep.subr.bf16.mxu0 %v1907_v3  ;;  %1220 = vperm.xlu1 %1828, %v1487_v17   ;;  %v2187_v17 = vld [vmem:[%s2326_s4 + $0x2] ss:$0 sm:$0xff] }
  0x23   :  { %946 = vperm.xlu0 %1827, %v938_v26  }
  0x24   :  { %1678 = vmatmul.mubr.msk.f32.vlgmr.msra.gmra.mrb[6].mxu0 %vm93_vm0, %v2002_v46  ;;  %v1244_v46 = vmul.f32 %v2151_v10, %v1975_v25 }
  0x25   :  { %1798 = vmatpush3.bf16.msra.mxu0 %v1907_v3  ;;  %1699 = vmatprep.mubr.msk.f32.mxu0 %vm93_vm0, %v2014_v51 }
  0x26   :  { %1800 = vmatprep.subr.bf16.mxu0 %v1920_v8  ;;  %1043 = vperm.xlu1 %1828, %v1525_v27   ;;  %v1246_v41 = vadd.f32 %v1244_v46, %v1242_v6 }
  0x28   :  { %v1253_v48 = vadd.f32 %v1251_v47, %v1246_v41 }
  0x29   :  { %1802 = vmatpush3.bf16.msra.mxu0 %v1920_v8 }
  0x2a   :  { %1811 = vmatprep.subr.bf16.mxu0 %v1830_v7  ;;  %v2158_v9 = vadd.f32 %v1266_v15, %v1253_v48 }
  0x2c   :  { %1700 = vmatmul.mubr.msk.f32.vlgmr.msra.gmra.mrb[8].mxu0 %vm93_vm0, %v1517_v28 }
  0x2d   :  { %1813 = vmatpush3.bf16.msra.mxu0 %v1768_v2  ;;  %1721 = vmatprep.mubr.msk.f32.mxu0 %vm1831_vm3, %v1832_v19  ;;  %v2177_v2 = vld [vmem:[%s2326_s4 + $0x8] ss:$0 sm:$0xff] }
  0x2e   :  { %1814 = vmatprep.subr.bf16.mxu0 %v1830_v7 }
  0x31   :  { %1816 = vmatpush3.bf16.msra.mxu0 %v1771_v18  ;;  %v2192_v18 = vld [vmem:[%s2326_s4] ss:$0 sm:$0xff] }
  0x8a   :  { %v182_v49 = vpop.permute.xlu0 %181 }
  0x8f   :  { %v375_v50 = vpop.permute.xlu1 %374  ;;  %v280_v51 = vpop.permute.xlu0 %279 }
  0x95   :  { %v464_v52 = vpop.permute.xlu1 %463 }
  0x96   :  { %v187_v0 = vpop.permute.xlu0 %186 }
  0x99   :  { %v285_v1 = vpop.permute.xlu1 %284 }
  0xdf   :  { %v1613_v54 = vpop.f32.mrb[0].mxu0  ;;  %v1624_v55 = vpop.f32.mrb[0].mxu1 }
  0xe0   :  { %v172_v25 = vadd.f32 %v1613_v54, %v2163_v53  ;;  %v269_v56 = vadd.f32 %v1624_v55, %v2163_v53  ;;  %v166_v57 = vpop.f32.mrb[1].mxu0  ;;  %v263_v58 = vpop.f32.mrb[1].mxu1  ;;  %v1495_v55 = vld [vmem:[%s2326_s4 + $0x3] ss:$0 sm:$0xff] }
  0xe1   :  { %v167_v59 = vadd.f32 %v2163_v53, %v166_v57  ;;  %v264_v60 = vadd.f32 %v2163_v53, %v263_v58 }
  0xe2   :  { %v176_v62 = vmax.f32 %v172_v25, 0.0  ;;  %v273_v63 = vmax.f32 %v269_v56, 0.0  ;;  %v1499_v25 = vld [vmem:[%s2326_s4 + $0x5] ss:$0 sm:$0xff] }
  0xe3   :  { %v175_v11 = vmax.f32 %v167_v59, 0.0  ;;  %v272_v13 = vmax.f32 %v264_v60, 0.0  ;;  %v2222_v60 = vld [vmem:[%s2326_s4 + $0x4] ss:$0 sm:$0xff] }
  0xe4   :  { %v190_v14 = vmul.f32 %v187_v0, %v176_v62  ;;  %v288_v16 = vmul.f32 %v285_v1, %v273_v63  ;;  %v942_v63 = vpop.permute.xlu0 %941 }
  0xe5   :  { %v189_v21 = vmul.f32 %v182_v49, %v175_v11  ;;  %v287_v23 = vmul.f32 %v280_v51, %v272_v13 }
  0xe6   :  { %v588_v24 = vmul.f32 %v2172_v61, %v190_v14  ;;  %v649_v26 = vmul.f32 %v2177_v2, %v190_v14  ;;  %v619_v27 = vmul.f32 %v2182_v5, %v288_v16 }
  0xe7   :  { %v510_v28 = vmul.f32 %v2187_v17, %v189_v21  ;;  %v587_v29 = vmul.f32 %v2172_v61, %v189_v21  ;;  %v648_v30 = vmul.f32 %v2177_v2, %v189_v21  ;;  %v480_v32 = vmul.f32 %v2192_v18, %v189_v21  ;;  %v1635_v33 = vpop.f32.mrb[2].mxu0  ;;  %v1646_v35 = vpop.f32.mrb[2].mxu1 }
  0xe8   :  { %v600_v36 = vrot.slane %v588_v24, 3  ;;  %v661_v37 = vrot.slane %v649_v26, 4  ;;  %v630_v38 = vrot.slane %v619_v27, 3  ;;  %v494_v40 = vmul.f32 %v2197_v22, %v287_v23  ;;  %v361_v42 = vpop.f32.mrb[3].mxu0  ;;  %v450_v43 = vpop.f32.mrb[3].mxu1 }
  0xe9   :  { %v599_v44 = vrot.slane %v587_v29, 3  ;;  %v660_v15 = vrot.slane %v648_v30, 4  ;;  %v618_v45 = vmul.f32 %v2182_v5, %v287_v23  ;;  %v362_v46 = vadd.f32 %v2163_v53, %v361_v42  ;;  %v1133_v24 = vpop.permute.xlu0 %1132  ;;  %v2232_v33 = vld [vmem:[%s2327_s5] ss:$0 sm:$0xff] }
  0xea   :  { %v496_v47 = vadd.f32 %v494_v40, %v480_v32  ;;  %v516_v6 = vrot.slane %v510_v28, 1  ;;  %v451_v41 = vadd.f32 %v2163_v53, %v450_v43 }
  0xeb   :  { %v629_v48 = vrot.slane %v618_v45, 3  ;;  %v369_v49 = vmax.f32 %v362_v46, 0.0  ;;  %v601_v51 = vsel %vm591_vm1, %v599_v44, %v600_v36  ;;  %v662_v54 = vsel %vm652_vm2, %v660_v15, %v661_v37 }
  0xec   :  { %v518_v56 = vadd.f32 %v516_v6, %v496_v47  ;;  %v458_v57 = vmax.f32 %v451_v41, 0.0 }
  0xed   :  { %v631_v58 = vsel %vm591_vm1, %v629_v48, %v630_v38  ;;  %v377_v59 = vmul.f32 %v375_v50, %v369_v49  ;;  %v947_v35 = vpop.permute.xlu0 %946 }
  0xee   :  { %v466_v62 = vmul.f32 %v464_v52, %v458_v57 }
  0xef   :  { %v532_v0 = vmul.f32 %v1495_v55, %v377_v59  ;;  %v564_v1 = vmul.f32 %v1499_v25, %v377_v59  ;;  %v2224_v11 = vpop.f32.mrb[4].mxu0 }
  0xf0   :  { %v1657_v13 = vpop.f32.mrb[5].mxu0  ;;  %v548_v16 = vmul.f32 %v2222_v60, %v466_v62  ;;  %v1519_v62 = vld [vmem:[%s2319_s0 + $0x78] sm:$0xf] }
  0xf1   :  { %v534_v14 = vadd.f32 %v532_v0, %v518_v56  ;;  %v570_v21 = vrot.slane %v564_v1, 1  ;;  %v1515_v56 = vld [vmem:[%s2319_s0 + $0x58] sm:$0xf] }
  0xf3   :  { %v550_v23 = vadd.f32 %v548_v16, %v534_v14 }
  0xf5   :  { %v572_v26 = vadd.f32 %v570_v21, %v550_v23 }
  0xf7   :  { %v603_v50 = vadd.f32 %v601_v51, %v572_v26  ;;  %v1679_v27 = vpop.f32.mrb[6].mxu0 }
  0xf8   :  { %v932_v28 = vadd.f32 %v1679_v27, %v2163_v53  ;;  %v926_v29 = vpop.f32.mrb[7].mxu0 }
  0xf9   :  { %v633_v30 = vadd.f32 %v631_v58, %v603_v50  ;;  %v927_v52 = vadd.f32 %v2163_v53, %v926_v29 }
  0xfa   :  { %v936_v32 = vmax.f32 %v932_v28, 0.0 }
  0xfb   :  { %v935_v36 = vmax.f32 %v927_v52, 0.0  ;;  %v664_v37 = vadd.f32 %v662_v54, %v633_v30 }
  0xfc   :  { %v950_v38 = vmul.f32 %v947_v35, %v936_v32 }
  0xfd   :  { %v949_v40 = vmul.f32 %v942_v63, %v935_v36  ;;  %v678_v42 = vadd.f32 %v2232_v33, %v664_v37 }
  0xfe   :  { %v1261_v43 = vmul.f32 %v2172_v61, %v950_v38  ;;  %v1297_v44 = vmul.f32 %v2177_v2, %v950_v38 }
  0xff   :  { %v2238_v15 = vmul.f32 %v2187_v17, %v949_v40  ;;  %v1260_v45 = vmul.f32 %v2172_v61, %v949_v40  ;;  %v1296_v46 = vmul.f32 %v2177_v2, %v949_v40  ;;  %1667 = vmatmul.mubr.msk.f32.vlgmr.msra.gmra.mrb[4].mxu1 %vm93_vm0, %v678_v42  ;;  %v1701_v47 = vpop.f32.mrb[8].mxu0  ;;  %v2244_v6 = vmul.f32 %v2192_v18, %v949_v40 }
 0x100   :  { %v1272_v41 = vrot.slane %v1261_v43, 3  ;;  %v1308_v48 = vrot.slane %v1297_v44, 4  ;;  %1790 = vmatpush3.bf16.msra.mxu1 %v1907_v3  ;;  %v1120_v49 = vpop.f32.mrb[9].mxu0  ;;  %1688 = vmatprep.mubr.msk.f32.mxu1 %vm93_vm0, %v2142_v39 }
 0x101   :  { %v1271_v17 = vrot.slane %v1260_v45, 3  ;;  %v1307_v51 = vrot.slane %v1296_v46, 4  ;;  %v1121_v61 = vadd.f32 %v2163_v53, %v1120_v49  ;;  %1792 = vmatprep.subr.bf16.mxu1 %v1920_v8  ;;  %v1237_v38 = vrot.slane %v2238_v15, 1 }
 0x103   :  { %v1128_v2 = vmax.f32 %v1121_v61, 0.0  ;;  %v2252_v54 = vsel %vm591_vm1, %v1271_v17, %v1272_v41  ;;  %v2255_v18 = vsel %vm652_vm2, %v1307_v51, %v1308_v48 }
 0x104   :  { %1794 = vmatpush3.bf16.msra.mxu1 %v1920_v8 }
 0x105   :  { %v1135_v57 = vmul.f32 %v1133_v24, %v1128_v2  ;;  %1804 = vmatprep.subr.bf16.mxu1 %v1907_v3 }
 0x107   :  { %v1241_v58 = vmul.f32 %v1495_v55, %v1135_v57  ;;  %v2262_v59 = vmul.f32 %v1499_v25, %v1135_v57  ;;  %1689 = vmatmul.mubr.msk.f32.vlgmr.msra.gmra.mrb[6].mxu1 %vm93_vm0, %v1515_v56 }
 0x108   :  { %1806 = vmatpush3.bf16.msra.mxu1 %v1907_v3  ;;  %1710 = vmatprep.mubr.msk.f32.mxu1 %vm93_vm0, %v2151_v10  ;;  %v1276_v3 = vmul.f32 %v2142_v39, %v1939_v12 }
 0x109   :  { %1808 = vmatprep.subr.bf16.mxu1 %v1920_v8 }
 0x10a   :  { %v1282_v10 = vrot.slane %v1276_v3, 3 }
 0x10c   :  { %1810 = vmatpush3.bf16.msra.mxu1 %v1920_v8  ;;  %v1277_v8 = vmul.f32 %v1515_v56, %v1939_v12  ;;  %v1510_v12 = vld [vmem:[%s2329_s7] ss:$0 sm:$0xff] }
 0x10d   :  { %1817 = vmatprep.subr.bf16.mxu1 %v1830_v7 }
 0x10e   :  { %v1283_v55 = vrot.slane %v1277_v8, 3 }
 0x10f   :  { %1711 = vmatmul.mubr.msk.f32.vlgmr.msra.gmra.mrb[8].mxu1 %vm93_vm0, %v1519_v62 }
 0x110   :  { %1819 = vmatpush3.bf16.msra.mxu1 %v2120_v31  ;;  %1732 = vmatprep.mubr.msk.f32.mxu1 %vm1831_vm3, %v1832_v19  ;;  %v1284_v25 = vsel %vm591_vm1, %v1282_v10, %v1283_v55 }
 0x111   :  { %1820 = vmatprep.subr.bf16.mxu1 %v1830_v7  ;;  %v1286_v63 = vadd.f32 %v1284_v25, %v2158_v9  ;;  %v1508_v7 = vld [vmem:[%s2328_s11] ss:$0 sm:$0xff] }
 0x112   :  { %v755_v19 = vadd.f32 %v1508_v7, %v2224_v11 }
 0x113   :  { %v1304_v31 = vadd.f32 %v2049_v4, %v1286_v63 }
 0x114   :  { %1822 = vmatpush3.bf16.msra.mxu1 %v2130_v34  ;;  %v1039_v34 = vpop.permute.xlu1 %1038  ;;  %v758_v13 = vmax.f32 %v755_v19, 0.0 }
 0x115   :  { %v1312_v0 = vadd.f32 %v2073_v20, %v1304_v31 }
 0x117   :  { %1722 = vmatmul.mubr.msk.f32.vlgmr.msra.gmra.mrb[10].mxu0 %vm93_vm0, %v1312_v0 }
 0x118   :  { %v1221_v14 = vpop.permute.xlu1 %1220 }
 0x11c   :  { %v1044_v26 = vpop.permute.xlu1 %1043 }
 0x1d2   :  { %v834_v39 = vpop.f32.mrb[4].mxu1 }
 0x1d3   :  { %v835_v1 = vadd.f32 %v1510_v12, %v834_v39  ;;  %v1668_v9 = vpop.f32.mrb[5].mxu1 }
 0x1d5   :  { %v838_v4 = vmax.f32 %v835_v1, 0.0 }
 0x1d7   :  { %v839_v20 = vadd.f32 %v838_v4, %v758_v13 }
 0x1d9   :  { %841 = vst.msk [vmem:[%s2330_s12] sm:$0x3f] %vm840_vm4, %v839_v20 }
 0x1da   :  { %v1690_v16 = vpop.f32.mrb[6].mxu1 }
 0x1db   :  { %v1029_v21 = vadd.f32 %v1690_v16, %v2163_v53  ;;  %v1023_v23 = vpop.f32.mrb[7].mxu1 }
 0x1dc   :  { %v1024_v11 = vadd.f32 %v2163_v53, %v1023_v23 }
 0x1dd   :  { %v1033_v24 = vmax.f32 %v1029_v21, 0.0 }
 0x1de   :  { %v1032_v50 = vmax.f32 %v1024_v11, 0.0 }
 0x1df   :  { %v1047_v27 = vmul.f32 %v1044_v26, %v1033_v24 }
 0x1e0   :  { %v1046_v28 = vmul.f32 %v1039_v34, %v1032_v50 }
 0x1e1   :  { %v1279_v29 = vmul.f32 %v2182_v5, %v1047_v27 }
 0x1e2   :  { %v1227_v30 = vmul.f32 %v2197_v22, %v1046_v28  ;;  %v1278_v52 = vmul.f32 %v2182_v5, %v1046_v28  ;;  %v1712_v32 = vpop.f32.mrb[8].mxu1  ;;  %v1255_v5 = vrot.slane %v2262_v59, 1 }
 0x1e3   :  { %v1290_v35 = vrot.slane %v1279_v29, 3  ;;  %v1208_v36 = vpop.f32.mrb[9].mxu1 }
 0x1e4   :  { %v1229_v37 = vadd.f32 %v1227_v30, %v2244_v6  ;;  %v1289_v40 = vrot.slane %v1278_v52, 3  ;;  %v1209_v42 = vadd.f32 %v2163_v53, %v1208_v36 }
 0x1e6   :  { %v1239_v43 = vadd.f32 %v1237_v38, %v1229_v37  ;;  %v1291_v44 = vsel %vm591_vm1, %v1289_v40, %v1290_v35  ;;  %v1216_v45 = vmax.f32 %v1209_v42, 0.0 }
 0x1e8   :  { %v1223_v46 = vmul.f32 %v1221_v14, %v1216_v45  ;;  %v1243_v47 = vadd.f32 %v1241_v58, %v1239_v43 }
 0x1ea   :  { %v1245_v22 = vmul.f32 %v2222_v60, %v1223_v46  ;;  %v1383_v53 = vpop.f32.mrb[10].mxu0 }
 0x1eb   :  { %v1723_v51 = vpop.f32.mrb[11].mxu0  ;;  %v1384_v61 = vadd.f32 %v1508_v7, %v1383_v53 }
 0x1ec   :  { %v1247_v41 = vadd.f32 %v1245_v22, %v1243_v47 }
 0x1ed   :  { %v1387_v56 = vmax.f32 %v1384_v61, 0.0 }
 0x1ee   :  { %v1257_v48 = vadd.f32 %v1255_v5, %v1247_v41 }
 0x1f0   :  { %v1275_v49 = vadd.f32 %v2252_v54, %v1257_v48 }
 0x1f2   :  { %v1293_v6 = vadd.f32 %v1291_v44, %v1275_v49 }
 0x1f4   :  { %v1311_v15 = vadd.f32 %v2255_v18, %v1293_v6 }
 0x1f6   :  { %v1313_v17 = vadd.f32 %v2232_v33, %v1311_v15 }
 0x1f8   :  { %1733 = vmatmul.mubr.msk.f32.vlgmr.msra.gmra.mrb[10].mxu1 %vm93_vm0, %v1313_v17 }
 0x2cb   :  { %v1457_v2 = vpop.f32.mrb[10].mxu1 }
 0x2cc   :  { %v1458_v57 = vadd.f32 %v1510_v12, %v1457_v2  ;;  %v1734_v60 = vpop.f32.mrb[11].mxu1 }
 0x2ce   :  { %v1461_v58 = vmax.f32 %v1458_v57, 0.0 }
 0x2d0   :  { %v1462_v59 = vadd.f32 %v1461_v58, %v1387_v56 }
 0x2d2   :  { %1534 = vst.msk [vmem:[%s2330_s12 + $0x8] sm:$0x3f] %vm840_vm4, %v1462_v59 }

// kernel: shufflenet_forward.12
= control target key start
LH: loop header
LB: loop body
LE: loop exit
PB: predicated region body
PF: predicated region fallthrough
CT: control target
= control target key end

     0   :  { %v983_v0 = vmov 0.0|0.0   ;;  %vm984_vm0 = vmmov 0   ;;  %v985_v4 = vmov 0.0   ;;  %v986_v7 = vmov 0   ;;  %s1299_s3 = inlined_call_operand.vmem [shape: f32[32,32], index: 3, kind: input, shape index: {}]   ;;  %s1300_s2 = inlined_call_operand.vmem [shape: f32[20,1], index: 2, kind: input, shape index: {}]   ;;  %s1301_s1 = inlined_call_operand.vmem [shape: f32[2,20,32], index: 1, kind: input, shape index: {}]   ;;  %s1302_s7 = inlined_call_operand.vmem [shape: f32[32,64], index: 7, kind: input, shape index: {}]   ;;  %s1303_s9 = inlined_call_operand.vmem [shape: f32[32,64], index: 9, kind: input, shape index: {}]   ;;  %s1304_s0 = inlined_call_operand.vmem [shape: f32[2,20,32], index: 0, kind: input, shape index: {}]   ;;  %s1305_s4 = inlined_call_operand.vmem [shape: f32[1,32], index: 4, kind: input, shape index: {}]   ;;  %s1306_s5 = inlined_call_operand.vmem [shape: f32[9,1,32], index: 5, kind: input, shape index: {}]   ;;  %s1307_s6 = inlined_call_operand.vmem [shape: f32[1,32], index: 6, kind: input, shape index: {}]   ;;  %s1308_s8 = inlined_call_operand.vmem [shape: f32[1,64], index: 8, kind: input, shape index: {}]   ;;  %s1309_s10 = inlined_call_operand.vmem [shape: f32[2,8,64], index: 10, kind: output, shape index: {}]  }
   0x1   :  { %941 = vmatprep.subr.bf16.mxu0 %v983_v0  ;;  %v38_v1 = vld [vmem:[%s1299_s3] sm:$0xff]  ;;  %v39_v2 = vld [vmem:[%s1299_s3 + $0x8] sm:$0xff]  ;;  %v40_v3 = vld [vmem:[%s1299_s3 + $0x10] sm:$0xff]  ;;  %871 = vmatprep.mubr.msk.f32.mxu0 %vm984_vm0, %v985_v4  ;;  %vm71_vm1 = vcmask 261120   ;;  %vm247_vm2 = vcmask 1042432   ;;  %vm199_vm3 = vcmask 1046528  }
   0x2   :  { %v942_v5 = vpack.c.bf16 %v39_v2, %v38_v1  ;;  %v41_v6 = vld [vmem:[%s1299_s3 + $0x18] sm:$0xff]  ;;  %981 = vset.pattern.permute.xlu0 %v986_v7  ;;  %982 = vset.pattern.permute.xlu1 %v986_v7  ;;  %v35_v9 = vld [vmem:[%s1300_s2] sm:$0xff]  ;;  %v37_v10 = vld [vmem:[%s1300_s2 + $0x10] sm:$0xf]  ;;  %vm215_vm4 = vcmask 1045504   ;;  %vm231_vm5 = vcmask 1043456  }
   0x3   :  { %947 = vmatprep.subr.bf16.mxu1 %v983_v0  ;;  %888 = vmatprep.mubr.msk.f32.mxu1 %vm984_vm0, %v985_v4  ;;  %v945_v8 = vpack.c.bf16 %v41_v6, %v40_v3  ;;  %v36_v11 = vld [vmem:[%s1300_s2 + $0x8] sm:$0xff]  ;;  %v62_v12 = vld [vmem:[%s1301_s1] sm:$0xff]  ;;  %v64_v14 = vld [vmem:[%s1301_s1 + $0x10] sm:$0xf]  ;;  %vm263_vm6 = vcmask 1041408   ;;  %vm473_vm7 = vcmask 523264  }
   0x4   :  { %943 = vmatpush3.bf16.msra.mxu0 %v942_v5  ;;  %166 = vperm.xlu0 %981, %v35_v9   ;;  %v63_v13 = vld [vmem:[%s1301_s1 + $0x8] sm:$0xff]  ;;  %v818_v15 = vld [vmem:[%s1301_s1 + $0x18] sm:$0xff]  ;;  %v819_v16 = vld [vmem:[%s1301_s1 + $0x20] sm:$0xff] }
   0x5   :  { %944 = vmatprep.subr.bf16.mxu0 %v983_v0  ;;  %176 = vperm.xlu1 %982, %v37_v10   ;;  %v820_v17 = vld [vmem:[%s1301_s1 + $0x28] sm:$0xf]  ;;  %v43_v18 = vld [vmem:[%s1302_s7] sm:$0xff]  ;;  %v45_v21 = vld [vmem:[%s1302_s7 + $0x10] sm:$0xff] }
   0x6   :  { %v44_v19 = vld [vmem:[%s1302_s7 + $0x8] sm:$0xff]  ;;  %v46_v22 = vld [vmem:[%s1302_s7 + $0x18] sm:$0xff]  ;;  %v48_v24 = vld [vmem:[%s1303_s9] sm:$0xff] }
   0x7   :  { %v1115_v20 = vpack.c.bf16 %v44_v19, %v43_v18  ;;  %v1125_v23 = vpack.c.bf16 %v46_v22, %v45_v21  ;;  %v49_v25 = vld [vmem:[%s1303_s9 + $0x8] sm:$0xff]  ;;  %v50_v27 = vld [vmem:[%s1303_s9 + $0x10] sm:$0xff]  ;;  %v51_v28 = vld [vmem:[%s1303_s9 + $0x18] sm:$0xff] }
   0x8   :  { %946 = vmatpush3.bf16.msra.mxu0 %v945_v8  ;;  %171 = vperm.xlu0 %981, %v36_v11   ;;  %v1135_v26 = vpack.c.bf16 %v49_v25, %v48_v24  ;;  %v1145_v29 = vpack.c.bf16 %v51_v28, %v50_v27  ;;  %v825_v30 = vld [vmem:[%s1304_s0 + $0x18] sm:$0xff]  ;;  %v826_v31 = vld [vmem:[%s1304_s0 + $0x20] sm:$0xff]  ;;  %v1213_v7 = vld [vmem:[%s1306_s5 + $0x8] ss:$0 sm:$0xff] }
   0x9   :  { %959 = vmatprep.subr.bf16.mxu0 %v983_v0  ;;  %949 = vmatpush3.bf16.msra.mxu1 %v1115_v20  ;;  %v720_v32 = vrot.slane %v825_v30, 5  ;;  %v721_v33 = vrot.slane %v826_v31, 5  ;;  %v1159_v35 = vld [vmem:[%s1305_s4] ss:$0 sm:$0xff]  ;;  %v1167_v41 = vld [vmem:[%s1306_s5 + $0x3] ss:$0 sm:$0xff] }
   0xa   :  { %950 = vmatprep.subr.bf16.mxu1 %v983_v0  ;;  %v1172_v43 = vld [vmem:[%s1306_s5 + $0x1] ss:$0 sm:$0xff]  ;;  %v1179_v47 = vld [vmem:[%s1306_s5 + $0x2] ss:$0 sm:$0xff]  ;;  %v1184_v48 = vld [vmem:[%s1306_s5 + $0x4] ss:$0 sm:$0xff] }
   0xb   :  { %872 = vmatmul.mubr.msk.f32.vlgmr.msra.gmra.mrb[0].mxu0 %vm71_vm1, %v62_v12  ;;  %v722_v34 = vsel %vm247_vm2, %v720_v32, %v721_v33  ;;  %v1189_v49 = vld [vmem:[%s1306_s5] ss:$0 sm:$0xff]  ;;  %v1195_v52 = vld [vmem:[%s1306_s5 + $0x5] ss:$0 sm:$0xff]  ;;  %v1204_v61 = vld [vmem:[%s1306_s5 + $0x7] ss:$0 sm:$0xff] }
   0xc   :  { %874 = vmatprep.mubr.msk.f32.mxu0 %vm984_vm0, %v985_v4  ;;  %961 = vmatpush3.bf16.msra.mxu0 %v942_v5 }
   0xd   :  { %962 = vmatprep.subr.bf16.mxu0 %v983_v0  ;;  %952 = vmatpush3.bf16.msra.mxu1 %v1125_v23 }
   0xe   :  { %953 = vmatprep.subr.bf16.mxu1 %v983_v0 }
   0xf   :  { %875 = vmatmul.mubr.msk.f32.gmra.mrb[2].mxu0 %vm71_vm1, %v63_v13 }
  0x10   :  { %877 = vmatprep.mubr.msk.f32.mxu0 %vm984_vm0, %v985_v4  ;;  %964 = vmatpush3.bf16.msra.mxu0 %v945_v8 }
  0x11   :  { %971 = vmatprep.subr.bf16.mxu0 %v983_v0 }
  0x13   :  { %878 = vmatmul.mubr.msk.f32.gmra.mrb[4].mxu0 %vm71_vm1, %v64_v14 }
  0x14   :  { %910 = vmatprep.mubr.msk.f32.mxu0 %vm984_vm0, %v985_v4 }
  0x17   :  { %911 = vmatmul.mubr.msk.f32.vlgmr.msra.gmra.mrb[6].mxu0 %vm71_vm1, %v818_v15 }
  0x18   :  { %913 = vmatprep.mubr.msk.f32.mxu0 %vm984_vm0, %v985_v4  ;;  %973 = vmatpush3.bf16.msra.mxu0 %v1135_v26 }
  0x19   :  { %974 = vmatprep.subr.bf16.mxu0 %v983_v0 }
  0x1b   :  { %914 = vmatmul.mubr.msk.f32.gmra.mrb[8].mxu0 %vm71_vm1, %v819_v16 }
  0x1c   :  { %916 = vmatprep.mubr.msk.f32.mxu0 %vm984_vm0, %v985_v4  ;;  %976 = vmatpush3.bf16.msra.mxu0 %v1145_v29 }
  0x1f   :  { %917 = vmatmul.mubr.msk.f32.gmra.mrb[10].mxu0 %vm71_vm1, %v820_v17 }
  0x20   :  { %938 = vmatprep.mubr.msk.f32.mxu0 %vm984_vm0, %v985_v4 }
  0x23   :  { %939 = vmatmul.mubr.msk.f32.vlgmr.msra.gmra.mrb[12].mxu0 %vm71_vm1, %v722_v34 }
  0x83   :  { %v1162_v39 = vpop.permute.xlu0 %166 }
  0x84   :  { %v1207_v1 = vpop.permute.xlu1 %176 }
  0x87   :  { %v172_v54 = vpop.permute.xlu0 %171 }
  0xde   :  { %v147_v36 = vpop.f32.mrb[0].mxu0 }
  0xdf   :  { %v148_v37 = vadd.f32 %v1159_v35, %v147_v36  ;;  %v873_v38 = vpop.f32.mrb[1].mxu0 }
  0xe1   :  { %v161_v40 = vmax.f32 %v148_v37, 0.0 }
  0xe2   :  { %v152_v42 = vpop.f32.mrb[2].mxu0 }
  0xe3   :  { %v179_v44 = vmul.f32 %v1162_v39, %v161_v40  ;;  %v153_v45 = vadd.f32 %v1159_v35, %v152_v42  ;;  %v876_v46 = vpop.f32.mrb[3].mxu0 }
  0xe5   :  { %v227_v50 = vmul.f32 %v1167_v41, %v179_v44  ;;  %v162_v51 = vmax.f32 %v153_v45, 0.0  ;;  %v195_v53 = vmul.f32 %v1172_v43, %v179_v44  ;;  %v211_v56 = vmul.f32 %v1179_v47, %v179_v44 }
  0xe6   :  { %v157_v55 = vpop.f32.mrb[4].mxu0  ;;  %v243_v57 = vmul.f32 %v1184_v48, %v179_v44  ;;  %v188_v62 = vmul.f32 %v1189_v49, %v179_v44  ;;  %v259_v5 = vmul.f32 %v1195_v52, %v179_v44 }
  0xe7   :  { %v180_v58 = vmul.f32 %v172_v54, %v162_v51  ;;  %v158_v59 = vadd.f32 %v1159_v35, %v157_v55  ;;  %v879_v60 = vpop.f32.mrb[5].mxu0  ;;  %v232_v63 = vrot.slane %v227_v50, 4  ;;  %v200_v2 = vrot.slane %v195_v53, 1 }
  0xe8   :  { %v216_v3 = vrot.slane %v211_v56, 2  ;;  %v248_v12 = vrot.slane %v243_v57, 5  ;;  %v264_v24 = vrot.slane %v259_v5, 6 }
  0xe9   :  { %v163_v6 = vmax.f32 %v158_v59, 0.0  ;;  %v196_v8 = vmul.f32 %v1172_v43, %v180_v58  ;;  %v212_v9 = vmul.f32 %v1179_v47, %v180_v58  ;;  %v228_v10 = vmul.f32 %v1167_v41, %v180_v58  ;;  %v1236_v59 = vld [vmem:[%s1306_s5 + $0x6] ss:$0 sm:$0xff] }
  0xea   :  { %v244_v11 = vmul.f32 %v1184_v48, %v180_v58  ;;  %v260_v13 = vmul.f32 %v1195_v52, %v180_v58  ;;  %v283_v14 = vmul.f32 %v1204_v61, %v180_v58  ;;  %v554_v15 = vpop.f32.mrb[6].mxu0  ;;  %v298_v27 = vmul.f32 %v1213_v7, %v180_v58 }
  0xeb   :  { %v181_v16 = vmul.f32 %v1207_v1, %v163_v6  ;;  %v201_v17 = vrot.slane %v196_v8, 1  ;;  %v217_v18 = vrot.slane %v212_v9, 2  ;;  %v233_v19 = vrot.slane %v228_v10, 4  ;;  %v912_v21 = vpop.f32.mrb[7].mxu0 }
  0xec   :  { %v249_v22 = vrot.slane %v244_v11, 5  ;;  %v265_v25 = vrot.slane %v260_v13, 6  ;;  %v287_v40 = vrot.slane %v283_v14, 1  ;;  %v555_v44 = vadd.f32 %v1159_v35, %v554_v15 }
  0xed   :  { %v202_v28 = vsel %vm199_vm3, %v200_v2, %v201_v17  ;;  %v218_v30 = vsel %vm215_vm4, %v216_v3, %v217_v18  ;;  %v234_v31 = vsel %vm231_vm5, %v232_v63, %v233_v19  ;;  %v284_v32 = vmul.f32 %v1204_v61, %v181_v16 }
  0xee   :  { %v204_v33 = vadd.f32 %v202_v28, %v188_v62  ;;  %v250_v34 = vsel %vm247_vm2, %v248_v12, %v249_v22  ;;  %v266_v36 = vsel %vm263_vm6, %v264_v24, %v265_v25  ;;  %v299_v37 = vmul.f32 %v1213_v7, %v181_v16  ;;  %v559_v38 = vpop.f32.mrb[8].mxu0 }
  0xef   :  { %v288_v42 = vrot.slane %v284_v32, 1  ;;  %v560_v45 = vadd.f32 %v1159_v35, %v559_v38  ;;  %v915_v46 = vpop.f32.mrb[9].mxu0  ;;  %v302_v51 = vrot.slane %v298_v27, 2  ;;  %v568_v56 = vmax.f32 %v555_v44, 0.0 }
  0xf0   :  { %v220_v50 = vadd.f32 %v218_v30, %v204_v33  ;;  %v303_v53 = vrot.slane %v299_v37, 2  ;;  %v275_v9 = vmul.f32 %v1236_v59, %v180_v58 }
  0xf1   :  { %v289_v55 = vsel %vm199_vm3, %v287_v40, %v288_v42  ;;  %v569_v57 = vmax.f32 %v560_v45, 0.0  ;;  %v571_v2 = vmul.f32 %v568_v56, %v1162_v39  ;;  %v395_v56 = vld [vmem:[%s1304_s0 + $0x8] sm:$0xff] }
  0xf2   :  { %v236_v60 = vadd.f32 %v234_v31, %v220_v50  ;;  %v304_v62 = vsel %vm215_vm4, %v302_v51, %v303_v53  ;;  %v564_v63 = vpop.f32.mrb[10].mxu0 }
  0xf3   :  { %v572_v3 = vmul.f32 %v569_v57, %v172_v54  ;;  %v565_v5 = vadd.f32 %v1159_v35, %v564_v63  ;;  %v918_v6 = vpop.f32.mrb[11].mxu0  ;;  %v575_v10 = vmul.f32 %v1172_v43, %v571_v2  ;;  %v584_v11 = vmul.f32 %v1179_v47, %v571_v2 }
  0xf4   :  { %v252_v8 = vadd.f32 %v250_v34, %v236_v60  ;;  %v593_v12 = vmul.f32 %v1167_v41, %v571_v2  ;;  %v602_v14 = vmul.f32 %v1184_v48, %v571_v2  ;;  %v574_v39 = vmul.f32 %v1189_v49, %v571_v2 }
  0xf5   :  { %v570_v15 = vmax.f32 %v565_v5, 0.0  ;;  %v576_v16 = vmul.f32 %v1172_v43, %v572_v3  ;;  %v579_v54 = vrot.slane %v575_v10, 1  ;;  %v588_v35 = vrot.slane %v584_v11, 2 }
  0xf6   :  { %v268_v13 = vadd.f32 %v266_v36, %v252_v8  ;;  %v585_v17 = vmul.f32 %v1179_v47, %v572_v3  ;;  %v597_v58 = vrot.slane %v593_v12, 4  ;;  %v594_v24 = vmul.f32 %v1167_v41, %v572_v3 }
  0xf7   :  { %v573_v19 = vmul.f32 %v570_v15, %v1207_v1  ;;  %v580_v21 = vrot.slane %v576_v16, 1  ;;  %v603_v25 = vmul.f32 %v1184_v48, %v572_v3  ;;  %v611_v27 = vmul.f32 %v1195_v52, %v571_v2  ;;  %v814_v48 = vld [vmem:[%s1307_s6] ss:$0 sm:$0xff] }
  0xf8   :  { %v276_v18 = vadd.f32 %v275_v9, %v268_v13  ;;  %v589_v22 = vrot.slane %v585_v17, 2  ;;  %v606_v43 = vrot.slane %v602_v14, 5  ;;  %v612_v30 = vmul.f32 %v1195_v52, %v572_v3 }
  0xf9   :  { %v581_v49 = vsel %vm199_vm3, %v579_v54, %v580_v21  ;;  %v598_v32 = vrot.slane %v594_v24, 4  ;;  %v607_v33 = vrot.slane %v603_v25, 5  ;;  %v615_v34 = vrot.slane %v611_v27, 6 }
  0xfa   :  { %v291_v28 = vadd.f32 %v289_v55, %v276_v18  ;;  %v583_v31 = vadd.f32 %v581_v49, %v574_v39  ;;  %v590_v47 = vsel %vm215_vm4, %v588_v35, %v589_v22  ;;  %v616_v36 = vrot.slane %v612_v30, 6  ;;  %v394_v55 = vld [vmem:[%s1304_s0] sm:$0xff] }
  0xfb   :  { %v622_v41 = vmul.f32 %v1204_v61, %v572_v3  ;;  %v599_v38 = vsel %vm231_vm5, %v597_v58, %v598_v32  ;;  %v608_v40 = vsel %vm247_vm2, %v606_v43, %v607_v33  ;;  %v623_v52 = vmul.f32 %v1204_v61, %v573_v19 }
  0xfc   :  { %v306_v1 = vadd.f32 %v304_v62, %v291_v28  ;;  %v592_v37 = vadd.f32 %v590_v47, %v583_v31  ;;  %v617_v42 = vsel %vm263_vm6, %v615_v34, %v616_v36  ;;  %v631_v44 = vmul.f32 %v1213_v7, %v572_v3 }
  0xfd   :  { %v632_v45 = vmul.f32 %v1213_v7, %v573_v19  ;;  %v626_v50 = vrot.slane %v622_v41, 1  ;;  %v627_v51 = vrot.slane %v623_v52, 1  ;;  %v398_v63 = vrot.slane %v394_v55, 5 }
  0xfe   :  { %v601_v46 = vadd.f32 %v599_v38, %v592_v37  ;;  %v313_v53 = vadd.f32 %v814_v48, %v306_v1  ;;  %v635_v57 = vrot.slane %v631_v44, 2  ;;  %v399_v2 = vrot.slane %v395_v56, 5 }
  0xff   :  { %v636_v61 = vrot.slane %v632_v45, 2  ;;  %v628_v62 = vsel %vm199_vm3, %v626_v50, %v627_v51  ;;  %v620_v6 = vmul.f32 %v1236_v59, %v572_v3  ;;  %v815_v3 = vld [vmem:[%s1308_s8] ss:$0 sm:$0xff] }
 0x100   :  { %v610_v60 = vadd.f32 %v608_v40, %v601_v46  ;;  %889 = vmatmul.mubr.msk.f32.vlgmr.msra.gmra.mrb[0].mxu1 %vm71_vm1, %v313_v53  ;;  %v400_v9 = vsel %vm247_vm2, %v398_v63, %v399_v2 }
 0x101   :  { %v637_v7 = vsel %vm215_vm4, %v635_v57, %v636_v61  ;;  %955 = vmatpush3.bf16.msra.mxu1 %v1135_v26  ;;  %899 = vmatprep.mubr.msk.f32.mxu1 %vm984_vm0, %v985_v4 }
 0x102   :  { %v619_v5 = vadd.f32 %v617_v42, %v610_v60  ;;  %956 = vmatprep.subr.bf16.mxu1 %v983_v0 }
 0x104   :  { %v621_v8 = vadd.f32 %v620_v6, %v619_v5 }
 0x105   :  { %958 = vmatpush3.bf16.msra.mxu1 %v1145_v29  ;;  %v791_v29 = vpop.f32.mrb[12].mxu0 }
 0x106   :  { %v630_v10 = vadd.f32 %v628_v62, %v621_v8  ;;  %965 = vmatprep.subr.bf16.mxu1 %v983_v0  ;;  %v940_v59 = vpop.f32.mrb[13].mxu0 }
 0x108   :  { %v639_v11 = vadd.f32 %v637_v7, %v630_v10  ;;  %900 = vmatmul.mubr.msk.f32.vlgmr.msra.gmra.mrb[2].mxu1 %vm71_vm1, %v400_v9 }
 0x109   :  { %967 = vmatpush3.bf16.msra.mxu1 %v1115_v20  ;;  %927 = vmatprep.mubr.msk.f32.mxu1 %vm984_vm0, %v985_v4 }
 0x10a   :  { %968 = vmatprep.subr.bf16.mxu1 %v983_v0  ;;  %v640_v26 = vadd.f32 %v814_v48, %v639_v11 }
 0x10d   :  { %970 = vmatpush3.bf16.msra.mxu1 %v1125_v23 }
 0x110   :  { %928 = vmatmul.mubr.msk.f32.vlgmr.msra.gmra.mrb[4].mxu1 %vm71_vm1, %v640_v26 }
 0x1d3   :  { %v389_v12 = vpop.f32.mrb[0].mxu1 }
 0x1d4   :  { %v890_v13 = vpop.f32.mrb[1].mxu1  ;;  %v390_v14 = vadd.f32 %v815_v3, %v389_v12 }
 0x1d6   :  { %v393_v20 = vmax.f32 %v390_v14, 0.0 }
 0x1db   :  { %v469_v15 = vpop.f32.mrb[2].mxu1 }
 0x1dc   :  { %v470_v4 = vadd.f32 %v469_v15, %v393_v20  ;;  %v901_v16 = vpop.f32.mrb[3].mxu1 }
 0x1de   :  { %474 = vst.msk [vmem:[%s1309_s10] sm:$0xff] %vm473_vm7, %v470_v4 }
 0x1e3   :  { %v710_v0 = vpop.f32.mrb[4].mxu1 }
 0x1e4   :  { %v711_v23 = vadd.f32 %v815_v3, %v710_v0  ;;  %v929_v39 = vpop.f32.mrb[5].mxu1 }
 0x1e6   :  { %v714_v54 = vmax.f32 %v711_v23, 0.0 }
 0x1e8   :  { %v792_v35 = vadd.f32 %v791_v29, %v714_v54 }
 0x1ea   :  { %828 = vst.msk [vmem:[%s1309_s10 + $0x8] sm:$0xff] %vm473_vm7, %v792_v35 }

// kernel: shufflenet_forward.15
= control target key start
LH: loop header
LB: loop body
LE: loop exit
PB: predicated region body
PF: predicated region fallthrough
CT: control target
= control target key end

     0   :  { %v692_v3 = vmov 0.0|0.0   ;;  %vm693_vm0 = vmmov 0   ;;  %v694_v6 = vmov 0.0   ;;  %s918_s0 = inlined_call_operand.vmem [shape: f32[2,1,128], index: 0, kind: input, shape index: {}]   ;;  %s919_s1 = inlined_call_operand.vmem [shape: f32[128,128], index: 1, kind: input, shape index: {}]   ;;  %s920_s2 = inlined_call_operand.vmem [shape: f32[1,128], index: 2, kind: input, shape index: {}]   ;;  %s921_s3 = inlined_call_operand.vmem [shape: f32[128,10], index: 3, kind: input, shape index: {}]   ;;  %s922_s4 = inlined_call_operand.vmem [shape: f32[1,10], index: 4, kind: input, shape index: {}]   ;;  %s923_s5 = inlined_call_operand.hbm [shape: f32[2,10], index: 5, kind: output, shape index: {}]  }
   0x1   :  { %v21_v0 = vld [vmem:[%s919_s1] sm:$0xff]  ;;  %v22_v1 = vld [vmem:[%s919_s1 + $0x8] sm:$0xff]  ;;  %v23_v2 = vld [vmem:[%s919_s1 + $0x10] sm:$0xff]  ;;  %568 = vmatprep.subr.bf16.mxu0 %v692_v3  ;;  %460 = vmatprep.mubr.msk.f32.mxu0 %vm693_vm0, %v694_v6 }
   0x2   :  { %v736_v4 = vpack.c.bf16 %v22_v1, %v21_v0  ;;  %v24_v5 = vld [vmem:[%s919_s1 + $0x18] sm:$0xff]  ;;  %592 = vmatprep.subr.bf16.mxu1 %v692_v3  ;;  %495 = vmatprep.mubr.msk.f32.mxu1 %vm693_vm0, %v694_v6  ;;  %v25_v8 = vld [vmem:[%s919_s1 + $0x20] sm:$0xff]  ;;  %v26_v9 = vld [vmem:[%s919_s1 + $0x28] sm:$0xff] }
   0x3   :  { %v747_v7 = vpack.c.bf16 %v24_v5, %v23_v2  ;;  %v38_v10 = vld [vmem:[%s921_s3] sm:$0xff]  ;;  %v39_v11 = vld [vmem:[%s921_s3 + $0x8] sm:$0xff]  ;;  %v40_v12 = vld [vmem:[%s921_s3 + $0x10] sm:$0xff]  ;;  %v766_v13 = vpack.c.bf16 %v26_v9, %v25_v8 }
   0x4   :  { %570 = vmatpush3.bf16.msra.mxu0 %v736_v4  ;;  %v768_v14 = vpack.c.bf16 %v39_v11, %v38_v10  ;;  %v41_v15 = vld [vmem:[%s921_s3 + $0x18] sm:$0xff]  ;;  %v27_v16 = vld [vmem:[%s919_s1 + $0x30] sm:$0xff]  ;;  %v42_v19 = vld [vmem:[%s921_s3 + $0x20] sm:$0xff] }
   0x5   :  { %571 = vmatprep.subr.bf16.mxu0 %v692_v3  ;;  %v28_v17 = vld [vmem:[%s919_s1 + $0x38] sm:$0xff]  ;;  %v781_v18 = vpack.c.bf16 %v41_v15, %v40_v12  ;;  %v43_v20 = vld [vmem:[%s921_s3 + $0x28] sm:$0xff] }
   0x6   :  { %594 = vmatpush3.bf16.msra.mxu1 %v768_v14  ;;  %v578_v21 = vpack.c.bf16 %v28_v17, %v27_v16 }
   0x7   :  { %595 = vmatprep.subr.bf16.mxu1 %v692_v3 }
   0x8   :  { %573 = vmatpush3.bf16.msra.mxu0 %v747_v7 }
   0x9   :  { %574 = vmatprep.subr.bf16.mxu0 %v692_v3 }
   0xc   :  { %576 = vmatpush3.bf16.msra.mxu0 %v766_v13 }
   0xd   :  { %10 = vsyncpa [#allocation3], 0  ;;  %577 = vmatprep.subr.bf16.mxu0 %v692_v3  ;;  %v29_v22 = vld [vmem:[%s919_s1 + $0x40] sm:$0xff]  ;;  %v30_v23 = vld [vmem:[%s919_s1 + $0x48] sm:$0xff]  ;;  %597 = vmatpush3.bf16.msra.mxu1 %v781_v18  ;;  %v799_v24 = vpack.c.bf16 %v43_v20, %v42_v19  ;;  %vm198_vm1 = vcmask 73728  }
   0xe   :  { %598 = vmatprep.subr.bf16.mxu1 %v692_v3  ;;  %v44_v25 = vld [vmem:[%s921_s3 + $0x30] sm:$0xff]  ;;  %v45_v26 = vld [vmem:[%s921_s3 + $0x38] sm:$0xff]  ;;  %v581_v27 = vpack.c.bf16 %v30_v23, %v29_v22  ;;  %v46_v31 = vld [vmem:[%s921_s3 + $0x40] sm:$0xff] }
   0xf   :  { %v31_v28 = vld [vmem:[%s919_s1 + $0x50] sm:$0xff]  ;;  %v32_v29 = vld [vmem:[%s919_s1 + $0x58] sm:$0xff]  ;;  %v816_v30 = vpack.c.bf16 %v45_v26, %v44_v25  ;;  %v47_v32 = vld [vmem:[%s921_s3 + $0x48] sm:$0xff] }
  0x10   :  { %579 = vmatpush3.bf16.msra.mxu0 %v578_v21  ;;  %v584_v33 = vpack.c.bf16 %v32_v29, %v31_v28  ;;  %v33_v34 = vld [vmem:[%s919_s1 + $0x60] sm:$0xff]  ;;  %v34_v35 = vld [vmem:[%s919_s1 + $0x68] sm:$0xff]  ;;  %v833_v36 = vpack.c.bf16 %v47_v32, %v46_v31  ;;  %v48_v37 = vld [vmem:[%s921_s3 + $0x50] sm:$0xff] }
  0x11   :  { %580 = vmatprep.subr.bf16.mxu0 %v692_v3  ;;  %600 = vmatpush3.bf16.msra.mxu1 %v799_v24  ;;  %v49_v38 = vld [vmem:[%s921_s3 + $0x58] sm:$0xff]  ;;  %v587_v39 = vpack.c.bf16 %v34_v35, %v33_v34  ;;  %v35_v40 = vld [vmem:[%s919_s1 + $0x70] sm:$0xff]  ;;  %v50_v43 = vld [vmem:[%s921_s3 + $0x60] sm:$0xff] }
  0x12   :  { %601 = vmatprep.subr.bf16.mxu1 %v692_v3  ;;  %v36_v41 = vld [vmem:[%s919_s1 + $0x78] sm:$0xff]  ;;  %v608_v42 = vpack.c.bf16 %v49_v38, %v48_v37  ;;  %v51_v44 = vld [vmem:[%s921_s3 + $0x68] sm:$0xff]  ;;  %v55_v47 = vld [vmem:[%s918_s0] sm:$0x1] }
  0x13   :  { %v590_v45 = vpack.c.bf16 %v36_v41, %v35_v40  ;;  %v611_v46 = vpack.c.bf16 %v51_v44, %v50_v43  ;;  %v359_v48 = vld [vmem:[%s918_s0 + $0x1] sm:$0x1]  ;;  %v52_v49 = vld [vmem:[%s921_s3 + $0x70] sm:$0xff]  ;;  %v53_v50 = vld [vmem:[%s921_s3 + $0x78] sm:$0xff]  ;;  %s695_s3 = smov [#allocation2]  }
  0x14   :  { %582 = vmatpush3.bf16.msra.mxu0 %v581_v27  ;;  %v614_v51 = vpack.c.bf16 %v53_v50, %v52_v49  ;;  %v37_v52 = vld [vmem:[%s920_s2] sm:$0x1]  ;;  %s351_s12 = sshll.u32 %s695_s3, 4  ;;  %s352_s12 = int_to_ptr.vmem [resolvable:$true] %s351_s12 }
  0x15   :  { %583 = vmatprep.subr.bf16.mxu0 %v692_v3  ;;  %603 = vmatpush3.bf16.msra.mxu1 %v816_v30  ;;  %v54_v61 = vld [vmem:[%s922_s4] sm:$0x1]  ;;  %s668_s13 = scalar_lea.vmem %s352_s12, 32  ;;  %p673_p1 = scmp.lt.s32.totalorder %s352_s12, %s352_s12 }
  0x16   :  { %604 = vmatprep.subr.bf16.mxu1 %v692_v3  ;;  %p669_p0 = scmp.ne.s32.totalorder %s352_s12, %s668_s13  ;;  %p674_p2 = scmp.lt.s32.totalorder %s668_s13, %s668_s13 }
  0x18   :  { %585 = vmatpush3.bf16.msra.mxu0 %v584_v33  ;;  %p675_p3 = por %p674_p2, %p673_p1 }
  0x19   :  { %586 = vmatprep.subr.bf16.mxu0 %v692_v3  ;;  %606 = vmatpush3.bf16.msra.mxu1 %v833_v36 }
  0x1a   :  { %607 = vmatprep.subr.bf16.mxu1 %v692_v3  ;;  %p676_p4 = pnand %p675_p3, %p669_p0 }
  0x1c   :  { %588 = vmatpush3.bf16.msra.mxu0 %v587_v39 }
  0x1d   :  { %589 = vmatprep.subr.bf16.mxu0 %v692_v3  ;;  %609 = vmatpush3.bf16.msra.mxu1 %v608_v42 }
  0x1e   :  { %610 = vmatprep.subr.bf16.mxu1 %v692_v3 }
  0x20   :  { %591 = vmatpush3.bf16.msra.mxu0 %v590_v45 }
  0x21   :  { %616 = vmatprep.subr.bf16.mxu0 %v692_v3  ;;  %612 = vmatpush3.bf16.msra.mxu1 %v611_v46 }
  0x22   :  { %613 = vmatprep.subr.bf16.mxu1 %v692_v3 }
  0x23   :  { %461 = vmatmul.mubr.f32.vlgmr.msra.gmra.mrb[0].mxu0 %v55_v47 }
  0x24   :  { %618 = vmatpush3.bf16.msra.mxu0 %v736_v4  ;;  %530 = vmatprep.mubr.msk.f32.mxu0 %vm693_vm0, %v694_v6 }
  0x25   :  { %619 = vmatprep.subr.bf16.mxu0 %v692_v3  ;;  %615 = vmatpush3.bf16.msra.mxu1 %v614_v51 }
  0x26   :  { %640 = vmatprep.subr.bf16.mxu1 %v692_v3 }
  0x28   :  { %621 = vmatpush3.bf16.msra.mxu0 %v747_v7 }
  0x29   :  { %622 = vmatprep.subr.bf16.mxu0 %v692_v3 }
  0x2c   :  { %624 = vmatpush3.bf16.msra.mxu0 %v766_v13 }
  0x2d   :  { %625 = vmatprep.subr.bf16.mxu0 %v692_v3 }
  0x30   :  { %627 = vmatpush3.bf16.msra.mxu0 %v578_v21 }
  0x31   :  { %628 = vmatprep.subr.bf16.mxu0 %v692_v3 }
  0x34   :  { %630 = vmatpush3.bf16.msra.mxu0 %v581_v27 }
  0x35   :  { %631 = vmatprep.subr.bf16.mxu0 %v692_v3 }
  0x38   :  { %633 = vmatpush3.bf16.msra.mxu0 %v584_v33 }
  0x39   :  { %634 = vmatprep.subr.bf16.mxu0 %v692_v3 }
  0x3c   :  { %636 = vmatpush3.bf16.msra.mxu0 %v587_v39 }
  0x3d   :  { %637 = vmatprep.subr.bf16.mxu0 %v692_v3 }
  0x40   :  { %639 = vmatpush3.bf16.msra.mxu0 %v590_v45 }
  0x43   :  { %531 = vmatmul.mubr.f32.vlgmr.msra.gmra.mrb[2].mxu0 %v359_v48 }
  0xf6   :  { %v122_v53 = vpop.f32.mrb[0].mxu0 }
  0xf7   :  { %v123_v54 = vadd.f32 %v122_v53, %v37_v52  ;;  %v462_v55 = vpop.f32.mrb[1].mxu0 }
  0xf9   :  { %v126_v56 = vmax.f32 %v123_v54, 0.0 }
  0xfb   :  { %496 = vmatmul.mubr.f32.vlgmr.msra.gmra.mrb[0].mxu1 %v126_v56 }
  0xfc   :  { %642 = vmatpush3.bf16.msra.mxu1 %v768_v14  ;;  %565 = vmatprep.mubr.msk.f32.mxu1 %vm693_vm0, %v694_v6 }
  0xfd   :  { %643 = vmatprep.subr.bf16.mxu1 %v692_v3 }
 0x100   :  { %645 = vmatpush3.bf16.msra.mxu1 %v781_v18 }
 0x101   :  { %646 = vmatprep.subr.bf16.mxu1 %v692_v3 }
 0x104   :  { %648 = vmatpush3.bf16.msra.mxu1 %v799_v24 }
 0x105   :  { %649 = vmatprep.subr.bf16.mxu1 %v692_v3 }
 0x108   :  { %651 = vmatpush3.bf16.msra.mxu1 %v816_v30 }
 0x109   :  { %652 = vmatprep.subr.bf16.mxu1 %v692_v3 }
 0x10c   :  { %654 = vmatpush3.bf16.msra.mxu1 %v833_v36 }
 0x10d   :  { %655 = vmatprep.subr.bf16.mxu1 %v692_v3 }
 0x110   :  { %657 = vmatpush3.bf16.msra.mxu1 %v608_v42 }
 0x111   :  { %658 = vmatprep.subr.bf16.mxu1 %v692_v3 }
 0x114   :  { %660 = vmatpush3.bf16.msra.mxu1 %v611_v46 }
 0x115   :  { %661 = vmatprep.subr.bf16.mxu1 %v692_v3 }
 0x116   :  { %v268_v57 = vpop.f32.mrb[2].mxu0 }
 0x117   :  { %v269_v58 = vadd.f32 %v268_v57, %v37_v52  ;;  %v532_v59 = vpop.f32.mrb[3].mxu0 }
 0x118   :  { %663 = vmatpush3.bf16.msra.mxu1 %v614_v51 }
 0x119   :  { %v272_v60 = vmax.f32 %v269_v58, 0.0 }
 0x11b   :  { %566 = vmatmul.mubr.f32.vlgmr.msra.gmra.mrb[2].mxu1 %v272_v60 }
 0x1ce   :  { %v194_v62 = vpop.f32.mrb[0].mxu1 }
 0x1cf   :  { %v195_v63 = vadd.f32 %v194_v62, %v54_v61  ;;  %v497_v0 = vpop.f32.mrb[1].mxu1 }
 0x1d1   :  { %199 = vst.msk [vmem:[#allocation2] sm:$0x1] %vm198_vm1, %v195_v63 }
 0x1ee   :  { %v340_v1 = vpop.f32.mrb[2].mxu1 }
 0x1ef   :  { %v341_v2 = vadd.f32 %v340_v1, %v54_v61  ;;  %v567_v3 = vpop.f32.mrb[3].mxu1 }
 0x1f1   :  { %344 = vst.msk [vmem:[#allocation2 + $0x1] sm:$0x1] %vm198_vm1, %v341_v2 }
 0x1f2   :  { %679 = shalt.err (!%p676_p4)
}
 0x1f3   :  { %s680_s15 = scalar_lea.hbm %s923_s5, 32 }
 0x1f4   :  { %p681_p5 = scmp.ne.s32.totalorder %s923_s5, %s680_s15  ;;  %p684_p6 = scmp.lt.u32.totalorder %s680_s15, %s923_s5 }
 0x1f6   :  { %p686_p7 = pnand %p684_p6, %p681_p5 }
 0x1f8   :  { %689 = shalt.err (!%p686_p7)
}
 0x1f9   :  { %354 = dma.vmem_to_hbm [thread:$0]  %s352_s12, 32, %s923_s5, [#allocation3]  }
 0x1fa   :  { %690 = dma.done.wait [#allocation3], 32  }
 0x1fb   :  { %691 = vsyncadd [#allocation3], 4294967264 }
 0x1fc   :  { %358 = vsyncpa [#allocation3], 1 }

// kernel: shufflenet_forward.14
= control target key start
LH: loop header
LB: loop body
LE: loop exit
PB: predicated region body
PF: predicated region fallthrough
CT: control target
= control target key end

     0   :  { %vm81_vm0 = vcmask 523264   ;;  %v1012_v3 = vmov 0   ;;  %v1013_v20 = vmov 0.0|0.0   ;;  %vm1014_vm1 = vmmov 0   ;;  %s1343_s3 = inlined_call_operand.vmem [shape: f32[64,64], index: 3, kind: input, shape index: {}]   ;;  %s1344_s1 = inlined_call_operand.vmem [shape: f32[2,12,64], index: 1, kind: input, shape index: {}]   ;;  %s1345_s2 = inlined_call_operand.vmem [shape: f32[12,1], index: 2, kind: input, shape index: {}]   ;;  %s1346_s7 = inlined_call_operand.vmem [shape: f32[64,128], index: 7, kind: input, shape index: {}]   ;;  %s1347_s9 = inlined_call_operand.vmem [shape: f32[64,128], index: 9, kind: input, shape index: {}]   ;;  %s1348_s0 = inlined_call_operand.vmem [shape: f32[2,12,64], index: 0, kind: input, shape index: {}]   ;;  %s1349_s4 = inlined_call_operand.vmem [shape: f32[1,64], index: 4, kind: input, shape index: {}]   ;;  %s1350_s5 = inlined_call_operand.vmem [shape: f32[9,1,64], index: 5, kind: input, shape index: {}]   ;;  %s1351_s6 = inlined_call_operand.vmem [shape: f32[1,64], index: 6, kind: input, shape index: {}]   ;;  %s1352_s8 = inlined_call_operand.vmem [shape: f32[1,128], index: 8, kind: input, shape index: {}]   ;;  %s1353_s10 = inlined_call_operand.vmem [shape: f32[2,3,128], index: 10, kind: output, shape index: {}]  }
   0x1   :  { %v37_v0 = vld [vmem:[%s1343_s3] sm:$0xff]  ;;  %v38_v1 = vld [vmem:[%s1343_s3 + $0x8] sm:$0xff]  ;;  %v39_v2 = vld [vmem:[%s1343_s3 + $0x10] sm:$0xff]  ;;  %1011 = vset.pattern.permute.xlu0 %v1012_v3  ;;  %943 = vmatprep.subr.bf16.mxu1 %v1013_v20  ;;  %v1015_v39 = vmov 0.0   ;;  %vm249_vm2 = vcmask 1041408   ;;  %vm265_vm3 = vcmask 1040384  }
   0x2   :  { %v1080_v4 = vpack.c.bf16 %v38_v1, %v37_v0  ;;  %v40_v5 = vld [vmem:[%s1343_s3 + $0x18] sm:$0xff]  ;;  %v41_v7 = vld [vmem:[%s1343_s3 + $0x20] sm:$0xff]  ;;  %v42_v8 = vld [vmem:[%s1343_s3 + $0x28] sm:$0xff]  ;;  %848 = vmatprep.mubr.msk.f32.mxu1 %vm1014_vm1, %v1015_v39 }
   0x3   :  { %v1085_v6 = vpack.c.bf16 %v40_v5, %v39_v2  ;;  %v73_v9 = vld [vmem:[%s1344_s1] sm:$0xff]  ;;  %v1103_v11 = vpack.c.bf16 %v42_v8, %v41_v7  ;;  %v36_v12 = vld [vmem:[%s1345_s2 + $0x8] sm:$0xf]  ;;  %v43_v13 = vld [vmem:[%s1343_s3 + $0x30] sm:$0xff] }
   0x4   :  { %928 = vmatprep.subr.bf16.mxu0 %v1080_v4  ;;  %829 = vmatprep.mubr.msk.f32.mxu0 %vm81_vm0, %v73_v9  ;;  %v35_v10 = vld [vmem:[%s1345_s2] sm:$0xff]  ;;  %v44_v14 = vld [vmem:[%s1343_s3 + $0x38] sm:$0xff]  ;;  %v74_v16 = vld [vmem:[%s1344_s1 + $0x8] sm:$0xf] }
   0x5   :  { %930 = vmatpush3.bf16.msra.mxu0 %v1080_v4  ;;  %167 = vperm.xlu0 %1011, %v35_v10   ;;  %v1116_v15 = vpack.c.bf16 %v44_v14, %v43_v13  ;;  %v46_v17 = vld [vmem:[%s1346_s7] sm:$0xff]  ;;  %v47_v18 = vld [vmem:[%s1346_s7 + $0x8] sm:$0xff]  ;;  %v48_v21 = vld [vmem:[%s1346_s7 + $0x10] sm:$0xff] }
   0x6   :  { %932 = vmatprep.subr.bf16.mxu0 %v1085_v6  ;;  %v944_v19 = vpack.c.bf16 %v47_v18, %v46_v17  ;;  %v49_v22 = vld [vmem:[%s1346_s7 + $0x18] sm:$0xff]  ;;  %v55_v24 = vld [vmem:[%s1347_s9] sm:$0xff]  ;;  %v56_v25 = vld [vmem:[%s1347_s9 + $0x8] sm:$0xff] }
   0x7   :  { %v947_v23 = vpack.c.bf16 %v49_v22, %v48_v21  ;;  %v1146_v26 = vpack.c.bf16 %v56_v25, %v55_v24  ;;  %v50_v27 = vld [vmem:[%s1346_s7 + $0x20] sm:$0xff]  ;;  %v51_v28 = vld [vmem:[%s1346_s7 + $0x28] sm:$0xff]  ;;  %v57_v30 = vld [vmem:[%s1347_s9 + $0x10] sm:$0xff] }
   0x8   :  { %945 = vmatpush3.bf16.msra.mxu1 %v944_v19  ;;  %v950_v29 = vpack.c.bf16 %v51_v28, %v50_v27  ;;  %v58_v31 = vld [vmem:[%s1347_s9 + $0x18] sm:$0xff]  ;;  %v52_v33 = vld [vmem:[%s1346_s7 + $0x30] sm:$0xff]  ;;  %v59_v36 = vld [vmem:[%s1347_s9 + $0x20] sm:$0xff] }
   0x9   :  { %934 = vmatpush3.bf16.msra.mxu0 %v1085_v6  ;;  %172 = vperm.xlu0 %1011, %v36_v12   ;;  %v1163_v32 = vpack.c.bf16 %v58_v31, %v57_v30  ;;  %v53_v34 = vld [vmem:[%s1346_s7 + $0x38] sm:$0xff]  ;;  %v60_v37 = vld [vmem:[%s1347_s9 + $0x28] sm:$0xff]  ;;  %v61_v40 = vld [vmem:[%s1347_s9 + $0x30] sm:$0xff] }
   0xa   :  { %936 = vmatprep.subr.bf16.mxu0 %v1103_v11  ;;  %946 = vmatprep.subr.bf16.mxu1 %v1013_v20  ;;  %v953_v35 = vpack.c.bf16 %v53_v34, %v52_v33  ;;  %v1180_v38 = vpack.c.bf16 %v60_v37, %v59_v36  ;;  %v62_v41 = vld [vmem:[%s1347_s9 + $0x38] sm:$0xff]  ;;  %v366_v43 = vld [vmem:[%s1348_s0] sm:$0xff]  ;;  %v1276_v33 = vld [vmem:[%s1350_s5 + $0x8] ss:$0 sm:$0xff] }
   0xb   :  { %v1195_v42 = vpack.c.bf16 %v62_v41, %v61_v40  ;;  %v368_v44 = vrot.slane %v366_v43, 4  ;;  %v1213_v46 = vld [vmem:[%s1349_s4] ss:$0 sm:$0xff]  ;;  %v1222_v54 = vld [vmem:[%s1350_s5 + $0x6] ss:$0 sm:$0xff]  ;;  %v749_v43 = vld [vmem:[%s1344_s1 + $0x10] sm:$0xff] }
   0xc   :  { %948 = vmatpush3.bf16.msra.mxu1 %v947_v23  ;;  %v1227_v55 = vld [vmem:[%s1350_s5 + $0x7] ss:$0 sm:$0xff]  ;;  %v1232_v56 = vld [vmem:[%s1350_s5 + $0x1] ss:$0 sm:$0xff]  ;;  %v1237_v57 = vld [vmem:[%s1350_s5 + $0x2] ss:$0 sm:$0xff] }
   0xd   :  { %938 = vmatpush3.bf16.msra.mxu0 %v1103_v11  ;;  %949 = vmatprep.subr.bf16.mxu1 %v1013_v20  ;;  %v1244_v60 = vld [vmem:[%s1350_s5] ss:$0 sm:$0xff]  ;;  %v1249_v61 = vld [vmem:[%s1350_s5 + $0x3] ss:$0 sm:$0xff]  ;;  %v1258_v2 = vld [vmem:[%s1350_s5 + $0x4] ss:$0 sm:$0xff] }
   0xe   :  { %940 = vmatprep.subr.bf16.mxu0 %v1116_v15  ;;  %v1267_v12 = vld [vmem:[%s1350_s5 + $0x5] ss:$0 sm:$0xff]  ;;  %v1282_v37 = vld [vmem:[%s1351_s6] ss:$0 sm:$0xff] }
  0x10   :  { %951 = vmatpush3.bf16.msra.mxu1 %v950_v29 }
  0x11   :  { %942 = vmatpush3.bf16.msra.mxu0 %v1116_v15  ;;  %952 = vmatprep.subr.bf16.mxu1 %v1013_v20 }
  0x12   :  { %955 = vmatprep.subr.bf16.mxu0 %v1013_v20 }
  0x14   :  { %830 = vmatmul.mubr.msk.f32.vlgmr.msra.gmra.mrb[0].mxu0 %vm81_vm0, %v74_v16  ;;  %954 = vmatpush3.bf16.msra.mxu1 %v953_v35 }
  0x15   :  { %957 = vmatpush3.bf16.msra.mxu0 %v1146_v26  ;;  %867 = vmatprep.mubr.msk.f32.mxu0 %vm1014_vm1, %v1015_v39 }
  0x16   :  { %958 = vmatprep.subr.bf16.mxu0 %v1013_v20  ;;  %968 = vmatprep.subr.bf16.mxu1 %v1080_v4 }
  0x19   :  { %960 = vmatpush3.bf16.msra.mxu0 %v1163_v32 }
  0x1a   :  { %961 = vmatprep.subr.bf16.mxu0 %v1013_v20 }
  0x1d   :  { %963 = vmatpush3.bf16.msra.mxu0 %v1180_v38 }
  0x1e   :  { %964 = vmatprep.subr.bf16.mxu0 %v1013_v20 }
  0x21   :  { %966 = vmatpush3.bf16.msra.mxu0 %v1195_v42 }
  0x22   :  { %983 = vmatprep.subr.bf16.mxu0 %v1013_v20 }
  0x24   :  { %868 = vmatmul.mubr.msk.f32.vlgmr.msra.gmra.mrb[2].mxu0 %vm81_vm0, %v368_v44  ;;  %v750_v44 = vld [vmem:[%s1344_s1 + $0x18] sm:$0xf] }
  0x25   :  { %985 = vmatpush3.bf16.msra.mxu0 %v944_v19  ;;  %905 = vmatprep.mubr.msk.f32.mxu0 %vm1014_vm1, %v1015_v39 }
  0x26   :  { %986 = vmatprep.subr.bf16.mxu0 %v1013_v20 }
  0x29   :  { %988 = vmatpush3.bf16.msra.mxu0 %v947_v23 }
  0x2a   :  { %989 = vmatprep.subr.bf16.mxu0 %v1013_v20 }
  0x2d   :  { %991 = vmatpush3.bf16.msra.mxu0 %v950_v29 }
  0x2e   :  { %992 = vmatprep.subr.bf16.mxu0 %v1013_v20 }
  0x31   :  { %994 = vmatpush3.bf16.msra.mxu0 %v953_v35 }
  0x84   :  { %v1208_v45 = vpop.permute.xlu0 %167 }
  0x88   :  { %v1217_v51 = vpop.permute.xlu0 %172 }
  0xe7   :  { %v831_v47 = vpop.f32.mrb[0].mxu0 }
  0xe8   :  { %v160_v48 = vadd.f32 %v831_v47, %v1213_v46  ;;  %v154_v49 = vpop.f32.mrb[1].mxu0 }
  0xe9   :  { %v155_v50 = vadd.f32 %v1213_v46, %v154_v49 }
  0xea   :  { %v164_v52 = vmax.f32 %v160_v48, 0.0 }
  0xeb   :  { %v163_v53 = vmax.f32 %v155_v50, 0.0 }
  0xec   :  { %v176_v58 = vmul.f32 %v1217_v51, %v164_v52 }
  0xed   :  { %v175_v59 = vmul.f32 %v1208_v45, %v163_v53 }
  0xee   :  { %v246_v62 = vmul.f32 %v1222_v54, %v176_v58  ;;  %v262_v63 = vmul.f32 %v1227_v55, %v176_v58  ;;  %v277_v36 = vmul.f32 %v1276_v33, %v176_v58 }
  0xef   :  { %v190_v0 = vmul.f32 %v1232_v56, %v175_v59  ;;  %v201_v1 = vmul.f32 %v1237_v57, %v175_v59  ;;  %v245_v3 = vmul.f32 %v1222_v54, %v175_v59  ;;  %v183_v7 = vmul.f32 %v1244_v60, %v175_v59 }
  0xf0   :  { %v251_v5 = vrot.slane %v246_v62, 6  ;;  %v212_v9 = vmul.f32 %v1249_v61, %v175_v59  ;;  %v261_v10 = vmul.f32 %v1227_v55, %v175_v59  ;;  %v267_v14 = vrot.slane %v262_v63, 7 }
  0xf1   :  { %v192_v8 = vrot.slane %v190_v0, 1  ;;  %v250_v13 = vrot.slane %v245_v3, 6  ;;  %v203_v17 = vrot.slane %v201_v1, 2  ;;  %v223_v18 = vmul.f32 %v1258_v2, %v175_v59 }
  0xf2   :  { %v266_v19 = vrot.slane %v261_v10, 7  ;;  %v214_v23 = vrot.slane %v212_v9, 3  ;;  %v234_v24 = vmul.f32 %v1267_v12, %v175_v59 }
  0xf3   :  { %v194_v16 = vadd.f32 %v192_v8, %v183_v7  ;;  %v252_v21 = vsel %vm249_vm2, %v250_v13, %v251_v5  ;;  %v225_v28 = vrot.slane %v223_v18, 4 }
  0xf4   :  { %v268_v25 = vsel %vm265_vm3, %v266_v19, %v267_v14  ;;  %v236_v30 = vrot.slane %v234_v24, 5 }
  0xf5   :  { %v205_v22 = vadd.f32 %v203_v17, %v194_v16 }
  0xf7   :  { %v216_v27 = vadd.f32 %v214_v23, %v205_v22 }
  0xf9   :  { %v227_v29 = vadd.f32 %v225_v28, %v216_v27 }
  0xfb   :  { %v238_v31 = vadd.f32 %v236_v30, %v227_v29 }
  0xfd   :  { %v254_v34 = vadd.f32 %v252_v21, %v238_v31 }
  0xff   :  { %v270_v35 = vadd.f32 %v268_v25, %v254_v34 }
 0x101   :  { %v278_v40 = vadd.f32 %v277_v36, %v270_v35 }
 0x103   :  { %v285_v41 = vadd.f32 %v1282_v37, %v278_v40 }
 0x105   :  { %849 = vmatmul.mubr.msk.f32.vlgmr.msra.gmra.mrb[0].mxu1 %vm81_vm0, %v285_v41 }
 0x106   :  { %970 = vmatpush3.bf16.msra.mxu1 %v1080_v4  ;;  %886 = vmatprep.mubr.msk.f32.mxu1 %vm81_vm0, %v749_v43  ;;  %v437_v4 = vpop.f32.mrb[2].mxu0 }
 0x107   :  { %972 = vmatprep.subr.bf16.mxu1 %v1085_v6 }
 0x10a   :  { %974 = vmatpush3.bf16.msra.mxu1 %v1085_v6  ;;  %v869_v6 = vpop.f32.mrb[3].mxu0 }
 0x10b   :  { %976 = vmatprep.subr.bf16.mxu1 %v1103_v11 }
 0x10e   :  { %978 = vmatpush3.bf16.msra.mxu1 %v1103_v11  ;;  %v754_v11 = vld [vmem:[%s1348_s0 + $0x10] sm:$0xff] }
 0x10f   :  { %980 = vmatprep.subr.bf16.mxu1 %v1116_v15 }
 0x112   :  { %982 = vmatpush3.bf16.msra.mxu1 %v1116_v15  ;;  %v654_v15 = vrot.slane %v754_v11, 4 }
 0x113   :  { %995 = vmatprep.subr.bf16.mxu1 %v1013_v20 }
 0x115   :  { %887 = vmatmul.mubr.msk.f32.vlgmr.msra.gmra.mrb[2].mxu1 %vm81_vm0, %v750_v44 }
 0x116   :  { %997 = vmatpush3.bf16.msra.mxu1 %v1146_v26  ;;  %924 = vmatprep.mubr.msk.f32.mxu1 %vm1014_vm1, %v1015_v39  ;;  %v746_v26 = vld [vmem:[%s1352_s8] ss:$0 sm:$0xff] }
 0x117   :  { %998 = vmatprep.subr.bf16.mxu1 %v1013_v20 }
 0x11a   :  { %1000 = vmatpush3.bf16.msra.mxu1 %v1163_v32 }
 0x11b   :  { %1001 = vmatprep.subr.bf16.mxu1 %v1013_v20 }
 0x11e   :  { %1003 = vmatpush3.bf16.msra.mxu1 %v1180_v38 }
 0x11f   :  { %1004 = vmatprep.subr.bf16.mxu1 %v1013_v20 }
 0x122   :  { %1006 = vmatpush3.bf16.msra.mxu1 %v1195_v42 }
 0x125   :  { %925 = vmatmul.mubr.msk.f32.vlgmr.msra.gmra.mrb[4].mxu1 %vm81_vm0, %v654_v15 }
 0x1d8   :  { %v361_v32 = vpop.f32.mrb[0].mxu1 }
 0x1d9   :  { %v362_v39 = vadd.f32 %v746_v26, %v361_v32  ;;  %v850_v38 = vpop.f32.mrb[1].mxu1 }
 0x1db   :  { %v365_v47 = vmax.f32 %v362_v39, 0.0 }
 0x1dd   :  { %v438_v20 = vadd.f32 %v437_v4, %v365_v47 }
 0x1df   :  { %441 = vst [vmem:[%s1353_s10] sm:$0x7] %v438_v20 }
 0x1e8   :  { %v888_v42 = vpop.f32.mrb[2].mxu1 }
 0x1e9   :  { %v523_v48 = vadd.f32 %v888_v42, %v1213_v46  ;;  %v517_v49 = vpop.f32.mrb[3].mxu1 }
 0x1ea   :  { %v518_v50 = vadd.f32 %v1213_v46, %v517_v49 }
 0x1eb   :  { %v527_v52 = vmax.f32 %v523_v48, 0.0 }
 0x1ec   :  { %v526_v53 = vmax.f32 %v518_v50, 0.0 }
 0x1ed   :  { %v529_v58 = vmul.f32 %v527_v52, %v1217_v51 }
 0x1ee   :  { %v528_v59 = vmul.f32 %v526_v53, %v1208_v45 }
 0x1ef   :  { %v557_v62 = vmul.f32 %v1222_v54, %v529_v58  ;;  %v566_v63 = vmul.f32 %v1227_v55, %v529_v58  ;;  %v574_v23 = vmul.f32 %v1276_v33, %v529_v58 }
 0x1f0   :  { %v531_v0 = vmul.f32 %v1232_v56, %v528_v59  ;;  %v536_v1 = vmul.f32 %v1237_v57, %v528_v59  ;;  %v530_v3 = vmul.f32 %v1244_v60, %v528_v59  ;;  %v541_v46 = vmul.f32 %v1249_v61, %v528_v59 }
 0x1f1   :  { %v561_v5 = vrot.slane %v557_v62, 6  ;;  %v556_v8 = vmul.f32 %v1222_v54, %v528_v59  ;;  %v570_v9 = vrot.slane %v566_v63, 7  ;;  %v565_v51 = vmul.f32 %v1227_v55, %v528_v59 }
 0x1f2   :  { %v533_v7 = vrot.slane %v531_v0, 1  ;;  %v538_v10 = vrot.slane %v536_v1, 2  ;;  %v546_v13 = vmul.f32 %v1258_v2, %v528_v59  ;;  %v543_v17 = vrot.slane %v541_v46, 3 }
 0x1f3   :  { %v560_v14 = vrot.slane %v556_v8, 6  ;;  %v569_v16 = vrot.slane %v565_v51, 7  ;;  %v551_v57 = vmul.f32 %v1267_v12, %v528_v59 }
 0x1f4   :  { %v535_v45 = vadd.f32 %v533_v7, %v530_v3  ;;  %v548_v19 = vrot.slane %v546_v13, 4 }
 0x1f5   :  { %v562_v60 = vsel %vm249_vm2, %v560_v14, %v561_v5  ;;  %v571_v18 = vsel %vm265_vm3, %v569_v16, %v570_v9  ;;  %v553_v21 = vrot.slane %v551_v57, 5 }
 0x1f6   :  { %v540_v56 = vadd.f32 %v538_v10, %v535_v45 }
 0x1f8   :  { %v545_v61 = vadd.f32 %v543_v17, %v540_v56  ;;  %v723_v27 = vpop.f32.mrb[4].mxu1 }
 0x1f9   :  { %v926_v12 = vpop.f32.mrb[5].mxu1 }
 0x1fa   :  { %v550_v54 = vadd.f32 %v548_v19, %v545_v61 }
 0x1fc   :  { %v555_v22 = vadd.f32 %v553_v21, %v550_v54 }
 0x1fe   :  { %v564_v55 = vadd.f32 %v562_v60, %v555_v22 }
 0x200   :  { %v573_v24 = vadd.f32 %v571_v18, %v564_v55 }
 0x202   :  { %v575_v2 = vadd.f32 %v574_v23, %v573_v24 }
 0x204   :  { %v576_v25 = vadd.f32 %v1282_v37, %v575_v2 }
 0x206   :  { %906 = vmatmul.mubr.msk.f32.vlgmr.msra.gmra.mrb[4].mxu0 %vm81_vm0, %v576_v25 }
 0x2d9   :  { %v646_v28 = vpop.f32.mrb[4].mxu0 }
 0x2da   :  { %v647_v29 = vadd.f32 %v746_v26, %v646_v28  ;;  %v907_v30 = vpop.f32.mrb[5].mxu0 }
 0x2dc   :  { %v650_v31 = vmax.f32 %v647_v29, 0.0 }
 0x2de   :  { %v724_v34 = vadd.f32 %v723_v27, %v650_v31 }
 0x2e0   :  { %756 = vst [vmem:[%s1353_s10 + $0x4] sm:$0x7] %v724_v34 }

// kernel: shufflenet_forward.13
= control target key start
LH: loop header
LB: loop body
LE: loop exit
PB: predicated region body
PF: predicated region fallthrough
CT: control target
= control target key end

     0   :  { %v1865_v0 = vmov 0.0|0.0   ;;  %vm1866_vm0 = vmmov 0   ;;  %v1867_v6 = vmov 0.0   ;;  %v1868_v7 = vmov 0   ;;  %s2391_s2 = inlined_call_operand.vmem [shape: f32[64,64], index: 2, kind: input, shape index: {}]   ;;  %s2392_s8 = inlined_call_operand.vmem [shape: f32[9,1,64], index: 8, kind: input, shape index: {}]   ;;  %s2393_s0 = inlined_call_operand.vmem [shape: f32[2,4,6,64], index: 0, kind: input, shape index: {}]   ;;  %s2394_s1 = inlined_call_operand.vmem [shape: f32[4,6,1], index: 1, kind: input, shape index: {}]   ;;  %s2395_s10 = inlined_call_operand.vmem [shape: f32[64,128], index: 10, kind: input, shape index: {}]   ;;  %s2396_s9 = inlined_call_operand.vmem [shape: f32[1,64], index: 9, kind: input, shape index: {}]   ;;  %s2397_s6 = inlined_call_operand.vmem [shape: f32[64,128], index: 6, kind: input, shape index: {}]   ;;  %s2398_s3 = inlined_call_operand.vmem [shape: f32[1,64], index: 3, kind: input, shape index: {}]   ;;  %s2399_s4 = inlined_call_operand.vmem [shape: f32[9,1,64], index: 4, kind: input, shape index: {}]   ;;  %s2400_s5 = inlined_call_operand.vmem [shape: f32[1,64], index: 5, kind: input, shape index: {}]   ;;  %s2401_s11 = inlined_call_operand.vmem [shape: f32[1,128], index: 11, kind: input, shape index: {}]   ;;  %s2402_s7 = inlined_call_operand.vmem [shape: f32[1,128], index: 7, kind: input, shape index: {}]   ;;  %s2403_s12 = inlined_call_operand.vmem [shape: f32[2,2,128], index: 12, kind: output, shape index: {}]  }
   0x1   :  { %1715 = vmatprep.subr.bf16.mxu0 %v1865_v0  ;;  %1727 = vmatprep.subr.bf16.mxu1 %v1865_v0  ;;  %v41_v1 = vld [vmem:[%s2391_s2] sm:$0xff]  ;;  %v42_v2 = vld [vmem:[%s2391_s2 + $0x8] sm:$0xff]  ;;  %v43_v3 = vld [vmem:[%s2391_s2 + $0x10] sm:$0xff]  ;;  %vm101_vm1 = vcmask 523264  }
   0x2   :  { %v1945_v4 = vpack.c.bf16 %v42_v2, %v41_v1  ;;  %v44_v5 = vld [vmem:[%s2391_s2 + $0x18] sm:$0xff]  ;;  %1503 = vmatprep.mubr.msk.f32.mxu0 %vm1866_vm0, %v1867_v6  ;;  %1522 = vmatprep.mubr.msk.f32.mxu1 %vm1866_vm0, %v1867_v6  ;;  %v45_v9 = vld [vmem:[%s2391_s2 + $0x20] sm:$0xff]  ;;  %v46_v10 = vld [vmem:[%s2391_s2 + $0x28] sm:$0xff] }
   0x3   :  { %1863 = vset.pattern.permute.xlu0 %v1868_v7  ;;  %1864 = vset.pattern.permute.xlu1 %v1868_v7  ;;  %v1956_v8 = vpack.c.bf16 %v44_v5, %v43_v3  ;;  %v1968_v11 = vpack.c.bf16 %v46_v10, %v45_v9  ;;  %v1973_v12 = vld [vmem:[%s2392_s8 + $0x2] ss:$0 sm:$0xff]  ;;  %v1978_v13 = vld [vmem:[%s2392_s8] ss:$0 sm:$0xff]  ;;  %v1983_v14 = vld [vmem:[%s2392_s8 + $0x1] ss:$0 sm:$0xff] }
   0x4   :  { %1717 = vmatpush3.bf16.msra.mxu0 %v1945_v4  ;;  %1729 = vmatpush3.bf16.msra.mxu1 %v1945_v4  ;;  %v47_v15 = vld [vmem:[%s2391_s2 + $0x30] sm:$0xff]  ;;  %v48_v16 = vld [vmem:[%s2391_s2 + $0x38] sm:$0xff]  ;;  %v1996_v17 = vld [vmem:[%s2393_s0] sm:$0x3f] }
   0x5   :  { %1718 = vmatprep.subr.bf16.mxu0 %v1865_v0  ;;  %1730 = vmatprep.subr.bf16.mxu1 %v1865_v0  ;;  %v2001_v18 = vld [vmem:[%s2393_s0 + $0x8] sm:$0x3f]  ;;  %v465_v19 = vmul.f32 %v1973_v12, %v1996_v17  ;;  %v435_v20 = vmul.f32 %v1978_v13, %v1996_v17  ;;  %v2011_v22 = vpack.c.bf16 %v48_v16, %v47_v15  ;;  %v176_v23 = vld [vmem:[%s2394_s1] sm:$0x3f]  ;;  %v1338_v24 = vld [vmem:[%s2394_s1 + $0x10] sm:$0x3f] }
   0x6   :  { %v449_v21 = vmul.f32 %v1983_v14, %v2001_v18  ;;  %179 = vperm.xlu0 %1863, %v176_v23   ;;  %343 = vperm.xlu1 %1864, %v1338_v24   ;;  %v1336_v27 = vld [vmem:[%s2394_s1 + $0x8] sm:$0x3f]  ;;  %v1340_v28 = vld [vmem:[%s2394_s1 + $0x18] sm:$0x3f]  ;;  %v2032_v29 = vld [vmem:[%s2392_s8 + $0x3] ss:$0 sm:$0xff] }
   0x7   :  { %v474_v26 = vrot.slane %v465_v19, 1  ;;  %v1331_v30 = vld [vmem:[%s2393_s0 + $0x10] sm:$0x3f]  ;;  %v2046_v32 = vld [vmem:[%s2392_s8 + $0x5] ss:$0 sm:$0xff]  ;;  %v60_v49 = vld [vmem:[%s2395_s10 + $0x8] sm:$0xff] }
   0x8   :  { %1720 = vmatpush3.bf16.msra.mxu0 %v1956_v8  ;;  %1732 = vmatpush3.bf16.msra.mxu1 %v1956_v8  ;;  %v457_v25 = vadd.f32 %v449_v21, %v435_v20  ;;  %v487_v33 = vmul.f32 %v2032_v29, %v1331_v30  ;;  %v2054_v34 = vld [vmem:[%s2392_s8 + $0x4] ss:$0 sm:$0xff]  ;;  %v1371_v36 = vld [vmem:[%s2394_s1 + $0x8] sm:$0x3f]  ;;  %v1332_v37 = vld [vmem:[%s2393_s0 + $0x18] sm:$0x3f]  ;;  %v519_v39 = vmul.f32 %v2046_v32, %v1331_v30 }
   0x9   :  { %1721 = vmatprep.subr.bf16.mxu0 %v1865_v0  ;;  %1733 = vmatprep.subr.bf16.mxu1 %v1865_v0  ;;  %v859_v35 = vld [vmem:[%s2394_s1] sm:$0x3f]  ;;  %v503_v40 = vmul.f32 %v2054_v34, %v1332_v37  ;;  %v2076_v41 = vld [vmem:[%s2392_s8 + $0x6] ss:$0 sm:$0xff]  ;;  %v1373_v42 = vld [vmem:[%s2394_s1 + $0x10] sm:$0x3f] }
   0xa   :  { %261 = vperm.xlu0 %1863, %v1336_v27   ;;  %425 = vperm.xlu1 %1864, %v1340_v28   ;;  %v476_v31 = vadd.f32 %v474_v26, %v457_v25  ;;  %v1375_v43 = vld [vmem:[%s2394_s1 + $0x18] sm:$0x3f]  ;;  %v541_v44 = vmul.f32 %v2076_v41, %v1996_v17  ;;  %v528_v45 = vrot.slane %v519_v39, 1  ;;  %v2093_v47 = vld [vmem:[%s2392_s8 + $0x7] ss:$0 sm:$0xff]  ;;  %v61_v55 = vld [vmem:[%s2395_s10 + $0x10] sm:$0xff] }
   0xb   :  { %v59_v48 = vld [vmem:[%s2395_s10] sm:$0xff]  ;;  %v563_v51 = vmul.f32 %v2093_v47, %v2001_v18  ;;  %v2110_v53 = vld [vmem:[%s2392_s8 + $0x8] ss:$0 sm:$0xff]  ;;  %v62_v56 = vld [vmem:[%s2395_s10 + $0x18] sm:$0xff] }
   0xc   :  { %1723 = vmatpush3.bf16.msra.mxu0 %v1968_v11  ;;  %1735 = vmatpush3.bf16.msra.mxu1 %v1968_v11  ;;  %v495_v38 = vadd.f32 %v487_v33, %v476_v31  ;;  %v550_v50 = vrot.slane %v541_v44, 2  ;;  %v1764_v54 = vpack.c.bf16 %v60_v49, %v59_v48  ;;  %v585_v57 = vmul.f32 %v2110_v53, %v1996_v17  ;;  %v63_v61 = vld [vmem:[%s2395_s10 + $0x20] sm:$0xff]  ;;  %v64_v62 = vld [vmem:[%s2395_s10 + $0x28] sm:$0xff]  ;;  %v65_v3 = vld [vmem:[%s2395_s10 + $0x30] sm:$0xff] }
   0xd   :  { %1724 = vmatprep.subr.bf16.mxu0 %v1865_v0  ;;  %1736 = vmatprep.subr.bf16.mxu1 %v1865_v0  ;;  %v572_v58 = vrot.slane %v563_v51, 2  ;;  %v1767_v60 = vpack.c.bf16 %v62_v56, %v61_v55  ;;  %v1770_v2 = vpack.c.bf16 %v64_v62, %v63_v61  ;;  %v66_v5 = vld [vmem:[%s2395_s10 + $0x38] sm:$0xff]  ;;  %v2147_v10 = vld [vmem:[%s2396_s9] ss:$0 sm:$0xff]  ;;  %v51_v19 = vld [vmem:[%s2397_s6 + $0x8] sm:$0xff] }
   0xe   :  { %862 = vperm.xlu0 %1863, %v859_v35   ;;  %943 = vperm.xlu1 %1864, %v1371_v36   ;;  %v511_v46 = vadd.f32 %v503_v40, %v495_v38  ;;  %v594_v63 = vrot.slane %v585_v57, 3  ;;  %v1773_v9 = vpack.c.bf16 %v66_v5, %v65_v3  ;;  %v2165_v16 = vld [vmem:[%s2393_s0 + $0x20] sm:$0x3f]  ;;  %v52_v21 = vld [vmem:[%s2397_s6 + $0x10] sm:$0xff]  ;;  %v53_v23 = vld [vmem:[%s2397_s6 + $0x18] sm:$0xff] }
   0xf   :  { %v2205_v24 = vpack.c.bf16 %v53_v23, %v52_v21  ;;  %v54_v25 = vld [vmem:[%s2397_s6 + $0x20] sm:$0xff]  ;;  %v55_v26 = vld [vmem:[%s2397_s6 + $0x28] sm:$0xff]  ;;  %v56_v28 = vld [vmem:[%s2397_s6 + $0x30] sm:$0xff]  ;;  %v1115_v35 = vmul.f32 %v2165_v16, %v1973_v12  ;;  %v1109_v36 = vmul.f32 %v2165_v16, %v1978_v13  ;;  %v1143_v44 = vmul.f32 %v2165_v16, %v2076_v41 }
  0x10   :  { %1726 = vmatpush3.bf16.msra.mxu0 %v2011_v22  ;;  %1738 = vmatpush3.bf16.msra.mxu1 %v2011_v22  ;;  %v530_v52 = vadd.f32 %v528_v45, %v511_v46  ;;  %v2215_v27 = vpack.c.bf16 %v55_v26, %v54_v25  ;;  %v2232_v33 = vld [vmem:[%s2393_s0 + $0x28] sm:$0x3f]  ;;  %v2247_v12 = vld [vmem:[%s2393_s0 + $0x38] sm:$0x3f]  ;;  %v2256_v41 = vld [vmem:[%s2398_s3] ss:$0 sm:$0xff] }
  0x11   :  { %1739 = vmatprep.subr.bf16.mxu0 %v1865_v0  ;;  %1751 = vmatprep.subr.bf16.mxu1 %v1865_v0  ;;  %v1118_v38 = vrot.slane %v1115_v35, 1  ;;  %v1146_v46 = vrot.slane %v1143_v44, 2  ;;  %v2273_v62 = vld [vmem:[%s2399_s4 + $0x2] ss:$0 sm:$0xff]  ;;  %v2283_v35 = vld [vmem:[%s2399_s4 + $0x3] ss:$0 sm:$0xff] }
  0x12   :  { %1024 = vperm.xlu0 %1863, %v1373_v42   ;;  %1105 = vperm.xlu1 %1864, %v1375_v43   ;;  %v552_v59 = vadd.f32 %v550_v50, %v530_v52  ;;  %v2303_v44 = vld [vmem:[%s2399_s4 + $0x7] ss:$0 sm:$0xff] }
  0x13   :  { %1504 = vmatmul.mubr.msk.f32.vlgmr.msra.gmra.mrb[0].mxu0 %vm101_vm1, %v1996_v17  ;;  %1523 = vmatmul.mubr.msk.f32.vlgmr.msra.gmra.mrb[0].mxu1 %vm101_vm1, %v2001_v18  ;;  %v1367_v17 = vld [vmem:[%s2393_s0 + $0x30] sm:$0x3f]  ;;  %v50_v18 = vld [vmem:[%s2397_s6] sm:$0xff] }
  0x14   :  { %1741 = vmatpush3.bf16.msra.mxu0 %v1945_v4  ;;  %1753 = vmatpush3.bf16.msra.mxu1 %v1945_v4  ;;  %v574_v1 = vadd.f32 %v572_v58, %v552_v59  ;;  %v2195_v20 = vpack.c.bf16 %v51_v19, %v50_v18  ;;  %v1125_v40 = vmul.f32 %v1367_v17, %v2032_v29  ;;  %v2263_v59 = vld [vmem:[%s2399_s4] ss:$0 sm:$0xff] }
  0x15   :  { %1742 = vmatprep.subr.bf16.mxu0 %v1865_v0  ;;  %1754 = vmatprep.subr.bf16.mxu1 %v1865_v0  ;;  %v1133_v42 = vmul.f32 %v1367_v17, %v2046_v32 }
  0x16   :  { %1541 = vmatprep.mubr.msk.f32.mxu0 %vm1866_vm0, %v1867_v6  ;;  %1560 = vmatprep.mubr.msk.f32.mxu1 %vm1866_vm0, %v1867_v6  ;;  %v596_v7 = vadd.f32 %v594_v63, %v574_v1 }
  0x17   :  { %v1136_v45 = vrot.slane %v1133_v42, 1 }
  0x18   :  { %1744 = vmatpush3.bf16.msra.mxu0 %v1956_v8  ;;  %1756 = vmatpush3.bf16.msra.mxu1 %v1956_v8  ;;  %v607_v15 = vadd.f32 %v2147_v10, %v596_v7 }
  0x19   :  { %1745 = vmatprep.subr.bf16.mxu0 %v1865_v0  ;;  %1757 = vmatprep.subr.bf16.mxu1 %v1865_v0 }
  0x1c   :  { %1747 = vmatpush3.bf16.msra.mxu0 %v1968_v11  ;;  %1759 = vmatpush3.bf16.msra.mxu1 %v1968_v11 }
  0x1d   :  { %1748 = vmatprep.subr.bf16.mxu0 %v1865_v0  ;;  %1760 = vmatprep.subr.bf16.mxu1 %v1865_v0 }
  0x20   :  { %1750 = vmatpush3.bf16.msra.mxu0 %v2011_v22  ;;  %1762 = vmatpush3.bf16.msra.mxu1 %v2011_v22 }
  0x21   :  { %1763 = vmatprep.subr.bf16.mxu0 %v1865_v0  ;;  %1775 = vmatprep.subr.bf16.mxu1 %v1865_v0 }
  0x23   :  { %1542 = vmatmul.mubr.msk.f32.vlgmr.msra.gmra.mrb[2].mxu0 %vm101_vm1, %v1331_v30  ;;  %1561 = vmatmul.mubr.msk.f32.vlgmr.msra.gmra.mrb[2].mxu1 %vm101_vm1, %v1332_v37  ;;  %v57_v30 = vld [vmem:[%s2397_s6 + $0x38] sm:$0xff]  ;;  %v1111_v37 = vmul.f32 %v2232_v33, %v1983_v14  ;;  %v1129_v14 = vmul.f32 %v2247_v12, %v2054_v34 }
  0x24   :  { %1765 = vmatpush3.bf16.msra.mxu0 %v1764_v54  ;;  %1579 = vmatprep.mubr.msk.f32.mxu0 %vm1866_vm0, %v1867_v6  ;;  %v2225_v31 = vpack.c.bf16 %v57_v30, %v56_v28 }
  0x25   :  { %1766 = vmatprep.subr.bf16.mxu0 %v1865_v0  ;;  %1598 = vmatprep.mubr.msk.f32.mxu1 %vm1866_vm0, %v1867_v6  ;;  %v1113_v39 = vadd.f32 %v1111_v37, %v1109_v36  ;;  %v2288_v36 = vld [vmem:[%s2399_s4 + $0x5] ss:$0 sm:$0xff] }
  0x26   :  { %1777 = vmatpush3.bf16.msra.mxu1 %v2195_v20 }
  0x27   :  { %1778 = vmatprep.subr.bf16.mxu1 %v1865_v0  ;;  %v1120_v43 = vadd.f32 %v1118_v38, %v1113_v39  ;;  %v1354_v39 = vld [vmem:[%s2399_s4 + $0x6] ss:$0 sm:$0xff] }
  0x28   :  { %1768 = vmatpush3.bf16.msra.mxu0 %v1767_v60 }
  0x29   :  { %1769 = vmatprep.subr.bf16.mxu0 %v1865_v0  ;;  %v1127_v13 = vadd.f32 %v1125_v40, %v1120_v43  ;;  %v2296_v40 = vld [vmem:[%s2399_s4 + $0x4] ss:$0 sm:$0xff] }
  0x2a   :  { %1780 = vmatpush3.bf16.msra.mxu1 %v2205_v24 }
  0x2b   :  { %1781 = vmatprep.subr.bf16.mxu1 %v1865_v0  ;;  %v1131_v48 = vadd.f32 %v1129_v14, %v1127_v13 }
  0x2c   :  { %1771 = vmatpush3.bf16.msra.mxu0 %v1770_v2 }
  0x2d   :  { %1772 = vmatprep.subr.bf16.mxu0 %v1865_v0  ;;  %v1138_v49 = vadd.f32 %v1136_v45, %v1131_v48 }
  0x2e   :  { %1783 = vmatpush3.bf16.msra.mxu1 %v2215_v27 }
  0x2f   :  { %1784 = vmatprep.subr.bf16.mxu1 %v1865_v0  ;;  %v2251_v29 = vadd.f32 %v1146_v46, %v1138_v49  ;;  %v1358_v46 = vld [vmem:[%s2399_s4 + $0x8] ss:$0 sm:$0xff] }
  0x30   :  { %1774 = vmatpush3.bf16.msra.mxu0 %v1773_v9 }
  0x31   :  { %1787 = vmatprep.subr.bf16.mxu0 %v1865_v0 }
  0x32   :  { %1786 = vmatpush3.bf16.msra.mxu1 %v2225_v31 }
  0x33   :  { %1580 = vmatmul.mubr.msk.f32.vlgmr.msra.gmra.mrb[4].mxu0 %vm101_vm1, %v607_v15  ;;  %1799 = vmatprep.subr.bf16.mxu1 %v1865_v0 }
  0x34   :  { %1789 = vmatpush3.bf16.msra.mxu0 %v1945_v4  ;;  %1617 = vmatprep.mubr.msk.f32.mxu0 %vm1866_vm0, %v1867_v6 }
  0x35   :  { %1790 = vmatprep.subr.bf16.mxu0 %v1865_v0 }
  0x38   :  { %1792 = vmatpush3.bf16.msra.mxu0 %v1956_v8 }
  0x39   :  { %1793 = vmatprep.subr.bf16.mxu0 %v1865_v0 }
  0x3c   :  { %1795 = vmatpush3.bf16.msra.mxu0 %v1968_v11 }
  0x3d   :  { %1796 = vmatprep.subr.bf16.mxu0 %v1865_v0 }
  0x40   :  { %1798 = vmatpush3.bf16.msra.mxu0 %v2011_v22 }
  0x41   :  { %1811 = vmatprep.subr.bf16.mxu0 %v1865_v0 }
  0x43   :  { %1618 = vmatmul.mubr.msk.f32.vlgmr.msra.gmra.mrb[6].mxu0 %vm101_vm1, %v2165_v16 }
  0x44   :  { %1813 = vmatpush3.bf16.msra.mxu0 %v1945_v4  ;;  %1655 = vmatprep.mubr.msk.f32.mxu0 %vm1866_vm0, %v1867_v6 }
  0x45   :  { %1814 = vmatprep.subr.bf16.mxu0 %v1865_v0 }
  0x48   :  { %1816 = vmatpush3.bf16.msra.mxu0 %v1956_v8 }
  0x49   :  { %1817 = vmatprep.subr.bf16.mxu0 %v1865_v0 }
  0x4c   :  { %1819 = vmatpush3.bf16.msra.mxu0 %v1968_v11 }
  0x4d   :  { %1820 = vmatprep.subr.bf16.mxu0 %v1865_v0 }
  0x50   :  { %1822 = vmatpush3.bf16.msra.mxu0 %v2011_v22 }
  0x51   :  { %1835 = vmatprep.subr.bf16.mxu0 %v1865_v0 }
  0x53   :  { %1656 = vmatmul.mubr.msk.f32.vlgmr.msra.gmra.mrb[8].mxu0 %vm101_vm1, %v1367_v17 }
  0x54   :  { %1837 = vmatpush3.bf16.msra.mxu0 %v1764_v54  ;;  %1693 = vmatprep.mubr.msk.f32.mxu0 %vm1866_vm0, %v1867_v6 }
  0x55   :  { %1838 = vmatprep.subr.bf16.mxu0 %v1865_v0 }
  0x58   :  { %1840 = vmatpush3.bf16.msra.mxu0 %v1767_v60  ;;  %v2268_v60 = vld [vmem:[%s2399_s4 + $0x1] ss:$0 sm:$0xff] }
  0x59   :  { %1841 = vmatprep.subr.bf16.mxu0 %v1865_v0 }
  0x5c   :  { %1843 = vmatpush3.bf16.msra.mxu0 %v1770_v2 }
  0x5d   :  { %1844 = vmatprep.subr.bf16.mxu0 %v1865_v0 }
  0x60   :  { %1846 = vmatpush3.bf16.msra.mxu0 %v1773_v9 }
  0x85   :  { %v180_v32 = vpop.permute.xlu0 %179  ;;  %v344_v15 = vpop.permute.xlu1 %343 }
  0x89   :  { %v262_v34 = vpop.permute.xlu0 %261  ;;  %v426_v30 = vpop.permute.xlu1 %425 }
  0xe6   :  { %v171_v50 = vpop.f32.mrb[0].mxu0  ;;  %v252_v51 = vpop.f32.mrb[0].mxu1 }
  0xe7   :  { %v172_v52 = vadd.f32 %v2256_v41, %v171_v50  ;;  %v1505_v54 = vpop.f32.mrb[1].mxu0  ;;  %v253_v55 = vadd.f32 %v2256_v41, %v252_v51  ;;  %v1524_v56 = vpop.f32.mrb[1].mxu1 }
  0xe9   :  { %v175_v57 = vmax.f32 %v172_v52, 0.0  ;;  %v256_v58 = vmax.f32 %v253_v55, 0.0 }
  0xeb   :  { %v182_v61 = vmul.f32 %v180_v32, %v175_v57  ;;  %v264_v63 = vmul.f32 %v262_v34, %v256_v58 }
  0xed   :  { %v442_v1 = vmul.f32 %v2263_v59, %v182_v61  ;;  %v456_v2 = vmul.f32 %v2268_v60, %v264_v63  ;;  %v472_v3 = vmul.f32 %v2273_v62, %v182_v61  ;;  %v548_v45 = vmul.f32 %v1354_v39, %v182_v61 }
  0xee   :  { %v570_v48 = vmul.f32 %v2303_v44, %v264_v63  ;;  %v592_v51 = vmul.f32 %v1358_v46, %v182_v61 }
  0xef   :  { %v458_v5 = vadd.f32 %v456_v2, %v442_v1  ;;  %v478_v7 = vrot.slane %v472_v3, 1  ;;  %v554_v50 = vrot.slane %v548_v45, 2  ;;  %v2315_v1 = vld [vmem:[%s2400_s5] ss:$0 sm:$0xff] }
  0xf0   :  { %v576_v54 = vrot.slane %v570_v48, 2  ;;  %v598_v34 = vrot.slane %v592_v51, 3 }
  0xf1   :  { %v480_v9 = vadd.f32 %v478_v7, %v458_v5 }
  0xf6   :  { %v334_v17 = vpop.f32.mrb[2].mxu0  ;;  %v416_v18 = vpop.f32.mrb[2].mxu1 }
  0xf7   :  { %v335_v19 = vadd.f32 %v2256_v41, %v334_v17  ;;  %v417_v21 = vadd.f32 %v2256_v41, %v416_v18  ;;  %v1543_v23 = vpop.f32.mrb[3].mxu0  ;;  %v1562_v25 = vpop.f32.mrb[3].mxu1 }
  0xf9   :  { %v338_v26 = vmax.f32 %v335_v19, 0.0  ;;  %v420_v28 = vmax.f32 %v417_v21, 0.0 }
  0xfb   :  { %v346_v37 = vmul.f32 %v344_v15, %v338_v26  ;;  %v428_v38 = vmul.f32 %v426_v30, %v420_v28 }
  0xfd   :  { %v494_v42 = vmul.f32 %v2283_v35, %v346_v37  ;;  %v526_v43 = vmul.f32 %v2288_v36, %v346_v37  ;;  %v510_v14 = vmul.f32 %v2296_v40, %v428_v38 }
  0xff   :  { %v496_v13 = vadd.f32 %v494_v42, %v480_v9  ;;  %v532_v49 = vrot.slane %v526_v43, 1  ;;  %v863_v9 = vpop.permute.xlu0 %862 }
 0x101   :  { %v512_v32 = vadd.f32 %v510_v14, %v496_v13 }
 0x103   :  { %v534_v52 = vadd.f32 %v532_v49, %v512_v32  ;;  %v1025_v26 = vpop.permute.xlu0 %1024 }
 0x105   :  { %v556_v55 = vadd.f32 %v554_v50, %v534_v52 }
 0x106   :  { %v2310_v56 = vpop.f32.mrb[4].mxu0 }
 0x107   :  { %v578_v57 = vadd.f32 %v576_v54, %v556_v55  ;;  %v1581_v58 = vpop.f32.mrb[5].mxu0 }
 0x109   :  { %v600_v2 = vadd.f32 %v598_v34, %v578_v57 }
 0x10b   :  { %v614_v63 = vadd.f32 %v2315_v1, %v600_v2 }
 0x10d   :  { %1599 = vmatmul.mubr.msk.f32.vlgmr.msra.gmra.mrb[4].mxu1 %vm101_vm1, %v614_v63 }
 0x10e   :  { %1801 = vmatpush3.bf16.msra.mxu1 %v1945_v4  ;;  %1636 = vmatprep.mubr.msk.f32.mxu1 %vm1866_vm0, %v1867_v6 }
 0x10f   :  { %1802 = vmatprep.subr.bf16.mxu1 %v1865_v0 }
 0x112   :  { %1804 = vmatpush3.bf16.msra.mxu1 %v1956_v8 }
 0x113   :  { %1805 = vmatprep.subr.bf16.mxu1 %v1865_v0 }
 0x116   :  { %1807 = vmatpush3.bf16.msra.mxu1 %v1968_v11  ;;  %v854_v61 = vpop.f32.mrb[6].mxu0 }
 0x117   :  { %v855_v3 = vadd.f32 %v2256_v41, %v854_v61  ;;  %1808 = vmatprep.subr.bf16.mxu1 %v1865_v0  ;;  %v1619_v5 = vpop.f32.mrb[7].mxu0 }
 0x119   :  { %v858_v7 = vmax.f32 %v855_v3, 0.0 }
 0x11a   :  { %1810 = vmatpush3.bf16.msra.mxu1 %v2011_v22 }
 0x11b   :  { %v865_v15 = vmul.f32 %v863_v9, %v858_v7  ;;  %1823 = vmatprep.subr.bf16.mxu1 %v1865_v0 }
 0x11d   :  { %v1116_v17 = vmul.f32 %v2273_v62, %v865_v15  ;;  %v2331_v18 = vmul.f32 %v1354_v39, %v865_v15  ;;  %v2333_v19 = vmul.f32 %v1358_v46, %v865_v15  ;;  %1637 = vmatmul.mubr.msk.f32.vlgmr.msra.gmra.mrb[6].mxu1 %vm101_vm1, %v2232_v33  ;;  %v1110_v21 = vmul.f32 %v2263_v59, %v865_v15  ;;  %v944_v39 = vpop.permute.xlu1 %943 }
 0x11e   :  { %1825 = vmatpush3.bf16.msra.mxu1 %v1945_v4  ;;  %1674 = vmatprep.mubr.msk.f32.mxu1 %vm1866_vm0, %v1867_v6 }
 0x11f   :  { %1826 = vmatprep.subr.bf16.mxu1 %v1865_v0  ;;  %v1122_v13 = vrot.slane %v1116_v17, 1  ;;  %v1150_v57 = vrot.slane %v2331_v18, 2  ;;  %v1170_v63 = vrot.slane %v2333_v19, 3 }
 0x121   :  { %v1106_v51 = vpop.permute.xlu1 %1105 }
 0x122   :  { %1828 = vmatpush3.bf16.msra.mxu1 %v1956_v8 }
 0x123   :  { %1829 = vmatprep.subr.bf16.mxu1 %v1865_v0 }
 0x126   :  { %1831 = vmatpush3.bf16.msra.mxu1 %v1968_v11  ;;  %v1016_v62 = vpop.f32.mrb[8].mxu0  ;;  %v1153_v11 = vmul.f32 %v2232_v33, %v2093_v47  ;;  %v1363_v47 = vld [vmem:[%s2402_s7] ss:$0 sm:$0xff] }
 0x127   :  { %v1017_v23 = vadd.f32 %v2256_v41, %v1016_v62  ;;  %1832 = vmatprep.subr.bf16.mxu1 %v1865_v0  ;;  %v1657_v25 = vpop.f32.mrb[9].mxu0 }
 0x129   :  { %v1020_v59 = vmax.f32 %v1017_v23, 0.0 }
 0x12a   :  { %1834 = vmatpush3.bf16.msra.mxu1 %v2011_v22  ;;  %v1163_v22 = vmul.f32 %v2165_v16, %v2110_v53 }
 0x12b   :  { %v1027_v4 = vmul.f32 %v1025_v26, %v1020_v59  ;;  %1847 = vmatprep.subr.bf16.mxu1 %v1865_v0 }
 0x12d   :  { %v1126_v28 = vmul.f32 %v2283_v35, %v1027_v4  ;;  %v1134_v8 = vmul.f32 %v2288_v36, %v1027_v4  ;;  %1675 = vmatmul.mubr.msk.f32.vlgmr.msra.gmra.mrb[8].mxu1 %vm101_vm1, %v2247_v12 }
 0x12e   :  { %1849 = vmatpush3.bf16.msra.mxu1 %v2195_v20  ;;  %1712 = vmatprep.mubr.msk.f32.mxu1 %vm1866_vm0, %v1867_v6  ;;  %v1156_v20 = vrot.slane %v1153_v11, 2  ;;  %v1166_v6 = vrot.slane %v1163_v22, 3 }
 0x12f   :  { %1850 = vmatprep.subr.bf16.mxu1 %v1865_v0  ;;  %v1140_v55 = vrot.slane %v1134_v8, 1 }
 0x130   :  { %v1158_v12 = vadd.f32 %v1156_v20, %v2251_v29 }
 0x132   :  { %1852 = vmatpush3.bf16.msra.mxu1 %v2205_v24  ;;  %v1168_v30 = vadd.f32 %v1166_v6, %v1158_v12 }
 0x133   :  { %1853 = vmatprep.subr.bf16.mxu1 %v1865_v0 }
 0x134   :  { %v1173_v24 = vadd.f32 %v2147_v10, %v1168_v30 }
 0x136   :  { %1855 = vmatpush3.bf16.msra.mxu1 %v2215_v27  ;;  %1694 = vmatmul.mubr.msk.f32.vlgmr.msra.gmra.mrb[10].mxu0 %vm101_vm1, %v1173_v24 }
 0x137   :  { %1856 = vmatprep.subr.bf16.mxu1 %v1865_v0  ;;  %v1361_v0 = vld [vmem:[%s2401_s11] ss:$0 sm:$0xff] }
 0x138   :  { %v691_v27 = vadd.f32 %v1361_v0, %v2310_v56 }
 0x13a   :  { %1858 = vmatpush3.bf16.msra.mxu1 %v2225_v31  ;;  %v694_v33 = vmax.f32 %v691_v27, 0.0 }
 0x1e0   :  { %v770_v53 = vpop.f32.mrb[4].mxu1 }
 0x1e1   :  { %v771_v16 = vadd.f32 %v1363_v47, %v770_v53  ;;  %v1600_v31 = vpop.f32.mrb[5].mxu1 }
 0x1e3   :  { %v774_v29 = vmax.f32 %v771_v16, 0.0 }
 0x1e5   :  { %v775_v35 = vadd.f32 %v774_v29, %v694_v33 }
 0x1e7   :  { %776 = vst [vmem:[%s2403_s12] sm:$0x3] %v775_v35 }
 0x1f0   :  { %v935_v10 = vpop.f32.mrb[6].mxu1 }
 0x1f1   :  { %v936_v36 = vadd.f32 %v2256_v41, %v935_v10  ;;  %v1638_v37 = vpop.f32.mrb[7].mxu1 }
 0x1f3   :  { %v939_v38 = vmax.f32 %v936_v36, 0.0 }
 0x1f5   :  { %v946_v42 = vmul.f32 %v944_v39, %v939_v38 }
 0x1f7   :  { %v1112_v43 = vmul.f32 %v2268_v60, %v946_v42  ;;  %v1154_v56 = vmul.f32 %v2303_v44, %v946_v42 }
 0x1f9   :  { %v1114_v45 = vadd.f32 %v1112_v43, %v1110_v21  ;;  %v1160_v58 = vrot.slane %v1154_v56, 2 }
 0x1fb   :  { %v1124_v14 = vadd.f32 %v1122_v13, %v1114_v45 }
 0x1fd   :  { %v1128_v46 = vadd.f32 %v1126_v28, %v1124_v14 }
 0x200   :  { %v1097_v48 = vpop.f32.mrb[8].mxu1 }
 0x201   :  { %v1098_v49 = vadd.f32 %v2256_v41, %v1097_v48  ;;  %v1676_v32 = vpop.f32.mrb[9].mxu1 }
 0x203   :  { %v1101_v50 = vmax.f32 %v1098_v49, 0.0 }
 0x205   :  { %v1108_v52 = vmul.f32 %v1106_v51, %v1101_v50 }
 0x207   :  { %v1130_v54 = vmul.f32 %v2296_v40, %v1108_v52 }
 0x209   :  { %v1132_v34 = vadd.f32 %v1130_v54, %v1128_v46  ;;  %v1244_v5 = vpop.f32.mrb[10].mxu0 }
 0x20a   :  { %v1695_v7 = vpop.f32.mrb[11].mxu0  ;;  %v1245_v40 = vadd.f32 %v1361_v0, %v1244_v5 }
 0x20b   :  { %v1142_v60 = vadd.f32 %v1140_v55, %v1132_v34 }
 0x20c   :  { %v1248_v15 = vmax.f32 %v1245_v40, 0.0 }
 0x20d   :  { %v1152_v2 = vadd.f32 %v1150_v57, %v1142_v60 }
 0x20f   :  { %v1162_v61 = vadd.f32 %v1160_v58, %v1152_v2 }
 0x211   :  { %v1172_v3 = vadd.f32 %v1170_v63, %v1162_v61 }
 0x213   :  { %v1174_v41 = vadd.f32 %v2315_v1, %v1172_v3 }
 0x215   :  { %1713 = vmatmul.mubr.msk.f32.vlgmr.msra.gmra.mrb[10].mxu1 %vm101_vm1, %v1174_v41 }
 0x2e8   :  { %v1318_v9 = vpop.f32.mrb[10].mxu1 }
 0x2e9   :  { %v1319_v44 = vadd.f32 %v1363_v47, %v1318_v9  ;;  %v1714_v17 = vpop.f32.mrb[11].mxu1 }
 0x2eb   :  { %v1322_v21 = vmax.f32 %v1319_v44, 0.0 }
 0x2ed   :  { %v1323_v18 = vadd.f32 %v1322_v21, %v1248_v15 }
 0x2ef   :  { %1378 = vst [vmem:[%s2403_s12 + $0x2] sm:$0x3] %v1323_v18 }

</bundles_post_ra>
